<compile_context>
chip_gen: v5e
topology: v5e:2x2
jax: 0.10.0
libtpu: 0.0.40
codegen_flags: <defaults>
</compile_context>

<pallas_src>
import functools

import jax
import jax.numpy as jnp
from jax.experimental import pallas as pl
from jax.experimental.pallas import tpu as pltpu


# ---------------------------------------------------------------------------
# Small helpers
# ---------------------------------------------------------------------------
def _round_up(n, m):
    return (n + m - 1) // m * m


def _sigmoid(x):
    # tanh-based sigmoid: numerically stable, maps onto the EUP slot.
    return 0.5 * (jnp.tanh(0.5 * x) + 1.0)


def _pick_t_chunk(S, target=16):
    for cand in range(min(S, target), 0, -1):
        if S % cand == 0:
            return cand
    return S


def _pick_block_b(B):
    if B <= 8 or B % 8 != 0:
        return B
    # Prefer >= 2 sublane-aligned batch tiles (megacore sharding), <= 256 rows.
    hi = min(B // 2, 256)
    hi -= hi % 8
    for cand in range(hi, 7, -8):
        if B % cand == 0:
            return cand
    return B


def _default_vmem_limit():
    # Size the scoped-VMEM budget per chip (v5e/v6e: 128 MiB, v7x: 64 MiB),
    # leaving headroom for double buffers; fall back to a safe 64 MiB.
    try:
        cap = int(pltpu.get_tpu_info().vmem_capacity_bytes)
        return min((cap * 3) // 4, 96 * 1024 * 1024)
    except Exception:
        return 64 * 1024 * 1024


# ---------------------------------------------------------------------------
# Weight preparation (transpose to lane-dense gate layout + pad H -> Hp)
# ---------------------------------------------------------------------------
def _pad_gate_cols(w, H, Hp):
    """(rows, 4H) with gate blocks of width H -> (rows, 4Hp), each gate padded."""
    if Hp == H:
        return w
    rows = w.shape[0]
    w4 = w.reshape(rows, 4, H)
    out = jnp.zeros((rows, 4, Hp), w.dtype).at[:, :, :H].set(w4)
    return out.reshape(rows, 4 * Hp)


def _prep_whh(w_hh, H, Hp):
    """PyTorch (4H, H) recurrent weight -> padded, transposed (Hp, 4Hp)."""
    wt = _pad_gate_cols(jnp.transpose(w_hh), H, Hp)           # (H, 4Hp)
    if Hp == H:
        return wt
    return jnp.zeros((Hp, 4 * Hp), wt.dtype).at[:H, :].set(wt)


def _prep_bias(b_ih, b_hh, H, Hp):
    return _pad_gate_cols((b_ih + b_hh).reshape(1, 4 * H), H, Hp)


def _prep_wih_parts(w_ih, H, Hp, part_dims):
    """PyTorch (4H, Din) input weight -> list of (Dp_padded, 4Hp), one per part."""
    wt = _pad_gate_cols(jnp.transpose(w_ih), H, Hp)           # (Din, 4Hp)
    parts = []
    r = 0
    for d, dp in part_dims:
        blk = wt[r:r + d]
        if dp != d:
            blk = jnp.zeros((dp, 4 * Hp), wt.dtype).at[:d, :].set(blk)
        parts.append(blk)
        r += d
    return parts


# ---------------------------------------------------------------------------
# Fused bidirectional LSTM layer kernel (one grid step = one (batch, time) tile)
# ---------------------------------------------------------------------------
def _bilstm_layer_kernel(*args, num_parts, t_chunk, hp, final_head, unroll):
    P = num_parts
    T = t_chunk
    G = 4 * hp

    n_in = 4 * P + 4 + (2 if final_head else 0)
    in_refs = args[:n_in]
    rest = args[n_in:]
    if final_head:
        head_ref = rest[0]
        pf_ref, pb_ref, hf_ref, cf_ref, hb_ref, cb_ref = rest[1:]
    else:
        of_ref, ob_ref = rest[0], rest[1]
        pf_ref, pb_ref, hf_ref, cf_ref, hb_ref, cb_ref = rest[2:]

    xf_refs = in_refs[0:P]                 # forward-time chunk views
    xr_refs = in_refs[P:2 * P]             # reversed-time chunk views
    wf_refs = in_refs[2 * P:3 * P]         # W_ih parts, forward direction
    wb_refs = in_refs[3 * P:4 * P]         # W_ih parts, backward direction
    whh_f_ref, whh_b_ref, bf_ref, bb_ref = in_refs[4 * P:4 * P + 4]
    if final_head:
        wfc_ref, bfc_ref = in_refs[4 * P + 4], in_refs[4 * P + 5]

    tc = pl.program_id(1)
    nc = pl.num_programs(1)
    TB = hf_ref.shape[0]

    # --- carried state: reset at the first time chunk of every batch tile ----
    @pl.when(tc == 0)
    def _():
        z = jnp.zeros((TB, hp), jnp.float32)
        hf_ref[...] = z
        cf_ref[...] = z
        hb_ref[...] = z
        cb_ref[...] = z

    # --- bulk input projection for this chunk, bias folded in (both dirs) ----
    def bulk_proj(x_refs, w_refs, b_ref):
        acc = jnp.dot(x_refs[0][...].reshape(T * TB, x_refs[0].shape[-1]),
                      w_refs[0][...], preferred_element_type=jnp.float32)
        for p in range(1, P):
            acc = acc + jnp.dot(
                x_refs[p][...].reshape(T * TB, x_refs[p].shape[-1]),
                w_refs[p][...], preferred_element_type=jnp.float32)
        acc = acc + b_ref[...].astype(jnp.float32)
        return acc.reshape(T, TB, G)

    pf_ref[...] = bulk_proj(xf_refs, wf_refs, bf_ref)
    pb_ref[...] = bulk_proj(xr_refs, wb_refs, bb_ref)

    whh_f = whh_f_ref[...]
    whh_b = whh_b_ref[...]

    def gate_update(g, c):
        i = _sigmoid(g[:, 0 * hp:1 * hp])
        f = _sigmoid(g[:, 1 * hp:2 * hp])
        cand = jnp.tanh(g[:, 2 * hp:3 * hp])
        o = _sigmoid(g[:, 3 * hp:4 * hp])
        c_new = f * c + i * cand
        h_new = o * jnp.tanh(c_new)
        return h_new, c_new

    def step(j, carry):
        hf, cf, hb, cb = carry
        jr = T - 1 - j
        # Forward direction: local step j == global time tc*T + j.
        gf = pf_ref[j] + jnp.dot(hf, whh_f, preferred_element_type=jnp.float32)
        hf, cf = gate_update(gf, cf)
        # Backward direction: local row jr of the reversed chunk == global
        # time S-1-(tc*T+j); its output lands at the same row of the reversed
        # output block, i.e. in natural time order in HBM.
        gb = pb_ref[jr] + jnp.dot(hb, whh_b, preferred_element_type=jnp.float32)
        hb, cb = gate_update(gb, cb)
        if not final_head:
            of_ref[j] = hf.astype(of_ref.dtype)
            ob_ref[jr] = hb.astype(ob_ref.dtype)
        return hf, cf, hb, cb

    hf, cf, hb, cb = jax.lax.fori_loop(
        0, T, step, (hf_ref[...], cf_ref[...], hb_ref[...], cb_ref[...]),
        unroll=unroll)

    hf_ref[...] = hf
    cf_ref[...] = cf
    hb_ref[...] = hb
    cb_ref[...] = cb

    if final_head:
        # After the last chunk: hf == h_fwd(S-1), hb == h_bwd(0). Fused head:
        # sigmoid(cat(hf, hb) @ W_fc.T + b_fc), padded lanes/rows are zero.
        @pl.when(tc == nc - 1)
        def _():
            logits = (
                jnp.dot(hf, wfc_ref[:hp, :], preferred_element_type=jnp.float32)
                + jnp.dot(hb, wfc_ref[hp:, :], preferred_element_type=jnp.float32)
                + bfc_ref[...].astype(jnp.float32))
            head_ref[...] = _sigmoid(logits).astype(head_ref.dtype)


# ---------------------------------------------------------------------------
# Layer wrapper
# ---------------------------------------------------------------------------
def _bilstm_layer(x_parts, part_dims, layer_p, *, H, Hp, t_chunk, block_b,
                  out_dtype, vmem_limit_bytes, unroll,
                  final_head=False, w_fc=None, b_fc=None, Op=None):
    S, B = x_parts[0].shape[0], x_parts[0].shape[1]
    P = len(x_parts)
    assert S % t_chunk == 0, "sequence length must divide into time chunks"
    assert B % block_b == 0, "batch must divide into batch tiles"
    assert block_b == B or block_b % 8 == 0, "partial batch tiles must be sublane-aligned"
    nc = S // t_chunk
    nbt = B // block_b
    T = t_chunk

    wf_parts = _prep_wih_parts(layer_p["w_ih_fwd"], H, Hp, part_dims)
    wb_parts = _prep_wih_parts(layer_p["w_ih_bwd"], H, Hp, part_dims)
    whh_f = _prep_whh(layer_p["w_hh_fwd"], H, Hp)
    whh_b = _prep_whh(layer_p["w_hh_bwd"], H, Hp)
    bias_f = _prep_bias(layer_p["b_ih_fwd"], layer_p["b_hh_fwd"], H, Hp)
    bias_b = _prep_bias(layer_p["b_ih_bwd"], layer_p["b_hh_bwd"], H, Hp)

    def fwd_map(bt, tc):
        return (tc, bt, 0)

    def rev_map(bt, tc):
        return (nc - 1 - tc, bt, 0)

    def const2_map(bt, tc):
        return (0, 0)

    ins, in_specs = [], []
    for xp in x_parts:                                     # forward-time views
        ins.append(xp)
        in_specs.append(pl.BlockSpec((T, block_b, xp.shape[-1]), fwd_map))
    for xp in x_parts:                                     # reversed-time views
        ins.append(xp)
        in_specs.append(pl.BlockSpec((T, block_b, xp.shape[-1]), rev_map))
    for w in wf_parts + wb_parts + [whh_f, whh_b, bias_f, bias_b]:
        ins.append(w)                                      # VMEM-resident weights
        in_specs.append(pl.BlockSpec(w.shape, const2_map))

    if final_head:
        O = w_fc.shape[0]
        wfc_t = jnp.transpose(w_fc)                        # (2H, O)
        wfc_p = jnp.zeros((2 * Hp, Op), wfc_t.dtype)
        wfc_p = wfc_p.at[:H, :O].set(wfc_t[:H])
        wfc_p = wfc_p.at[Hp:Hp + H, :O].set(wfc_t[H:])
        bfc_p = jnp.zeros((1, Op), b_fc.dtype).at[0, :O].set(b_fc)
        for w in (wfc_p, bfc_p):
            ins.append(w)
            in_specs.append(pl.BlockSpec(w.shape, const2_map))
        out_shape = jax.ShapeDtypeStruct((B, Op), out_dtype)
        out_specs = pl.BlockSpec((block_b, Op), lambda bt, tc: (bt, 0))
    else:
        out_shape = (jax.ShapeDtypeStruct((S, B, Hp), out_dtype),
                     jax.ShapeDtypeStruct((S, B, Hp), out_dtype))
        out_specs = (pl.BlockSpec((T, block_b, Hp), fwd_map),
                     pl.BlockSpec((T, block_b, Hp), rev_map))

    scratch_shapes = [
        pltpu.VMEM((T, block_b, 4 * Hp), jnp.float32),     # fwd chunk input proj
        pltpu.VMEM((T, block_b, 4 * Hp), jnp.float32),     # bwd chunk input proj
        pltpu.VMEM((block_b, Hp), jnp.float32),            # h_fwd carry
        pltpu.VMEM((block_b, Hp), jnp.float32),            # c_fwd carry
        pltpu.VMEM((block_b, Hp), jnp.float32),            # h_bwd carry
        pltpu.VMEM((block_b, Hp), jnp.float32),            # c_bwd carry
    ]

    kernel = functools.partial(
        _bilstm_layer_kernel, num_parts=P, t_chunk=T, hp=Hp,
        final_head=final_head, unroll=unroll)

    return pl.pallas_call(
        kernel,
        out_shape=out_shape,
        grid_spec=pltpu.PrefetchScalarGridSpec(
            num_scalar_prefetch=0,
            grid=(nbt, nc),
            in_specs=in_specs,
            out_specs=out_specs,
            scratch_shapes=scratch_shapes,
        ),
        compiler_params=pltpu.CompilerParams(
            dimension_semantics=("parallel", "arbitrary"),
            vmem_limit_bytes=vmem_limit_bytes,
        ),
    )(*ins)


# ---------------------------------------------------------------------------
# Full forward pass (Pallas) and pure-JAX reference.
# ---------------------------------------------------------------------------
def bilstm_forward_pallas(x, params, *, hidden_size, num_layers,
                          t_chunk=None, block_b=None, vmem_limit_bytes=None,
                          unroll=None):
    """x: (B, S, input_size) -> (B, output_size)."""
    B, S, D = x.shape
    H = hidden_size
    Hp = _round_up(H, 128)
    O = params["w_fc"].shape[0]
    Op = _round_up(O, 128)

    if t_chunk is None:
        t_chunk = _pick_t_chunk(S)
    if block_b is None:
        block_b = _pick_block_b(B)
    if vmem_limit_bytes is None:
        vmem_limit_bytes = _default_vmem_limit()
    if unroll is None:
        unroll = True if t_chunk <= 8 else 4

    x_tm = jnp.transpose(x, (1, 0, 2))                     # (S, B, D) time-major
    parts = [x_tm]
    part_dims = [(D, D)]

    for l in range(num_layers):
        p = params["layers"][l]
        if l == num_layers - 1:
            head = _bilstm_layer(parts, part_dims, p, H=H, Hp=Hp,
                                 t_chunk=t_chunk, block_b=block_b,
                                 out_dtype=x.dtype,
                                 vmem_limit_bytes=vmem_limit_bytes,
                                 unroll=unroll, final_head=True,
                                 w_fc=params["w_fc"], b_fc=params["b_fc"], Op=Op)
            return head[:, :O]
        hf, hb = _bilstm_layer(parts, part_dims, p, H=H, Hp=Hp,
                               t_chunk=t_chunk, block_b=block_b,
                               out_dtype=x.dtype,
                               vmem_limit_bytes=vmem_limit_bytes,
                               unroll=unroll)
        parts = [hf, hb]                                   # no concat / reversal passes
        part_dims = [(H, Hp), (H, Hp)]


def _lstm_dir_reference(x_tm, w_ih, w_hh, b_ih, b_hh, hidden_size):
    H = hidden_size
    B = x_tm.shape[1]

    def step(carry, x_t):
        h, c = carry
        gates = x_t @ w_ih.T + h @ w_hh.T + b_ih + b_hh
        i = jax.nn.sigmoid(gates[:, 0 * H:1 * H])
        f = jax.nn.sigmoid(gates[:, 1 * H:2 * H])
        g = jnp.tanh(gates[:, 2 * H:3 * H])
        o = jax.nn.sigmoid(gates[:, 3 * H:4 * H])
        c = f * c + i * g
        h = o * jnp.tanh(c)
        return (h, c), h

    h0 = jnp.zeros((B, H), x_tm.dtype)
    c0 = jnp.zeros((B, H), x_tm.dtype)
    _, hs = jax.lax.scan(step, (h0, c0), x_tm)
    return hs                                              # (S, B, H)


def bilstm_forward_reference(x, params, *, hidden_size, num_layers):
    H = hidden_size
    layer_in = jnp.transpose(x, (1, 0, 2))
    for l in range(num_layers):
        p = params["layers"][l]
        h_fwd = _lstm_dir_reference(layer_in, p["w_ih_fwd"], p["w_hh_fwd"],
                                    p["b_ih_fwd"], p["b_hh_fwd"], H)
        h_bwd = _lstm_dir_reference(layer_in[::-1], p["w_ih_bwd"], p["w_hh_bwd"],
                                    p["b_ih_bwd"], p["b_hh_bwd"], H)[::-1]
        layer_in = jnp.concatenate([h_fwd, h_bwd], axis=-1)
    concat = jnp.concatenate([layer_in[-1, :, :H], layer_in[0, :, H:]], axis=-1)
    logits = concat @ params["w_fc"].T + params["b_fc"]
    return jax.nn.sigmoid(logits)


def init_params(key, input_size, hidden_size, num_layers, output_size):
    H = hidden_size
    scale = 1.0 / float(H) ** 0.5
    layers = []
    for l in range(num_layers):
        d_in = input_size if l == 0 else 2 * H
        key, *ks = jax.random.split(key, 9)
        layers.append({
            "w_ih_fwd": jax.random.normal(ks[0], (4 * H, d_in), jnp.float32) * scale,
            "w_hh_fwd": jax.random.normal(ks[1], (4 * H, H), jnp.float32) * scale,
            "b_ih_fwd": jax.random.normal(ks[2], (4 * H,), jnp.float32) * scale,
            "b_hh_fwd": jax.random.normal(ks[3], (4 * H,), jnp.float32) * scale,
            "w_ih_bwd": jax.random.normal(ks[4], (4 * H, d_in), jnp.float32) * scale,
            "w_hh_bwd": jax.random.normal(ks[5], (4 * H, H), jnp.float32) * scale,
            "b_ih_bwd": jax.random.normal(ks[6], (4 * H,), jnp.float32) * scale,
            "b_hh_bwd": jax.random.normal(ks[7], (4 * H,), jnp.float32) * scale,
        })
    key, k_w, k_b = jax.random.split(key, 3)
    return {
        "layers": layers,
        "w_fc": jax.random.normal(k_w, (output_size, 2 * H), jnp.float32) * scale,
        "b_fc": jax.random.normal(k_b, (output_size,), jnp.float32) * scale,
    }


if __name__ == "__main__":
    B, S = 2, 8
    input_size, hidden_size, num_layers, output_size = 16, 32, 2, 4

    key = jax.random.PRNGKey(0)
    k_x, k_p = jax.random.split(key)
    x = jax.random.normal(k_x, (B, S, input_size), dtype=jnp.float32)
    params = init_params(k_p, input_size, hidden_size, num_layers, output_size)

    # t_chunk=4 => 2 time chunks: exercises the carried-h/c chunked recurrence,
    # the reversed-chunk index maps and the fused-head epilogue.
    fwd = jax.jit(functools.partial(bilstm_forward_pallas,
                                    hidden_size=hidden_size,
                                    num_layers=num_layers,
                                    t_chunk=4))
    out = jax.block_until_ready(fwd(x, params))

    ref = jax.block_until_ready(
        bilstm_forward_reference(x, params,
                                 hidden_size=hidden_size, num_layers=num_layers))

    assert out.shape == (B, output_size)
    max_err = float(jnp.max(jnp.abs(out - ref)))
    assert max_err < 2e-3, f"max abs diff = {max_err}"

    print("KERNEL_OK")
</pallas_src>

<mosaic_0001>
module attributes {stable_mosaic.version = 11 : i64} {
  func.func @_bilstm_layer_kernel(%arg0: i32, %arg1: i32, %arg2: memref<4x2x16xf32, #tpu.memory_space<vmem>>, %arg3: memref<4x2x16xf32, #tpu.memory_space<vmem>>, %arg4: memref<16x512xf32, #tpu.memory_space<vmem>>, %arg5: memref<16x512xf32, #tpu.memory_space<vmem>>, %arg6: memref<128x512xf32, #tpu.memory_space<vmem>>, %arg7: memref<128x512xf32, #tpu.memory_space<vmem>>, %arg8: memref<1x512xf32, #tpu.memory_space<vmem>>, %arg9: memref<1x512xf32, #tpu.memory_space<vmem>>, %arg10: memref<4x2x128xf32, #tpu.memory_space<vmem>>, %arg11: memref<4x2x128xf32, #tpu.memory_space<vmem>>, %arg12: memref<4x2x512xf32, #tpu.memory_space<vmem>>, %arg13: memref<4x2x512xf32, #tpu.memory_space<vmem>>, %arg14: memref<2x128xf32, #tpu.memory_space<vmem>>, %arg15: memref<2x128xf32, #tpu.memory_space<vmem>>, %arg16: memref<2x128xf32, #tpu.memory_space<vmem>>, %arg17: memref<2x128xf32, #tpu.memory_space<vmem>>) attributes {dimension_semantics = [#tpu.dimension_semantics<parallel>, #tpu.dimension_semantics<arbitrary>], iteration_bounds = array<i64: 1, 2>, scalar_prefetch = 0 : i64, scratch_operands = 6 : i64, tpu.core_type = #tpu.core_type<tc>, window_params = [{transform_indices = @transform_0, window_bounds = array<i64: 4, 2, 16>}, {transform_indices = @transform_1, window_bounds = array<i64: 4, 2, 16>}, {pipeline_mode = #tpu.pipeline_mode<synchronous>, transform_indices = @transform_2, window_bounds = array<i64: 16, 512>}, {pipeline_mode = #tpu.pipeline_mode<synchronous>, transform_indices = @transform_3, window_bounds = array<i64: 16, 512>}, {pipeline_mode = #tpu.pipeline_mode<synchronous>, transform_indices = @transform_4, window_bounds = array<i64: 128, 512>}, {pipeline_mode = #tpu.pipeline_mode<synchronous>, transform_indices = @transform_5, window_bounds = array<i64: 128, 512>}, {pipeline_mode = #tpu.pipeline_mode<synchronous>, transform_indices = @transform_6, window_bounds = array<i64: 1, 512>}, {pipeline_mode = #tpu.pipeline_mode<synchronous>, transform_indices = @transform_7, window_bounds = array<i64: 1, 512>}, {transform_indices = @transform_8, window_bounds = array<i64: 4, 2, 128>}, {transform_indices = @transform_9, window_bounds = array<i64: 4, 2, 128>}]} {
    %c0_i32 = arith.constant 0 : i32
    %0 = arith.cmpi eq, %arg1, %c0_i32 : i32
    %1 = arith.extui %0 : i1 to i32
    %c0_i32_0 = arith.constant 0 : i32
    %2 = arith.cmpi ne, %1, %c0_i32_0 : i32
    scf.if %2 {
      %cst_158 = arith.constant 0.000000e+00 : f32
      %355 = vector.broadcast %cst_158 : f32 to vector<2x128xf32>
      %c0_159 = arith.constant 0 : index
      %c0_160 = arith.constant 0 : index
      %356 = vector.load %arg14[%c0_159, %c0_160] : memref<2x128xf32, #tpu.memory_space<vmem>>, vector<2x128xf32>
      tpu.vector_store %arg14[%c0_159, %c0_160], %355 {strides = array<i32>} : memref<2x128xf32, #tpu.memory_space<vmem>>, vector<2x128xf32>,
      %c0_161 = arith.constant 0 : index
      %c0_162 = arith.constant 0 : index
      %357 = vector.load %arg15[%c0_161, %c0_162] : memref<2x128xf32, #tpu.memory_space<vmem>>, vector<2x128xf32>
      tpu.vector_store %arg15[%c0_161, %c0_162], %355 {strides = array<i32>} : memref<2x128xf32, #tpu.memory_space<vmem>>, vector<2x128xf32>,
      %c0_163 = arith.constant 0 : index
      %c0_164 = arith.constant 0 : index
      %358 = vector.load %arg16[%c0_163, %c0_164] : memref<2x128xf32, #tpu.memory_space<vmem>>, vector<2x128xf32>
      tpu.vector_store %arg16[%c0_163, %c0_164], %355 {strides = array<i32>} : memref<2x128xf32, #tpu.memory_space<vmem>>, vector<2x128xf32>,
      %c0_165 = arith.constant 0 : index
      %c0_166 = arith.constant 0 : index
      %359 = vector.load %arg17[%c0_165, %c0_166] : memref<2x128xf32, #tpu.memory_space<vmem>>, vector<2x128xf32>
      tpu.vector_store %arg17[%c0_165, %c0_166], %355 {strides = array<i32>} : memref<2x128xf32, #tpu.memory_space<vmem>>, vector<2x128xf32>,
    } else {
    }
    %c0 = arith.constant 0 : index
    %c0_1 = arith.constant 0 : index
    %c0_2 = arith.constant 0 : index
    %3 = vector.load %arg2[%c0, %c0_1, %c0_2] : memref<4x2x16xf32, #tpu.memory_space<vmem>>, vector<4x2x16xf32>
    %4 = vector.shape_cast %3 : vector<4x2x16xf32> to vector<8x16xf32>
    %c0_3 = arith.constant 0 : index
    %c0_4 = arith.constant 0 : index
    %5 = vector.load %arg4[%c0_3, %c0_4] : memref<16x512xf32, #tpu.memory_space<vmem>>, vector<16x512xf32>
    %cst = arith.constant dense<0.000000e+00> : vector<8x512xf32>
    %6 = tpu.matmul %4, %5, %cst {dimension_numbers = #tpu.dot_dimension_numbers<[1], [0], [0], [1], [0, 0, 1, 1], [], []>} : vector<8x16xf32>, vector<16x512xf32>, vector<8x512xf32> -> vector<8x512xf32>
    %c0_5 = arith.constant 0 : index
    %c0_6 = arith.constant 0 : index
    %7 = vector.load %arg8[%c0_5, %c0_6] : memref<1x512xf32, #tpu.memory_space<vmem>>, vector<1x512xf32>
    %8 = vector.broadcast %7 : vector<1x512xf32> to vector<8x512xf32>
    %9 = arith.addf %6, %8 : vector<8x512xf32>
    %10 = vector.shape_cast %9 : vector<8x512xf32> to vector<4x2x512xf32>
    %c0_7 = arith.constant 0 : index
    %c0_8 = arith.constant 0 : index
    %c0_9 = arith.constant 0 : index
    %11 = vector.load %arg12[%c0_7, %c0_8, %c0_9] : memref<4x2x512xf32, #tpu.memory_space<vmem>>, vector<4x2x512xf32>
    tpu.vector_store %arg12[%c0_7, %c0_8, %c0_9], %10 {strides = array<i32>} : memref<4x2x512xf32, #tpu.memory_space<vmem>>, vector<4x2x512xf32>,
    %c0_10 = arith.constant 0 : index
    %c0_11 = arith.constant 0 : index
    %c0_12 = arith.constant 0 : index
    %12 = vector.load %arg3[%c0_10, %c0_11, %c0_12] : memref<4x2x16xf32, #tpu.memory_space<vmem>>, vector<4x2x16xf32>
    %13 = vector.shape_cast %12 : vector<4x2x16xf32> to vector<8x16xf32>
    %c0_13 = arith.constant 0 : index
    %c0_14 = arith.constant 0 : index
    %14 = vector.load %arg5[%c0_13, %c0_14] : memref<16x512xf32, #tpu.memory_space<vmem>>, vector<16x512xf32>
    %cst_15 = arith.constant dense<0.000000e+00> : vector<8x512xf32>
    %15 = tpu.matmul %13, %14, %cst_15 {dimension_numbers = #tpu.dot_dimension_numbers<[1], [0], [0], [1], [0, 0, 1, 1], [], []>} : vector<8x16xf32>, vector<16x512xf32>, vector<8x512xf32> -> vector<8x512xf32>
    %c0_16 = arith.constant 0 : index
    %c0_17 = arith.constant 0 : index
    %16 = vector.load %arg9[%c0_16, %c0_17] : memref<1x512xf32, #tpu.memory_space<vmem>>, vector<1x512xf32>
    %17 = vector.broadcast %16 : vector<1x512xf32> to vector<8x512xf32>
    %18 = arith.addf %15, %17 : vector<8x512xf32>
    %19 = vector.shape_cast %18 : vector<8x512xf32> to vector<4x2x512xf32>
    %c0_18 = arith.constant 0 : index
    %c0_19 = arith.constant 0 : index
    %c0_20 = arith.constant 0 : index
    %20 = vector.load %arg13[%c0_18, %c0_19, %c0_20] : memref<4x2x512xf32, #tpu.memory_space<vmem>>, vector<4x2x512xf32>
    tpu.vector_store %arg13[%c0_18, %c0_19, %c0_20], %19 {strides = array<i32>} : memref<4x2x512xf32, #tpu.memory_space<vmem>>, vector<4x2x512xf32>,
    %c0_21 = arith.constant 0 : index
    %c0_22 = arith.constant 0 : index
    %21 = vector.load %arg6[%c0_21, %c0_22] : memref<128x512xf32, #tpu.memory_space<vmem>>, vector<128x512xf32>
    %c0_23 = arith.constant 0 : index
    %c0_24 = arith.constant 0 : index
    %22 = vector.load %arg7[%c0_23, %c0_24] : memref<128x512xf32, #tpu.memory_space<vmem>>, vector<128x512xf32>
    %c0_25 = arith.constant 0 : index
    %c0_26 = arith.constant 0 : index
    %23 = vector.load %arg14[%c0_25, %c0_26] : memref<2x128xf32, #tpu.memory_space<vmem>>, vector<2x128xf32>
    %c0_27 = arith.constant 0 : index
    %c0_28 = arith.constant 0 : index
    %24 = vector.load %arg15[%c0_27, %c0_28] : memref<2x128xf32, #tpu.memory_space<vmem>>, vector<2x128xf32>
    %c0_29 = arith.constant 0 : index
    %c0_30 = arith.constant 0 : index
    %25 = vector.load %arg16[%c0_29, %c0_30] : memref<2x128xf32, #tpu.memory_space<vmem>>, vector<2x128xf32>
    %c0_31 = arith.constant 0 : index
    %c0_32 = arith.constant 0 : index
    %26 = vector.load %arg17[%c0_31, %c0_32] : memref<2x128xf32, #tpu.memory_space<vmem>>, vector<2x128xf32>
    %c0_i32_33 = arith.constant 0 : i32
    %c3_i32 = arith.constant 3 : i32
    %27 = arith.subi %c3_i32, %c0_i32_33 : i32
    %28 = arith.index_cast %c0_i32_33 : i32 to index
    %c0_34 = arith.constant 0 : index
    %c0_35 = arith.constant 0 : index
    %29 = vector.load %arg12[%28, %c0_34, %c0_35] : memref<4x2x512xf32, #tpu.memory_space<vmem>>, vector<1x2x512xf32>
    %30 = vector.shape_cast %29 : vector<1x2x512xf32> to vector<2x512xf32>
    %cst_36 = arith.constant dense<0.000000e+00> : vector<2x512xf32>
    %31 = tpu.matmul %23, %21, %cst_36 {dimension_numbers = #tpu.dot_dimension_numbers<[1], [0], [0], [1], [0, 0, 1, 1], [], []>} : vector<2x128xf32>, vector<128x512xf32>, vector<2x512xf32> -> vector<2x512xf32>
    %32 = arith.addf %30, %31 : vector<2x512xf32>
    %33 = vector.extract_strided_slice %32 {offsets = [0, 0], sizes = [2, 128], strides = [1, 1]} : vector<2x512xf32> to vector<2x128xf32>
    %cst_37 = arith.constant 5.000000e-01 : f32
    %34 = vector.broadcast %cst_37 : f32 to vector<2x128xf32>
    %35 = arith.mulf %34, %33 : vector<2x128xf32>
    %36 = math.tanh %35 : vector<2x128xf32>
    %cst_38 = arith.constant 1.000000e+00 : f32
    %37 = vector.broadcast %cst_38 : f32 to vector<2x128xf32>
    %38 = arith.addf %36, %37 : vector<2x128xf32>
    %cst_39 = arith.constant 5.000000e-01 : f32
    %39 = vector.broadcast %cst_39 : f32 to vector<2x128xf32>
    %40 = arith.mulf %39, %38 : vector<2x128xf32>
    %41 = vector.extract_strided_slice %32 {offsets = [0, 128], sizes = [2, 128], strides = [1, 1]} : vector<2x512xf32> to vector<2x128xf32>
    %cst_40 = arith.constant 5.000000e-01 : f32
    %42 = vector.broadcast %cst_40 : f32 to vector<2x128xf32>
    %43 = arith.mulf %42, %41 : vector<2x128xf32>
    %44 = math.tanh %43 : vector<2x128xf32>
    %cst_41 = arith.constant 1.000000e+00 : f32
    %45 = vector.broadcast %cst_41 : f32 to vector<2x128xf32>
    %46 = arith.addf %44, %45 : vector<2x128xf32>
    %cst_42 = arith.constant 5.000000e-01 : f32
    %47 = vector.broadcast %cst_42 : f32 to vector<2x128xf32>
    %48 = arith.mulf %47, %46 : vector<2x128xf32>
    %49 = vector.extract_strided_slice %32 {offsets = [0, 256], sizes = [2, 128], strides = [1, 1]} : vector<2x512xf32> to vector<2x128xf32>
    %50 = math.tanh %49 : vector<2x128xf32>
    %51 = vector.extract_strided_slice %32 {offsets = [0, 384], sizes = [2, 128], strides = [1, 1]} : vector<2x512xf32> to vector<2x128xf32>
    %cst_43 = arith.constant 5.000000e-01 : f32
    %52 = vector.broadcast %cst_43 : f32 to vector<2x128xf32>
    %53 = arith.mulf %52, %51 : vector<2x128xf32>
    %54 = math.tanh %53 : vector<2x128xf32>
    %cst_44 = arith.constant 1.000000e+00 : f32
    %55 = vector.broadcast %cst_44 : f32 to vector<2x128xf32>
    %56 = arith.addf %54, %55 : vector<2x128xf32>
    %cst_45 = arith.constant 5.000000e-01 : f32
    %57 = vector.broadcast %cst_45 : f32 to vector<2x128xf32>
    %58 = arith.mulf %57, %56 : vector<2x128xf32>
    %59 = arith.mulf %48, %24 : vector<2x128xf32>
    %60 = arith.mulf %40, %50 : vector<2x128xf32>
    %61 = arith.addf %59, %60 : vector<2x128xf32>
    %62 = math.tanh %61 : vector<2x128xf32>
    %63 = arith.mulf %58, %62 : vector<2x128xf32>
    %64 = arith.index_cast %27 : i32 to index
    %c0_46 = arith.constant 0 : index
    %c0_47 = arith.constant 0 : index
    %65 = vector.load %arg13[%64, %c0_46, %c0_47] : memref<4x2x512xf32, #tpu.memory_space<vmem>>, vector<1x2x512xf32>
    %66 = vector.shape_cast %65 : vector<1x2x512xf32> to vector<2x512xf32>
    %cst_48 = arith.constant dense<0.000000e+00> : vector<2x512xf32>
    %67 = tpu.matmul %25, %22, %cst_48 {dimension_numbers = #tpu.dot_dimension_numbers<[1], [0], [0], [1], [0, 0, 1, 1], [], []>} : vector<2x128xf32>, vector<128x512xf32>, vector<2x512xf32> -> vector<2x512xf32>
    %68 = arith.addf %66, %67 : vector<2x512xf32>
    %69 = vector.extract_strided_slice %68 {offsets = [0, 0], sizes = [2, 128], strides = [1, 1]} : vector<2x512xf32> to vector<2x128xf32>
    %cst_49 = arith.constant 5.000000e-01 : f32
    %70 = vector.broadcast %cst_49 : f32 to vector<2x128xf32>
    %71 = arith.mulf %70, %69 : vector<2x128xf32>
    %72 = math.tanh %71 : vector<2x128xf32>
    %cst_50 = arith.constant 1.000000e+00 : f32
    %73 = vector.broadcast %cst_50 : f32 to vector<2x128xf32>
    %74 = arith.addf %72, %73 : vector<2x128xf32>
    %cst_51 = arith.constant 5.000000e-01 : f32
    %75 = vector.broadcast %cst_51 : f32 to vector<2x128xf32>
    %76 = arith.mulf %75, %74 : vector<2x128xf32>
    %77 = vector.extract_strided_slice %68 {offsets = [0, 128], sizes = [2, 128], strides = [1, 1]} : vector<2x512xf32> to vector<2x128xf32>
    %cst_52 = arith.constant 5.000000e-01 : f32
    %78 = vector.broadcast %cst_52 : f32 to vector<2x128xf32>
    %79 = arith.mulf %78, %77 : vector<2x128xf32>
    %80 = math.tanh %79 : vector<2x128xf32>
    %cst_53 = arith.constant 1.000000e+00 : f32
    %81 = vector.broadcast %cst_53 : f32 to vector<2x128xf32>
    %82 = arith.addf %80, %81 : vector<2x128xf32>
    %cst_54 = arith.constant 5.000000e-01 : f32
    %83 = vector.broadcast %cst_54 : f32 to vector<2x128xf32>
    %84 = arith.mulf %83, %82 : vector<2x128xf32>
    %85 = vector.extract_strided_slice %68 {offsets = [0, 256], sizes = [2, 128], strides = [1, 1]} : vector<2x512xf32> to vector<2x128xf32>
    %86 = math.tanh %85 : vector<2x128xf32>
    %87 = vector.extract_strided_slice %68 {offsets = [0, 384], sizes = [2, 128], strides = [1, 1]} : vector<2x512xf32> to vector<2x128xf32>
    %cst_55 = arith.constant 5.000000e-01 : f32
    %88 = vector.broadcast %cst_55 : f32 to vector<2x128xf32>
    %89 = arith.mulf %88, %87 : vector<2x128xf32>
    %90 = math.tanh %89 : vector<2x128xf32>
    %cst_56 = arith.constant 1.000000e+00 : f32
    %91 = vector.broadcast %cst_56 : f32 to vector<2x128xf32>
    %92 = arith.addf %90, %91 : vector<2x128xf32>
    %cst_57 = arith.constant 5.000000e-01 : f32
    %93 = vector.broadcast %cst_57 : f32 to vector<2x128xf32>
    %94 = arith.mulf %93, %92 : vector<2x128xf32>
    %95 = arith.mulf %84, %26 : vector<2x128xf32>
    %96 = arith.mulf %76, %86 : vector<2x128xf32>
    %97 = arith.addf %95, %96 : vector<2x128xf32>
    %98 = math.tanh %97 : vector<2x128xf32>
    %99 = arith.mulf %94, %98 : vector<2x128xf32>
    %100 = arith.index_cast %c0_i32_33 : i32 to index
    %c0_58 = arith.constant 0 : index
    %c0_59 = arith.constant 0 : index
    %101 = vector.load %arg10[%100, %c0_58, %c0_59] : memref<4x2x128xf32, #tpu.memory_space<vmem>>, vector<1x2x128xf32>
    %102 = vector.shape_cast %101 : vector<1x2x128xf32> to vector<2x128xf32>
    %103 = vector.shape_cast %63 : vector<2x128xf32> to vector<1x2x128xf32>
    tpu.vector_store %arg10[%100, %c0_58, %c0_59], %103 {strides = array<i32>} : memref<4x2x128xf32, #tpu.memory_space<vmem>>, vector<1x2x128xf32>,
    %104 = arith.index_cast %27 : i32 to index
    %c0_60 = arith.constant 0 : index
    %c0_61 = arith.constant 0 : index
    %105 = vector.load %arg11[%104, %c0_60, %c0_61] : memref<4x2x128xf32, #tpu.memory_space<vmem>>, vector<1x2x128xf32>
    %106 = vector.shape_cast %105 : vector<1x2x128xf32> to vector<2x128xf32>
    %107 = vector.shape_cast %99 : vector<2x128xf32> to vector<1x2x128xf32>
    tpu.vector_store %arg11[%104, %c0_60, %c0_61], %107 {strides = array<i32>} : memref<4x2x128xf32, #tpu.memory_space<vmem>>, vector<1x2x128xf32>,
    %c1_i32 = arith.constant 1 : i32
    %c3_i32_62 = arith.constant 3 : i32
    %108 = arith.subi %c3_i32_62, %c1_i32 : i32
    %109 = arith.index_cast %c1_i32 : i32 to index
    %c0_63 = arith.constant 0 : index
    %c0_64 = arith.constant 0 : index
    %110 = vector.load %arg12[%109, %c0_63, %c0_64] : memref<4x2x512xf32, #tpu.memory_space<vmem>>, vector<1x2x512xf32>
    %111 = vector.shape_cast %110 : vector<1x2x512xf32> to vector<2x512xf32>
    %cst_65 = arith.constant dense<0.000000e+00> : vector<2x512xf32>
    %112 = tpu.matmul %63, %21, %cst_65 {dimension_numbers = #tpu.dot_dimension_numbers<[1], [0], [0], [1], [0, 0, 1, 1], [], []>} : vector<2x128xf32>, vector<128x512xf32>, vector<2x512xf32> -> vector<2x512xf32>
    %113 = arith.addf %111, %112 : vector<2x512xf32>
    %114 = vector.extract_strided_slice %113 {offsets = [0, 0], sizes = [2, 128], strides = [1, 1]} : vector<2x512xf32> to vector<2x128xf32>
    %cst_66 = arith.constant 5.000000e-01 : f32
    %115 = vector.broadcast %cst_66 : f32 to vector<2x128xf32>
    %116 = arith.mulf %115, %114 : vector<2x128xf32>
    %117 = math.tanh %116 : vector<2x128xf32>
    %cst_67 = arith.constant 1.000000e+00 : f32
    %118 = vector.broadcast %cst_67 : f32 to vector<2x128xf32>
    %119 = arith.addf %117, %118 : vector<2x128xf32>
    %cst_68 = arith.constant 5.000000e-01 : f32
    %120 = vector.broadcast %cst_68 : f32 to vector<2x128xf32>
    %121 = arith.mulf %120, %119 : vector<2x128xf32>
    %122 = vector.extract_strided_slice %113 {offsets = [0, 128], sizes = [2, 128], strides = [1, 1]} : vector<2x512xf32> to vector<2x128xf32>
    %cst_69 = arith.constant 5.000000e-01 : f32
    %123 = vector.broadcast %cst_69 : f32 to vector<2x128xf32>
    %124 = arith.mulf %123, %122 : vector<2x128xf32>
    %125 = math.tanh %124 : vector<2x128xf32>
    %cst_70 = arith.constant 1.000000e+00 : f32
    %126 = vector.broadcast %cst_70 : f32 to vector<2x128xf32>
    %127 = arith.addf %125, %126 : vector<2x128xf32>
    %cst_71 = arith.constant 5.000000e-01 : f32
    %128 = vector.broadcast %cst_71 : f32 to vector<2x128xf32>
    %129 = arith.mulf %128, %127 : vector<2x128xf32>
    %130 = vector.extract_strided_slice %113 {offsets = [0, 256], sizes = [2, 128], strides = [1, 1]} : vector<2x512xf32> to vector<2x128xf32>
    %131 = math.tanh %130 : vector<2x128xf32>
    %132 = vector.extract_strided_slice %113 {offsets = [0, 384], sizes = [2, 128], strides = [1, 1]} : vector<2x512xf32> to vector<2x128xf32>
    %cst_72 = arith.constant 5.000000e-01 : f32
    %133 = vector.broadcast %cst_72 : f32 to vector<2x128xf32>
    %134 = arith.mulf %133, %132 : vector<2x128xf32>
    %135 = math.tanh %134 : vector<2x128xf32>
    %cst_73 = arith.constant 1.000000e+00 : f32
    %136 = vector.broadcast %cst_73 : f32 to vector<2x128xf32>
    %137 = arith.addf %135, %136 : vector<2x128xf32>
    %cst_74 = arith.constant 5.000000e-01 : f32
    %138 = vector.broadcast %cst_74 : f32 to vector<2x128xf32>
    %139 = arith.mulf %138, %137 : vector<2x128xf32>
    %140 = arith.mulf %129, %61 : vector<2x128xf32>
    %141 = arith.mulf %121, %131 : vector<2x128xf32>
    %142 = arith.addf %140, %141 : vector<2x128xf32>
    %143 = math.tanh %142 : vector<2x128xf32>
    %144 = arith.mulf %139, %143 : vector<2x128xf32>
    %145 = arith.index_cast %108 : i32 to index
    %c0_75 = arith.constant 0 : index
    %c0_76 = arith.constant 0 : index
    %146 = vector.load %arg13[%145, %c0_75, %c0_76] : memref<4x2x512xf32, #tpu.memory_space<vmem>>, vector<1x2x512xf32>
    %147 = vector.shape_cast %146 : vector<1x2x512xf32> to vector<2x512xf32>
    %cst_77 = arith.constant dense<0.000000e+00> : vector<2x512xf32>
    %148 = tpu.matmul %99, %22, %cst_77 {dimension_numbers = #tpu.dot_dimension_numbers<[1], [0], [0], [1], [0, 0, 1, 1], [], []>} : vector<2x128xf32>, vector<128x512xf32>, vector<2x512xf32> -> vector<2x512xf32>
    %149 = arith.addf %147, %148 : vector<2x512xf32>
    %150 = vector.extract_strided_slice %149 {offsets = [0, 0], sizes = [2, 128], strides = [1, 1]} : vector<2x512xf32> to vector<2x128xf32>
    %cst_78 = arith.constant 5.000000e-01 : f32
    %151 = vector.broadcast %cst_78 : f32 to vector<2x128xf32>
    %152 = arith.mulf %151, %150 : vector<2x128xf32>
    %153 = math.tanh %152 : vector<2x128xf32>
    %cst_79 = arith.constant 1.000000e+00 : f32
    %154 = vector.broadcast %cst_79 : f32 to vector<2x128xf32>
    %155 = arith.addf %153, %154 : vector<2x128xf32>
    %cst_80 = arith.constant 5.000000e-01 : f32
    %156 = vector.broadcast %cst_80 : f32 to vector<2x128xf32>
    %157 = arith.mulf %156, %155 : vector<2x128xf32>
    %158 = vector.extract_strided_slice %149 {offsets = [0, 128], sizes = [2, 128], strides = [1, 1]} : vector<2x512xf32> to vector<2x128xf32>
    %cst_81 = arith.constant 5.000000e-01 : f32
    %159 = vector.broadcast %cst_81 : f32 to vector<2x128xf32>
    %160 = arith.mulf %159, %158 : vector<2x128xf32>
    %161 = math.tanh %160 : vector<2x128xf32>
    %cst_82 = arith.constant 1.000000e+00 : f32
    %162 = vector.broadcast %cst_82 : f32 to vector<2x128xf32>
    %163 = arith.addf %161, %162 : vector<2x128xf32>
    %cst_83 = arith.constant 5.000000e-01 : f32
    %164 = vector.broadcast %cst_83 : f32 to vector<2x128xf32>
    %165 = arith.mulf %164, %163 : vector<2x128xf32>
    %166 = vector.extract_strided_slice %149 {offsets = [0, 256], sizes = [2, 128], strides = [1, 1]} : vector<2x512xf32> to vector<2x128xf32>
    %167 = math.tanh %166 : vector<2x128xf32>
    %168 = vector.extract_strided_slice %149 {offsets = [0, 384], sizes = [2, 128], strides = [1, 1]} : vector<2x512xf32> to vector<2x128xf32>
    %cst_84 = arith.constant 5.000000e-01 : f32
    %169 = vector.broadcast %cst_84 : f32 to vector<2x128xf32>
    %170 = arith.mulf %169, %168 : vector<2x128xf32>
    %171 = math.tanh %170 : vector<2x128xf32>
    %cst_85 = arith.constant 1.000000e+00 : f32
    %172 = vector.broadcast %cst_85 : f32 to vector<2x128xf32>
    %173 = arith.addf %171, %172 : vector<2x128xf32>
    %cst_86 = arith.constant 5.000000e-01 : f32
    %174 = vector.broadcast %cst_86 : f32 to vector<2x128xf32>
    %175 = arith.mulf %174, %173 : vector<2x128xf32>
    %176 = arith.mulf %165, %97 : vector<2x128xf32>
    %177 = arith.mulf %157, %167 : vector<2x128xf32>
    %178 = arith.addf %176, %177 : vector<2x128xf32>
    %179 = math.tanh %178 : vector<2x128xf32>
    %180 = arith.mulf %175, %179 : vector<2x128xf32>
    %181 = arith.index_cast %c1_i32 : i32 to index
    %c0_87 = arith.constant 0 : index
    %c0_88 = arith.constant 0 : index
    %182 = vector.load %arg10[%181, %c0_87, %c0_88] : memref<4x2x128xf32, #tpu.memory_space<vmem>>, vector<1x2x128xf32>
    %183 = vector.shape_cast %182 : vector<1x2x128xf32> to vector<2x128xf32>
    %184 = vector.shape_cast %144 : vector<2x128xf32> to vector<1x2x128xf32>
    tpu.vector_store %arg10[%181, %c0_87, %c0_88], %184 {strides = array<i32>} : memref<4x2x128xf32, #tpu.memory_space<vmem>>, vector<1x2x128xf32>,
    %185 = arith.index_cast %108 : i32 to index
    %c0_89 = arith.constant 0 : index
    %c0_90 = arith.constant 0 : index
    %186 = vector.load %arg11[%185, %c0_89, %c0_90] : memref<4x2x128xf32, #tpu.memory_space<vmem>>, vector<1x2x128xf32>
    %187 = vector.shape_cast %186 : vector<1x2x128xf32> to vector<2x128xf32>
    %188 = vector.shape_cast %180 : vector<2x128xf32> to vector<1x2x128xf32>
    tpu.vector_store %arg11[%185, %c0_89, %c0_90], %188 {strides = array<i32>} : memref<4x2x128xf32, #tpu.memory_space<vmem>>, vector<1x2x128xf32>,
    %c2_i32 = arith.constant 2 : i32
    %c3_i32_91 = arith.constant 3 : i32
    %189 = arith.subi %c3_i32_91, %c2_i32 : i32
    %190 = arith.index_cast %c2_i32 : i32 to index
    %c0_92 = arith.constant 0 : index
    %c0_93 = arith.constant 0 : index
    %191 = vector.load %arg12[%190, %c0_92, %c0_93] : memref<4x2x512xf32, #tpu.memory_space<vmem>>, vector<1x2x512xf32>
    %192 = vector.shape_cast %191 : vector<1x2x512xf32> to vector<2x512xf32>
    %cst_94 = arith.constant dense<0.000000e+00> : vector<2x512xf32>
    %193 = tpu.matmul %144, %21, %cst_94 {dimension_numbers = #tpu.dot_dimension_numbers<[1], [0], [0], [1], [0, 0, 1, 1], [], []>} : vector<2x128xf32>, vector<128x512xf32>, vector<2x512xf32> -> vector<2x512xf32>
    %194 = arith.addf %192, %193 : vector<2x512xf32>
    %195 = vector.extract_strided_slice %194 {offsets = [0, 0], sizes = [2, 128], strides = [1, 1]} : vector<2x512xf32> to vector<2x128xf32>
    %cst_95 = arith.constant 5.000000e-01 : f32
    %196 = vector.broadcast %cst_95 : f32 to vector<2x128xf32>
    %197 = arith.mulf %196, %195 : vector<2x128xf32>
    %198 = math.tanh %197 : vector<2x128xf32>
    %cst_96 = arith.constant 1.000000e+00 : f32
    %199 = vector.broadcast %cst_96 : f32 to vector<2x128xf32>
    %200 = arith.addf %198, %199 : vector<2x128xf32>
    %cst_97 = arith.constant 5.000000e-01 : f32
    %201 = vector.broadcast %cst_97 : f32 to vector<2x128xf32>
    %202 = arith.mulf %201, %200 : vector<2x128xf32>
    %203 = vector.extract_strided_slice %194 {offsets = [0, 128], sizes = [2, 128], strides = [1, 1]} : vector<2x512xf32> to vector<2x128xf32>
    %cst_98 = arith.constant 5.000000e-01 : f32
    %204 = vector.broadcast %cst_98 : f32 to vector<2x128xf32>
    %205 = arith.mulf %204, %203 : vector<2x128xf32>
    %206 = math.tanh %205 : vector<2x128xf32>
    %cst_99 = arith.constant 1.000000e+00 : f32
    %207 = vector.broadcast %cst_99 : f32 to vector<2x128xf32>
    %208 = arith.addf %206, %207 : vector<2x128xf32>
    %cst_100 = arith.constant 5.000000e-01 : f32
    %209 = vector.broadcast %cst_100 : f32 to vector<2x128xf32>
    %210 = arith.mulf %209, %208 : vector<2x128xf32>
    %211 = vector.extract_strided_slice %194 {offsets = [0, 256], sizes = [2, 128], strides = [1, 1]} : vector<2x512xf32> to vector<2x128xf32>
    %212 = math.tanh %211 : vector<2x128xf32>
    %213 = vector.extract_strided_slice %194 {offsets = [0, 384], sizes = [2, 128], strides = [1, 1]} : vector<2x512xf32> to vector<2x128xf32>
    %cst_101 = arith.constant 5.000000e-01 : f32
    %214 = vector.broadcast %cst_101 : f32 to vector<2x128xf32>
    %215 = arith.mulf %214, %213 : vector<2x128xf32>
    %216 = math.tanh %215 : vector<2x128xf32>
    %cst_102 = arith.constant 1.000000e+00 : f32
    %217 = vector.broadcast %cst_102 : f32 to vector<2x128xf32>
    %218 = arith.addf %216, %217 : vector<2x128xf32>
    %cst_103 = arith.constant 5.000000e-01 : f32
    %219 = vector.broadcast %cst_103 : f32 to vector<2x128xf32>
    %220 = arith.mulf %219, %218 : vector<2x128xf32>
    %221 = arith.mulf %210, %142 : vector<2x128xf32>
    %222 = arith.mulf %202, %212 : vector<2x128xf32>
    %223 = arith.addf %221, %222 : vector<2x128xf32>
    %224 = math.tanh %223 : vector<2x128xf32>
    %225 = arith.mulf %220, %224 : vector<2x128xf32>
    %226 = arith.index_cast %189 : i32 to index
    %c0_104 = arith.constant 0 : index
    %c0_105 = arith.constant 0 : index
    %227 = vector.load %arg13[%226, %c0_104, %c0_105] : memref<4x2x512xf32, #tpu.memory_space<vmem>>, vector<1x2x512xf32>
    %228 = vector.shape_cast %227 : vector<1x2x512xf32> to vector<2x512xf32>
    %cst_106 = arith.constant dense<0.000000e+00> : vector<2x512xf32>
    %229 = tpu.matmul %180, %22, %cst_106 {dimension_numbers = #tpu.dot_dimension_numbers<[1], [0], [0], [1], [0, 0, 1, 1], [], []>} : vector<2x128xf32>, vector<128x512xf32>, vector<2x512xf32> -> vector<2x512xf32>
    %230 = arith.addf %228, %229 : vector<2x512xf32>
    %231 = vector.extract_strided_slice %230 {offsets = [0, 0], sizes = [2, 128], strides = [1, 1]} : vector<2x512xf32> to vector<2x128xf32>
    %cst_107 = arith.constant 5.000000e-01 : f32
    %232 = vector.broadcast %cst_107 : f32 to vector<2x128xf32>
    %233 = arith.mulf %232, %231 : vector<2x128xf32>
    %234 = math.tanh %233 : vector<2x128xf32>
    %cst_108 = arith.constant 1.000000e+00 : f32
    %235 = vector.broadcast %cst_108 : f32 to vector<2x128xf32>
    %236 = arith.addf %234, %235 : vector<2x128xf32>
    %cst_109 = arith.constant 5.000000e-01 : f32
    %237 = vector.broadcast %cst_109 : f32 to vector<2x128xf32>
    %238 = arith.mulf %237, %236 : vector<2x128xf32>
    %239 = vector.extract_strided_slice %230 {offsets = [0, 128], sizes = [2, 128], strides = [1, 1]} : vector<2x512xf32> to vector<2x128xf32>
    %cst_110 = arith.constant 5.000000e-01 : f32
    %240 = vector.broadcast %cst_110 : f32 to vector<2x128xf32>
    %241 = arith.mulf %240, %239 : vector<2x128xf32>
    %242 = math.tanh %241 : vector<2x128xf32>
    %cst_111 = arith.constant 1.000000e+00 : f32
    %243 = vector.broadcast %cst_111 : f32 to vector<2x128xf32>
    %244 = arith.addf %242, %243 : vector<2x128xf32>
    %cst_112 = arith.constant 5.000000e-01 : f32
    %245 = vector.broadcast %cst_112 : f32 to vector<2x128xf32>
    %246 = arith.mulf %245, %244 : vector<2x128xf32>
    %247 = vector.extract_strided_slice %230 {offsets = [0, 256], sizes = [2, 128], strides = [1, 1]} : vector<2x512xf32> to vector<2x128xf32>
    %248 = math.tanh %247 : vector<2x128xf32>
    %249 = vector.extract_strided_slice %230 {offsets = [0, 384], sizes = [2, 128], strides = [1, 1]} : vector<2x512xf32> to vector<2x128xf32>
    %cst_113 = arith.constant 5.000000e-01 : f32
    %250 = vector.broadcast %cst_113 : f32 to vector<2x128xf32>
    %251 = arith.mulf %250, %249 : vector<2x128xf32>
    %252 = math.tanh %251 : vector<2x128xf32>
    %cst_114 = arith.constant 1.000000e+00 : f32
    %253 = vector.broadcast %cst_114 : f32 to vector<2x128xf32>
    %254 = arith.addf %252, %253 : vector<2x128xf32>
    %cst_115 = arith.constant 5.000000e-01 : f32
    %255 = vector.broadcast %cst_115 : f32 to vector<2x128xf32>
    %256 = arith.mulf %255, %254 : vector<2x128xf32>
    %257 = arith.mulf %246, %178 : vector<2x128xf32>
    %258 = arith.mulf %238, %248 : vector<2x128xf32>
    %259 = arith.addf %257, %258 : vector<2x128xf32>
    %260 = math.tanh %259 : vector<2x128xf32>
    %261 = arith.mulf %256, %260 : vector<2x128xf32>
    %262 = arith.index_cast %c2_i32 : i32 to index
    %c0_116 = arith.constant 0 : index
    %c0_117 = arith.constant 0 : index
    %263 = vector.load %arg10[%262, %c0_116, %c0_117] : memref<4x2x128xf32, #tpu.memory_space<vmem>>, vector<1x2x128xf32>
    %264 = vector.shape_cast %263 : vector<1x2x128xf32> to vector<2x128xf32>
    %265 = vector.shape_cast %225 : vector<2x128xf32> to vector<1x2x128xf32>
    tpu.vector_store %arg10[%262, %c0_116, %c0_117], %265 {strides = array<i32>} : memref<4x2x128xf32, #tpu.memory_space<vmem>>, vector<1x2x128xf32>,
    %266 = arith.index_cast %189 : i32 to index
    %c0_118 = arith.constant 0 : index
    %c0_119 = arith.constant 0 : index
    %267 = vector.load %arg11[%266, %c0_118, %c0_119] : memref<4x2x128xf32, #tpu.memory_space<vmem>>, vector<1x2x128xf32>
    %268 = vector.shape_cast %267 : vector<1x2x128xf32> to vector<2x128xf32>
    %269 = vector.shape_cast %261 : vector<2x128xf32> to vector<1x2x128xf32>
    tpu.vector_store %arg11[%266, %c0_118, %c0_119], %269 {strides = array<i32>} : memref<4x2x128xf32, #tpu.memory_space<vmem>>, vector<1x2x128xf32>,
    %c3_i32_120 = arith.constant 3 : i32
    %c3_i32_121 = arith.constant 3 : i32
    %270 = arith.subi %c3_i32_121, %c3_i32_120 : i32
    %271 = arith.index_cast %c3_i32_120 : i32 to index
    %c0_122 = arith.constant 0 : index
    %c0_123 = arith.constant 0 : index
    %272 = vector.load %arg12[%271, %c0_122, %c0_123] : memref<4x2x512xf32, #tpu.memory_space<vmem>>, vector<1x2x512xf32>
    %273 = vector.shape_cast %272 : vector<1x2x512xf32> to vector<2x512xf32>
    %cst_124 = arith.constant dense<0.000000e+00> : vector<2x512xf32>
    %274 = tpu.matmul %225, %21, %cst_124 {dimension_numbers = #tpu.dot_dimension_numbers<[1], [0], [0], [1], [0, 0, 1, 1], [], []>} : vector<2x128xf32>, vector<128x512xf32>, vector<2x512xf32> -> vector<2x512xf32>
    %275 = arith.addf %273, %274 : vector<2x512xf32>
    %276 = vector.extract_strided_slice %275 {offsets = [0, 0], sizes = [2, 128], strides = [1, 1]} : vector<2x512xf32> to vector<2x128xf32>
    %cst_125 = arith.constant 5.000000e-01 : f32
    %277 = vector.broadcast %cst_125 : f32 to vector<2x128xf32>
    %278 = arith.mulf %277, %276 : vector<2x128xf32>
    %279 = math.tanh %278 : vector<2x128xf32>
    %cst_126 = arith.constant 1.000000e+00 : f32
    %280 = vector.broadcast %cst_126 : f32 to vector<2x128xf32>
    %281 = arith.addf %279, %280 : vector<2x128xf32>
    %cst_127 = arith.constant 5.000000e-01 : f32
    %282 = vector.broadcast %cst_127 : f32 to vector<2x128xf32>
    %283 = arith.mulf %282, %281 : vector<2x128xf32>
    %284 = vector.extract_strided_slice %275 {offsets = [0, 128], sizes = [2, 128], strides = [1, 1]} : vector<2x512xf32> to vector<2x128xf32>
    %cst_128 = arith.constant 5.000000e-01 : f32
    %285 = vector.broadcast %cst_128 : f32 to vector<2x128xf32>
    %286 = arith.mulf %285, %284 : vector<2x128xf32>
    %287 = math.tanh %286 : vector<2x128xf32>
    %cst_129 = arith.constant 1.000000e+00 : f32
    %288 = vector.broadcast %cst_129 : f32 to vector<2x128xf32>
    %289 = arith.addf %287, %288 : vector<2x128xf32>
    %cst_130 = arith.constant 5.000000e-01 : f32
    %290 = vector.broadcast %cst_130 : f32 to vector<2x128xf32>
    %291 = arith.mulf %290, %289 : vector<2x128xf32>
    %292 = vector.extract_strided_slice %275 {offsets = [0, 256], sizes = [2, 128], strides = [1, 1]} : vector<2x512xf32> to vector<2x128xf32>
    %293 = math.tanh %292 : vector<2x128xf32>
    %294 = vector.extract_strided_slice %275 {offsets = [0, 384], sizes = [2, 128], strides = [1, 1]} : vector<2x512xf32> to vector<2x128xf32>
    %cst_131 = arith.constant 5.000000e-01 : f32
    %295 = vector.broadcast %cst_131 : f32 to vector<2x128xf32>
    %296 = arith.mulf %295, %294 : vector<2x128xf32>
    %297 = math.tanh %296 : vector<2x128xf32>
    %cst_132 = arith.constant 1.000000e+00 : f32
    %298 = vector.broadcast %cst_132 : f32 to vector<2x128xf32>
    %299 = arith.addf %297, %298 : vector<2x128xf32>
    %cst_133 = arith.constant 5.000000e-01 : f32
    %300 = vector.broadcast %cst_133 : f32 to vector<2x128xf32>
    %301 = arith.mulf %300, %299 : vector<2x128xf32>
    %302 = arith.mulf %291, %223 : vector<2x128xf32>
    %303 = arith.mulf %283, %293 : vector<2x128xf32>
    %304 = arith.addf %302, %303 : vector<2x128xf32>
    %305 = math.tanh %304 : vector<2x128xf32>
    %306 = arith.mulf %301, %305 : vector<2x128xf32>
    %307 = arith.index_cast %270 : i32 to index
    %c0_134 = arith.constant 0 : index
    %c0_135 = arith.constant 0 : index
    %308 = vector.load %arg13[%307, %c0_134, %c0_135] : memref<4x2x512xf32, #tpu.memory_space<vmem>>, vector<1x2x512xf32>
    %309 = vector.shape_cast %308 : vector<1x2x512xf32> to vector<2x512xf32>
    %cst_136 = arith.constant dense<0.000000e+00> : vector<2x512xf32>
    %310 = tpu.matmul %261, %22, %cst_136 {dimension_numbers = #tpu.dot_dimension_numbers<[1], [0], [0], [1], [0, 0, 1, 1], [], []>} : vector<2x128xf32>, vector<128x512xf32>, vector<2x512xf32> -> vector<2x512xf32>
    %311 = arith.addf %309, %310 : vector<2x512xf32>
    %312 = vector.extract_strided_slice %311 {offsets = [0, 0], sizes = [2, 128], strides = [1, 1]} : vector<2x512xf32> to vector<2x128xf32>
    %cst_137 = arith.constant 5.000000e-01 : f32
    %313 = vector.broadcast %cst_137 : f32 to vector<2x128xf32>
    %314 = arith.mulf %313, %312 : vector<2x128xf32>
    %315 = math.tanh %314 : vector<2x128xf32>
    %cst_138 = arith.constant 1.000000e+00 : f32
    %316 = vector.broadcast %cst_138 : f32 to vector<2x128xf32>
    %317 = arith.addf %315, %316 : vector<2x128xf32>
    %cst_139 = arith.constant 5.000000e-01 : f32
    %318 = vector.broadcast %cst_139 : f32 to vector<2x128xf32>
    %319 = arith.mulf %318, %317 : vector<2x128xf32>
    %320 = vector.extract_strided_slice %311 {offsets = [0, 128], sizes = [2, 128], strides = [1, 1]} : vector<2x512xf32> to vector<2x128xf32>
    %cst_140 = arith.constant 5.000000e-01 : f32
    %321 = vector.broadcast %cst_140 : f32 to vector<2x128xf32>
    %322 = arith.mulf %321, %320 : vector<2x128xf32>
    %323 = math.tanh %322 : vector<2x128xf32>
    %cst_141 = arith.constant 1.000000e+00 : f32
    %324 = vector.broadcast %cst_141 : f32 to vector<2x128xf32>
    %325 = arith.addf %323, %324 : vector<2x128xf32>
    %cst_142 = arith.constant 5.000000e-01 : f32
    %326 = vector.broadcast %cst_142 : f32 to vector<2x128xf32>
    %327 = arith.mulf %326, %325 : vector<2x128xf32>
    %328 = vector.extract_strided_slice %311 {offsets = [0, 256], sizes = [2, 128], strides = [1, 1]} : vector<2x512xf32> to vector<2x128xf32>
    %329 = math.tanh %328 : vector<2x128xf32>
    %330 = vector.extract_strided_slice %311 {offsets = [0, 384], sizes = [2, 128], strides = [1, 1]} : vector<2x512xf32> to vector<2x128xf32>
    %cst_143 = arith.constant 5.000000e-01 : f32
    %331 = vector.broadcast %cst_143 : f32 to vector<2x128xf32>
    %332 = arith.mulf %331, %330 : vector<2x128xf32>
    %333 = math.tanh %332 : vector<2x128xf32>
    %cst_144 = arith.constant 1.000000e+00 : f32
    %334 = vector.broadcast %cst_144 : f32 to vector<2x128xf32>
    %335 = arith.addf %333, %334 : vector<2x128xf32>
    %cst_145 = arith.constant 5.000000e-01 : f32
    %336 = vector.broadcast %cst_145 : f32 to vector<2x128xf32>
    %337 = arith.mulf %336, %335 : vector<2x128xf32>
    %338 = arith.mulf %327, %259 : vector<2x128xf32>
    %339 = arith.mulf %319, %329 : vector<2x128xf32>
    %340 = arith.addf %338, %339 : vector<2x128xf32>
    %341 = math.tanh %340 : vector<2x128xf32>
    %342 = arith.mulf %337, %341 : vector<2x128xf32>
    %343 = arith.index_cast %c3_i32_120 : i32 to index
    %c0_146 = arith.constant 0 : index
    %c0_147 = arith.constant 0 : index
    %344 = vector.load %arg10[%343, %c0_146, %c0_147] : memref<4x2x128xf32, #tpu.memory_space<vmem>>, vector<1x2x128xf32>
    %345 = vector.shape_cast %344 : vector<1x2x128xf32> to vector<2x128xf32>
    %346 = vector.shape_cast %306 : vector<2x128xf32> to vector<1x2x128xf32>
    tpu.vector_store %arg10[%343, %c0_146, %c0_147], %346 {strides = array<i32>} : memref<4x2x128xf32, #tpu.memory_space<vmem>>, vector<1x2x128xf32>,
    %347 = arith.index_cast %270 : i32 to index
    %c0_148 = arith.constant 0 : index
    %c0_149 = arith.constant 0 : index
    %348 = vector.load %arg11[%347, %c0_148, %c0_149] : memref<4x2x128xf32, #tpu.memory_space<vmem>>, vector<1x2x128xf32>
    %349 = vector.shape_cast %348 : vector<1x2x128xf32> to vector<2x128xf32>
    %350 = vector.shape_cast %342 : vector<2x128xf32> to vector<1x2x128xf32>
    tpu.vector_store %arg11[%347, %c0_148, %c0_149], %350 {strides = array<i32>} : memref<4x2x128xf32, #tpu.memory_space<vmem>>, vector<1x2x128xf32>,
    %c4_i32 = arith.constant 4 : i32
    %c0_150 = arith.constant 0 : index
    %c0_151 = arith.constant 0 : index
    %351 = vector.load %arg14[%c0_150, %c0_151] : memref<2x128xf32, #tpu.memory_space<vmem>>, vector<2x128xf32>
    tpu.vector_store %arg14[%c0_150, %c0_151], %306 {strides = array<i32>} : memref<2x128xf32, #tpu.memory_space<vmem>>, vector<2x128xf32>,
    %c0_152 = arith.constant 0 : index
    %c0_153 = arith.constant 0 : index
    %352 = vector.load %arg15[%c0_152, %c0_153] : memref<2x128xf32, #tpu.memory_space<vmem>>, vector<2x128xf32>
    tpu.vector_store %arg15[%c0_152, %c0_153], %304 {strides = array<i32>} : memref<2x128xf32, #tpu.memory_space<vmem>>, vector<2x128xf32>,
    %c0_154 = arith.constant 0 : index
    %c0_155 = arith.constant 0 : index
    %353 = vector.load %arg16[%c0_154, %c0_155] : memref<2x128xf32, #tpu.memory_space<vmem>>, vector<2x128xf32>
    tpu.vector_store %arg16[%c0_154, %c0_155], %342 {strides = array<i32>} : memref<2x128xf32, #tpu.memory_space<vmem>>, vector<2x128xf32>,
    %c0_156 = arith.constant 0 : index
    %c0_157 = arith.constant 0 : index
    %354 = vector.load %arg17[%c0_156, %c0_157] : memref<2x128xf32, #tpu.memory_space<vmem>>, vector<2x128xf32>
    tpu.vector_store %arg17[%c0_156, %c0_157], %340 {strides = array<i32>} : memref<2x128xf32, #tpu.memory_space<vmem>>, vector<2x128xf32>,
    return
  }
  func.func @transform_0(%arg0: i32, %arg1: i32) -> (i32, i32, i32) {
    %c0_i32 = arith.constant 0 : i32
    %c0_i32_0 = arith.constant 0 : i32
    return %arg1, %arg0, %c0_i32 : i32, i32, i32
  }
  func.func @transform_1(%arg0: i32, %arg1: i32) -> (i32, i32, i32) {
    %c1_i32 = arith.constant 1 : i32
    %0 = arith.subi %c1_i32, %arg1 : i32
    %c0_i32 = arith.constant 0 : i32
    %c0_i32_0 = arith.constant 0 : i32
    return %0, %arg0, %c0_i32 : i32, i32, i32
  }
  func.func @transform_2(%arg0: i32, %arg1: i32) -> (i32, i32) {
    %c0_i32 = arith.constant 0 : i32
    %c0_i32_0 = arith.constant 0 : i32
    %c0_i32_1 = arith.constant 0 : i32
    return %c0_i32, %c0_i32_0 : i32, i32
  }
  func.func @transform_3(%arg0: i32, %arg1: i32) -> (i32, i32) {
    %c0_i32 = arith.constant 0 : i32
    %c0_i32_0 = arith.constant 0 : i32
    %c0_i32_1 = arith.constant 0 : i32
    return %c0_i32, %c0_i32_0 : i32, i32
  }
  func.func @transform_4(%arg0: i32, %arg1: i32) -> (i32, i32) {
    %c0_i32 = arith.constant 0 : i32
    %c0_i32_0 = arith.constant 0 : i32
    %c0_i32_1 = arith.constant 0 : i32
    return %c0_i32, %c0_i32_0 : i32, i32
  }
  func.func @transform_5(%arg0: i32, %arg1: i32) -> (i32, i32) {
    %c0_i32 = arith.constant 0 : i32
    %c0_i32_0 = arith.constant 0 : i32
    %c0_i32_1 = arith.constant 0 : i32
    return %c0_i32, %c0_i32_0 : i32, i32
  }
  func.func @transform_6(%arg0: i32, %arg1: i32) -> (i32, i32) {
    %c0_i32 = arith.constant 0 : i32
    %c0_i32_0 = arith.constant 0 : i32
    %c0_i32_1 = arith.constant 0 : i32
    return %c0_i32, %c0_i32_0 : i32, i32
  }
  func.func @transform_7(%arg0: i32, %arg1: i32) -> (i32, i32) {
    %c0_i32 = arith.constant 0 : i32
    %c0_i32_0 = arith.constant 0 : i32
    %c0_i32_1 = arith.constant 0 : i32
    return %c0_i32, %c0_i32_0 : i32, i32
  }
  func.func @transform_8(%arg0: i32, %arg1: i32) -> (i32, i32, i32) {
    %c0_i32 = arith.constant 0 : i32
    %c0_i32_0 = arith.constant 0 : i32
    return %arg1, %arg0, %c0_i32 : i32, i32, i32
  }
  func.func @transform_9(%arg0: i32, %arg1: i32) -> (i32, i32, i32) {
    %c1_i32 = arith.constant 1 : i32
    %0 = arith.subi %c1_i32, %arg1 : i32
    %c0_i32 = arith.constant 0 : i32
    %c0_i32_0 = arith.constant 0 : i32
    return %0, %arg0, %c0_i32 : i32, i32, i32
  }
}

module attributes {stable_mosaic.version = 11 : i64} {
  func.func @_bilstm_layer_kernel(%arg0: i32, %arg1: i32, %arg2: memref<4x2x128xf32, #tpu.memory_space<vmem>>, %arg3: memref<4x2x128xf32, #tpu.memory_space<vmem>>, %arg4: memref<4x2x128xf32, #tpu.memory_space<vmem>>, %arg5: memref<4x2x128xf32, #tpu.memory_space<vmem>>, %arg6: memref<128x512xf32, #tpu.memory_space<vmem>>, %arg7: memref<128x512xf32, #tpu.memory_space<vmem>>, %arg8: memref<128x512xf32, #tpu.memory_space<vmem>>, %arg9: memref<128x512xf32, #tpu.memory_space<vmem>>, %arg10: memref<128x512xf32, #tpu.memory_space<vmem>>, %arg11: memref<128x512xf32, #tpu.memory_space<vmem>>, %arg12: memref<1x512xf32, #tpu.memory_space<vmem>>, %arg13: memref<1x512xf32, #tpu.memory_space<vmem>>, %arg14: memref<256x128xf32, #tpu.memory_space<vmem>>, %arg15: memref<1x128xf32, #tpu.memory_space<vmem>>, %arg16: memref<2x128xf32, #tpu.memory_space<vmem>>, %arg17: memref<4x2x512xf32, #tpu.memory_space<vmem>>, %arg18: memref<4x2x512xf32, #tpu.memory_space<vmem>>, %arg19: memref<2x128xf32, #tpu.memory_space<vmem>>, %arg20: memref<2x128xf32, #tpu.memory_space<vmem>>, %arg21: memref<2x128xf32, #tpu.memory_space<vmem>>, %arg22: memref<2x128xf32, #tpu.memory_space<vmem>>) attributes {dimension_semantics = [#tpu.dimension_semantics<parallel>, #tpu.dimension_semantics<arbitrary>], iteration_bounds = array<i64: 1, 2>, scalar_prefetch = 0 : i64, scratch_operands = 6 : i64, tpu.core_type = #tpu.core_type<tc>, window_params = [{transform_indices = @transform_0, window_bounds = array<i64: 4, 2, 128>}, {transform_indices = @transform_1, window_bounds = array<i64: 4, 2, 128>}, {transform_indices = @transform_2, window_bounds = array<i64: 4, 2, 128>}, {transform_indices = @transform_3, window_bounds = array<i64: 4, 2, 128>}, {pipeline_mode = #tpu.pipeline_mode<synchronous>, transform_indices = @transform_4, window_bounds = array<i64: 128, 512>}, {pipeline_mode = #tpu.pipeline_mode<synchronous>, transform_indices = @transform_5, window_bounds = array<i64: 128, 512>}, {pipeline_mode = #tpu.pipeline_mode<synchronous>, transform_indices = @transform_6, window_bounds = array<i64: 128, 512>}, {pipeline_mode = #tpu.pipeline_mode<synchronous>, transform_indices = @transform_7, window_bounds = array<i64: 128, 512>}, {pipeline_mode = #tpu.pipeline_mode<synchronous>, transform_indices = @transform_8, window_bounds = array<i64: 128, 512>}, {pipeline_mode = #tpu.pipeline_mode<synchronous>, transform_indices = @transform_9, window_bounds = array<i64: 128, 512>}, {pipeline_mode = #tpu.pipeline_mode<synchronous>, transform_indices = @transform_10, window_bounds = array<i64: 1, 512>}, {pipeline_mode = #tpu.pipeline_mode<synchronous>, transform_indices = @transform_11, window_bounds = array<i64: 1, 512>}, {pipeline_mode = #tpu.pipeline_mode<synchronous>, transform_indices = @transform_12, window_bounds = array<i64: 256, 128>}, {pipeline_mode = #tpu.pipeline_mode<synchronous>, transform_indices = @transform_13, window_bounds = array<i64: 1, 128>}, {transform_indices = @transform_14, window_bounds = array<i64: 2, 128>}]} {
    %c0_i32 = arith.constant 0 : i32
    %0 = arith.cmpi eq, %arg1, %c0_i32 : i32
    %1 = arith.extui %0 : i1 to i32
    %c0_i32_0 = arith.constant 0 : i32
    %2 = arith.cmpi ne, %1, %c0_i32_0 : i32
    scf.if %2 {
      %cst_156 = arith.constant 0.000000e+00 : f32
      %336 = vector.broadcast %cst_156 : f32 to vector<2x128xf32>
      %c0_157 = arith.constant 0 : index
      %c0_158 = arith.constant 0 : index
      %337 = vector.load %arg19[%c0_157, %c0_158] : memref<2x128xf32, #tpu.memory_space<vmem>>, vector<2x128xf32>
      tpu.vector_store %arg19[%c0_157, %c0_158], %336 {strides = array<i32>} : memref<2x128xf32, #tpu.memory_space<vmem>>, vector<2x128xf32>,
      %c0_159 = arith.constant 0 : index
      %c0_160 = arith.constant 0 : index
      %338 = vector.load %arg20[%c0_159, %c0_160] : memref<2x128xf32, #tpu.memory_space<vmem>>, vector<2x128xf32>
      tpu.vector_store %arg20[%c0_159, %c0_160], %336 {strides = array<i32>} : memref<2x128xf32, #tpu.memory_space<vmem>>, vector<2x128xf32>,
      %c0_161 = arith.constant 0 : index
      %c0_162 = arith.constant 0 : index
      %339 = vector.load %arg21[%c0_161, %c0_162] : memref<2x128xf32, #tpu.memory_space<vmem>>, vector<2x128xf32>
      tpu.vector_store %arg21[%c0_161, %c0_162], %336 {strides = array<i32>} : memref<2x128xf32, #tpu.memory_space<vmem>>, vector<2x128xf32>,
      %c0_163 = arith.constant 0 : index
      %c0_164 = arith.constant 0 : index
      %340 = vector.load %arg22[%c0_163, %c0_164] : memref<2x128xf32, #tpu.memory_space<vmem>>, vector<2x128xf32>
      tpu.vector_store %arg22[%c0_163, %c0_164], %336 {strides = array<i32>} : memref<2x128xf32, #tpu.memory_space<vmem>>, vector<2x128xf32>,
    } else {
    }
    %c0 = arith.constant 0 : index
    %c0_1 = arith.constant 0 : index
    %c0_2 = arith.constant 0 : index
    %3 = vector.load %arg2[%c0, %c0_1, %c0_2] : memref<4x2x128xf32, #tpu.memory_space<vmem>>, vector<4x2x128xf32>
    %4 = vector.shape_cast %3 : vector<4x2x128xf32> to vector<8x128xf32>
    %c0_3 = arith.constant 0 : index
    %c0_4 = arith.constant 0 : index
    %5 = vector.load %arg6[%c0_3, %c0_4] : memref<128x512xf32, #tpu.memory_space<vmem>>, vector<128x512xf32>
    %cst = arith.constant dense<0.000000e+00> : vector<8x512xf32>
    %6 = tpu.matmul %4, %5, %cst {dimension_numbers = #tpu.dot_dimension_numbers<[1], [0], [0], [1], [0, 0, 1, 1], [], []>} : vector<8x128xf32>, vector<128x512xf32>, vector<8x512xf32> -> vector<8x512xf32>
    %c0_5 = arith.constant 0 : index
    %c0_6 = arith.constant 0 : index
    %c0_7 = arith.constant 0 : index
    %7 = vector.load %arg3[%c0_5, %c0_6, %c0_7] : memref<4x2x128xf32, #tpu.memory_space<vmem>>, vector<4x2x128xf32>
    %8 = vector.shape_cast %7 : vector<4x2x128xf32> to vector<8x128xf32>
    %c0_8 = arith.constant 0 : index
    %c0_9 = arith.constant 0 : index
    %9 = vector.load %arg7[%c0_8, %c0_9] : memref<128x512xf32, #tpu.memory_space<vmem>>, vector<128x512xf32>
    %cst_10 = arith.constant dense<0.000000e+00> : vector<8x512xf32>
    %10 = tpu.matmul %8, %9, %cst_10 {dimension_numbers = #tpu.dot_dimension_numbers<[1], [0], [0], [1], [0, 0, 1, 1], [], []>} : vector<8x128xf32>, vector<128x512xf32>, vector<8x512xf32> -> vector<8x512xf32>
    %11 = arith.addf %6, %10 : vector<8x512xf32>
    %c0_11 = arith.constant 0 : index
    %c0_12 = arith.constant 0 : index
    %12 = vector.load %arg12[%c0_11, %c0_12] : memref<1x512xf32, #tpu.memory_space<vmem>>, vector<1x512xf32>
    %13 = vector.broadcast %12 : vector<1x512xf32> to vector<8x512xf32>
    %14 = arith.addf %11, %13 : vector<8x512xf32>
    %15 = vector.shape_cast %14 : vector<8x512xf32> to vector<4x2x512xf32>
    %c0_13 = arith.constant 0 : index
    %c0_14 = arith.constant 0 : index
    %c0_15 = arith.constant 0 : index
    %16 = vector.load %arg17[%c0_13, %c0_14, %c0_15] : memref<4x2x512xf32, #tpu.memory_space<vmem>>, vector<4x2x512xf32>
    tpu.vector_store %arg17[%c0_13, %c0_14, %c0_15], %15 {strides = array<i32>} : memref<4x2x512xf32, #tpu.memory_space<vmem>>, vector<4x2x512xf32>,
    %c0_16 = arith.constant 0 : index
    %c0_17 = arith.constant 0 : index
    %c0_18 = arith.constant 0 : index
    %17 = vector.load %arg4[%c0_16, %c0_17, %c0_18] : memref<4x2x128xf32, #tpu.memory_space<vmem>>, vector<4x2x128xf32>
    %18 = vector.shape_cast %17 : vector<4x2x128xf32> to vector<8x128xf32>
    %c0_19 = arith.constant 0 : index
    %c0_20 = arith.constant 0 : index
    %19 = vector.load %arg8[%c0_19, %c0_20] : memref<128x512xf32, #tpu.memory_space<vmem>>, vector<128x512xf32>
    %cst_21 = arith.constant dense<0.000000e+00> : vector<8x512xf32>
    %20 = tpu.matmul %18, %19, %cst_21 {dimension_numbers = #tpu.dot_dimension_numbers<[1], [0], [0], [1], [0, 0, 1, 1], [], []>} : vector<8x128xf32>, vector<128x512xf32>, vector<8x512xf32> -> vector<8x512xf32>
    %c0_22 = arith.constant 0 : index
    %c0_23 = arith.constant 0 : index
    %c0_24 = arith.constant 0 : index
    %21 = vector.load %arg5[%c0_22, %c0_23, %c0_24] : memref<4x2x128xf32, #tpu.memory_space<vmem>>, vector<4x2x128xf32>
    %22 = vector.shape_cast %21 : vector<4x2x128xf32> to vector<8x128xf32>
    %c0_25 = arith.constant 0 : index
    %c0_26 = arith.constant 0 : index
    %23 = vector.load %arg9[%c0_25, %c0_26] : memref<128x512xf32, #tpu.memory_space<vmem>>, vector<128x512xf32>
    %cst_27 = arith.constant dense<0.000000e+00> : vector<8x512xf32>
    %24 = tpu.matmul %22, %23, %cst_27 {dimension_numbers = #tpu.dot_dimension_numbers<[1], [0], [0], [1], [0, 0, 1, 1], [], []>} : vector<8x128xf32>, vector<128x512xf32>, vector<8x512xf32> -> vector<8x512xf32>
    %25 = arith.addf %20, %24 : vector<8x512xf32>
    %c0_28 = arith.constant 0 : index
    %c0_29 = arith.constant 0 : index
    %26 = vector.load %arg13[%c0_28, %c0_29] : memref<1x512xf32, #tpu.memory_space<vmem>>, vector<1x512xf32>
    %27 = vector.broadcast %26 : vector<1x512xf32> to vector<8x512xf32>
    %28 = arith.addf %25, %27 : vector<8x512xf32>
    %29 = vector.shape_cast %28 : vector<8x512xf32> to vector<4x2x512xf32>
    %c0_30 = arith.constant 0 : index
    %c0_31 = arith.constant 0 : index
    %c0_32 = arith.constant 0 : index
    %30 = vector.load %arg18[%c0_30, %c0_31, %c0_32] : memref<4x2x512xf32, #tpu.memory_space<vmem>>, vector<4x2x512xf32>
    tpu.vector_store %arg18[%c0_30, %c0_31, %c0_32], %29 {strides = array<i32>} : memref<4x2x512xf32, #tpu.memory_space<vmem>>, vector<4x2x512xf32>,
    %c0_33 = arith.constant 0 : index
    %c0_34 = arith.constant 0 : index
    %31 = vector.load %arg10[%c0_33, %c0_34] : memref<128x512xf32, #tpu.memory_space<vmem>>, vector<128x512xf32>
    %c0_35 = arith.constant 0 : index
    %c0_36 = arith.constant 0 : index
    %32 = vector.load %arg11[%c0_35, %c0_36] : memref<128x512xf32, #tpu.memory_space<vmem>>, vector<128x512xf32>
    %c0_37 = arith.constant 0 : index
    %c0_38 = arith.constant 0 : index
    %33 = vector.load %arg19[%c0_37, %c0_38] : memref<2x128xf32, #tpu.memory_space<vmem>>, vector<2x128xf32>
    %c0_39 = arith.constant 0 : index
    %c0_40 = arith.constant 0 : index
    %34 = vector.load %arg20[%c0_39, %c0_40] : memref<2x128xf32, #tpu.memory_space<vmem>>, vector<2x128xf32>
    %c0_41 = arith.constant 0 : index
    %c0_42 = arith.constant 0 : index
    %35 = vector.load %arg21[%c0_41, %c0_42] : memref<2x128xf32, #tpu.memory_space<vmem>>, vector<2x128xf32>
    %c0_43 = arith.constant 0 : index
    %c0_44 = arith.constant 0 : index
    %36 = vector.load %arg22[%c0_43, %c0_44] : memref<2x128xf32, #tpu.memory_space<vmem>>, vector<2x128xf32>
    %c0_i32_45 = arith.constant 0 : i32
    %c3_i32 = arith.constant 3 : i32
    %37 = arith.subi %c3_i32, %c0_i32_45 : i32
    %38 = arith.index_cast %c0_i32_45 : i32 to index
    %c0_46 = arith.constant 0 : index
    %c0_47 = arith.constant 0 : index
    %39 = vector.load %arg17[%38, %c0_46, %c0_47] : memref<4x2x512xf32, #tpu.memory_space<vmem>>, vector<1x2x512xf32>
    %40 = vector.shape_cast %39 : vector<1x2x512xf32> to vector<2x512xf32>
    %cst_48 = arith.constant dense<0.000000e+00> : vector<2x512xf32>
    %41 = tpu.matmul %33, %31, %cst_48 {dimension_numbers = #tpu.dot_dimension_numbers<[1], [0], [0], [1], [0, 0, 1, 1], [], []>} : vector<2x128xf32>, vector<128x512xf32>, vector<2x512xf32> -> vector<2x512xf32>
    %42 = arith.addf %40, %41 : vector<2x512xf32>
    %43 = vector.extract_strided_slice %42 {offsets = [0, 0], sizes = [2, 128], strides = [1, 1]} : vector<2x512xf32> to vector<2x128xf32>
    %cst_49 = arith.constant 5.000000e-01 : f32
    %44 = vector.broadcast %cst_49 : f32 to vector<2x128xf32>
    %45 = arith.mulf %44, %43 : vector<2x128xf32>
    %46 = math.tanh %45 : vector<2x128xf32>
    %cst_50 = arith.constant 1.000000e+00 : f32
    %47 = vector.broadcast %cst_50 : f32 to vector<2x128xf32>
    %48 = arith.addf %46, %47 : vector<2x128xf32>
    %cst_51 = arith.constant 5.000000e-01 : f32
    %49 = vector.broadcast %cst_51 : f32 to vector<2x128xf32>
    %50 = arith.mulf %49, %48 : vector<2x128xf32>
    %51 = vector.extract_strided_slice %42 {offsets = [0, 128], sizes = [2, 128], strides = [1, 1]} : vector<2x512xf32> to vector<2x128xf32>
    %cst_52 = arith.constant 5.000000e-01 : f32
    %52 = vector.broadcast %cst_52 : f32 to vector<2x128xf32>
    %53 = arith.mulf %52, %51 : vector<2x128xf32>
    %54 = math.tanh %53 : vector<2x128xf32>
    %cst_53 = arith.constant 1.000000e+00 : f32
    %55 = vector.broadcast %cst_53 : f32 to vector<2x128xf32>
    %56 = arith.addf %54, %55 : vector<2x128xf32>
    %cst_54 = arith.constant 5.000000e-01 : f32
    %57 = vector.broadcast %cst_54 : f32 to vector<2x128xf32>
    %58 = arith.mulf %57, %56 : vector<2x128xf32>
    %59 = vector.extract_strided_slice %42 {offsets = [0, 256], sizes = [2, 128], strides = [1, 1]} : vector<2x512xf32> to vector<2x128xf32>
    %60 = math.tanh %59 : vector<2x128xf32>
    %61 = vector.extract_strided_slice %42 {offsets = [0, 384], sizes = [2, 128], strides = [1, 1]} : vector<2x512xf32> to vector<2x128xf32>
    %cst_55 = arith.constant 5.000000e-01 : f32
    %62 = vector.broadcast %cst_55 : f32 to vector<2x128xf32>
    %63 = arith.mulf %62, %61 : vector<2x128xf32>
    %64 = math.tanh %63 : vector<2x128xf32>
    %cst_56 = arith.constant 1.000000e+00 : f32
    %65 = vector.broadcast %cst_56 : f32 to vector<2x128xf32>
    %66 = arith.addf %64, %65 : vector<2x128xf32>
    %cst_57 = arith.constant 5.000000e-01 : f32
    %67 = vector.broadcast %cst_57 : f32 to vector<2x128xf32>
    %68 = arith.mulf %67, %66 : vector<2x128xf32>
    %69 = arith.mulf %58, %34 : vector<2x128xf32>
    %70 = arith.mulf %50, %60 : vector<2x128xf32>
    %71 = arith.addf %69, %70 : vector<2x128xf32>
    %72 = math.tanh %71 : vector<2x128xf32>
    %73 = arith.mulf %68, %72 : vector<2x128xf32>
    %74 = arith.index_cast %37 : i32 to index
    %c0_58 = arith.constant 0 : index
    %c0_59 = arith.constant 0 : index
    %75 = vector.load %arg18[%74, %c0_58, %c0_59] : memref<4x2x512xf32, #tpu.memory_space<vmem>>, vector<1x2x512xf32>
    %76 = vector.shape_cast %75 : vector<1x2x512xf32> to vector<2x512xf32>
    %cst_60 = arith.constant dense<0.000000e+00> : vector<2x512xf32>
    %77 = tpu.matmul %35, %32, %cst_60 {dimension_numbers = #tpu.dot_dimension_numbers<[1], [0], [0], [1], [0, 0, 1, 1], [], []>} : vector<2x128xf32>, vector<128x512xf32>, vector<2x512xf32> -> vector<2x512xf32>
    %78 = arith.addf %76, %77 : vector<2x512xf32>
    %79 = vector.extract_strided_slice %78 {offsets = [0, 0], sizes = [2, 128], strides = [1, 1]} : vector<2x512xf32> to vector<2x128xf32>
    %cst_61 = arith.constant 5.000000e-01 : f32
    %80 = vector.broadcast %cst_61 : f32 to vector<2x128xf32>
    %81 = arith.mulf %80, %79 : vector<2x128xf32>
    %82 = math.tanh %81 : vector<2x128xf32>
    %cst_62 = arith.constant 1.000000e+00 : f32
    %83 = vector.broadcast %cst_62 : f32 to vector<2x128xf32>
    %84 = arith.addf %82, %83 : vector<2x128xf32>
    %cst_63 = arith.constant 5.000000e-01 : f32
    %85 = vector.broadcast %cst_63 : f32 to vector<2x128xf32>
    %86 = arith.mulf %85, %84 : vector<2x128xf32>
    %87 = vector.extract_strided_slice %78 {offsets = [0, 128], sizes = [2, 128], strides = [1, 1]} : vector<2x512xf32> to vector<2x128xf32>
    %cst_64 = arith.constant 5.000000e-01 : f32
    %88 = vector.broadcast %cst_64 : f32 to vector<2x128xf32>
    %89 = arith.mulf %88, %87 : vector<2x128xf32>
    %90 = math.tanh %89 : vector<2x128xf32>
    %cst_65 = arith.constant 1.000000e+00 : f32
    %91 = vector.broadcast %cst_65 : f32 to vector<2x128xf32>
    %92 = arith.addf %90, %91 : vector<2x128xf32>
    %cst_66 = arith.constant 5.000000e-01 : f32
    %93 = vector.broadcast %cst_66 : f32 to vector<2x128xf32>
    %94 = arith.mulf %93, %92 : vector<2x128xf32>
    %95 = vector.extract_strided_slice %78 {offsets = [0, 256], sizes = [2, 128], strides = [1, 1]} : vector<2x512xf32> to vector<2x128xf32>
    %96 = math.tanh %95 : vector<2x128xf32>
    %97 = vector.extract_strided_slice %78 {offsets = [0, 384], sizes = [2, 128], strides = [1, 1]} : vector<2x512xf32> to vector<2x128xf32>
    %cst_67 = arith.constant 5.000000e-01 : f32
    %98 = vector.broadcast %cst_67 : f32 to vector<2x128xf32>
    %99 = arith.mulf %98, %97 : vector<2x128xf32>
    %100 = math.tanh %99 : vector<2x128xf32>
    %cst_68 = arith.constant 1.000000e+00 : f32
    %101 = vector.broadcast %cst_68 : f32 to vector<2x128xf32>
    %102 = arith.addf %100, %101 : vector<2x128xf32>
    %cst_69 = arith.constant 5.000000e-01 : f32
    %103 = vector.broadcast %cst_69 : f32 to vector<2x128xf32>
    %104 = arith.mulf %103, %102 : vector<2x128xf32>
    %105 = arith.mulf %94, %36 : vector<2x128xf32>
    %106 = arith.mulf %86, %96 : vector<2x128xf32>
    %107 = arith.addf %105, %106 : vector<2x128xf32>
    %108 = math.tanh %107 : vector<2x128xf32>
    %109 = arith.mulf %104, %108 : vector<2x128xf32>
    %c1_i32 = arith.constant 1 : i32
    %c3_i32_70 = arith.constant 3 : i32
    %110 = arith.subi %c3_i32_70, %c1_i32 : i32
    %111 = arith.index_cast %c1_i32 : i32 to index
    %c0_71 = arith.constant 0 : index
    %c0_72 = arith.constant 0 : index
    %112 = vector.load %arg17[%111, %c0_71, %c0_72] : memref<4x2x512xf32, #tpu.memory_space<vmem>>, vector<1x2x512xf32>
    %113 = vector.shape_cast %112 : vector<1x2x512xf32> to vector<2x512xf32>
    %cst_73 = arith.constant dense<0.000000e+00> : vector<2x512xf32>
    %114 = tpu.matmul %73, %31, %cst_73 {dimension_numbers = #tpu.dot_dimension_numbers<[1], [0], [0], [1], [0, 0, 1, 1], [], []>} : vector<2x128xf32>, vector<128x512xf32>, vector<2x512xf32> -> vector<2x512xf32>
    %115 = arith.addf %113, %114 : vector<2x512xf32>
    %116 = vector.extract_strided_slice %115 {offsets = [0, 0], sizes = [2, 128], strides = [1, 1]} : vector<2x512xf32> to vector<2x128xf32>
    %cst_74 = arith.constant 5.000000e-01 : f32
    %117 = vector.broadcast %cst_74 : f32 to vector<2x128xf32>
    %118 = arith.mulf %117, %116 : vector<2x128xf32>
    %119 = math.tanh %118 : vector<2x128xf32>
    %cst_75 = arith.constant 1.000000e+00 : f32
    %120 = vector.broadcast %cst_75 : f32 to vector<2x128xf32>
    %121 = arith.addf %119, %120 : vector<2x128xf32>
    %cst_76 = arith.constant 5.000000e-01 : f32
    %122 = vector.broadcast %cst_76 : f32 to vector<2x128xf32>
    %123 = arith.mulf %122, %121 : vector<2x128xf32>
    %124 = vector.extract_strided_slice %115 {offsets = [0, 128], sizes = [2, 128], strides = [1, 1]} : vector<2x512xf32> to vector<2x128xf32>
    %cst_77 = arith.constant 5.000000e-01 : f32
    %125 = vector.broadcast %cst_77 : f32 to vector<2x128xf32>
    %126 = arith.mulf %125, %124 : vector<2x128xf32>
    %127 = math.tanh %126 : vector<2x128xf32>
    %cst_78 = arith.constant 1.000000e+00 : f32
    %128 = vector.broadcast %cst_78 : f32 to vector<2x128xf32>
    %129 = arith.addf %127, %128 : vector<2x128xf32>
    %cst_79 = arith.constant 5.000000e-01 : f32
    %130 = vector.broadcast %cst_79 : f32 to vector<2x128xf32>
    %131 = arith.mulf %130, %129 : vector<2x128xf32>
    %132 = vector.extract_strided_slice %115 {offsets = [0, 256], sizes = [2, 128], strides = [1, 1]} : vector<2x512xf32> to vector<2x128xf32>
    %133 = math.tanh %132 : vector<2x128xf32>
    %134 = vector.extract_strided_slice %115 {offsets = [0, 384], sizes = [2, 128], strides = [1, 1]} : vector<2x512xf32> to vector<2x128xf32>
    %cst_80 = arith.constant 5.000000e-01 : f32
    %135 = vector.broadcast %cst_80 : f32 to vector<2x128xf32>
    %136 = arith.mulf %135, %134 : vector<2x128xf32>
    %137 = math.tanh %136 : vector<2x128xf32>
    %cst_81 = arith.constant 1.000000e+00 : f32
    %138 = vector.broadcast %cst_81 : f32 to vector<2x128xf32>
    %139 = arith.addf %137, %138 : vector<2x128xf32>
    %cst_82 = arith.constant 5.000000e-01 : f32
    %140 = vector.broadcast %cst_82 : f32 to vector<2x128xf32>
    %141 = arith.mulf %140, %139 : vector<2x128xf32>
    %142 = arith.mulf %131, %71 : vector<2x128xf32>
    %143 = arith.mulf %123, %133 : vector<2x128xf32>
    %144 = arith.addf %142, %143 : vector<2x128xf32>
    %145 = math.tanh %144 : vector<2x128xf32>
    %146 = arith.mulf %141, %145 : vector<2x128xf32>
    %147 = arith.index_cast %110 : i32 to index
    %c0_83 = arith.constant 0 : index
    %c0_84 = arith.constant 0 : index
    %148 = vector.load %arg18[%147, %c0_83, %c0_84] : memref<4x2x512xf32, #tpu.memory_space<vmem>>, vector<1x2x512xf32>
    %149 = vector.shape_cast %148 : vector<1x2x512xf32> to vector<2x512xf32>
    %cst_85 = arith.constant dense<0.000000e+00> : vector<2x512xf32>
    %150 = tpu.matmul %109, %32, %cst_85 {dimension_numbers = #tpu.dot_dimension_numbers<[1], [0], [0], [1], [0, 0, 1, 1], [], []>} : vector<2x128xf32>, vector<128x512xf32>, vector<2x512xf32> -> vector<2x512xf32>
    %151 = arith.addf %149, %150 : vector<2x512xf32>
    %152 = vector.extract_strided_slice %151 {offsets = [0, 0], sizes = [2, 128], strides = [1, 1]} : vector<2x512xf32> to vector<2x128xf32>
    %cst_86 = arith.constant 5.000000e-01 : f32
    %153 = vector.broadcast %cst_86 : f32 to vector<2x128xf32>
    %154 = arith.mulf %153, %152 : vector<2x128xf32>
    %155 = math.tanh %154 : vector<2x128xf32>
    %cst_87 = arith.constant 1.000000e+00 : f32
    %156 = vector.broadcast %cst_87 : f32 to vector<2x128xf32>
    %157 = arith.addf %155, %156 : vector<2x128xf32>
    %cst_88 = arith.constant 5.000000e-01 : f32
    %158 = vector.broadcast %cst_88 : f32 to vector<2x128xf32>
    %159 = arith.mulf %158, %157 : vector<2x128xf32>
    %160 = vector.extract_strided_slice %151 {offsets = [0, 128], sizes = [2, 128], strides = [1, 1]} : vector<2x512xf32> to vector<2x128xf32>
    %cst_89 = arith.constant 5.000000e-01 : f32
    %161 = vector.broadcast %cst_89 : f32 to vector<2x128xf32>
    %162 = arith.mulf %161, %160 : vector<2x128xf32>
    %163 = math.tanh %162 : vector<2x128xf32>
    %cst_90 = arith.constant 1.000000e+00 : f32
    %164 = vector.broadcast %cst_90 : f32 to vector<2x128xf32>
    %165 = arith.addf %163, %164 : vector<2x128xf32>
    %cst_91 = arith.constant 5.000000e-01 : f32
    %166 = vector.broadcast %cst_91 : f32 to vector<2x128xf32>
    %167 = arith.mulf %166, %165 : vector<2x128xf32>
    %168 = vector.extract_strided_slice %151 {offsets = [0, 256], sizes = [2, 128], strides = [1, 1]} : vector<2x512xf32> to vector<2x128xf32>
    %169 = math.tanh %168 : vector<2x128xf32>
    %170 = vector.extract_strided_slice %151 {offsets = [0, 384], sizes = [2, 128], strides = [1, 1]} : vector<2x512xf32> to vector<2x128xf32>
    %cst_92 = arith.constant 5.000000e-01 : f32
    %171 = vector.broadcast %cst_92 : f32 to vector<2x128xf32>
    %172 = arith.mulf %171, %170 : vector<2x128xf32>
    %173 = math.tanh %172 : vector<2x128xf32>
    %cst_93 = arith.constant 1.000000e+00 : f32
    %174 = vector.broadcast %cst_93 : f32 to vector<2x128xf32>
    %175 = arith.addf %173, %174 : vector<2x128xf32>
    %cst_94 = arith.constant 5.000000e-01 : f32
    %176 = vector.broadcast %cst_94 : f32 to vector<2x128xf32>
    %177 = arith.mulf %176, %175 : vector<2x128xf32>
    %178 = arith.mulf %167, %107 : vector<2x128xf32>
    %179 = arith.mulf %159, %169 : vector<2x128xf32>
    %180 = arith.addf %178, %179 : vector<2x128xf32>
    %181 = math.tanh %180 : vector<2x128xf32>
    %182 = arith.mulf %177, %181 : vector<2x128xf32>
    %c2_i32 = arith.constant 2 : i32
    %c3_i32_95 = arith.constant 3 : i32
    %183 = arith.subi %c3_i32_95, %c2_i32 : i32
    %184 = arith.index_cast %c2_i32 : i32 to index
    %c0_96 = arith.constant 0 : index
    %c0_97 = arith.constant 0 : index
    %185 = vector.load %arg17[%184, %c0_96, %c0_97] : memref<4x2x512xf32, #tpu.memory_space<vmem>>, vector<1x2x512xf32>
    %186 = vector.shape_cast %185 : vector<1x2x512xf32> to vector<2x512xf32>
    %cst_98 = arith.constant dense<0.000000e+00> : vector<2x512xf32>
    %187 = tpu.matmul %146, %31, %cst_98 {dimension_numbers = #tpu.dot_dimension_numbers<[1], [0], [0], [1], [0, 0, 1, 1], [], []>} : vector<2x128xf32>, vector<128x512xf32>, vector<2x512xf32> -> vector<2x512xf32>
    %188 = arith.addf %186, %187 : vector<2x512xf32>
    %189 = vector.extract_strided_slice %188 {offsets = [0, 0], sizes = [2, 128], strides = [1, 1]} : vector<2x512xf32> to vector<2x128xf32>
    %cst_99 = arith.constant 5.000000e-01 : f32
    %190 = vector.broadcast %cst_99 : f32 to vector<2x128xf32>
    %191 = arith.mulf %190, %189 : vector<2x128xf32>
    %192 = math.tanh %191 : vector<2x128xf32>
    %cst_100 = arith.constant 1.000000e+00 : f32
    %193 = vector.broadcast %cst_100 : f32 to vector<2x128xf32>
    %194 = arith.addf %192, %193 : vector<2x128xf32>
    %cst_101 = arith.constant 5.000000e-01 : f32
    %195 = vector.broadcast %cst_101 : f32 to vector<2x128xf32>
    %196 = arith.mulf %195, %194 : vector<2x128xf32>
    %197 = vector.extract_strided_slice %188 {offsets = [0, 128], sizes = [2, 128], strides = [1, 1]} : vector<2x512xf32> to vector<2x128xf32>
    %cst_102 = arith.constant 5.000000e-01 : f32
    %198 = vector.broadcast %cst_102 : f32 to vector<2x128xf32>
    %199 = arith.mulf %198, %197 : vector<2x128xf32>
    %200 = math.tanh %199 : vector<2x128xf32>
    %cst_103 = arith.constant 1.000000e+00 : f32
    %201 = vector.broadcast %cst_103 : f32 to vector<2x128xf32>
    %202 = arith.addf %200, %201 : vector<2x128xf32>
    %cst_104 = arith.constant 5.000000e-01 : f32
    %203 = vector.broadcast %cst_104 : f32 to vector<2x128xf32>
    %204 = arith.mulf %203, %202 : vector<2x128xf32>
    %205 = vector.extract_strided_slice %188 {offsets = [0, 256], sizes = [2, 128], strides = [1, 1]} : vector<2x512xf32> to vector<2x128xf32>
    %206 = math.tanh %205 : vector<2x128xf32>
    %207 = vector.extract_strided_slice %188 {offsets = [0, 384], sizes = [2, 128], strides = [1, 1]} : vector<2x512xf32> to vector<2x128xf32>
    %cst_105 = arith.constant 5.000000e-01 : f32
    %208 = vector.broadcast %cst_105 : f32 to vector<2x128xf32>
    %209 = arith.mulf %208, %207 : vector<2x128xf32>
    %210 = math.tanh %209 : vector<2x128xf32>
    %cst_106 = arith.constant 1.000000e+00 : f32
    %211 = vector.broadcast %cst_106 : f32 to vector<2x128xf32>
    %212 = arith.addf %210, %211 : vector<2x128xf32>
    %cst_107 = arith.constant 5.000000e-01 : f32
    %213 = vector.broadcast %cst_107 : f32 to vector<2x128xf32>
    %214 = arith.mulf %213, %212 : vector<2x128xf32>
    %215 = arith.mulf %204, %144 : vector<2x128xf32>
    %216 = arith.mulf %196, %206 : vector<2x128xf32>
    %217 = arith.addf %215, %216 : vector<2x128xf32>
    %218 = math.tanh %217 : vector<2x128xf32>
    %219 = arith.mulf %214, %218 : vector<2x128xf32>
    %220 = arith.index_cast %183 : i32 to index
    %c0_108 = arith.constant 0 : index
    %c0_109 = arith.constant 0 : index
    %221 = vector.load %arg18[%220, %c0_108, %c0_109] : memref<4x2x512xf32, #tpu.memory_space<vmem>>, vector<1x2x512xf32>
    %222 = vector.shape_cast %221 : vector<1x2x512xf32> to vector<2x512xf32>
    %cst_110 = arith.constant dense<0.000000e+00> : vector<2x512xf32>
    %223 = tpu.matmul %182, %32, %cst_110 {dimension_numbers = #tpu.dot_dimension_numbers<[1], [0], [0], [1], [0, 0, 1, 1], [], []>} : vector<2x128xf32>, vector<128x512xf32>, vector<2x512xf32> -> vector<2x512xf32>
    %224 = arith.addf %222, %223 : vector<2x512xf32>
    %225 = vector.extract_strided_slice %224 {offsets = [0, 0], sizes = [2, 128], strides = [1, 1]} : vector<2x512xf32> to vector<2x128xf32>
    %cst_111 = arith.constant 5.000000e-01 : f32
    %226 = vector.broadcast %cst_111 : f32 to vector<2x128xf32>
    %227 = arith.mulf %226, %225 : vector<2x128xf32>
    %228 = math.tanh %227 : vector<2x128xf32>
    %cst_112 = arith.constant 1.000000e+00 : f32
    %229 = vector.broadcast %cst_112 : f32 to vector<2x128xf32>
    %230 = arith.addf %228, %229 : vector<2x128xf32>
    %cst_113 = arith.constant 5.000000e-01 : f32
    %231 = vector.broadcast %cst_113 : f32 to vector<2x128xf32>
    %232 = arith.mulf %231, %230 : vector<2x128xf32>
    %233 = vector.extract_strided_slice %224 {offsets = [0, 128], sizes = [2, 128], strides = [1, 1]} : vector<2x512xf32> to vector<2x128xf32>
    %cst_114 = arith.constant 5.000000e-01 : f32
    %234 = vector.broadcast %cst_114 : f32 to vector<2x128xf32>
    %235 = arith.mulf %234, %233 : vector<2x128xf32>
    %236 = math.tanh %235 : vector<2x128xf32>
    %cst_115 = arith.constant 1.000000e+00 : f32
    %237 = vector.broadcast %cst_115 : f32 to vector<2x128xf32>
    %238 = arith.addf %236, %237 : vector<2x128xf32>
    %cst_116 = arith.constant 5.000000e-01 : f32
    %239 = vector.broadcast %cst_116 : f32 to vector<2x128xf32>
    %240 = arith.mulf %239, %238 : vector<2x128xf32>
    %241 = vector.extract_strided_slice %224 {offsets = [0, 256], sizes = [2, 128], strides = [1, 1]} : vector<2x512xf32> to vector<2x128xf32>
    %242 = math.tanh %241 : vector<2x128xf32>
    %243 = vector.extract_strided_slice %224 {offsets = [0, 384], sizes = [2, 128], strides = [1, 1]} : vector<2x512xf32> to vector<2x128xf32>
    %cst_117 = arith.constant 5.000000e-01 : f32
    %244 = vector.broadcast %cst_117 : f32 to vector<2x128xf32>
    %245 = arith.mulf %244, %243 : vector<2x128xf32>
    %246 = math.tanh %245 : vector<2x128xf32>
    %cst_118 = arith.constant 1.000000e+00 : f32
    %247 = vector.broadcast %cst_118 : f32 to vector<2x128xf32>
    %248 = arith.addf %246, %247 : vector<2x128xf32>
    %cst_119 = arith.constant 5.000000e-01 : f32
    %249 = vector.broadcast %cst_119 : f32 to vector<2x128xf32>
    %250 = arith.mulf %249, %248 : vector<2x128xf32>
    %251 = arith.mulf %240, %180 : vector<2x128xf32>
    %252 = arith.mulf %232, %242 : vector<2x128xf32>
    %253 = arith.addf %251, %252 : vector<2x128xf32>
    %254 = math.tanh %253 : vector<2x128xf32>
    %255 = arith.mulf %250, %254 : vector<2x128xf32>
    %c3_i32_120 = arith.constant 3 : i32
    %c3_i32_121 = arith.constant 3 : i32
    %256 = arith.subi %c3_i32_121, %c3_i32_120 : i32
    %257 = arith.index_cast %c3_i32_120 : i32 to index
    %c0_122 = arith.constant 0 : index
    %c0_123 = arith.constant 0 : index
    %258 = vector.load %arg17[%257, %c0_122, %c0_123] : memref<4x2x512xf32, #tpu.memory_space<vmem>>, vector<1x2x512xf32>
    %259 = vector.shape_cast %258 : vector<1x2x512xf32> to vector<2x512xf32>
    %cst_124 = arith.constant dense<0.000000e+00> : vector<2x512xf32>
    %260 = tpu.matmul %219, %31, %cst_124 {dimension_numbers = #tpu.dot_dimension_numbers<[1], [0], [0], [1], [0, 0, 1, 1], [], []>} : vector<2x128xf32>, vector<128x512xf32>, vector<2x512xf32> -> vector<2x512xf32>
    %261 = arith.addf %259, %260 : vector<2x512xf32>
    %262 = vector.extract_strided_slice %261 {offsets = [0, 0], sizes = [2, 128], strides = [1, 1]} : vector<2x512xf32> to vector<2x128xf32>
    %cst_125 = arith.constant 5.000000e-01 : f32
    %263 = vector.broadcast %cst_125 : f32 to vector<2x128xf32>
    %264 = arith.mulf %263, %262 : vector<2x128xf32>
    %265 = math.tanh %264 : vector<2x128xf32>
    %cst_126 = arith.constant 1.000000e+00 : f32
    %266 = vector.broadcast %cst_126 : f32 to vector<2x128xf32>
    %267 = arith.addf %265, %266 : vector<2x128xf32>
    %cst_127 = arith.constant 5.000000e-01 : f32
    %268 = vector.broadcast %cst_127 : f32 to vector<2x128xf32>
    %269 = arith.mulf %268, %267 : vector<2x128xf32>
    %270 = vector.extract_strided_slice %261 {offsets = [0, 128], sizes = [2, 128], strides = [1, 1]} : vector<2x512xf32> to vector<2x128xf32>
    %cst_128 = arith.constant 5.000000e-01 : f32
    %271 = vector.broadcast %cst_128 : f32 to vector<2x128xf32>
    %272 = arith.mulf %271, %270 : vector<2x128xf32>
    %273 = math.tanh %272 : vector<2x128xf32>
    %cst_129 = arith.constant 1.000000e+00 : f32
    %274 = vector.broadcast %cst_129 : f32 to vector<2x128xf32>
    %275 = arith.addf %273, %274 : vector<2x128xf32>
    %cst_130 = arith.constant 5.000000e-01 : f32
    %276 = vector.broadcast %cst_130 : f32 to vector<2x128xf32>
    %277 = arith.mulf %276, %275 : vector<2x128xf32>
    %278 = vector.extract_strided_slice %261 {offsets = [0, 256], sizes = [2, 128], strides = [1, 1]} : vector<2x512xf32> to vector<2x128xf32>
    %279 = math.tanh %278 : vector<2x128xf32>
    %280 = vector.extract_strided_slice %261 {offsets = [0, 384], sizes = [2, 128], strides = [1, 1]} : vector<2x512xf32> to vector<2x128xf32>
    %cst_131 = arith.constant 5.000000e-01 : f32
    %281 = vector.broadcast %cst_131 : f32 to vector<2x128xf32>
    %282 = arith.mulf %281, %280 : vector<2x128xf32>
    %283 = math.tanh %282 : vector<2x128xf32>
    %cst_132 = arith.constant 1.000000e+00 : f32
    %284 = vector.broadcast %cst_132 : f32 to vector<2x128xf32>
    %285 = arith.addf %283, %284 : vector<2x128xf32>
    %cst_133 = arith.constant 5.000000e-01 : f32
    %286 = vector.broadcast %cst_133 : f32 to vector<2x128xf32>
    %287 = arith.mulf %286, %285 : vector<2x128xf32>
    %288 = arith.mulf %277, %217 : vector<2x128xf32>
    %289 = arith.mulf %269, %279 : vector<2x128xf32>
    %290 = arith.addf %288, %289 : vector<2x128xf32>
    %291 = math.tanh %290 : vector<2x128xf32>
    %292 = arith.mulf %287, %291 : vector<2x128xf32>
    %293 = arith.index_cast %256 : i32 to index
    %c0_134 = arith.constant 0 : index
    %c0_135 = arith.constant 0 : index
    %294 = vector.load %arg18[%293, %c0_134, %c0_135] : memref<4x2x512xf32, #tpu.memory_space<vmem>>, vector<1x2x512xf32>
    %295 = vector.shape_cast %294 : vector<1x2x512xf32> to vector<2x512xf32>
    %cst_136 = arith.constant dense<0.000000e+00> : vector<2x512xf32>
    %296 = tpu.matmul %255, %32, %cst_136 {dimension_numbers = #tpu.dot_dimension_numbers<[1], [0], [0], [1], [0, 0, 1, 1], [], []>} : vector<2x128xf32>, vector<128x512xf32>, vector<2x512xf32> -> vector<2x512xf32>
    %297 = arith.addf %295, %296 : vector<2x512xf32>
    %298 = vector.extract_strided_slice %297 {offsets = [0, 0], sizes = [2, 128], strides = [1, 1]} : vector<2x512xf32> to vector<2x128xf32>
    %cst_137 = arith.constant 5.000000e-01 : f32
    %299 = vector.broadcast %cst_137 : f32 to vector<2x128xf32>
    %300 = arith.mulf %299, %298 : vector<2x128xf32>
    %301 = math.tanh %300 : vector<2x128xf32>
    %cst_138 = arith.constant 1.000000e+00 : f32
    %302 = vector.broadcast %cst_138 : f32 to vector<2x128xf32>
    %303 = arith.addf %301, %302 : vector<2x128xf32>
    %cst_139 = arith.constant 5.000000e-01 : f32
    %304 = vector.broadcast %cst_139 : f32 to vector<2x128xf32>
    %305 = arith.mulf %304, %303 : vector<2x128xf32>
    %306 = vector.extract_strided_slice %297 {offsets = [0, 128], sizes = [2, 128], strides = [1, 1]} : vector<2x512xf32> to vector<2x128xf32>
    %cst_140 = arith.constant 5.000000e-01 : f32
    %307 = vector.broadcast %cst_140 : f32 to vector<2x128xf32>
    %308 = arith.mulf %307, %306 : vector<2x128xf32>
    %309 = math.tanh %308 : vector<2x128xf32>
    %cst_141 = arith.constant 1.000000e+00 : f32
    %310 = vector.broadcast %cst_141 : f32 to vector<2x128xf32>
    %311 = arith.addf %309, %310 : vector<2x128xf32>
    %cst_142 = arith.constant 5.000000e-01 : f32
    %312 = vector.broadcast %cst_142 : f32 to vector<2x128xf32>
    %313 = arith.mulf %312, %311 : vector<2x128xf32>
    %314 = vector.extract_strided_slice %297 {offsets = [0, 256], sizes = [2, 128], strides = [1, 1]} : vector<2x512xf32> to vector<2x128xf32>
    %315 = math.tanh %314 : vector<2x128xf32>
    %316 = vector.extract_strided_slice %297 {offsets = [0, 384], sizes = [2, 128], strides = [1, 1]} : vector<2x512xf32> to vector<2x128xf32>
    %cst_143 = arith.constant 5.000000e-01 : f32
    %317 = vector.broadcast %cst_143 : f32 to vector<2x128xf32>
    %318 = arith.mulf %317, %316 : vector<2x128xf32>
    %319 = math.tanh %318 : vector<2x128xf32>
    %cst_144 = arith.constant 1.000000e+00 : f32
    %320 = vector.broadcast %cst_144 : f32 to vector<2x128xf32>
    %321 = arith.addf %319, %320 : vector<2x128xf32>
    %cst_145 = arith.constant 5.000000e-01 : f32
    %322 = vector.broadcast %cst_145 : f32 to vector<2x128xf32>
    %323 = arith.mulf %322, %321 : vector<2x128xf32>
    %324 = arith.mulf %313, %253 : vector<2x128xf32>
    %325 = arith.mulf %305, %315 : vector<2x128xf32>
    %326 = arith.addf %324, %325 : vector<2x128xf32>
    %327 = math.tanh %326 : vector<2x128xf32>
    %328 = arith.mulf %323, %327 : vector<2x128xf32>
    %c4_i32 = arith.constant 4 : i32
    %c0_146 = arith.constant 0 : index
    %c0_147 = arith.constant 0 : index
    %329 = vector.load %arg19[%c0_146, %c0_147] : memref<2x128xf32, #tpu.memory_space<vmem>>, vector<2x128xf32>
    tpu.vector_store %arg19[%c0_146, %c0_147], %292 {strides = array<i32>} : memref<2x128xf32, #tpu.memory_space<vmem>>, vector<2x128xf32>,
    %c0_148 = arith.constant 0 : index
    %c0_149 = arith.constant 0 : index
    %330 = vector.load %arg20[%c0_148, %c0_149] : memref<2x128xf32, #tpu.memory_space<vmem>>, vector<2x128xf32>
    tpu.vector_store %arg20[%c0_148, %c0_149], %290 {strides = array<i32>} : memref<2x128xf32, #tpu.memory_space<vmem>>, vector<2x128xf32>,
    %c0_150 = arith.constant 0 : index
    %c0_151 = arith.constant 0 : index
    %331 = vector.load %arg21[%c0_150, %c0_151] : memref<2x128xf32, #tpu.memory_space<vmem>>, vector<2x128xf32>
    tpu.vector_store %arg21[%c0_150, %c0_151], %328 {strides = array<i32>} : memref<2x128xf32, #tpu.memory_space<vmem>>, vector<2x128xf32>,
    %c0_152 = arith.constant 0 : index
    %c0_153 = arith.constant 0 : index
    %332 = vector.load %arg22[%c0_152, %c0_153] : memref<2x128xf32, #tpu.memory_space<vmem>>, vector<2x128xf32>
    tpu.vector_store %arg22[%c0_152, %c0_153], %326 {strides = array<i32>} : memref<2x128xf32, #tpu.memory_space<vmem>>, vector<2x128xf32>,
    %c1_i32_154 = arith.constant 1 : i32
    %333 = arith.cmpi eq, %arg1, %c1_i32_154 : i32
    %334 = arith.extui %333 : i1 to i32
    %c0_i32_155 = arith.constant 0 : i32
    %335 = arith.cmpi ne, %334, %c0_i32_155 : i32
    scf.if %335 {
      %c0_156 = arith.constant 0 : index
      %c0_157 = arith.constant 0 : index
      %336 = vector.load %arg14[%c0_156, %c0_157] : memref<256x128xf32, #tpu.memory_space<vmem>>, vector<128x128xf32>
      %cst_158 = arith.constant dense<0.000000e+00> : vector<2x128xf32>
      %337 = tpu.matmul %292, %336, %cst_158 {dimension_numbers = #tpu.dot_dimension_numbers<[1], [0], [0], [1], [0, 0, 1, 1], [], []>} : vector<2x128xf32>, vector<128x128xf32>, vector<2x128xf32> -> vector<2x128xf32>
      %c128 = arith.constant 128 : index
      %c0_159 = arith.constant 0 : index
      %338 = vector.load %arg14[%c128, %c0_159] : memref<256x128xf32, #tpu.memory_space<vmem>>, vector<128x128xf32>
      %cst_160 = arith.constant dense<0.000000e+00> : vector<2x128xf32>
      %339 = tpu.matmul %328, %338, %cst_160 {dimension_numbers = #tpu.dot_dimension_numbers<[1], [0], [0], [1], [0, 0, 1, 1], [], []>} : vector<2x128xf32>, vector<128x128xf32>, vector<2x128xf32> -> vector<2x128xf32>
      %340 = arith.addf %337, %339 : vector<2x128xf32>
      %c0_161 = arith.constant 0 : index
      %c0_162 = arith.constant 0 : index
      %341 = vector.load %arg15[%c0_161, %c0_162] : memref<1x128xf32, #tpu.memory_space<vmem>>, vector<1x128xf32>
      %342 = vector.broadcast %341 : vector<1x128xf32> to vector<2x128xf32>
      %343 = arith.addf %340, %342 : vector<2x128xf32>
      %cst_163 = arith.constant 5.000000e-01 : f32
      %344 = vector.broadcast %cst_163 : f32 to vector<2x128xf32>
      %345 = arith.mulf %344, %343 : vector<2x128xf32>
      %346 = math.tanh %345 : vector<2x128xf32>
      %cst_164 = arith.constant 1.000000e+00 : f32
      %347 = vector.broadcast %cst_164 : f32 to vector<2x128xf32>
      %348 = arith.addf %346, %347 : vector<2x128xf32>
      %cst_165 = arith.constant 5.000000e-01 : f32
      %349 = vector.broadcast %cst_165 : f32 to vector<2x128xf32>
      %350 = arith.mulf %349, %348 : vector<2x128xf32>
      %c0_166 = arith.constant 0 : index
      %c0_167 = arith.constant 0 : index
      %351 = vector.load %arg16[%c0_166, %c0_167] : memref<2x128xf32, #tpu.memory_space<vmem>>, vector<2x128xf32>
      tpu.vector_store %arg16[%c0_166, %c0_167], %350 {strides = array<i32>} : memref<2x128xf32, #tpu.memory_space<vmem>>, vector<2x128xf32>,
    } else {
    }
    return
  }
  func.func @transform_0(%arg0: i32, %arg1: i32) -> (i32, i32, i32) {
    %c0_i32 = arith.constant 0 : i32
    %c0_i32_0 = arith.constant 0 : i32
    return %arg1, %arg0, %c0_i32 : i32, i32, i32
  }
  func.func @transform_1(%arg0: i32, %arg1: i32) -> (i32, i32, i32) {
    %c0_i32 = arith.constant 0 : i32
    %c0_i32_0 = arith.constant 0 : i32
    return %arg1, %arg0, %c0_i32 : i32, i32, i32
  }
  func.func @transform_2(%arg0: i32, %arg1: i32) -> (i32, i32, i32) {
    %c1_i32 = arith.constant 1 : i32
    %0 = arith.subi %c1_i32, %arg1 : i32
    %c0_i32 = arith.constant 0 : i32
    %c0_i32_0 = arith.constant 0 : i32
    return %0, %arg0, %c0_i32 : i32, i32, i32
  }
  func.func @transform_3(%arg0: i32, %arg1: i32) -> (i32, i32, i32) {
    %c1_i32 = arith.constant 1 : i32
    %0 = arith.subi %c1_i32, %arg1 : i32
    %c0_i32 = arith.constant 0 : i32
    %c0_i32_0 = arith.constant 0 : i32
    return %0, %arg0, %c0_i32 : i32, i32, i32
  }
  func.func @transform_4(%arg0: i32, %arg1: i32) -> (i32, i32) {
    %c0_i32 = arith.constant 0 : i32
    %c0_i32_0 = arith.constant 0 : i32
    %c0_i32_1 = arith.constant 0 : i32
    return %c0_i32, %c0_i32_0 : i32, i32
  }
  func.func @transform_5(%arg0: i32, %arg1: i32) -> (i32, i32) {
    %c0_i32 = arith.constant 0 : i32
    %c0_i32_0 = arith.constant 0 : i32
    %c0_i32_1 = arith.constant 0 : i32
    return %c0_i32, %c0_i32_0 : i32, i32
  }
  func.func @transform_6(%arg0: i32, %arg1: i32) -> (i32, i32) {
    %c0_i32 = arith.constant 0 : i32
    %c0_i32_0 = arith.constant 0 : i32
    %c0_i32_1 = arith.constant 0 : i32
    return %c0_i32, %c0_i32_0 : i32, i32
  }
  func.func @transform_7(%arg0: i32, %arg1: i32) -> (i32, i32) {
    %c0_i32 = arith.constant 0 : i32
    %c0_i32_0 = arith.constant 0 : i32
    %c0_i32_1 = arith.constant 0 : i32
    return %c0_i32, %c0_i32_0 : i32, i32
  }
  func.func @transform_8(%arg0: i32, %arg1: i32) -> (i32, i32) {
    %c0_i32 = arith.constant 0 : i32
    %c0_i32_0 = arith.constant 0 : i32
    %c0_i32_1 = arith.constant 0 : i32
    return %c0_i32, %c0_i32_0 : i32, i32
  }
  func.func @transform_9(%arg0: i32, %arg1: i32) -> (i32, i32) {
    %c0_i32 = arith.constant 0 : i32
    %c0_i32_0 = arith.constant 0 : i32
    %c0_i32_1 = arith.constant 0 : i32
    return %c0_i32, %c0_i32_0 : i32, i32
  }
  func.func @transform_10(%arg0: i32, %arg1: i32) -> (i32, i32) {
    %c0_i32 = arith.constant 0 : i32
    %c0_i32_0 = arith.constant 0 : i32
    %c0_i32_1 = arith.constant 0 : i32
    return %c0_i32, %c0_i32_0 : i32, i32
  }
  func.func @transform_11(%arg0: i32, %arg1: i32) -> (i32, i32) {
    %c0_i32 = arith.constant 0 : i32
    %c0_i32_0 = arith.constant 0 : i32
    %c0_i32_1 = arith.constant 0 : i32
    return %c0_i32, %c0_i32_0 : i32, i32
  }
  func.func @transform_12(%arg0: i32, %arg1: i32) -> (i32, i32) {
    %c0_i32 = arith.constant 0 : i32
    %c0_i32_0 = arith.constant 0 : i32
    %c0_i32_1 = arith.constant 0 : i32
    return %c0_i32, %c0_i32_0 : i32, i32
  }
  func.func @transform_13(%arg0: i32, %arg1: i32) -> (i32, i32) {
    %c0_i32 = arith.constant 0 : i32
    %c0_i32_0 = arith.constant 0 : i32
    %c0_i32_1 = arith.constant 0 : i32
    return %c0_i32, %c0_i32_0 : i32, i32
  }
  func.func @transform_14(%arg0: i32, %arg1: i32) -> (i32, i32) {
    %c0_i32 = arith.constant 0 : i32
    %c0_i32_0 = arith.constant 0 : i32
    return %arg0, %c0_i32 : i32, i32
  }
}

</mosaic_0001>

<bundles_post_ra>
// kernel: bilstm_forward_pallas.2
= control target key start
LH: loop header
LB: loop body
LE: loop exit
PB: predicated region body
PF: predicated region fallthrough
CT: control target
= control target key end

     0   :  { %s2319_s30 = smov 0   ;;  %s2321_s10 = smov 0   ;;  %s4014_s0 = inlined_call_operand.vmem [shape: f32[8,2,16], index: 0, kind: input, shape index: {}, may-alias: {0,1}]   ;;  %s4015_s1 = inlined_call_operand.vmem [shape: f32[8,2,16], index: 1, kind: input, shape index: {}, may-alias: {0,1}]   ;;  %s4016_s2 = inlined_call_operand.vmem [shape: f32[16,512], index: 2, kind: input, shape index: {}]   ;;  %s4017_s3 = inlined_call_operand.vmem [shape: f32[16,512], index: 3, kind: input, shape index: {}]   ;;  %s4018_s4 = inlined_call_operand.vmem [shape: f32[128,512], index: 4, kind: input, shape index: {}]   ;;  %s4019_s5 = inlined_call_operand.vmem [shape: f32[128,512], index: 5, kind: input, shape index: {}]   ;;  %s4020_s6 = inlined_call_operand.vmem [shape: f32[1,512], index: 6, kind: input, shape index: {}]   ;;  %s4021_s7 = inlined_call_operand.vmem [shape: f32[1,512], index: 7, kind: input, shape index: {}]   ;;  %s4022_s8 = inlined_call_operand.vmem [shape: f32[8,2,128], index: 8, kind: output, shape index: {0}]   ;;  %s4023_s9 = inlined_call_operand.vmem [shape: f32[8,2,128], index: 9, kind: output, shape index: {1}]  }
   0x1   :  { %s2323_s11 = smov 0  }
   0x2 LB: > { %s29_s12 = sadd.s32 1, %s2262_s10  ;;  %p1985_p0 = scmp.ge.s32.totalorder %s2266_s11, 1  ;;  %s2266_s11 = sphi %s2323_s11, %s20_s11   ;;  %s2262_s10 = sphi %s2321_s10, %s4380_s10   ;;  %s2258_s30 = sphi %s2319_s30, %s4379_s30  }
   0x3   : > { %p30_p1 = scmp.ge.s32.totalorder %s29_s12, 2  ;;  %p334_p2 = scmp.lt.s32.totalorder %s2266_s11, 3 }
   0x5   : > { %s4382_s12 = smov (%p30_p1, %s29_s12), 0  ;;  %p335_p3 = pnand %p1985_p0, %p334_p2 }
   0x7   : > { %338 = sbr.rel (%p335_p3) target bundleno = 796 (0x31c), region = 52 }
   0xc   : > { %s1986_s13 = sshll.u32 %s2258_s30, 2  ;;  %s403_s14 = ssub.s32 1, %s2258_s30 }
   0xd   : > { %p395_p4 = scmp.lt.s32.totalorder %s1986_s13, 7  ;;  %s1988_s15 = sshll.u32 %s403_s14, 2 }
   0xe   : > { %p405_p5 = scmp.lt.s32.totalorder %s1988_s15, 7  ;;  %p1994_p6 = scmp.ne.s32.totalorder %s2258_s30, 0 }
   0xf   : > { %s4384_s13 = smov (!%p395_p4, %s1986_s13), 7 }
  0x10   : > { %s4386_s15 = smov (!%p405_p5, %s1988_s15), 7  ;;  %s1987_s16 = sshll.u32 %s4384_s13, 1 }
  0x11   : > { %s2340_s19 = scalar_lea.vmem %s4014_s0, %s1987_s16  ;;  %s1989_s20 = sshll.u32 %s4386_s15, 1 }
  0x12   : > { %s2345_s23 = scalar_lea.vmem %s4015_s1, %s1989_s20  ;;  %s2350_s26 = scalar_lea.vmem %s4022_s8, %s1987_s16 }
  0x13   : > { %s2355_s29 = scalar_lea.vmem %s4023_s9, %s1989_s20  ;;  %437 = sbr.rel (%p1994_p6) target bundleno = 29 (0x1d), region = 56 }
  0x18   : > { %v2268_v0 = vmov 0.0  }
  0x19   : > { %438 = vst [vmem:[#allocation4] sm:$0x3] %v2268_v0 }
  0x1a   : > { %439 = vst [vmem:[#allocation5] sm:$0x3] %v2268_v0 }
  0x1b   : > { %440 = vst [vmem:[#allocation6] sm:$0x3] %v2268_v0 }
  0x1c   : > { %441 = vst [vmem:[#allocation7] sm:$0x3] %v2268_v0 }
  0x1d PF: > { %v452_v1 = vld [vmem:[%s4016_s2 + $0x30] sm:$0xff]  ;;  %v453_v2 = vld [vmem:[%s4016_s2 + $0x38] sm:$0xff]  ;;  %v451_v9 = vld [vmem:[%s4016_s2 + $0x28] sm:$0xff]  ;;  %vm476_vm0 = vcmask 130048   ;;  %vm572_vm1 = vcmask 1043458   ;;  %vm568_vm2 = vcmask 1045508  }
  0x1e   : > { %v448_v3 = vld [vmem:[%s4016_s2 + $0x10] sm:$0xff]  ;;  %533 = vmatpush.msra.mxu2 %v452_v1  ;;  %553 = vmatpush.msra.mxu3 %v453_v2  ;;  %v449_v4 = vld [vmem:[%s4016_s2 + $0x18] sm:$0xff]  ;;  %v442_v10 = vld [vmem:[%s2340_s19] sm:$0x3]  ;;  %vm574_vm3 = vcmask 1045504   ;;  %vm566_vm4 = vcmask 1041408  }
  0x1f   : > { %v605_v5 = vld [vmem:[%s4017_s3 + $0x30] sm:$0xff]  ;;  %v606_v6 = vld [vmem:[%s4017_s3 + $0x38] sm:$0xff]  ;;  %v443_v11 = vld [vmem:[%s2340_s19 + $0x2] sm:$0x3]  ;;  %468 = vst [vmem:[#allocation1] ss:$4 sm:$0xff] %v442_v10  ;;  %513 = vmatpush.msra.mxu1 %v451_v9 }
  0x20   : > { %v601_v7 = vld [vmem:[%s4017_s3 + $0x10] sm:$0xff]  ;;  %v602_v8 = vld [vmem:[%s4017_s3 + $0x18] sm:$0xff]  ;;  %534 = vmatpush.msra.mxu2 %v448_v3  ;;  %554 = vmatpush.msra.mxu3 %v449_v4  ;;  %v444_v12 = vld [vmem:[%s2340_s19 + $0x4] sm:$0x3]  ;;  %470 = vst [vmem:[#allocation1 + $0x1] ss:$4 sm:$0xff] %v443_v11 }
  0x21   : > { %v445_v13 = vld [vmem:[%s2340_s19 + $0x6] sm:$0x3]  ;;  %472 = vst [vmem:[#allocation1 + $0x2] ss:$4 sm:$0xff] %v444_v12  ;;  %v447_v15 = vld [vmem:[%s4016_s2 + $0x8] sm:$0xff]  ;;  %v2414_v23 = vld [vmem:[%s4018_s4 + $0x1f0] sm:$0xff] }
  0x22   : > { %685 = vmatpush.msrb.mxu2 %v605_v5  ;;  %705 = vmatpush.msrb.mxu3 %v606_v6  ;;  %474 = vst [vmem:[#allocation1 + $0x3] ss:$4 sm:$0xff] %v445_v13  ;;  %v450_v14 = vld [vmem:[%s4016_s2 + $0x20] sm:$0xff]  ;;  %v604_v16 = vld [vmem:[%s4017_s3 + $0x28] sm:$0xff]  ;;  %v2419_v24 = vld [vmem:[%s4018_s4 + $0x1f8] sm:$0xff]  ;;  %vm570_vm5 = vcmask 1043456  }
  0x23   : > { %493 = vmatpush.msra.mxu0 %v450_v14  ;;  %514 = vmatpush.msra.mxu1 %v447_v15  ;;  %v446_v17 = vld [vmem:[%s4016_s2] sm:$0xff]  ;;  %v600_v19 = vld [vmem:[%s4017_s3 + $0x8] sm:$0xff]  ;;  %v2428_v28 = vld [vmem:[%s4018_s4 + $0x1d0] sm:$0xff]  ;;  %vm576_vm6 = vcmask 1045506  }
  0x24   : > { %686 = vmatpush.msrb.mxu2 %v601_v7  ;;  %706 = vmatpush.msrb.mxu3 %v602_v8  ;;  %v603_v18 = vld [vmem:[%s4017_s3 + $0x20] sm:$0xff]  ;;  %v2433_v29 = vld [vmem:[%s4018_s4 + $0x1d8] sm:$0xff]  ;;  %v2440_v30 = vld [vmem:[%s4018_s4 + $0x1e8] sm:$0xff] }
  0x25   : > { %665 = vmatpush.msrb.mxu1 %v604_v16  ;;  %494 = vmatpush.msra.mxu0 %v446_v17  ;;  %v599_v20 = vld [vmem:[%s4017_s3] sm:$0xff]  ;;  %v2450_v32 = vld [vmem:[%s4018_s4 + $0x1b0] sm:$0xff]  ;;  %v2455_v33 = vld [vmem:[%s4018_s4 + $0x1b8] sm:$0xff] }
  0x26   : > { %v595_v21 = vld [vmem:[%s2345_s23] sm:$0x3]  ;;  %v596_v22 = vld [vmem:[%s2345_s23 + $0x2] sm:$0x3]  ;;  %v597_v26 = vld [vmem:[%s2345_s23 + $0x4] sm:$0x3] }
  0x27   : > { %645 = vmatpush.msrb.mxu0 %v603_v18  ;;  %666 = vmatpush.msrb.mxu1 %v600_v19  ;;  %v598_v27 = vld [vmem:[%s2345_s23 + $0x6] sm:$0x3]  ;;  %v2464_v34 = vld [vmem:[%s4018_s4 + $0x1c8] sm:$0xff]  ;;  %v2475_v36 = vld [vmem:[%s4018_s4 + $0x190] sm:$0xff] }
  0x28   : > { %v2445_v31 = vld [vmem:[%s4018_s4 + $0x1e0] sm:$0xff]  ;;  %v2480_v37 = vld [vmem:[%s4018_s4 + $0x198] sm:$0xff]  ;;  %v2488_v38 = vld [vmem:[%s4018_s4 + $0x1a8] sm:$0xff] }
  0x29   : > { %646 = vmatpush.msrb.mxu0 %v599_v20  ;;  %v475_v25 = vld.sshfl [vmem:[#allocation1] sm:$0xff pattern:$0x73625140]  ;;  %v2499_v40 = vld [vmem:[%s4018_s4 + $0x170] sm:$0xff]  ;;  %v2504_v41 = vld [vmem:[%s4018_s4 + $0x178] sm:$0xff] }
  0x2a   : > { %1997 = vmatmul.msk.f32.vlgmr.msra.gmra.mxu2 %vm476_vm0, %v475_v25  ;;  %621 = vst [vmem:[#allocation1] ss:$4 sm:$0xff] %v595_v21  ;;  %1998 = vmatmul.msk.f32.vlgmr.msra.gmra.mxu3 %vm476_vm0, %v475_v25  ;;  %v2469_v35 = vld [vmem:[%s4018_s4 + $0x1c0] sm:$0xff]  ;;  %v2512_v42 = vld [vmem:[%s4018_s4 + $0x188] sm:$0xff]  ;;  %v2523_v44 = vld [vmem:[%s4018_s4 + $0x150] sm:$0xff] }
  0x2b   : > { %623 = vst [vmem:[#allocation1 + $0x1] ss:$4 sm:$0xff] %v596_v22  ;;  %914 = vmatpush.msra.mxu2 %v2414_v23  ;;  %934 = vmatpush.msra.mxu3 %v2419_v24  ;;  %v2493_v39 = vld [vmem:[%s4018_s4 + $0x1a0] sm:$0xff]  ;;  %v2528_v45 = vld [vmem:[%s4018_s4 + $0x158] sm:$0xff]  ;;  %v2536_v46 = vld [vmem:[%s4018_s4 + $0x168] sm:$0xff] }
  0x2c   : > { %625 = vst [vmem:[#allocation1 + $0x2] ss:$4 sm:$0xff] %v597_v26  ;;  %1996 = vmatmul.msk.f32.vlgmr.msra.gmra.mxu1 %vm476_vm0, %v475_v25  ;;  %1995 = vmatmul.msk.f32.vlgmr.msra.gmra.mxu0 %vm476_vm0, %v475_v25  ;;  %v2517_v43 = vld [vmem:[%s4018_s4 + $0x180] sm:$0xff]  ;;  %v2547_v48 = vld [vmem:[%s4018_s4 + $0x130] sm:$0xff]  ;;  %v2552_v49 = vld [vmem:[%s4018_s4 + $0x138] sm:$0xff] }
  0x2d   : > { %627 = vst [vmem:[#allocation1 + $0x3] ss:$4 sm:$0xff] %v598_v27  ;;  %915 = vmatpush.msra.mxu2 %v2428_v28  ;;  %935 = vmatpush.msra.mxu3 %v2433_v29  ;;  %v2541_v47 = vld [vmem:[%s4018_s4 + $0x160] sm:$0xff]  ;;  %v2560_v50 = vld [vmem:[%s4018_s4 + $0x148] sm:$0xff]  ;;  %v2571_v52 = vld [vmem:[%s4018_s4 + $0x110] sm:$0xff] }
  0x2e   : > { %894 = vmatpush.msra.mxu1 %v2440_v30  ;;  %874 = vmatpush.msra.mxu0 %v2445_v31  ;;  %v2565_v51 = vld [vmem:[%s4018_s4 + $0x140] sm:$0xff]  ;;  %v2576_v53 = vld [vmem:[%s4018_s4 + $0x118] sm:$0xff]  ;;  %v2584_v54 = vld [vmem:[%s4018_s4 + $0x128] sm:$0xff] }
  0x2f   : > { %916 = vmatpush.msra.mxu2 %v2450_v32  ;;  %936 = vmatpush.msra.mxu3 %v2455_v33  ;;  %v2589_v55 = vld [vmem:[%s4018_s4 + $0x120] sm:$0xff]  ;;  %v2595_v56 = vld [vmem:[%s4018_s4 + $0xf0] sm:$0xff]  ;;  %v2600_v57 = vld [vmem:[%s4018_s4 + $0xf8] sm:$0xff] }
  0x30   : > { %895 = vmatpush.msra.mxu1 %v2464_v34  ;;  %875 = vmatpush.msra.mxu0 %v2469_v35  ;;  %v2608_v58 = vld [vmem:[%s4018_s4 + $0x108] sm:$0xff]  ;;  %v2613_v59 = vld [vmem:[%s4018_s4 + $0x100] sm:$0xff]  ;;  %v2619_v60 = vld [vmem:[%s4018_s4 + $0xd0] sm:$0xff] }
  0x31   : > { %917 = vmatpush.msra.mxu2 %v2475_v36  ;;  %937 = vmatpush.msra.mxu3 %v2480_v37  ;;  %v2624_v61 = vld [vmem:[%s4018_s4 + $0xd8] sm:$0xff]  ;;  %v2632_v62 = vld [vmem:[%s4018_s4 + $0xe8] sm:$0xff]  ;;  %v2638_v0 = vld [vmem:[%s4018_s4 + $0xb0] sm:$0xff] }
  0x32   : > { %896 = vmatpush.msra.mxu1 %v2488_v38  ;;  %876 = vmatpush.msra.mxu0 %v2493_v39  ;;  %v2643_v1 = vld [vmem:[%s4018_s4 + $0xb8] sm:$0xff]  ;;  %v2651_v2 = vld [vmem:[%s4018_s4 + $0xe0] sm:$0xff]  ;;  %v2657_v3 = vld [vmem:[%s4018_s4 + $0x90] sm:$0xff] }
  0x33   : > { %918 = vmatpush.msra.mxu2 %v2499_v40  ;;  %938 = vmatpush.msra.mxu3 %v2504_v41  ;;  %v2662_v4 = vld [vmem:[%s4018_s4 + $0x98] sm:$0xff]  ;;  %v2670_v5 = vld [vmem:[%s4018_s4 + $0xc8] sm:$0xff]  ;;  %v2675_v6 = vld [vmem:[%s4018_s4 + $0xc0] sm:$0xff] }
  0x34   : > { %897 = vmatpush.msra.mxu1 %v2512_v42  ;;  %877 = vmatpush.msra.mxu0 %v2517_v43  ;;  %v628_v63 = vld.sshfl [vmem:[#allocation1] sm:$0xff pattern:$0x73625140]  ;;  %v2682_v7 = vld [vmem:[%s4018_s4 + $0x70] sm:$0xff]  ;;  %v2687_v8 = vld [vmem:[%s4018_s4 + $0x78] sm:$0xff] }
  0x35   : > { %919 = vmatpush.msra.mxu2 %v2523_v44  ;;  %939 = vmatpush.msra.mxu3 %v2528_v45  ;;  %v2694_v9 = vld [vmem:[%s4018_s4 + $0xa8] sm:$0xff]  ;;  %v2699_v10 = vld [vmem:[%s4018_s4 + $0xa0] sm:$0xff]  ;;  %v2706_v11 = vld [vmem:[%s4018_s4 + $0x50] sm:$0xff] }
  0x36   : > { %898 = vmatpush.msra.mxu1 %v2536_v46  ;;  %878 = vmatpush.msra.mxu0 %v2541_v47  ;;  %v2711_v12 = vld [vmem:[%s4018_s4 + $0x58] sm:$0xff]  ;;  %v2718_v13 = vld [vmem:[%s4018_s4 + $0x88] sm:$0xff]  ;;  %v2723_v14 = vld [vmem:[%s4018_s4 + $0x80] sm:$0xff] }
  0x37   : > { %920 = vmatpush.msra.mxu2 %v2547_v48  ;;  %940 = vmatpush.msra.mxu3 %v2552_v49  ;;  %v2730_v15 = vld [vmem:[%s4018_s4 + $0x30] sm:$0xff]  ;;  %v2735_v16 = vld [vmem:[%s4018_s4 + $0x38] sm:$0xff]  ;;  %v2744_v17 = vld [vmem:[%s4018_s4 + $0x68] sm:$0xff] }
  0x38   : > { %899 = vmatpush.msra.mxu1 %v2560_v50  ;;  %879 = vmatpush.msra.mxu0 %v2565_v51  ;;  %4162 = vst [vmem:[#allocation8_spill] sm:$0xff] %v2735_v16  ;;  %v2749_v18 = vld [vmem:[%s4018_s4 + $0x10] sm:$0xff]  ;;  %v2756_v19 = vld [vmem:[%s4018_s4 + $0x18] sm:$0xff]  ;;  %v869_v20 = vld [vmem:[#allocation4] sm:$0x3] }
  0x39   : > { %921 = vmatpush.msra.mxu2 %v2571_v52  ;;  %941 = vmatpush.msra.mxu3 %v2576_v53  ;;  %4163 = vst [vmem:[#allocation9_spill] sm:$0xff] %v2749_v18  ;;  %v2763_v21 = vld [vmem:[%s4019_s5 + $0x1f0] sm:$0xff]  ;;  %v2770_v22 = vld [vmem:[%s4019_s5 + $0x1f8] sm:$0xff]  ;;  %v2775_v25 = vld [vmem:[%s4018_s4 + $0x60] sm:$0xff] }
  0x3a   : > { %900 = vmatpush.msra.mxu1 %v2584_v54  ;;  %880 = vmatpush.msra.mxu0 %v2589_v55  ;;  %4164 = vst [vmem:[#allocation10_spill] sm:$0xff] %v2756_v19  ;;  %v2781_v26 = vld [vmem:[%s4018_s4 + $0x48] sm:$0xff]  ;;  %v2786_v27 = vld [vmem:[%s4019_s5 + $0x1d0] sm:$0xff] }
  0x3b   : > { %922 = vmatpush.msra.mxu2 %v2595_v56  ;;  %942 = vmatpush.msra.mxu3 %v2600_v57  ;;  %4165 = vst [vmem:[#allocation11_spill] sm:$0xff] %v2763_v21 }
  0x3c   : > { %901 = vmatpush.msra.mxu1 %v2608_v58  ;;  %881 = vmatpush.msra.mxu0 %v2613_v59  ;;  %4166 = vst [vmem:[#allocation12_spill] sm:$0xff] %v2770_v22 }
  0x3d   : > { %923 = vmatpush.msra.mxu2 %v2619_v60  ;;  %943 = vmatpush.msra.mxu3 %v2624_v61  ;;  %4167 = vst [vmem:[#allocation13_spill] sm:$0xff] %v2781_v26 }
  0x3e   : > { %902 = vmatpush.msra.mxu1 %v2632_v62  ;;  %2001 = vmatmul.msk.f32.vlgmr.msrb.gmra.mxu2 %vm476_vm0, %v628_v63  ;;  %4168 = vst [vmem:[#allocation14_spill] sm:$0xff] %v2786_v27 }
  0x3f   : > { %924 = vmatpush.msra.mxu2 %v2638_v0  ;;  %944 = vmatpush.msra.mxu3 %v2643_v1 }
  0x40   : > { %2002 = vmatmul.msk.f32.vlgmr.msrb.gmra.mxu3 %vm476_vm0, %v628_v63  ;;  %882 = vmatpush.msra.mxu0 %v2651_v2 }
  0x41   : > { %925 = vmatpush.msra.mxu2 %v2657_v3  ;;  %945 = vmatpush.msra.mxu3 %v2662_v4 }
  0x42   : > { %903 = vmatpush.msra.mxu1 %v2670_v5  ;;  %883 = vmatpush.msra.mxu0 %v2675_v6 }
  0x43   : > { %926 = vmatpush.msra.mxu2 %v2682_v7  ;;  %946 = vmatpush.msra.mxu3 %v2687_v8 }
  0x44   : > { %904 = vmatpush.msra.mxu1 %v2694_v9  ;;  %884 = vmatpush.msra.mxu0 %v2699_v10 }
  0x45   : > { %927 = vmatpush.msra.mxu2 %v2706_v11  ;;  %947 = vmatpush.msra.mxu3 %v2711_v12 }
  0x46   : > { %905 = vmatpush.msra.mxu1 %v2718_v13  ;;  %885 = vmatpush.msra.mxu0 %v2723_v14 }
  0x47   : > { %928 = vmatpush.msra.mxu2 %v2730_v15  ;;  %948 = vmatpush.msra.mxu3 %v2735_v16  ;;  %v2821_v16 = vld [vmem:[%s4018_s4 + $0x20] sm:$0xff] }
  0x48   : > { %2000 = vmatmul.msk.f32.vlgmr.msrb.gmra.mxu1 %vm476_vm0, %v628_v63  ;;  %1999 = vmatmul.msk.f32.vlgmr.msrb.gmra.mxu0 %vm476_vm0, %v628_v63  ;;  %v2792_v63 = vld [vmem:[%s4019_s5 + $0x1d8] sm:$0xff]  ;;  %4174 = vst [vmem:[#allocation20_spill] sm:$0xff] %v2821_v16 }
  0x49   : > { %906 = vmatpush.msra.mxu1 %v2744_v17  ;;  %929 = vmatpush.msra.mxu2 %v2749_v18  ;;  %4169 = vst [vmem:[#allocation15_spill] sm:$0xff] %v2792_v63  ;;  %v2804_v18 = vld [vmem:[%s4018_s4 + $0x28] sm:$0xff] }
  0x4a   : > { %949 = vmatpush.msra.mxu3 %v2756_v19  ;;  %930 = vmatmul.f32.vlgmr.msra.gmra.mxu2 %v869_v20  ;;  %v2797_v19 = vld [vmem:[%s4018_s4 + $0x40] sm:$0xff]  ;;  %4171 = vst [vmem:[#allocation17_spill] sm:$0xff] %v2804_v18 }
  0x4b   : > { %950 = vmatmul.f32.vlgmr.msra.gmra.mxu3 %v869_v20  ;;  %1033 = vmatpush.msrb.mxu2 %v2763_v21  ;;  %4170 = vst [vmem:[#allocation16_spill] sm:$0xff] %v2797_v19  ;;  %v2809_v21 = vld [vmem:[%s4019_s5 + $0x1b0] sm:$0xff] }
  0x4c   : > { %1053 = vmatpush.msrb.mxu3 %v2770_v22  ;;  %886 = vmatpush.msra.mxu0 %v2775_v25  ;;  %4172 = vst [vmem:[#allocation18_spill] sm:$0xff] %v2809_v21  ;;  %v2816_v22 = vld [vmem:[%s4019_s5 + $0x1b8] sm:$0xff] }
  0x4d   : > { %907 = vmatpush.msra.mxu1 %v2781_v26  ;;  %1034 = vmatpush.msrb.mxu2 %v2786_v27  ;;  %4173 = vst [vmem:[#allocation19_spill] sm:$0xff] %v2816_v22  ;;  %v2828_v26 = vld [vmem:[%s4018_s4 + $0x8] sm:$0xff]  ;;  %v2833_v27 = vld [vmem:[%s4019_s5 + $0x190] sm:$0xff] }
  0x4e   : > { %1054 = vmatpush.msrb.mxu3 %v2792_v63  ;;  %887 = vmatpush.msra.mxu0 %v2797_v19  ;;  %4175 = vst [vmem:[#allocation21_spill] sm:$0xff] %v2828_v26  ;;  %v2840_v63 = vld [vmem:[%s4019_s5 + $0x198] sm:$0xff]  ;;  %v2847_v19 = vld [vmem:[%s4019_s5 + $0x1e8] sm:$0xff] }
  0x4f   : > { %4176 = vst [vmem:[#allocation22_spill] sm:$0xff] %v2833_v27  ;;  %908 = vmatpush.msra.mxu1 %v2804_v18  ;;  %1035 = vmatpush.msrb.mxu2 %v2809_v21  ;;  %v2852_v18 = vld [vmem:[%s4018_s4] sm:$0xff] }
  0x50   : > { %4177 = vst [vmem:[#allocation23_spill] sm:$0xff] %v2840_v63  ;;  %1055 = vmatpush.msrb.mxu3 %v2816_v22  ;;  %888 = vmatpush.msra.mxu0 %v2821_v16  ;;  %v2859_v22 = vld [vmem:[%s4019_s5 + $0x170] sm:$0xff]  ;;  %v2865_v21 = vld [vmem:[%s4019_s5 + $0x1e0] sm:$0xff]  ;;  %v2870_v16 = vld [vmem:[%s4019_s5 + $0x1c8] sm:$0xff] }
  0x51   : > { %4178 = vst [vmem:[#allocation24_spill] sm:$0xff] %v2847_v19  ;;  %909 = vmatpush.msra.mxu1 %v2828_v26  ;;  %1036 = vmatpush.msrb.mxu2 %v2833_v27  ;;  %v2877_v27 = vld [vmem:[%s4019_s5 + $0x178] sm:$0xff]  ;;  %v2888_v26 = vld [vmem:[%s4019_s5 + $0x1c0] sm:$0xff] }
  0x52   : > { %4179 = vst [vmem:[#allocation25_spill] sm:$0xff] %v2852_v18  ;;  %910 = vmatmul.f32.vlgmr.msra.gmra.mxu1 %v869_v20  ;;  %1056 = vmatpush.msrb.mxu3 %v2840_v63  ;;  %v2882_v63 = vld [vmem:[%s4019_s5 + $0x150] sm:$0xff] }
  0x53   : > { %4180 = vst [vmem:[#allocation26_spill] sm:$0xff] %v2859_v22  ;;  %1013 = vmatpush.msrb.mxu1 %v2847_v19  ;;  %889 = vmatpush.msra.mxu0 %v2852_v18  ;;  %v2893_v19 = vld [vmem:[%s4019_s5 + $0x1a8] sm:$0xff]  ;;  %v3147_v18 = vld [vmem:[%s4019_s5 + $0x60] sm:$0xff] }
  0x54   : > { %4181 = vst [vmem:[#allocation27_spill] sm:$0xff] %v2865_v21  ;;  %890 = vmatmul.f32.vlgmr.msra.gmra.mxu0 %v869_v20  ;;  %1037 = vmatpush.msrb.mxu2 %v2859_v22  ;;  %v2900_v20 = vld [vmem:[%s4019_s5 + $0x158] sm:$0xff]  ;;  %v2905_v22 = vld [vmem:[%s4019_s5 + $0x130] sm:$0xff] }
  0x55   : > { %4182 = vst [vmem:[#allocation28_spill] sm:$0xff] %v2870_v16  ;;  %993 = vmatpush.msrb.mxu0 %v2865_v21  ;;  %1014 = vmatpush.msrb.mxu1 %v2870_v16  ;;  %v2912_v21 = vld [vmem:[%s4019_s5 + $0x1a0] sm:$0xff]  ;;  %v2917_v16 = vld [vmem:[%s4019_s5 + $0x188] sm:$0xff] }
  0x56   : > { %4183 = vst [vmem:[#allocation29_spill] sm:$0xff] %v2877_v27  ;;  %1057 = vmatpush.msrb.mxu3 %v2877_v27  ;;  %1038 = vmatpush.msrb.mxu2 %v2882_v63  ;;  %v2924_v27 = vld [vmem:[%s4019_s5 + $0x138] sm:$0xff] }
  0x57   : > { %4184 = vst [vmem:[#allocation30_spill] sm:$0xff] %v2882_v63  ;;  %994 = vmatpush.msrb.mxu0 %v2888_v26  ;;  %1015 = vmatpush.msrb.mxu1 %v2893_v19  ;;  %v2929_v63 = vld [vmem:[%s4019_s5 + $0x110] sm:$0xff] }
  0x58   : > { %4185 = vst [vmem:[#allocation31_spill] sm:$0xff] %v2888_v26  ;;  %1058 = vmatpush.msrb.mxu3 %v2900_v20  ;;  %1039 = vmatpush.msrb.mxu2 %v2905_v22  ;;  %v2936_v26 = vld [vmem:[%s4019_s5 + $0x180] sm:$0xff] }
  0x59   : > { %4186 = vst [vmem:[#allocation32_spill] sm:$0xff] %v2893_v19  ;;  %v2941_v19 = vld [vmem:[%s4019_s5 + $0x168] sm:$0xff]  ;;  %995 = vmatpush.msrb.mxu0 %v2912_v21  ;;  %1016 = vmatpush.msrb.mxu1 %v2917_v16 }
  0x5a   : > { %4187 = vst [vmem:[#allocation33_spill] sm:$0xff] %v2900_v20  ;;  %v2948_v20 = vld [vmem:[%s4019_s5 + $0x118] sm:$0xff]  ;;  %1059 = vmatpush.msrb.mxu3 %v2924_v27  ;;  %1040 = vmatpush.msrb.mxu2 %v2929_v63 }
  0x5b   : > { %4188 = vst [vmem:[#allocation34_spill] sm:$0xff] %v2905_v22  ;;  %v2953_v22 = vld [vmem:[%s4019_s5 + $0xf0] sm:$0xff]  ;;  %996 = vmatpush.msrb.mxu0 %v2936_v26  ;;  %1017 = vmatpush.msrb.mxu1 %v2941_v19 }
  0x5c   : > { %4189 = vst [vmem:[#allocation35_spill] sm:$0xff] %v2912_v21  ;;  %v2960_v21 = vld [vmem:[%s4019_s5 + $0x160] sm:$0xff]  ;;  %1060 = vmatpush.msrb.mxu3 %v2948_v20  ;;  %1041 = vmatpush.msrb.mxu2 %v2953_v22 }
  0x5d   : > { %4190 = vst [vmem:[#allocation36_spill] sm:$0xff] %v2917_v16  ;;  %v2965_v16 = vld [vmem:[%s4019_s5 + $0x148] sm:$0xff]  ;;  %997 = vmatpush.msrb.mxu0 %v2960_v21 }
  0x5e   : > { %4191 = vst [vmem:[#allocation37_spill] sm:$0xff] %v2924_v27  ;;  %v2972_v27 = vld [vmem:[%s4019_s5 + $0xf8] sm:$0xff]  ;;  %1018 = vmatpush.msrb.mxu1 %v2965_v16 }
  0x5f   : > { %4192 = vst [vmem:[#allocation38_spill] sm:$0xff] %v2929_v63  ;;  %v2977_v63 = vld [vmem:[%s4019_s5 + $0xd0] sm:$0xff]  ;;  %1061 = vmatpush.msrb.mxu3 %v2972_v27 }
  0x60   : > { %4193 = vst [vmem:[#allocation39_spill] sm:$0xff] %v2936_v26  ;;  %v2984_v26 = vld [vmem:[%s4019_s5 + $0x140] sm:$0xff]  ;;  %1042 = vmatpush.msrb.mxu2 %v2977_v63 }
  0x61   : > { %4194 = vst [vmem:[#allocation40_spill] sm:$0xff] %v2941_v19  ;;  %v2989_v19 = vld [vmem:[%s4019_s5 + $0x128] sm:$0xff]  ;;  %998 = vmatpush.msrb.mxu0 %v2984_v26 }
  0x62   : > { %4195 = vst [vmem:[#allocation41_spill] sm:$0xff] %v2948_v20  ;;  %v2996_v20 = vld [vmem:[%s4019_s5 + $0xd8] sm:$0xff]  ;;  %1019 = vmatpush.msrb.mxu1 %v2989_v19 }
  0x63   : > { %4196 = vst [vmem:[#allocation42_spill] sm:$0xff] %v2953_v22  ;;  %v3001_v22 = vld [vmem:[%s4019_s5 + $0xb0] sm:$0xff]  ;;  %1062 = vmatpush.msrb.mxu3 %v2996_v20 }
  0x64   : > { %4197 = vst [vmem:[#allocation43_spill] sm:$0xff] %v2960_v21  ;;  %v3008_v21 = vld [vmem:[%s4019_s5 + $0x120] sm:$0xff]  ;;  %1043 = vmatpush.msrb.mxu2 %v3001_v22 }
  0x65   : > { %4198 = vst [vmem:[#allocation44_spill] sm:$0xff] %v2965_v16  ;;  %v3013_v16 = vld [vmem:[%s4019_s5 + $0x108] sm:$0xff]  ;;  %999 = vmatpush.msrb.mxu0 %v3008_v21 }
  0x66   : > { %4199 = vst [vmem:[#allocation45_spill] sm:$0xff] %v2972_v27  ;;  %v3020_v27 = vld [vmem:[%s4019_s5 + $0xb8] sm:$0xff]  ;;  %1020 = vmatpush.msrb.mxu1 %v3013_v16 }
  0x67   : > { %4200 = vst [vmem:[#allocation46_spill] sm:$0xff] %v2977_v63  ;;  %v3025_v63 = vld [vmem:[%s4019_s5 + $0x90] sm:$0xff]  ;;  %1063 = vmatpush.msrb.mxu3 %v3020_v27 }
  0x68   : > { %4201 = vst [vmem:[#allocation47_spill] sm:$0xff] %v2984_v26  ;;  %v3032_v26 = vld [vmem:[%s4019_s5 + $0x100] sm:$0xff]  ;;  %1044 = vmatpush.msrb.mxu2 %v3025_v63 }
  0x69   : > { %4202 = vst [vmem:[#allocation48_spill] sm:$0xff] %v2989_v19  ;;  %v3037_v19 = vld [vmem:[%s4019_s5 + $0xe8] sm:$0xff]  ;;  %1000 = vmatpush.msrb.mxu0 %v3032_v26 }
  0x6a   : > { %4203 = vst [vmem:[#allocation49_spill] sm:$0xff] %v2996_v20  ;;  %v3044_v20 = vld [vmem:[%s4019_s5 + $0x98] sm:$0xff]  ;;  %1021 = vmatpush.msrb.mxu1 %v3037_v19 }
  0x6b   : > { %4204 = vst [vmem:[#allocation50_spill] sm:$0xff] %v3001_v22  ;;  %v3049_v22 = vld [vmem:[%s4019_s5 + $0x70] sm:$0xff]  ;;  %1064 = vmatpush.msrb.mxu3 %v3044_v20 }
  0x6c   : > { %4205 = vst [vmem:[#allocation51_spill] sm:$0xff] %v3008_v21  ;;  %v3056_v21 = vld [vmem:[%s4019_s5 + $0xe0] sm:$0xff]  ;;  %1045 = vmatpush.msrb.mxu2 %v3049_v22 }
  0x6d   : > { %4206 = vst [vmem:[#allocation52_spill] sm:$0xff] %v3013_v16  ;;  %v3061_v16 = vld [vmem:[%s4019_s5 + $0xc8] sm:$0xff]  ;;  %1001 = vmatpush.msrb.mxu0 %v3056_v21 }
  0x6e   : > { %4207 = vst [vmem:[#allocation53_spill] sm:$0xff] %v3020_v27  ;;  %v3068_v27 = vld [vmem:[%s4019_s5 + $0x78] sm:$0xff]  ;;  %1022 = vmatpush.msrb.mxu1 %v3061_v16 }
  0x6f   : > { %4208 = vst [vmem:[#allocation54_spill] sm:$0xff] %v3025_v63  ;;  %v3073_v63 = vld [vmem:[%s4019_s5 + $0x50] sm:$0xff]  ;;  %1065 = vmatpush.msrb.mxu3 %v3068_v27 }
  0x70   : > { %4209 = vst [vmem:[#allocation55_spill] sm:$0xff] %v3032_v26  ;;  %v3080_v26 = vld [vmem:[%s4019_s5 + $0xc0] sm:$0xff]  ;;  %1046 = vmatpush.msrb.mxu2 %v3073_v63 }
  0x71   : > { %4210 = vst [vmem:[#allocation56_spill] sm:$0xff] %v3037_v19  ;;  %v3085_v19 = vld [vmem:[%s4019_s5 + $0xa8] sm:$0xff]  ;;  %1002 = vmatpush.msrb.mxu0 %v3080_v26 }
  0x72   : > { %4211 = vst [vmem:[#allocation57_spill] sm:$0xff] %v3044_v20  ;;  %v3092_v20 = vld [vmem:[%s4019_s5 + $0x58] sm:$0xff]  ;;  %1023 = vmatpush.msrb.mxu1 %v3085_v19 }
  0x73   : > { %4212 = vst [vmem:[#allocation58_spill] sm:$0xff] %v3049_v22  ;;  %v3097_v22 = vld [vmem:[%s4019_s5 + $0x30] sm:$0xff]  ;;  %1066 = vmatpush.msrb.mxu3 %v3092_v20 }
  0x74   : > { %4213 = vst [vmem:[#allocation59_spill] sm:$0xff] %v3056_v21  ;;  %v3104_v21 = vld [vmem:[%s4019_s5 + $0xa0] sm:$0xff]  ;;  %1047 = vmatpush.msrb.mxu2 %v3097_v22 }
  0x75   : > { %4214 = vst [vmem:[#allocation60_spill] sm:$0xff] %v3061_v16  ;;  %v3109_v16 = vld [vmem:[%s4019_s5 + $0x88] sm:$0xff]  ;;  %1003 = vmatpush.msrb.mxu0 %v3104_v21 }
  0x76   : > { %4215 = vst [vmem:[#allocation61_spill] sm:$0xff] %v3068_v27  ;;  %v3116_v27 = vld [vmem:[%s4019_s5 + $0x38] sm:$0xff]  ;;  %1024 = vmatpush.msrb.mxu1 %v3109_v16 }
  0x77   : > { %4216 = vst [vmem:[#allocation62_spill] sm:$0xff] %v3073_v63  ;;  %v3121_v63 = vld [vmem:[%s4019_s5 + $0x10] sm:$0xff]  ;;  %1067 = vmatpush.msrb.mxu3 %v3116_v27 }
  0x78   : > { %4217 = vst [vmem:[#allocation63_spill] sm:$0xff] %v3080_v26  ;;  %v3128_v26 = vld [vmem:[%s4019_s5 + $0x80] sm:$0xff]  ;;  %1048 = vmatpush.msrb.mxu2 %v3121_v63 }
  0x79   : > { %4218 = vst [vmem:[#allocation64_spill] sm:$0xff] %v3085_v19  ;;  %v3133_v19 = vld [vmem:[%s4019_s5 + $0x68] sm:$0xff]  ;;  %1004 = vmatpush.msrb.mxu0 %v3128_v26 }
  0x7a   : > { %4219 = vst [vmem:[#allocation65_spill] sm:$0xff] %v3092_v20  ;;  %v3140_v20 = vld [vmem:[%s4019_s5 + $0x18] sm:$0xff]  ;;  %1025 = vmatpush.msrb.mxu1 %v3133_v19  ;;  %1155 = vmatpush.msra.mxu2 %v2414_v23  ;;  %v4235_v23 = vld [vmem:[#allocation8_spill] sm:$0xff] }
  0x7b   : > { %4220 = vst [vmem:[#allocation66_spill] sm:$0xff] %v3097_v22  ;;  %v871_v22 = vld [vmem:[#allocation6] sm:$0x3]  ;;  %1068 = vmatpush.msrb.mxu3 %v3140_v20  ;;  %1005 = vmatpush.msrb.mxu0 %v3147_v18 }
  0x7c   : > { %4221 = vst [vmem:[#allocation67_spill] sm:$0xff] %v3104_v21  ;;  %1049 = vmatmul.f32.vlgmr.msrb.gmra.mxu2 %v871_v22  ;;  %1069 = vmatmul.f32.vlgmr.msrb.gmra.mxu3 %v871_v22 }
  0x7d   : > { %4222 = vst [vmem:[#allocation68_spill] sm:$0xff] %v3109_v16  ;;  %v3154_v16 = vld [vmem:[%s4019_s5 + $0x48] sm:$0xff]  ;;  %1175 = vmatpush.msra.mxu3 %v2419_v24  ;;  %1156 = vmatpush.msra.mxu2 %v2428_v28  ;;  %v4236_v24 = vld [vmem:[#allocation13_spill] sm:$0xff] }
  0x7e   : > { %4223 = vst [vmem:[#allocation69_spill] sm:$0xff] %v3116_v27  ;;  %v3166_v27 = vld [vmem:[%s4019_s5 + $0x28] sm:$0xff]  ;;  %1026 = vmatpush.msrb.mxu1 %v3154_v16  ;;  %v4237_v28 = vld [vmem:[#allocation9_spill] sm:$0xff] }
  0x7f   : > { %4224 = vst [vmem:[#allocation70_spill] sm:$0xff] %v3121_v63  ;;  %v3160_v63 = vld [vmem:[%s4019_s5 + $0x40] sm:$0xff]  ;;  %1176 = vmatpush.msra.mxu3 %v2433_v29  ;;  %1157 = vmatpush.msra.mxu2 %v2450_v32  ;;  %v4238_v29 = vld [vmem:[#allocation16_spill] sm:$0xff]  ;;  %v4241_v32 = vld [vmem:[#allocation11_spill] sm:$0xff] }
  0x80   : > { %4225 = vst [vmem:[#allocation71_spill] sm:$0xff] %v3128_v26  ;;  %1006 = vmatpush.msrb.mxu0 %v3160_v63  ;;  %1027 = vmatpush.msrb.mxu1 %v3166_v27 }
  0x81   : > { %4226 = vst [vmem:[#allocation72_spill] sm:$0xff] %v3133_v19  ;;  %1177 = vmatpush.msra.mxu3 %v2455_v33  ;;  %1158 = vmatpush.msra.mxu2 %v2475_v36  ;;  %v4242_v33 = vld [vmem:[#allocation20_spill] sm:$0xff] }
  0x82   : > { %4227 = vst [vmem:[#allocation73_spill] sm:$0xff] %v3140_v20  ;;  %v3172_v20 = vld [vmem:[%s4019_s5 + $0x20] sm:$0xff]  ;;  %v4243_v36 = vld [vmem:[#allocation12_spill] sm:$0xff] }
  0x83   : > { %4228 = vst [vmem:[#allocation74_spill] sm:$0xff] %v3147_v18  ;;  %v3179_v18 = vld [vmem:[%s4019_s5 + $0x8] sm:$0xff]  ;;  %1007 = vmatpush.msrb.mxu0 %v3172_v20  ;;  %1178 = vmatpush.msra.mxu3 %v2480_v37  ;;  %v4244_v37 = vld [vmem:[#allocation21_spill] sm:$0xff] }
  0x84   : > { %4229 = vst [vmem:[#allocation75_spill] sm:$0xff] %v3154_v16  ;;  %v3186_v16 = vld [vmem:[%s4019_s5] sm:$0xff]  ;;  %1028 = vmatpush.msrb.mxu1 %v3179_v18  ;;  %1159 = vmatpush.msra.mxu2 %v2499_v40 }
  0x85   : > { %4230 = vst [vmem:[#allocation76_spill] sm:$0xff] %v3160_v63  ;;  %1029 = vmatmul.f32.vlgmr.msrb.gmra.mxu1 %v871_v22  ;;  %1008 = vmatpush.msrb.mxu0 %v3186_v16  ;;  %v4245_v40 = vld [vmem:[#allocation14_spill] sm:$0xff] }
  0x86   : > { %4231 = vst [vmem:[#allocation77_spill] sm:$0xff] %v3166_v27  ;;  %1009 = vmatmul.f32.vlgmr.msrb.gmra.mxu0 %v871_v22  ;;  %1135 = vmatpush.msra.mxu1 %v2440_v30  ;;  %v4239_v30 = vld [vmem:[#allocation10_spill] sm:$0xff] }
  0x87   : > { %4232 = vst [vmem:[#allocation78_spill] sm:$0xff] %v3172_v20  ;;  %1115 = vmatpush.msra.mxu0 %v2445_v31  ;;  %1179 = vmatpush.msra.mxu3 %v2504_v41  ;;  %v4240_v31 = vld [vmem:[#allocation17_spill] sm:$0xff]  ;;  %v4255_v22 = vld [vmem:[#allocation22_spill] sm:$0xff] }
  0x88   : > { %4233 = vst [vmem:[#allocation79_spill] sm:$0xff] %v3179_v18  ;;  %1136 = vmatpush.msra.mxu1 %v2464_v34  ;;  %1160 = vmatpush.msra.mxu2 %v2523_v44  ;;  %v4246_v41 = vld [vmem:[#allocation25_spill] sm:$0xff]  ;;  %v4247_v44 = vld [vmem:[#allocation24_spill] sm:$0xff] }
  0x89   : > { %4234 = vst [vmem:[#allocation80_spill] sm:$0xff] %v3186_v16  ;;  %1116 = vmatpush.msra.mxu0 %v2469_v35  ;;  %1180 = vmatpush.msra.mxu3 %v2528_v45  ;;  %v4248_v45 = vld [vmem:[#allocation27_spill] sm:$0xff] }
  0x8a   : > { %1137 = vmatpush.msra.mxu1 %v2488_v38  ;;  %1161 = vmatpush.msra.mxu2 %v2547_v48  ;;  %v4249_v48 = vld [vmem:[#allocation15_spill] sm:$0xff] }
  0x8b   : > { %1117 = vmatpush.msra.mxu0 %v2493_v39  ;;  %1181 = vmatpush.msra.mxu3 %v2552_v49  ;;  %v4250_v49 = vld [vmem:[#allocation28_spill] sm:$0xff] }
  0x8c   : > { %1138 = vmatpush.msra.mxu1 %v2512_v42  ;;  %1162 = vmatpush.msra.mxu2 %v2571_v52  ;;  %v4251_v52 = vld [vmem:[#allocation18_spill] sm:$0xff] }
  0x8d   : > { %1118 = vmatpush.msra.mxu0 %v2517_v43  ;;  %1182 = vmatpush.msra.mxu3 %v2576_v53  ;;  %v4252_v53 = vld [vmem:[#allocation31_spill] sm:$0xff] }
  0x8e   : > { %1139 = vmatpush.msra.mxu1 %v2536_v46  ;;  %1163 = vmatpush.msra.mxu2 %v2595_v56  ;;  %v4253_v56 = vld [vmem:[#allocation19_spill] sm:$0xff] }
  0x8f   : > { %1119 = vmatpush.msra.mxu0 %v2541_v47  ;;  %1183 = vmatpush.msra.mxu3 %v2600_v57  ;;  %v4254_v57 = vld [vmem:[#allocation32_spill] sm:$0xff] }
  0x90   : > { %1140 = vmatpush.msra.mxu1 %v2560_v50  ;;  %1164 = vmatpush.msra.mxu2 %v2619_v60 }
  0x91   : > { %1120 = vmatpush.msra.mxu0 %v2565_v51  ;;  %1184 = vmatpush.msra.mxu3 %v2624_v61 }
  0x92   : > { %1141 = vmatpush.msra.mxu1 %v2584_v54  ;;  %1165 = vmatpush.msra.mxu2 %v2638_v0 }
  0x93   : > { %1121 = vmatpush.msra.mxu0 %v2589_v55  ;;  %1185 = vmatpush.msra.mxu3 %v2643_v1 }
  0x94   : > { %1142 = vmatpush.msra.mxu1 %v2608_v58  ;;  %1166 = vmatpush.msra.mxu2 %v2657_v3 }
  0x95   : > { %1122 = vmatpush.msra.mxu0 %v2613_v59  ;;  %1186 = vmatpush.msra.mxu3 %v2662_v4 }
  0x96   : > { %1143 = vmatpush.msra.mxu1 %v2632_v62  ;;  %1167 = vmatpush.msra.mxu2 %v2682_v7 }
  0x97   : > { %1123 = vmatpush.msra.mxu0 %v2651_v2  ;;  %1187 = vmatpush.msra.mxu3 %v2687_v8 }
  0x98   : > { %1144 = vmatpush.msra.mxu1 %v2670_v5  ;;  %1168 = vmatpush.msra.mxu2 %v2706_v11 }
  0x99   : > { %1124 = vmatpush.msra.mxu0 %v2675_v6  ;;  %1188 = vmatpush.msra.mxu3 %v2711_v12 }
  0x9a   : > { %1145 = vmatpush.msra.mxu1 %v2694_v9  ;;  %1169 = vmatpush.msra.mxu2 %v2730_v15 }
  0x9b   : > { %1125 = vmatpush.msra.mxu0 %v2699_v10  ;;  %1189 = vmatpush.msra.mxu3 %v4235_v23 }
  0x9c   : > { %1146 = vmatpush.msra.mxu1 %v2718_v13  ;;  %1170 = vmatpush.msra.mxu2 %v4237_v28 }
  0x9d   : > { %1126 = vmatpush.msra.mxu0 %v2723_v14  ;;  %1190 = vmatpush.msra.mxu3 %v4239_v30  ;;  %v4287_v30 = vld [vmem:[#allocation54_spill] sm:$0xff] }
  0x9e   : > { %1147 = vmatpush.msra.mxu1 %v2744_v17  ;;  %1274 = vmatpush.msrb.mxu2 %v4241_v32  ;;  %v4258_v32 = vld [vmem:[#allocation36_spill] sm:$0xff] }
  0x9f   : > { %1127 = vmatpush.msra.mxu0 %v2775_v25  ;;  %1294 = vmatpush.msrb.mxu3 %v4243_v36  ;;  %v4257_v36 = vld [vmem:[#allocation23_spill] sm:$0xff] }
  0xa0   : > { %1148 = vmatpush.msra.mxu1 %v4236_v24  ;;  %1275 = vmatpush.msrb.mxu2 %v4245_v40  ;;  %v4256_v40 = vld [vmem:[#allocation35_spill] sm:$0xff] }
  0xa1   : > { %1128 = vmatpush.msra.mxu0 %v4238_v29  ;;  %1295 = vmatpush.msrb.mxu3 %v4249_v48  ;;  %v4260_v48 = vld [vmem:[#allocation39_spill] sm:$0xff] }
  0xa2   : > { %1149 = vmatpush.msra.mxu1 %v4240_v31  ;;  %1276 = vmatpush.msrb.mxu2 %v4251_v52  ;;  %v4262_v52 = vld [vmem:[#allocation40_spill] sm:$0xff] }
  0xa3   : > { %1129 = vmatpush.msra.mxu0 %v4242_v33  ;;  %1296 = vmatpush.msrb.mxu3 %v4253_v56  ;;  %v4264_v56 = vld [vmem:[#allocation43_spill] sm:$0xff] }
  0xa4   : > { %1150 = vmatpush.msra.mxu1 %v4244_v37  ;;  %1277 = vmatpush.msrb.mxu2 %v4255_v22  ;;  %v4266_v22 = vld [vmem:[#allocation44_spill] sm:$0xff] }
  0xa5   : > { %1130 = vmatpush.msra.mxu0 %v4246_v41  ;;  %1297 = vmatpush.msrb.mxu3 %v4257_v36  ;;  %v4268_v36 = vld [vmem:[#allocation47_spill] sm:$0xff] }
  0xa6   : > { %1254 = vmatpush.msrb.mxu1 %v4247_v44  ;;  %v4259_v44 = vld [vmem:[#allocation26_spill] sm:$0xff] }
  0xa7   : > { %1234 = vmatpush.msrb.mxu0 %v4248_v45  ;;  %1278 = vmatpush.msrb.mxu2 %v4259_v44  ;;  %v4270_v44 = vld [vmem:[#allocation48_spill] sm:$0xff] }
  0xa8   : > { %1255 = vmatpush.msrb.mxu1 %v4250_v49  ;;  %v4261_v49 = vld [vmem:[#allocation29_spill] sm:$0xff]  ;;  %v4286_v45 = vld [vmem:[#allocation64_spill] sm:$0xff] }
  0xa9   : > { %1235 = vmatpush.msrb.mxu0 %v4252_v53  ;;  %1298 = vmatpush.msrb.mxu3 %v4261_v49  ;;  %v4263_v53 = vld [vmem:[#allocation30_spill] sm:$0xff]  ;;  %v4272_v49 = vld [vmem:[#allocation51_spill] sm:$0xff] }
  0xaa   : > { %1256 = vmatpush.msrb.mxu1 %v4254_v57  ;;  %1279 = vmatpush.msrb.mxu2 %v4263_v53  ;;  %v4265_v57 = vld [vmem:[#allocation33_spill] sm:$0xff]  ;;  %v4274_v53 = vld [vmem:[#allocation52_spill] sm:$0xff] }
  0xab   : > { %1236 = vmatpush.msrb.mxu0 %v4256_v40  ;;  %1299 = vmatpush.msrb.mxu3 %v4265_v57  ;;  %v4267_v40 = vld [vmem:[#allocation34_spill] sm:$0xff]  ;;  %v4276_v57 = vld [vmem:[#allocation55_spill] sm:$0xff] }
  0xac   : > { %1257 = vmatpush.msrb.mxu1 %v4258_v32  ;;  %1280 = vmatpush.msrb.mxu2 %v4267_v40  ;;  %v4269_v32 = vld [vmem:[#allocation37_spill] sm:$0xff]  ;;  %v4278_v40 = vld [vmem:[#allocation56_spill] sm:$0xff] }
  0xad   : > { %1237 = vmatpush.msrb.mxu0 %v4260_v48  ;;  %1300 = vmatpush.msrb.mxu3 %v4269_v32  ;;  %v4271_v48 = vld [vmem:[#allocation38_spill] sm:$0xff] }
  0xae   : > { %1258 = vmatpush.msrb.mxu1 %v4262_v52  ;;  %1281 = vmatpush.msrb.mxu2 %v4271_v48  ;;  %v4273_v52 = vld [vmem:[#allocation41_spill] sm:$0xff]  ;;  %v454_v32 = vld [vmem:[%s4020_s6] sm:$0xf]  ;;  %v4280_v48 = vld [vmem:[#allocation59_spill] sm:$0xff] }
  0xaf   : > { %1238 = vmatpush.msrb.mxu0 %v4264_v56  ;;  %1301 = vmatpush.msrb.mxu3 %v4273_v52  ;;  %v4275_v56 = vld [vmem:[#allocation42_spill] sm:$0xff]  ;;  %v4282_v52 = vld [vmem:[#allocation60_spill] sm:$0xff]  ;;  %v458_v28 = vperm.slane %v454_v32, 2  ;;  %v459_v37 = vperm.slane %v454_v32, 3 }
  0xb0   : > { %1259 = vmatpush.msrb.mxu1 %v4266_v22  ;;  %1282 = vmatpush.msrb.mxu2 %v4275_v56  ;;  %v4277_v22 = vld [vmem:[#allocation45_spill] sm:$0xff]  ;;  %v457_v56 = vperm.slane %v454_v32, 1 }
  0xb1   : > { %1239 = vmatpush.msrb.mxu0 %v4268_v36  ;;  %1302 = vmatpush.msrb.mxu3 %v4277_v22  ;;  %v4284_v36 = vld [vmem:[#allocation63_spill] sm:$0xff]  ;;  %v4285_v22 = vld [vmem:[#allocation53_spill] sm:$0xff] }
  0xb2   : > { %1260 = vmatpush.msrb.mxu1 %v4270_v44  ;;  %v4279_v44 = vld [vmem:[#allocation46_spill] sm:$0xff] }
  0xb3   : > { %1240 = vmatpush.msrb.mxu0 %v4272_v49  ;;  %1283 = vmatpush.msrb.mxu2 %v4279_v44  ;;  %v4281_v49 = vld [vmem:[#allocation49_spill] sm:$0xff] }
  0xb4   : > { %1261 = vmatpush.msrb.mxu1 %v4274_v53  ;;  %1303 = vmatpush.msrb.mxu3 %v4281_v49  ;;  %v4283_v53 = vld [vmem:[#allocation50_spill] sm:$0xff]  ;;  %v4288_v44 = vld [vmem:[#allocation57_spill] sm:$0xff]  ;;  %v496_v49 = vpop.f32.mrf.mxu0 }
  0xb5   : > { %1241 = vmatpush.msrb.mxu0 %v4276_v57  ;;  %1284 = vmatpush.msrb.mxu2 %v4283_v53  ;;  %v456_v57 = vperm.slane %v454_v32, 0  ;;  %v536_v32 = vpop.f32.mrf.mxu2 }
  0xb6   : > { %1262 = vmatpush.msrb.mxu1 %v4278_v40  ;;  %1304 = vmatpush.msrb.mxu3 %v4285_v22  ;;  %v516_v40 = vpop.f32.mrf.mxu1  ;;  %v4291_v22 = vld [vmem:[#allocation61_spill] sm:$0xff] }
  0xb7   : > { %1242 = vmatpush.msrb.mxu0 %v4280_v48  ;;  %1285 = vmatpush.msrb.mxu2 %v4287_v30  ;;  %v4289_v48 = vld [vmem:[#allocation68_spill] sm:$0xff]  ;;  %v517_v53 = vadd.f32 %v516_v40, %v457_v56  ;;  %v4294_v40 = vld [vmem:[#allocation65_spill] sm:$0xff]  ;;  %v4295_v56 = vld [vmem:[#allocation75_spill] sm:$0xff] }
  0xb8   : > { %1263 = vmatpush.msrb.mxu1 %v4282_v52  ;;  %1305 = vmatpush.msrb.mxu3 %v4288_v44  ;;  %v4290_v52 = vld [vmem:[#allocation58_spill] sm:$0xff] }
  0xb9   : > { %1243 = vmatpush.msrb.mxu0 %v4284_v36  ;;  %1286 = vmatpush.msrb.mxu2 %v4290_v52  ;;  %v3304_v36 = vadd.f32 %v496_v49, %v456_v57  ;;  %v4292_v44 = vld [vmem:[#allocation62_spill] sm:$0xff]  ;;  %v3310_v30 = vrot.slane %v517_v53, 6  ;;  %v556_v49 = vpop.f32.mrf.mxu3 }
  0xba   : > { %1264 = vmatpush.msrb.mxu1 %v4286_v45  ;;  %1306 = vmatpush.msrb.mxu3 %v4291_v22  ;;  %v4296_v57 = vld [vmem:[#allocation66_spill] sm:$0xff]  ;;  %v537_v22 = vadd.f32 %v536_v32, %v458_v28  ;;  %v557_v52 = vadd.f32 %v556_v49, %v459_v37  ;;  %v4299_v49 = vld [vmem:[#allocation73_spill] sm:$0xff] }
  0xbb   : > { %1244 = vmatpush.msrb.mxu0 %v3104_v21  ;;  %1287 = vmatpush.msrb.mxu2 %v4292_v44  ;;  %v579_v53 = vsel %vm568_vm2, %v3304_v36, %v3310_v30  ;;  %v4298_v32 = vld [vmem:[#allocation70_spill] sm:$0xff] }
  0xbc   : > { %1265 = vmatpush.msrb.mxu1 %v4289_v48  ;;  %v4293_v48 = vld [vmem:[#allocation74_spill] sm:$0xff]  ;;  %1307 = vmatpush.msrb.mxu3 %v4294_v40  ;;  %v583_v40 = vsel %vm574_vm3, %v3310_v30, %v3304_v36  ;;  %v564_v28 = vrot.slane %v537_v22, 4  ;;  %v565_v37 = vrot.slane %v557_v52, 2 }
  0xbd   : > { %1245 = vmatpush.msrb.mxu0 %v3128_v26  ;;  %1288 = vmatpush.msrb.mxu2 %v4296_v57  ;;  %v4297_v57 = vld [vmem:[#allocation69_spill] sm:$0xff] }
  0xbe   : > { %1266 = vmatpush.msrb.mxu1 %v3133_v19  ;;  %v573_v19 = vsel %vm572_vm1, %v3304_v36, %v3310_v30  ;;  %1308 = vmatpush.msrb.mxu3 %v4297_v57  ;;  %v575_v44 = vsel %vm574_vm3, %v565_v37, %v564_v28  ;;  %v569_v23 = vsel %vm568_vm2, %v564_v28, %v565_v37 }
  0xbf   : > { %1246 = vmatpush.msrb.mxu0 %v4293_v48  ;;  %1289 = vmatpush.msrb.mxu2 %v4298_v32  ;;  %v3337_v52 = vsel %vm576_vm6, %v573_v19, %v575_v44 }
  0xc0   : > { %1267 = vmatpush.msrb.mxu1 %v4295_v56  ;;  %1309 = vmatpush.msrb.mxu3 %v4299_v49  ;;  %v580_v56 = vsel %vm566_vm4, %v564_v28, %v565_v37  ;;  %4300 = vst [vmem:[#allocation13_spill] sm:$0xff] %v3337_v52  ;;  %v607_v49 = vld [vmem:[%s4021_s7] sm:$0xf] }
  0xc1   : > { %1247 = vmatpush.msrb.mxu0 %v3160_v63  ;;  %v3340_v22 = vsel %vm570_vm5, %v580_v56, %v579_v53  ;;  %v612_v57 = vperm.slane %v607_v49, 3  ;;  %v610_v63 = vperm.slane %v607_v49, 1  ;;  %v609_v26 = vperm.slane %v607_v49, 0 }
  0xc2   : > { %1268 = vmatpush.msrb.mxu1 %v3166_v27  ;;  %v584_v27 = vsel %vm572_vm1, %v564_v28, %v565_v37  ;;  %4301 = vst [vmem:[#allocation16_spill] sm:$0xff] %v3340_v22 }
  0xc3   : > { %1248 = vmatpush.msrb.mxu0 %v3172_v20  ;;  %v3343_v32 = vsel %vm576_vm6, %v584_v27, %v583_v40  ;;  %v688_v20 = vpop.f32.mrf.mxu2 }
  0xc4   : > { %1269 = vmatpush.msrb.mxu1 %v3179_v18  ;;  %4302 = vst [vmem:[#allocation17_spill] sm:$0xff] %v3343_v32  ;;  %v611_v18 = vperm.slane %v607_v49, 2 }
  0xc5   : > { %1249 = vmatpush.msrb.mxu0 %v3186_v16  ;;  %v708_v16 = vpop.f32.mrf.mxu3  ;;  %v668_v44 = vpop.f32.mrf.mxu1 }
  0xc6   : > { %v689_v48 = vadd.f32 %v688_v20, %v611_v18  ;;  %v709_v19 = vadd.f32 %v708_v16, %v612_v57  ;;  %v648_v52 = vpop.f32.mrf.mxu0  ;;  %v669_v56 = vadd.f32 %v668_v44, %v610_v63 }
  0xc7   : > { %v649_v22 = vadd.f32 %v648_v52, %v609_v26 }
  0xc8   : > { %v716_v45 = vrot.slane %v689_v48, 4  ;;  %v717_v53 = vrot.slane %v709_v19, 2  ;;  %v715_v27 = vrot.slane %v669_v56, 6  ;;  %v567_v56 = vsel %vm566_vm4, %v3304_v36, %v3310_v30 }
  0xca   : > { %v719_v40 = vsel %vm568_vm2, %v716_v45, %v717_v53  ;;  %v722_v32 = vsel %vm574_vm3, %v717_v53, %v716_v45  ;;  %v726_v21 = vsel %vm566_vm4, %v716_v45, %v717_v53  ;;  %v718_v41 = vsel %vm566_vm4, %v649_v22, %v715_v27 }
  0xcb   : > { %v721_v18 = vsel %vm572_vm1, %v649_v22, %v715_v27  ;;  %v725_v20 = vsel %vm568_vm2, %v649_v22, %v715_v27  ;;  %v3361_v26 = vsel %vm570_vm5, %v718_v41, %v719_v40  ;;  %v571_v41 = vsel %vm570_vm5, %v567_v56, %v569_v23 }
  0xcc   : > { %v3355_v16 = vsel %vm570_vm5, %v726_v21, %v725_v20  ;;  %v3358_v63 = vsel %vm576_vm6, %v721_v18, %v722_v32  ;;  %4304 = vst [vmem:[#allocation81_spill] sm:$0xff] %v3361_v26 }
  0xcd   : > { %4303 = vst [vmem:[#allocation20_spill] sm:$0xff] %v3358_v63  ;;  %v931_v48 = vpop.f32.mrf.mxu2 }
  0xce   : > { %v959_v57 = vrot.slane %v931_v48, 4  ;;  %v951_v49 = vpop.f32.mrf.mxu3 }
  0xcf   : > { %v911_v52 = vpop.f32.mrf.mxu1  ;;  %v960_v19 = vrot.slane %v951_v49, 2 }
  0xd0   : > { %v958_v44 = vrot.slane %v911_v52, 6 }
  0xd1   : > { %v962_v21 = vsel %vm568_vm2, %v959_v57, %v960_v19  ;;  %v891_v20 = vpop.f32.mrf.mxu0 }
  0xd2   : > { %v961_v32 = vsel %vm566_vm4, %v891_v20, %v958_v44  ;;  %v870_v44 = vld [vmem:[#allocation5] sm:$0x3] }
  0xd3   : > { %v963_v40 = vsel %vm570_vm5, %v961_v32, %v962_v21 }
  0xd4   : > { %v965_v18 = vadd.f32 %v963_v40, %v571_v41  ;;  %v730_v40 = vsel %vm572_vm1, %v716_v45, %v717_v53 }
  0xd6   : > { %v966_v48 = vmul.f32 0.5, %v965_v18  ;;  %v971_v26 = vrot.slane %v965_v18, 2  ;;  %v980_v52 = vrot.slane %v965_v18, 6  ;;  %v977_v63 = vrot.slane %v965_v18, 4 }
  0xd8   : > { %2036 = vtanh.f32 %v966_v48  ;;  %v973_v49 = vmul.f32 0.5, %v971_v26  ;;  %v982_v30 = vmul.f32 0.5, %v980_v52 }
  0xda   : > { %2038 = vtanh.f32 %v973_v49 }
  0xdb   : > { %2040 = vtanh.f32 %v977_v63  ;;  %v729_v63 = vsel %vm574_vm3, %v715_v27, %v649_v22  ;;  %v3384_v27 = vld [vmem:[%s4018_s4 + $0x1e0] sm:$0xff] }
  0xdc   : > { %2042 = vtanh.f32 %v982_v30 }
  0xde   : > { %v2037_v36 = vpop.eup %2036 }
  0xdf   : > { %v968_v28 = vadd.f32 1.0, %v2037_v36 }
  0xe0   : > { %v2039_v37 = vpop.eup %2038 }
  0xe1   : > { %v969_v57 = vmul.f32 0.5, %v968_v28  ;;  %v975_v19 = vadd.f32 1.0, %v2039_v37  ;;  %v2041_v56 = vpop.eup %2040  ;;  %v731_v28 = vsel %vm576_vm6, %v730_v40, %v729_v63  ;;  %v3410_v63 = vld [vmem:[%s4018_s4 + $0x1d0] sm:$0xff] }
  0xe2   : > { %v2043_v32 = vpop.eup %2042  ;;  %v732_v45 = vrot.slane %v731_v28, 6 }
  0xe3   : > { %v976_v23 = vmul.f32 0.5, %v975_v19  ;;  %v987_v20 = vmul.f32 %v2041_v56, %v969_v57  ;;  %v984_v26 = vadd.f32 1.0, %v2043_v32  ;;  %v3390_v56 = vld [vmem:[%s4018_s4 + $0x1e8] sm:$0xff]  ;;  %v3402_v32 = vld [vmem:[%s4018_s4 + $0x1f8] sm:$0xff] }
  0xe5   : > { %v986_v21 = vmul.f32 %v976_v23, %v870_v44  ;;  %v985_v18 = vmul.f32 0.5, %v984_v26 }
  0xe7   : > { %v3371_v41 = vadd.f32 %v987_v20, %v986_v21  ;;  %v3396_v20 = vld [vmem:[%s4018_s4 + $0x1f0] sm:$0xff] }
  0xe9   : > { %2044 = vtanh.f32 %v3371_v41 }
  0xef   : > { %v2045_v48 = vpop.eup %2044 }
  0xf0   : > { %v990_v37 = vmul.f32 %v2045_v48, %v985_v18  ;;  %v3416_v18 = vld [vmem:[%s4018_s4 + $0x1d8] sm:$0xff] }
  0xf1   : > { %v3430_v48 = vld [vmem:[%s4018_s4 + $0x1b8] sm:$0xff] }
  0xf2   : > { %1110 = vst [vmem:[%s2350_s26] sm:$0x3] %v990_v37  ;;  %1131 = vmatmul.f32.vlgmr.msra.gmra.mxu0 %v990_v37  ;;  %1151 = vmatmul.f32.vlgmr.msra.gmra.mxu1 %v990_v37 }
  0xf3   : > { %1171 = vmatmul.f32.vlgmr.msra.gmra.mxu2 %v990_v37  ;;  %1191 = vmatmul.f32.vlgmr.msra.gmra.mxu3 %v990_v37  ;;  %v3486_v37 = vld [vmem:[%s4018_s4 + $0x138] sm:$0xff] }
  0xf4   : > { %1357 = vmatpush.msra.mxu0 %v3384_v27  ;;  %1377 = vmatpush.msra.mxu1 %v3390_v56 }
  0xf5   : > { %1397 = vmatpush.msra.mxu2 %v3396_v20  ;;  %1417 = vmatpush.msra.mxu3 %v3402_v32 }
  0xf6   : > { %1358 = vmatpush.msra.mxu0 %v2469_v35  ;;  %1378 = vmatpush.msra.mxu1 %v2464_v34  ;;  %v3424_v35 = vld [vmem:[%s4018_s4 + $0x1b0] sm:$0xff] }
  0xf7   : > { %1398 = vmatpush.msra.mxu2 %v3410_v63  ;;  %1418 = vmatpush.msra.mxu3 %v3416_v18 }
  0xf8   : > { %1359 = vmatpush.msra.mxu0 %v2493_v39  ;;  %1379 = vmatpush.msra.mxu1 %v2488_v38  ;;  %v3438_v39 = vld [vmem:[%s4018_s4 + $0x190] sm:$0xff] }
  0xf9   : > { %1399 = vmatpush.msra.mxu2 %v3424_v35  ;;  %1419 = vmatpush.msra.mxu3 %v3430_v48 }
  0xfa   : > { %1360 = vmatpush.msra.mxu0 %v2517_v43  ;;  %1380 = vmatpush.msra.mxu1 %v2512_v42  ;;  %v3452_v42 = vld [vmem:[%s4018_s4 + $0x170] sm:$0xff]  ;;  %v3458_v43 = vld [vmem:[%s4018_s4 + $0x178] sm:$0xff] }
  0xfb   : > { %1400 = vmatpush.msra.mxu2 %v3438_v39 }
  0xfc   : > { %1361 = vmatpush.msra.mxu0 %v2541_v47  ;;  %1381 = vmatpush.msra.mxu1 %v2536_v46  ;;  %v3466_v47 = vld [vmem:[%s4018_s4 + $0x150] sm:$0xff] }
  0xfd   : > { %1401 = vmatpush.msra.mxu2 %v3452_v42 }
  0xfe   : > { %1362 = vmatpush.msra.mxu0 %v2565_v51  ;;  %1382 = vmatpush.msra.mxu1 %v2560_v50  ;;  %v3480_v51 = vld [vmem:[%s4018_s4 + $0x130] sm:$0xff] }
  0xff   : > { %v1050_v49 = vpop.f32.mrf.mxu2  ;;  %v1070_v36 = vpop.f32.mrf.mxu3  ;;  %1402 = vmatpush.msra.mxu2 %v3466_v47 }
 0x100   : > { %v1078_v30 = vrot.slane %v1050_v49, 4  ;;  %v1079_v19 = vrot.slane %v1070_v36, 2  ;;  %v3472_v36 = vld [vmem:[%s4018_s4 + $0x158] sm:$0xff]  ;;  %1363 = vmatpush.msra.mxu0 %v2589_v55  ;;  %1383 = vmatpush.msra.mxu1 %v2584_v54  ;;  %v872_v54 = vld [vmem:[#allocation7] sm:$0x3]  ;;  %v3494_v55 = vld [vmem:[%s4018_s4 + $0x110] sm:$0xff] }
 0x101   : > { %1403 = vmatpush.msra.mxu2 %v3480_v51 }
 0x102   : > { %v1030_v52 = vpop.f32.mrf.mxu1  ;;  %v1081_v23 = vsel %vm568_vm2, %v1078_v30, %v1079_v19  ;;  %1364 = vmatpush.msra.mxu0 %v2613_v59  ;;  %1384 = vmatpush.msra.mxu1 %v2608_v58  ;;  %v3508_v59 = vld [vmem:[%s4018_s4 + $0xf0] sm:$0xff] }
 0x103   : > { %v1077_v57 = vrot.slane %v1030_v52, 6  ;;  %v1010_v44 = vpop.f32.mrf.mxu0  ;;  %v3444_v52 = vld [vmem:[%s4018_s4 + $0x198] sm:$0xff]  ;;  %1404 = vmatpush.msra.mxu2 %v3494_v55 }
 0x104   : > { %1420 = vmatpush.msra.mxu3 %v3444_v52  ;;  %1365 = vmatpush.msra.mxu0 %v2651_v2 }
 0x105   : > { %v1080_v22 = vsel %vm566_vm4, %v1010_v44, %v1077_v57  ;;  %v3500_v44 = vld [vmem:[%s4018_s4 + $0x118] sm:$0xff]  ;;  %1385 = vmatpush.msra.mxu1 %v2632_v62  ;;  %1405 = vmatpush.msra.mxu2 %v3508_v59 }
 0x106   : > { %v1082_v53 = vsel %vm570_vm5, %v1080_v22, %v1081_v23  ;;  %1421 = vmatpush.msra.mxu3 %v3458_v43  ;;  %1366 = vmatpush.msra.mxu0 %v2675_v6  ;;  %v4308_v6 = vld [vmem:[#allocation9_spill] sm:$0xff] }
 0x107   : > { %v1084_v21 = vadd.f32 %v1082_v53, %v732_v45  ;;  %v3514_v45 = vld [vmem:[%s4018_s4 + $0xf8] sm:$0xff]  ;;  %1386 = vmatpush.msra.mxu1 %v2670_v5  ;;  %1406 = vmatpush.msra.mxu2 %v2619_v60 }
 0x108   : > { %1422 = vmatpush.msra.mxu3 %v3472_v36  ;;  %1367 = vmatpush.msra.mxu0 %v2699_v10  ;;  %v4307_v5 = vld [vmem:[#allocation21_spill] sm:$0xff]  ;;  %v4312_v10 = vld [vmem:[#allocation11_spill] sm:$0xff] }
 0x109   : > { %v1085_v26 = vmul.f32 0.5, %v1084_v21  ;;  %v1090_v40 = vrot.slane %v1084_v21, 2  ;;  %v1099_v49 = vrot.slane %v1084_v21, 6  ;;  %v1096_v38 = vrot.slane %v1084_v21, 4  ;;  %1387 = vmatpush.msra.mxu1 %v2694_v9  ;;  %1407 = vmatpush.msra.mxu2 %v2638_v0  ;;  %v4311_v9 = vld [vmem:[#allocation24_spill] sm:$0xff]  ;;  %v4324_v21 = vld [vmem:[#allocation22_spill] sm:$0xff] }
 0x10a   : > { %1423 = vmatpush.msra.mxu3 %v3486_v37  ;;  %1368 = vmatpush.msra.mxu0 %v2723_v14  ;;  %v4316_v14 = vld [vmem:[#allocation14_spill] sm:$0xff] }
 0x10b   : > { %2046 = vtanh.f32 %v1085_v26  ;;  %v1092_v34 = vmul.f32 0.5, %v1090_v40  ;;  %v1101_v30 = vmul.f32 0.5, %v1099_v49  ;;  %1388 = vmatpush.msra.mxu1 %v2718_v13  ;;  %1408 = vmatpush.msra.mxu2 %v2657_v3  ;;  %v4305_v3 = vld [vmem:[#allocation8_spill] sm:$0xff]  ;;  %v4325_v26 = vld [vmem:[#allocation23_spill] sm:$0xff]  ;;  %v4328_v49 = vld [vmem:[#allocation26_spill] sm:$0xff] }
 0x10c   : > { %1424 = vmatpush.msra.mxu3 %v3500_v44  ;;  %1369 = vmatpush.msra.mxu0 %v2775_v25  ;;  %v4315_v13 = vld [vmem:[#allocation28_spill] sm:$0xff]  ;;  %v4326_v40 = vld [vmem:[#allocation43_spill] sm:$0xff] }
 0x10d   : > { %2048 = vtanh.f32 %v1092_v34  ;;  %1389 = vmatpush.msra.mxu1 %v2744_v17  ;;  %1409 = vmatpush.msra.mxu2 %v2682_v7  ;;  %v4309_v7 = vld [vmem:[#allocation10_spill] sm:$0xff]  ;;  %v4318_v17 = vld [vmem:[#allocation35_spill] sm:$0xff]  ;;  %v4319_v25 = vld [vmem:[#allocation32_spill] sm:$0xff] }
 0x10e   : > { %2050 = vtanh.f32 %v1096_v38  ;;  %1425 = vmatpush.msra.mxu3 %v3514_v45  ;;  %1370 = vmatpush.msra.mxu0 %v4238_v29  ;;  %v4321_v29 = vld [vmem:[#allocation19_spill] sm:$0xff]  ;;  %v4327_v34 = vld [vmem:[#allocation40_spill] sm:$0xff]  ;;  %v4329_v38 = vld [vmem:[#allocation29_spill] sm:$0xff] }
 0x10f   : > { %2052 = vtanh.f32 %v1101_v30  ;;  %1390 = vmatpush.msra.mxu1 %v4236_v24  ;;  %1410 = vmatpush.msra.mxu2 %v2706_v11  ;;  %v4313_v11 = vld [vmem:[#allocation12_spill] sm:$0xff]  ;;  %v4320_v24 = vld [vmem:[#allocation18_spill] sm:$0xff]  ;;  %v4330_v30 = vld [vmem:[#allocation47_spill] sm:$0xff] }
 0x110   : > { %1426 = vmatpush.msra.mxu3 %v2624_v61  ;;  %1371 = vmatpush.msra.mxu0 %v4242_v33  ;;  %v4323_v33 = vld [vmem:[#allocation36_spill] sm:$0xff] }
 0x111   : > { %v2047_v46 = vpop.eup %2046  ;;  %1391 = vmatpush.msra.mxu1 %v4240_v31  ;;  %1411 = vmatpush.msra.mxu2 %v2730_v15  ;;  %v4317_v15 = vld [vmem:[#allocation15_spill] sm:$0xff] }
 0x112   : > { %v1087_v28 = vadd.f32 1.0, %v2047_v46  ;;  %1427 = vmatpush.msra.mxu3 %v2643_v1  ;;  %v4322_v31 = vld [vmem:[#allocation39_spill] sm:$0xff]  ;;  %v4331_v46 = vld [vmem:[#allocation44_spill] sm:$0xff] }
 0x113   : > { %v2049_v50 = vpop.eup %2048  ;;  %1392 = vmatpush.msra.mxu1 %v4307_v5  ;;  %1412 = vmatpush.msra.mxu2 %v4308_v6  ;;  %v4348_v5 = vld [vmem:[#allocation46_spill] sm:$0xff]  ;;  %v4349_v6 = vld [vmem:[#allocation49_spill] sm:$0xff] }
 0x114   : > { %v1088_v57 = vmul.f32 0.5, %v1087_v28  ;;  %v1094_v19 = vadd.f32 1.0, %v2049_v50  ;;  %v2051_v58 = vpop.eup %2050  ;;  %1428 = vmatpush.msra.mxu3 %v2662_v4  ;;  %v4306_v4 = vld [vmem:[#allocation25_spill] sm:$0xff]  ;;  %v4332_v28 = vld [vmem:[#allocation30_spill] sm:$0xff] }
 0x115   : > { %v2053_v62 = vpop.eup %2052  ;;  %1372 = vmatpush.msra.mxu0 %v4306_v4  ;;  %v4333_v50 = vld [vmem:[#allocation33_spill] sm:$0xff]  ;;  %v4347_v4 = vld [vmem:[#allocation60_spill] sm:$0xff] }
 0x116   : > { %v1095_v23 = vmul.f32 0.5, %v1094_v19  ;;  %v1106_v53 = vmul.f32 %v2051_v58, %v1088_v57  ;;  %v1103_v60 = vadd.f32 1.0, %v2053_v62  ;;  %1429 = vmatpush.msra.mxu3 %v2687_v8  ;;  %v4310_v8 = vld [vmem:[#allocation27_spill] sm:$0xff]  ;;  %v4335_v19 = vld [vmem:[#allocation48_spill] sm:$0xff]  ;;  %v4341_v62 = vld [vmem:[#allocation41_spill] sm:$0xff] }
 0x117   : > { %v4334_v57 = vld [vmem:[#allocation51_spill] sm:$0xff] }
 0x118   : > { %v1105_v22 = vmul.f32 %v1095_v23, %v872_v54  ;;  %v1104_v61 = vmul.f32 0.5, %v1103_v60  ;;  %1430 = vmatpush.msra.mxu3 %v2711_v12  ;;  %v4314_v12 = vld [vmem:[#allocation31_spill] sm:$0xff]  ;;  %v4336_v54 = vld [vmem:[#allocation34_spill] sm:$0xff]  ;;  %v4337_v23 = vld [vmem:[#allocation37_spill] sm:$0xff] }
 0x119   : > { %v4338_v58 = vld [vmem:[#allocation55_spill] sm:$0xff] }
 0x11a   : > { %v3521_v2 = vadd.f32 %v1106_v53, %v1105_v22  ;;  %1431 = vmatpush.msra.mxu3 %v4305_v3  ;;  %v4339_v22 = vld [vmem:[#allocation52_spill] sm:$0xff]  ;;  %v4340_v53 = vld [vmem:[#allocation38_spill] sm:$0xff]  ;;  %v4342_v60 = vld [vmem:[#allocation59_spill] sm:$0xff] }
 0x11b   : > { %v4346_v3 = vld [vmem:[#allocation63_spill] sm:$0xff] }
 0x11c   : > { %2054 = vtanh.f32 %v3521_v2  ;;  %1432 = vmatpush.msra.mxu3 %v4309_v7  ;;  %v4350_v7 = vld [vmem:[#allocation67_spill] sm:$0xff] }
 0x122   : > { %v2055_v0 = vpop.eup %2054 }
 0x123   : > { %v1109_v1 = vmul.f32 %v2055_v0, %v1104_v61  ;;  %v4343_v61 = vld [vmem:[#allocation56_spill] sm:$0xff]  ;;  %v4344_v0 = vld [vmem:[#allocation42_spill] sm:$0xff] }
 0x125   : > { %2003 = vst [vmem:[%s2355_s29 + $0x6] sm:$0x3] %v1109_v1  ;;  %1250 = vmatmul.f32.vlgmr.msrb.gmra.mxu0 %v1109_v1  ;;  %1270 = vmatmul.f32.vlgmr.msrb.gmra.mxu1 %v1109_v1 }
 0x126   : > { %1290 = vmatmul.f32.vlgmr.msrb.gmra.mxu2 %v1109_v1  ;;  %1310 = vmatmul.f32.vlgmr.msrb.gmra.mxu3 %v1109_v1  ;;  %v4345_v1 = vld [vmem:[#allocation45_spill] sm:$0xff] }
 0x127   : > { %1476 = vmatpush.msrb.mxu0 %v4310_v8  ;;  %1496 = vmatpush.msrb.mxu1 %v4311_v9  ;;  %v4351_v8 = vld [vmem:[#allocation64_spill] sm:$0xff]  ;;  %v4352_v9 = vld [vmem:[#allocation50_spill] sm:$0xff] }
 0x128   : > { %1516 = vmatpush.msrb.mxu2 %v4312_v10  ;;  %1536 = vmatpush.msrb.mxu3 %v4313_v11  ;;  %v4353_v10 = vld [vmem:[#allocation53_spill] sm:$0xff]  ;;  %v4354_v11 = vld [vmem:[#allocation71_spill] sm:$0xff] }
 0x129   : > { %1477 = vmatpush.msrb.mxu0 %v4314_v12  ;;  %1497 = vmatpush.msrb.mxu1 %v4315_v13  ;;  %v4355_v12 = vld [vmem:[#allocation68_spill] sm:$0xff]  ;;  %v4356_v13 = vld [vmem:[#allocation54_spill] sm:$0xff] }
 0x12a   : > { %1517 = vmatpush.msrb.mxu2 %v4316_v14  ;;  %1537 = vmatpush.msrb.mxu3 %v4317_v15  ;;  %v4357_v14 = vld [vmem:[#allocation57_spill] sm:$0xff]  ;;  %v4358_v15 = vld [vmem:[#allocation74_spill] sm:$0xff] }
 0x12b   : > { %1478 = vmatpush.msrb.mxu0 %v4318_v17  ;;  %1498 = vmatpush.msrb.mxu1 %v4319_v25  ;;  %v4359_v17 = vld [vmem:[#allocation72_spill] sm:$0xff]  ;;  %v4360_v25 = vld [vmem:[#allocation58_spill] sm:$0xff] }
 0x12c   : > { %1518 = vmatpush.msrb.mxu2 %v4320_v24  ;;  %1538 = vmatpush.msrb.mxu3 %v4321_v29  ;;  %v4361_v24 = vld [vmem:[#allocation61_spill] sm:$0xff]  ;;  %v4362_v29 = vld [vmem:[#allocation76_spill] sm:$0xff] }
 0x12d   : > { %1479 = vmatpush.msrb.mxu0 %v4322_v31  ;;  %1499 = vmatpush.msrb.mxu1 %v4323_v33  ;;  %v4363_v31 = vld [vmem:[#allocation75_spill] sm:$0xff]  ;;  %v4364_v33 = vld [vmem:[#allocation62_spill] sm:$0xff] }
 0x12e   : > { %1519 = vmatpush.msrb.mxu2 %v4324_v21  ;;  %1539 = vmatpush.msrb.mxu3 %v4325_v26  ;;  %v4365_v21 = vld [vmem:[#allocation65_spill] sm:$0xff]  ;;  %v4366_v26 = vld [vmem:[#allocation78_spill] sm:$0xff] }
 0x12f   : > { %1480 = vmatpush.msrb.mxu0 %v4326_v40  ;;  %1500 = vmatpush.msrb.mxu1 %v4327_v34  ;;  %v4367_v40 = vld [vmem:[#allocation77_spill] sm:$0xff]  ;;  %v4368_v34 = vld [vmem:[#allocation66_spill] sm:$0xff] }
 0x130   : > { %1520 = vmatpush.msrb.mxu2 %v4328_v49  ;;  %1540 = vmatpush.msrb.mxu3 %v4329_v38  ;;  %v4369_v49 = vld [vmem:[#allocation69_spill] sm:$0xff]  ;;  %v4370_v38 = vld [vmem:[#allocation80_spill] sm:$0xff] }
 0x131   : > { %1481 = vmatpush.msrb.mxu0 %v4330_v30  ;;  %1501 = vmatpush.msrb.mxu1 %v4331_v46  ;;  %v4371_v30 = vld [vmem:[#allocation79_spill] sm:$0xff]  ;;  %v4372_v46 = vld [vmem:[#allocation70_spill] sm:$0xff] }
 0x132   : > { %1521 = vmatpush.msrb.mxu2 %v4332_v28  ;;  %1541 = vmatpush.msrb.mxu3 %v4333_v50  ;;  %v4373_v28 = vld [vmem:[#allocation73_spill] sm:$0xff] }
 0x133   : > { %1482 = vmatpush.msrb.mxu0 %v4334_v57  ;;  %1502 = vmatpush.msrb.mxu1 %v4335_v19 }
 0x134   : > { %1522 = vmatpush.msrb.mxu2 %v4336_v54  ;;  %1542 = vmatpush.msrb.mxu3 %v4337_v23 }
 0x135   : > { %1483 = vmatpush.msrb.mxu0 %v4338_v58  ;;  %1503 = vmatpush.msrb.mxu1 %v4339_v22 }
 0x136   : > { %1523 = vmatpush.msrb.mxu2 %v4340_v53  ;;  %1543 = vmatpush.msrb.mxu3 %v4341_v62  ;;  %v4374_v62 = vld [vmem:[#allocation13_spill] sm:$0xff] }
 0x137   : > { %1484 = vmatpush.msrb.mxu0 %v4342_v60  ;;  %1504 = vmatpush.msrb.mxu1 %v4343_v61  ;;  %v578_v60 = vrot.slane %v4374_v62, 2 }
 0x138   : > { %1524 = vmatpush.msrb.mxu2 %v4344_v0  ;;  %1544 = vmatpush.msrb.mxu3 %v4345_v1 }
 0x139   : > { %1485 = vmatpush.msrb.mxu0 %v4346_v3  ;;  %1505 = vmatpush.msrb.mxu1 %v4347_v4 }
 0x13a   : > { %1525 = vmatpush.msrb.mxu2 %v4348_v5  ;;  %1545 = vmatpush.msrb.mxu3 %v4349_v6 }
 0x13b   : > { %1486 = vmatpush.msrb.mxu0 %v4350_v7  ;;  %1506 = vmatpush.msrb.mxu1 %v4351_v8 }
 0x13c   : > { %1526 = vmatpush.msrb.mxu2 %v4352_v9  ;;  %1546 = vmatpush.msrb.mxu3 %v4353_v10 }
 0x13d   : > { %1487 = vmatpush.msrb.mxu0 %v4354_v11  ;;  %1507 = vmatpush.msrb.mxu1 %v4355_v12 }
 0x13e   : > { %1527 = vmatpush.msrb.mxu2 %v4356_v13  ;;  %1547 = vmatpush.msrb.mxu3 %v4357_v14 }
 0x13f   : > { %1488 = vmatpush.msrb.mxu0 %v4358_v15  ;;  %1508 = vmatpush.msrb.mxu1 %v4359_v17 }
 0x140   : > { %1528 = vmatpush.msrb.mxu2 %v4360_v25  ;;  %1548 = vmatpush.msrb.mxu3 %v4361_v24 }
 0x141   : > { %1489 = vmatpush.msrb.mxu0 %v4362_v29  ;;  %1509 = vmatpush.msrb.mxu1 %v4363_v31 }
 0x142   : > { %1529 = vmatpush.msrb.mxu2 %v4364_v33  ;;  %1549 = vmatpush.msrb.mxu3 %v4365_v21 }
 0x143   : > { %1490 = vmatpush.msrb.mxu0 %v4366_v26  ;;  %1510 = vmatpush.msrb.mxu1 %v4367_v40 }
 0x144   : > { %1530 = vmatpush.msrb.mxu2 %v4368_v34  ;;  %1550 = vmatpush.msrb.mxu3 %v4369_v49 }
 0x145   : > { %1491 = vmatpush.msrb.mxu0 %v4370_v38  ;;  %1511 = vmatpush.msrb.mxu1 %v4371_v30 }
 0x146   : > { %1531 = vmatpush.msrb.mxu2 %v4372_v46  ;;  %1551 = vmatpush.msrb.mxu3 %v4373_v28 }
 0x16f   : > { %v1152_v50 = vpop.f32.mrf.mxu1  ;;  %v1132_v22 = vpop.f32.mrf.mxu0 }
 0x170   : > { %v1199_v57 = vrot.slane %v1152_v50, 6  ;;  %v728_v50 = vrot.slane %v3355_v16, 4  ;;  %v2137_v16 = vld [vmem:[%s4018_s4 + $0x1c8] sm:$0xff] }
 0x172   : > { %v1202_v53 = vsel %vm566_vm4, %v1132_v22, %v1199_v57 }
 0x176   : > { %v1172_v19 = vpop.f32.mrf.mxu2  ;;  %v1192_v54 = vpop.f32.mrf.mxu3 }
 0x177   : > { %v1200_v23 = vrot.slane %v1172_v19, 4  ;;  %v1201_v58 = vrot.slane %v1192_v54, 2 }
 0x179   : > { %v1203_v61 = vsel %vm568_vm2, %v1200_v23, %v1201_v58  ;;  %v2136_v23 = vld [vmem:[%s4018_s4 + $0x1c0] sm:$0xff] }
 0x17a   : > { %v1204_v0 = vsel %vm570_vm5, %v1202_v53, %v1203_v61  ;;  %v2147_v61 = vld [vmem:[%s4018_s4 + $0x128] sm:$0xff] }
 0x17b   : > { %v1206_v1 = vadd.f32 %v1204_v0, %v578_v60 }
 0x17d   : > { %v1207_v3 = vmul.f32 0.5, %v1206_v1  ;;  %v1212_v4 = vrot.slane %v1206_v1, 2  ;;  %v1221_v6 = vrot.slane %v1206_v1, 6  ;;  %v1218_v7 = vrot.slane %v1206_v1, 4 }
 0x17f   : > { %2056 = vtanh.f32 %v1207_v3  ;;  %v1214_v5 = vmul.f32 0.5, %v1212_v4  ;;  %v1223_v8 = vmul.f32 0.5, %v1221_v6  ;;  %v2149_v3 = vld [vmem:[%s4018_s4 + $0x108] sm:$0xff] }
 0x180   : > { %v2151_v4 = vld [vmem:[%s4018_s4 + $0xe8] sm:$0xff] }
 0x181   : > { %2058 = vtanh.f32 %v1214_v5 }
 0x182   : > { %2060 = vtanh.f32 %v1218_v7  ;;  %v2153_v7 = vld [vmem:[%s4018_s4 + $0xc8] sm:$0xff] }
 0x183   : > { %2062 = vtanh.f32 %v1223_v8  ;;  %v2154_v8 = vld [vmem:[%s4018_s4 + $0xd0] sm:$0xff] }
 0x185   : > { %v2057_v9 = vpop.eup %2056 }
 0x186   : > { %v1209_v10 = vadd.f32 1.0, %v2057_v9  ;;  %v2156_v9 = vld [vmem:[%s4018_s4 + $0xa0] sm:$0xff] }
 0x187   : > { %v2059_v11 = vpop.eup %2058 }
 0x188   : > { %v1210_v12 = vmul.f32 0.5, %v1209_v10  ;;  %v1216_v13 = vadd.f32 1.0, %v2059_v11  ;;  %v2061_v15 = vpop.eup %2060  ;;  %v2157_v10 = vld [vmem:[%s4018_s4 + $0xa8] sm:$0xff]  ;;  %v2158_v11 = vld [vmem:[%s4018_s4 + $0xb0] sm:$0xff] }
 0x189   : > { %v2063_v24 = vpop.eup %2062 }
 0x18a   : > { %v1217_v14 = vmul.f32 0.5, %v1216_v13  ;;  %v1228_v25 = vmul.f32 %v2061_v15, %v1210_v12  ;;  %v1225_v31 = vadd.f32 1.0, %v2063_v24  ;;  %v2159_v12 = vld [vmem:[%s4018_s4 + $0xb8] sm:$0xff]  ;;  %v2160_v13 = vld [vmem:[%s4018_s4 + $0x80] sm:$0xff] }
 0x18b   : > { %v2164_v24 = vld [vmem:[%s4018_s4 + $0x60] sm:$0xff] }
 0x18c   : > { %v1227_v17 = vmul.f32 %v1217_v14, %v3371_v41  ;;  %v1226_v21 = vmul.f32 0.5, %v1225_v31  ;;  %v2161_v14 = vld [vmem:[%s4018_s4 + $0x88] sm:$0xff] }
 0x18d   : > { %v2165_v31 = vld [vmem:[%s4018_s4 + $0x68] sm:$0xff] }
 0x18e   : > { %v3618_v29 = vadd.f32 %v1228_v25, %v1227_v17  ;;  %v2162_v17 = vld [vmem:[%s4018_s4 + $0x90] sm:$0xff]  ;;  %v2163_v25 = vld [vmem:[%s4018_s4 + $0x98] sm:$0xff] }
 0x190   : > { %2064 = vtanh.f32 %v3618_v29 }
 0x196   : > { %v2065_v26 = vpop.eup %2064 }
 0x197   : > { %v1231_v38 = vmul.f32 %v2065_v26, %v1226_v21  ;;  %v2167_v21 = vld [vmem:[%s4018_s4 + $0x78] sm:$0xff]  ;;  %v2168_v26 = vld [vmem:[%s4018_s4 + $0x40] sm:$0xff] }
 0x199   : > { %2004 = vst [vmem:[%s2350_s26 + $0x2] sm:$0x3] %v1231_v38  ;;  %1373 = vmatmul.f32.vlgmr.msra.gmra.mxu0 %v1231_v38  ;;  %1393 = vmatmul.f32.vlgmr.msra.gmra.mxu1 %v1231_v38 }
 0x19a   : > { %1413 = vmatmul.f32.vlgmr.msra.gmra.mxu2 %v1231_v38  ;;  %1433 = vmatmul.f32.vlgmr.msra.gmra.mxu3 %v1231_v38  ;;  %v2171_v38 = vld [vmem:[%s4018_s4 + $0x58] sm:$0xff] }
 0x19b   : > { %1599 = vmatpush.msra.mxu0 %v3384_v27  ;;  %1619 = vmatpush.msra.mxu1 %v3390_v56  ;;  %v2138_v27 = vld [vmem:[%s4018_s4 + $0x1a0] sm:$0xff]  ;;  %v2139_v56 = vld [vmem:[%s4018_s4 + $0x1a8] sm:$0xff] }
 0x19c   : > { %1639 = vmatpush.msra.mxu2 %v3396_v20  ;;  %1659 = vmatpush.msra.mxu3 %v3402_v32 }
 0x19d   : > { %1600 = vmatpush.msra.mxu0 %v2136_v23  ;;  %1620 = vmatpush.msra.mxu1 %v2137_v16  ;;  %v2178_v23 = vld [vmem:[%s4018_s4 + $0x10] sm:$0xff]  ;;  %v2179_v16 = vld [vmem:[%s4018_s4 + $0x18] sm:$0xff] }
 0x19e   : > { %1640 = vmatpush.msra.mxu2 %v3410_v63  ;;  %1660 = vmatpush.msra.mxu3 %v3416_v18  ;;  %v2140_v63 = vld [vmem:[%s4018_s4 + $0x180] sm:$0xff]  ;;  %v2141_v18 = vld [vmem:[%s4018_s4 + $0x188] sm:$0xff] }
 0x19f   : > { %1601 = vmatpush.msra.mxu0 %v2138_v27  ;;  %1621 = vmatpush.msra.mxu1 %v2139_v56  ;;  %v2182_v27 = vld [vmem:[%s4019_s5 + $0x1f0] sm:$0xff]  ;;  %v2183_v56 = vld [vmem:[%s4019_s5 + $0x1f8] sm:$0xff] }
 0x1a0   : > { %1641 = vmatpush.msra.mxu2 %v3424_v35  ;;  %1661 = vmatpush.msra.mxu3 %v3430_v48  ;;  %v2142_v35 = vld [vmem:[%s4018_s4 + $0x160] sm:$0xff]  ;;  %v2143_v48 = vld [vmem:[%s4018_s4 + $0x168] sm:$0xff] }
 0x1a1   : > { %1602 = vmatpush.msra.mxu0 %v2140_v63  ;;  %1622 = vmatpush.msra.mxu1 %v2141_v18  ;;  %v2186_v63 = vld [vmem:[%s4019_s5 + $0x1d0] sm:$0xff]  ;;  %v2187_v18 = vld [vmem:[%s4019_s5 + $0x1d8] sm:$0xff] }
 0x1a2   : > { %v1271_v33 = vpop.f32.mrf.mxu1  ;;  %v1251_v28 = vpop.f32.mrf.mxu0  ;;  %1642 = vmatpush.msra.mxu2 %v3438_v39  ;;  %1662 = vmatpush.msra.mxu3 %v3444_v52  ;;  %v2144_v39 = vld [vmem:[%s4018_s4 + $0x140] sm:$0xff]  ;;  %v2145_v52 = vld [vmem:[%s4018_s4 + $0x148] sm:$0xff] }
 0x1a3   : > { %v1318_v40 = vrot.slane %v1271_v33, 6  ;;  %1603 = vmatpush.msra.mxu0 %v2142_v35  ;;  %1623 = vmatpush.msra.mxu1 %v2143_v48  ;;  %v2166_v33 = vld [vmem:[%s4018_s4 + $0x70] sm:$0xff]  ;;  %v2189_v35 = vld [vmem:[%s4019_s5 + $0x1a8] sm:$0xff] }
 0x1a4   : > { %1643 = vmatpush.msra.mxu2 %v3452_v42  ;;  %1663 = vmatpush.msra.mxu3 %v3458_v43  ;;  %v2146_v43 = vld [vmem:[%s4018_s4 + $0x120] sm:$0xff]  ;;  %v2190_v48 = vld [vmem:[%s4019_s5 + $0x1b0] sm:$0xff] }
 0x1a5   : > { %v1321_v41 = vsel %vm566_vm4, %v1251_v28, %v1318_v40  ;;  %1604 = vmatpush.msra.mxu0 %v2144_v39  ;;  %1624 = vmatpush.msra.mxu1 %v2145_v52  ;;  %v2169_v40 = vld [vmem:[%s4018_s4 + $0x48] sm:$0xff]  ;;  %v2192_v39 = vld [vmem:[%s4019_s5 + $0x180] sm:$0xff] }
 0x1a6   : > { %1644 = vmatpush.msra.mxu2 %v3466_v47  ;;  %1664 = vmatpush.msra.mxu3 %v3472_v36  ;;  %v2148_v36 = vld [vmem:[%s4018_s4 + $0x100] sm:$0xff]  ;;  %v2173_v28 = vld [vmem:[%s4018_s4 + $0x28] sm:$0xff] }
 0x1a7   : > { %1605 = vmatpush.msra.mxu0 %v2146_v43  ;;  %1625 = vmatpush.msra.mxu1 %v2147_v61  ;;  %v2193_v52 = vld [vmem:[%s4019_s5 + $0x188] sm:$0xff]  ;;  %v2196_v43 = vld [vmem:[%s4019_s5 + $0x160] sm:$0xff] }
 0x1a8   : > { %1645 = vmatpush.msra.mxu2 %v3480_v51  ;;  %1665 = vmatpush.msra.mxu3 %v3486_v37  ;;  %v2150_v37 = vld [vmem:[%s4018_s4 + $0xe0] sm:$0xff]  ;;  %v2197_v61 = vld [vmem:[%s4019_s5 + $0x168] sm:$0xff] }
 0x1a9   : > { %v1291_v34 = vpop.f32.mrf.mxu2  ;;  %v1311_v49 = vpop.f32.mrf.mxu3  ;;  %1606 = vmatpush.msra.mxu0 %v2148_v36  ;;  %1626 = vmatpush.msra.mxu1 %v2149_v3  ;;  %v2201_v36 = vld [vmem:[%s4019_s5 + $0x148] sm:$0xff]  ;;  %v2202_v3 = vld [vmem:[%s4019_s5 + $0x150] sm:$0xff] }
 0x1aa   : > { %v1319_v30 = vrot.slane %v1291_v34, 4  ;;  %v1320_v46 = vrot.slane %v1311_v49, 2  ;;  %1646 = vmatpush.msra.mxu2 %v3494_v55  ;;  %1666 = vmatpush.msra.mxu3 %v3500_v44  ;;  %v2152_v44 = vld [vmem:[%s4018_s4 + $0xc0] sm:$0xff]  ;;  %v2170_v49 = vld [vmem:[%s4018_s4 + $0x50] sm:$0xff] }
 0x1ab   : > { %1607 = vmatpush.msra.mxu0 %v2150_v37  ;;  %1627 = vmatpush.msra.mxu1 %v2151_v4  ;;  %v2204_v37 = vld [vmem:[%s4019_s5 + $0x120] sm:$0xff]  ;;  %v2205_v4 = vld [vmem:[%s4019_s5 + $0x128] sm:$0xff] }
 0x1ac   : > { %v1322_v57 = vsel %vm568_vm2, %v1319_v30, %v1320_v46  ;;  %1647 = vmatpush.msra.mxu2 %v3508_v59  ;;  %1667 = vmatpush.msra.mxu3 %v3514_v45  ;;  %v2155_v59 = vld [vmem:[%s4018_s4 + $0xd8] sm:$0xff]  ;;  %v2172_v46 = vld [vmem:[%s4018_s4 + $0x20] sm:$0xff] }
 0x1ad   : > { %v1323_v19 = vsel %vm570_vm5, %v1321_v41, %v1322_v57  ;;  %1608 = vmatpush.msra.mxu0 %v2152_v44  ;;  %1628 = vmatpush.msra.mxu1 %v2153_v7  ;;  %v2175_v57 = vld [vmem:[%s4018_s4 + $0x38] sm:$0xff]  ;;  %v2209_v44 = vld [vmem:[%s4019_s5 + $0x108] sm:$0xff]  ;;  %v2210_v7 = vld [vmem:[%s4019_s5 + $0x110] sm:$0xff] }
 0x1ae   : > { %v1325_v54 = vadd.f32 %v1323_v19, %v728_v50  ;;  %1648 = vmatpush.msra.mxu2 %v2154_v8  ;;  %1668 = vmatpush.msra.mxu3 %v2155_v59  ;;  %v2174_v50 = vld [vmem:[%s4018_s4 + $0x30] sm:$0xff]  ;;  %v2176_v19 = vld [vmem:[%s4018_s4] sm:$0xff]  ;;  %v2211_v8 = vld [vmem:[%s4019_s5 + $0x118] sm:$0xff] }
 0x1af   : > { %1609 = vmatpush.msra.mxu0 %v2156_v9  ;;  %1629 = vmatpush.msra.mxu1 %v2157_v10  ;;  %v2212_v59 = vld [vmem:[%s4019_s5 + $0xe0] sm:$0xff]  ;;  %v2214_v9 = vld [vmem:[%s4019_s5 + $0xf0] sm:$0xff]  ;;  %v2215_v10 = vld [vmem:[%s4019_s5 + $0xf8] sm:$0xff] }
 0x1b0   : > { %v1326_v58 = vmul.f32 0.5, %v1325_v54  ;;  %v1331_v22 = vrot.slane %v1325_v54, 2  ;;  %v1340_v32 = vrot.slane %v1325_v54, 6  ;;  %v1337_v53 = vrot.slane %v1325_v54, 4  ;;  %1649 = vmatpush.msra.mxu2 %v2158_v11  ;;  %1669 = vmatpush.msra.mxu3 %v2159_v12  ;;  %v2177_v54 = vld [vmem:[%s4018_s4 + $0x8] sm:$0xff]  ;;  %v2216_v11 = vld [vmem:[%s4019_s5 + $0xc0] sm:$0xff] }
 0x1b1   : > { %1610 = vmatpush.msra.mxu0 %v2160_v13  ;;  %1630 = vmatpush.msra.mxu1 %v2161_v14  ;;  %v2217_v12 = vld [vmem:[%s4019_s5 + $0xc8] sm:$0xff]  ;;  %v2218_v13 = vld [vmem:[%s4019_s5 + $0xd0] sm:$0xff]  ;;  %v2219_v14 = vld [vmem:[%s4019_s5 + $0xd8] sm:$0xff] }
 0x1b2   : > { %2066 = vtanh.f32 %v1326_v58  ;;  %v1333_v20 = vmul.f32 0.5, %v1331_v22  ;;  %v1342_v62 = vmul.f32 0.5, %v1340_v32  ;;  %1650 = vmatpush.msra.mxu2 %v2162_v17  ;;  %1670 = vmatpush.msra.mxu3 %v2163_v25  ;;  %v2180_v58 = vld [vmem:[%s4019_s5 + $0x1e0] sm:$0xff]  ;;  %v2181_v22 = vld [vmem:[%s4019_s5 + $0x1e8] sm:$0xff]  ;;  %v2222_v25 = vld [vmem:[%s4019_s5 + $0xb0] sm:$0xff] }
 0x1b3   : > { %1611 = vmatpush.msra.mxu0 %v2164_v24  ;;  %1631 = vmatpush.msra.mxu1 %v2165_v31  ;;  %v2185_v32 = vld [vmem:[%s4019_s5 + $0x1c8] sm:$0xff]  ;;  %v2223_v24 = vld [vmem:[%s4019_s5 + $0xb8] sm:$0xff]  ;;  %v2224_v31 = vld [vmem:[%s4019_s5 + $0x80] sm:$0xff] }
 0x1b4   : > { %2068 = vtanh.f32 %v1333_v20  ;;  %1651 = vmatpush.msra.mxu2 %v2166_v33  ;;  %1671 = vmatpush.msra.mxu3 %v2167_v21  ;;  %v2184_v20 = vld [vmem:[%s4019_s5 + $0x1c0] sm:$0xff]  ;;  %v2221_v17 = vld [vmem:[%s4019_s5 + $0xa8] sm:$0xff]  ;;  %v2226_v21 = vld [vmem:[%s4019_s5 + $0x90] sm:$0xff] }
 0x1b5   : > { %2070 = vtanh.f32 %v1337_v53  ;;  %1612 = vmatpush.msra.mxu0 %v2168_v26  ;;  %1632 = vmatpush.msra.mxu1 %v2169_v40  ;;  %v2188_v53 = vld [vmem:[%s4019_s5 + $0x1a0] sm:$0xff]  ;;  %v2225_v33 = vld [vmem:[%s4019_s5 + $0x88] sm:$0xff]  ;;  %v2227_v26 = vld [vmem:[%s4019_s5 + $0x98] sm:$0xff] }
 0x1b6   : > { %2072 = vtanh.f32 %v1342_v62  ;;  %1652 = vmatpush.msra.mxu2 %v2170_v49  ;;  %1672 = vmatpush.msra.mxu3 %v2171_v38  ;;  %v2191_v62 = vld [vmem:[%s4019_s5 + $0x1b8] sm:$0xff]  ;;  %v2228_v40 = vld [vmem:[%s4019_s5 + $0x60] sm:$0xff]  ;;  %v2230_v49 = vld [vmem:[%s4019_s5 + $0x70] sm:$0xff] }
 0x1b7   : > { %1613 = vmatpush.msra.mxu0 %v2172_v46  ;;  %1633 = vmatpush.msra.mxu1 %v2173_v28  ;;  %v2231_v38 = vld [vmem:[%s4019_s5 + $0x78] sm:$0xff]  ;;  %v2233_v46 = vld [vmem:[%s4019_s5 + $0x48] sm:$0xff]  ;;  %v2234_v28 = vld [vmem:[%s4019_s5 + $0x50] sm:$0xff] }
 0x1b8   : > { %v2067_v60 = vpop.eup %2066  ;;  %1653 = vmatpush.msra.mxu2 %v2174_v50  ;;  %1673 = vmatpush.msra.mxu3 %v2175_v57  ;;  %v2236_v50 = vld [vmem:[%s4019_s5 + $0x20] sm:$0xff]  ;;  %v2237_v57 = vld [vmem:[%s4019_s5 + $0x28] sm:$0xff] }
 0x1b9   : > { %v1328_v42 = vadd.f32 1.0, %v2067_v60  ;;  %1614 = vmatpush.msra.mxu0 %v2176_v19  ;;  %1634 = vmatpush.msra.mxu1 %v2177_v54  ;;  %v2194_v60 = vld [vmem:[%s4019_s5 + $0x190] sm:$0xff]  ;;  %v2239_v54 = vld [vmem:[%s4019_s5 + $0x38] sm:$0xff] }
 0x1ba   : > { %v2069_v0 = vpop.eup %2068  ;;  %1654 = vmatpush.msra.mxu2 %v2178_v23  ;;  %1674 = vmatpush.msra.mxu3 %v2179_v16  ;;  %v2238_v19 = vld [vmem:[%s4019_s5 + $0x30] sm:$0xff]  ;;  %v2240_v23 = vld [vmem:[%s4019_s5] sm:$0xff]  ;;  %v2241_v16 = vld [vmem:[%s4019_s5 + $0x8] sm:$0xff] }
 0x1bb   : > { %v1329_v1 = vmul.f32 0.5, %v1328_v42  ;;  %v1335_v47 = vadd.f32 1.0, %v2069_v0  ;;  %v2071_v5 = vpop.eup %2070  ;;  %v2195_v42 = vld [vmem:[%s4019_s5 + $0x198] sm:$0xff]  ;;  %v2198_v0 = vld [vmem:[%s4019_s5 + $0x170] sm:$0xff] }
 0x1bc   : > { %v2073_v45 = vpop.eup %2072 }
 0x1bd   : > { %v1336_v51 = vmul.f32 0.5, %v1335_v47  ;;  %v1347_v6 = vmul.f32 %v2071_v5, %v1329_v1  ;;  %v1344_v15 = vadd.f32 1.0, %v2073_v45  ;;  %v2199_v1 = vld [vmem:[%s4019_s5 + $0x178] sm:$0xff]  ;;  %v2200_v47 = vld [vmem:[%s4019_s5 + $0x140] sm:$0xff]  ;;  %v2206_v5 = vld [vmem:[%s4019_s5 + $0x130] sm:$0xff] }
 0x1be   : > { %v2213_v45 = vld [vmem:[%s4019_s5 + $0xe8] sm:$0xff] }
 0x1bf   : > { %v1346_v55 = vmul.f32 %v1336_v51, %v3521_v2  ;;  %v1345_v34 = vmul.f32 0.5, %v1344_v15  ;;  %v2203_v51 = vld [vmem:[%s4019_s5 + $0x158] sm:$0xff]  ;;  %v2220_v15 = vld [vmem:[%s4019_s5 + $0xa0] sm:$0xff] }
 0x1c1   : > { %v3707_v2 = vadd.f32 %v1347_v6, %v1346_v55  ;;  %v2207_v55 = vld [vmem:[%s4019_s5 + $0x138] sm:$0xff]  ;;  %v2208_v6 = vld [vmem:[%s4019_s5 + $0x100] sm:$0xff] }
 0x1c3   : > { %2074 = vtanh.f32 %v3707_v2 }
 0x1c9   : > { %v2075_v30 = vpop.eup %2074 }
 0x1ca   : > { %v1350_v41 = vmul.f32 %v2075_v30, %v1345_v34  ;;  %v2229_v34 = vld [vmem:[%s4019_s5 + $0x68] sm:$0xff]  ;;  %v2232_v30 = vld [vmem:[%s4019_s5 + $0x40] sm:$0xff] }
 0x1cc   : > { %2005 = vst [vmem:[%s2355_s29 + $0x4] sm:$0x3] %v1350_v41  ;;  %1492 = vmatmul.f32.vlgmr.msrb.gmra.mxu0 %v1350_v41  ;;  %1512 = vmatmul.f32.vlgmr.msrb.gmra.mxu1 %v1350_v41 }
 0x1cd   : > { %1532 = vmatmul.f32.vlgmr.msrb.gmra.mxu2 %v1350_v41  ;;  %1552 = vmatmul.f32.vlgmr.msrb.gmra.mxu3 %v1350_v41  ;;  %v2235_v41 = vld [vmem:[%s4019_s5 + $0x58] sm:$0xff] }
 0x1ce   : > { %1717 = vmatpush.msrb.mxu0 %v2180_v58  ;;  %1737 = vmatpush.msrb.mxu1 %v2181_v22  ;;  %v2242_v58 = vld [vmem:[%s4019_s5 + $0x10] sm:$0xff]  ;;  %v2243_v22 = vld [vmem:[%s4019_s5 + $0x18] sm:$0xff] }
 0x1cf   : > { %1757 = vmatpush.msrb.mxu2 %v2182_v27  ;;  %1777 = vmatpush.msrb.mxu3 %v2183_v56 }
 0x1d0   : > { %1718 = vmatpush.msrb.mxu0 %v2184_v20  ;;  %1738 = vmatpush.msrb.mxu1 %v2185_v32 }
 0x1d1   : > { %1758 = vmatpush.msrb.mxu2 %v2186_v63  ;;  %1778 = vmatpush.msrb.mxu3 %v2187_v18 }
 0x1d2   : > { %1719 = vmatpush.msrb.mxu0 %v2188_v53  ;;  %1739 = vmatpush.msrb.mxu1 %v2189_v35 }
 0x1d3   : > { %1759 = vmatpush.msrb.mxu2 %v2190_v48  ;;  %1779 = vmatpush.msrb.mxu3 %v2191_v62  ;;  %v4375_v48 = vld [vmem:[#allocation16_spill] sm:$0xff] }
 0x1d4   : > { %1720 = vmatpush.msrb.mxu0 %v2192_v39  ;;  %1740 = vmatpush.msrb.mxu1 %v2193_v52  ;;  %v582_v62 = vrot.slane %v4375_v48, 4 }
 0x1d5   : > { %1760 = vmatpush.msrb.mxu2 %v2194_v60  ;;  %1780 = vmatpush.msrb.mxu3 %v2195_v42 }
 0x1d6   : > { %1721 = vmatpush.msrb.mxu0 %v2196_v43  ;;  %1741 = vmatpush.msrb.mxu1 %v2197_v61 }
 0x1d7   : > { %1761 = vmatpush.msrb.mxu2 %v2198_v0  ;;  %1781 = vmatpush.msrb.mxu3 %v2199_v1 }
 0x1d8   : > { %1722 = vmatpush.msrb.mxu0 %v2200_v47  ;;  %1742 = vmatpush.msrb.mxu1 %v2201_v36 }
 0x1d9   : > { %1762 = vmatpush.msrb.mxu2 %v2202_v3  ;;  %1782 = vmatpush.msrb.mxu3 %v2203_v51 }
 0x1da   : > { %1723 = vmatpush.msrb.mxu0 %v2204_v37  ;;  %1743 = vmatpush.msrb.mxu1 %v2205_v4 }
 0x1db   : > { %1763 = vmatpush.msrb.mxu2 %v2206_v5  ;;  %1783 = vmatpush.msrb.mxu3 %v2207_v55 }
 0x1dc   : > { %1724 = vmatpush.msrb.mxu0 %v2208_v6  ;;  %1744 = vmatpush.msrb.mxu1 %v2209_v44 }
 0x1dd   : > { %1764 = vmatpush.msrb.mxu2 %v2210_v7  ;;  %1784 = vmatpush.msrb.mxu3 %v2211_v8 }
 0x1de   : > { %1725 = vmatpush.msrb.mxu0 %v2212_v59  ;;  %1745 = vmatpush.msrb.mxu1 %v2213_v45 }
 0x1df   : > { %1765 = vmatpush.msrb.mxu2 %v2214_v9  ;;  %1785 = vmatpush.msrb.mxu3 %v2215_v10 }
 0x1e0   : > { %1726 = vmatpush.msrb.mxu0 %v2216_v11  ;;  %1746 = vmatpush.msrb.mxu1 %v2217_v12 }
 0x1e1   : > { %1766 = vmatpush.msrb.mxu2 %v2218_v13  ;;  %1786 = vmatpush.msrb.mxu3 %v2219_v14 }
 0x1e2   : > { %1727 = vmatpush.msrb.mxu0 %v2220_v15  ;;  %1747 = vmatpush.msrb.mxu1 %v2221_v17 }
 0x1e3   : > { %1767 = vmatpush.msrb.mxu2 %v2222_v25  ;;  %1787 = vmatpush.msrb.mxu3 %v2223_v24  ;;  %v4376_v24 = vld [vmem:[#allocation20_spill] sm:$0xff] }
 0x1e4   : > { %1728 = vmatpush.msrb.mxu0 %v2224_v31  ;;  %1748 = vmatpush.msrb.mxu1 %v2225_v33  ;;  %v724_v31 = vrot.slane %v4376_v24, 2 }
 0x1e5   : > { %1768 = vmatpush.msrb.mxu2 %v2226_v21  ;;  %1788 = vmatpush.msrb.mxu3 %v2227_v26 }
 0x1e6   : > { %1729 = vmatpush.msrb.mxu0 %v2228_v40  ;;  %1749 = vmatpush.msrb.mxu1 %v2229_v34 }
 0x1e7   : > { %1769 = vmatpush.msrb.mxu2 %v2230_v49  ;;  %1789 = vmatpush.msrb.mxu3 %v2231_v38 }
 0x1e8   : > { %1730 = vmatpush.msrb.mxu0 %v2232_v30  ;;  %1750 = vmatpush.msrb.mxu1 %v2233_v46 }
 0x1e9   : > { %1770 = vmatpush.msrb.mxu2 %v2234_v28  ;;  %1790 = vmatpush.msrb.mxu3 %v2235_v41 }
 0x1ea   : > { %1731 = vmatpush.msrb.mxu0 %v2236_v50  ;;  %1751 = vmatpush.msrb.mxu1 %v2237_v57 }
 0x1eb   : > { %1771 = vmatpush.msrb.mxu2 %v2238_v19  ;;  %1791 = vmatpush.msrb.mxu3 %v2239_v54 }
 0x1ec   : > { %1732 = vmatpush.msrb.mxu0 %v2240_v23  ;;  %1752 = vmatpush.msrb.mxu1 %v2241_v16 }
 0x1ed   : > { %1772 = vmatpush.msrb.mxu2 %v2242_v58  ;;  %1792 = vmatpush.msrb.mxu3 %v2243_v22 }
 0x216   : > { %v1394_v27 = vpop.f32.mrf.mxu1  ;;  %v1374_v53 = vpop.f32.mrf.mxu0 }
 0x217   : > { %v1441_v56 = vrot.slane %v1394_v27, 6 }
 0x219   : > { %v1444_v35 = vsel %vm566_vm4, %v1374_v53, %v1441_v56 }
 0x21d   : > { %v1414_v20 = vpop.f32.mrf.mxu2  ;;  %v1434_v32 = vpop.f32.mrf.mxu3 }
 0x21e   : > { %v1442_v63 = vrot.slane %v1414_v20, 4  ;;  %v1443_v18 = vrot.slane %v1434_v32, 2 }
 0x220   : > { %v1445_v39 = vsel %vm568_vm2, %v1442_v63, %v1443_v18 }
 0x221   : > { %v1446_v52 = vsel %vm570_vm5, %v1444_v35, %v1445_v39 }
 0x222   : > { %v1448_v60 = vadd.f32 %v1446_v52, %v582_v62 }
 0x224   : > { %v1449_v42 = vmul.f32 0.5, %v1448_v60  ;;  %v1454_v43 = vrot.slane %v1448_v60, 2  ;;  %v1463_v0 = vrot.slane %v1448_v60, 6  ;;  %v1460_v1 = vrot.slane %v1448_v60, 4  ;;  %v4377_v60 = vld [vmem:[#allocation17_spill] sm:$0xff] }
 0x226   : > { %2076 = vtanh.f32 %v1449_v42  ;;  %v1456_v61 = vmul.f32 0.5, %v1454_v43  ;;  %v1465_v47 = vmul.f32 0.5, %v1463_v0  ;;  %v586_v42 = vrot.slane %v4377_v60, 6 }
 0x228   : > { %2078 = vtanh.f32 %v1456_v61 }
 0x229   : > { %2080 = vtanh.f32 %v1460_v1 }
 0x22a   : > { %2082 = vtanh.f32 %v1465_v47 }
 0x22c   : > { %v2077_v36 = vpop.eup %2076 }
 0x22d   : > { %v1451_v3 = vadd.f32 1.0, %v2077_v36 }
 0x22e   : > { %v2079_v51 = vpop.eup %2078 }
 0x22f   : > { %v1452_v37 = vmul.f32 0.5, %v1451_v3  ;;  %v1458_v4 = vadd.f32 1.0, %v2079_v51  ;;  %v2081_v55 = vpop.eup %2080 }
 0x230   : > { %v2083_v7 = vpop.eup %2082 }
 0x231   : > { %v1459_v5 = vmul.f32 0.5, %v1458_v4  ;;  %v1470_v44 = vmul.f32 %v2081_v55, %v1452_v37  ;;  %v1467_v59 = vadd.f32 1.0, %v2083_v7 }
 0x233   : > { %v1469_v6 = vmul.f32 %v1459_v5, %v3618_v29  ;;  %v1468_v9 = vmul.f32 0.5, %v1467_v59 }
 0x235   : > { %v3980_v8 = vadd.f32 %v1470_v44, %v1469_v6 }
 0x237   : > { %2084 = vtanh.f32 %v3980_v8 }
 0x23d   : > { %v2085_v10 = vpop.eup %2084 }
 0x23e   : > { %v1473_v14 = vmul.f32 %v2085_v10, %v1468_v9 }
 0x240   : > { %1615 = vmatmul.f32.vlgmr.msra.gmra.mxu0 %v1473_v14  ;;  %2006 = vst [vmem:[%s2350_s26 + $0x4] sm:$0x3] %v1473_v14  ;;  %1635 = vmatmul.f32.vlgmr.msra.gmra.mxu1 %v1473_v14 }
 0x241   : > { %1655 = vmatmul.f32.vlgmr.msra.gmra.mxu2 %v1473_v14  ;;  %1675 = vmatmul.f32.vlgmr.msra.gmra.mxu3 %v1473_v14 }
 0x249   : > { %v1513_v45 = vpop.f32.mrf.mxu1  ;;  %v1493_v25 = vpop.f32.mrf.mxu0 }
 0x24a   : > { %v1560_v11 = vrot.slane %v1513_v45, 6 }
 0x24c   : > { %v1563_v29 = vsel %vm566_vm4, %v1493_v25, %v1560_v11 }
 0x250   : > { %v1533_v12 = vpop.f32.mrf.mxu2  ;;  %v1553_v13 = vpop.f32.mrf.mxu3 }
 0x251   : > { %v1561_v15 = vrot.slane %v1533_v12, 4  ;;  %v1562_v17 = vrot.slane %v1553_v13, 2 }
 0x253   : > { %v1564_v33 = vsel %vm568_vm2, %v1561_v15, %v1562_v17 }
 0x254   : > { %v1565_v21 = vsel %vm570_vm5, %v1563_v29, %v1564_v33 }
 0x255   : > { %v1567_v26 = vadd.f32 %v1565_v21, %v724_v31 }
 0x257   : > { %v1568_v40 = vmul.f32 0.5, %v1567_v26  ;;  %v1573_v34 = vrot.slane %v1567_v26, 2  ;;  %v1582_v38 = vrot.slane %v1567_v26, 6  ;;  %v1579_v30 = vrot.slane %v1567_v26, 4 }
 0x259   : > { %2086 = vtanh.f32 %v1568_v40  ;;  %v1575_v49 = vmul.f32 0.5, %v1573_v34  ;;  %v1584_v46 = vmul.f32 0.5, %v1582_v38  ;;  %v4378_v34 = vld [vmem:[#allocation81_spill] sm:$0xff] }
 0x25b   : > { %2088 = vtanh.f32 %v1575_v49 }
 0x25c   : > { %2090 = vtanh.f32 %v1579_v30 }
 0x25d   : > { %2092 = vtanh.f32 %v1584_v46 }
 0x25f   : > { %v2087_v28 = vpop.eup %2086 }
 0x260   : > { %v1570_v41 = vadd.f32 1.0, %v2087_v28 }
 0x261   : > { %v2089_v50 = vpop.eup %2088 }
 0x262   : > { %v1571_v57 = vmul.f32 0.5, %v1570_v41  ;;  %v1577_v19 = vadd.f32 1.0, %v2089_v50  ;;  %v2091_v23 = vpop.eup %2090 }
 0x263   : > { %v2093_v22 = vpop.eup %2092 }
 0x264   : > { %v1578_v54 = vmul.f32 0.5, %v1577_v19  ;;  %v1589_v58 = vmul.f32 %v2091_v23, %v1571_v57  ;;  %v1586_v56 = vadd.f32 1.0, %v2093_v22 }
 0x266   : > { %v1588_v16 = vmul.f32 %v1578_v54, %v3707_v2  ;;  %v1587_v20 = vmul.f32 0.5, %v1586_v56 }
 0x268   : > { %v3989_v27 = vadd.f32 %v1589_v58, %v1588_v16 }
 0x26a   : > { %2094 = vtanh.f32 %v3989_v27 }
 0x270   : > { %v2095_v32 = vpop.eup %2094 }
 0x271   : > { %v1592_v63 = vmul.f32 %v2095_v32, %v1587_v20 }
 0x273   : > { %1733 = vmatmul.f32.vlgmr.msrb.gmra.mxu0 %v1592_v63  ;;  %2007 = vst [vmem:[%s2355_s29 + $0x2] sm:$0x3] %v1592_v63  ;;  %1753 = vmatmul.f32.vlgmr.msrb.gmra.mxu1 %v1592_v63 }
 0x274   : > { %1773 = vmatmul.f32.vlgmr.msrb.gmra.mxu2 %v1592_v63  ;;  %1793 = vmatmul.f32.vlgmr.msrb.gmra.mxu3 %v1592_v63 }
 0x2bd   : > { %v1636_v18 = vpop.f32.mrf.mxu1  ;;  %v1616_v39 = vpop.f32.mrf.mxu0 }
 0x2be   : > { %v1683_v53 = vrot.slane %v1636_v18, 6 }
 0x2c0   : > { %v1686_v52 = vsel %vm566_vm4, %v1616_v39, %v1683_v53 }
 0x2c4   : > { %v1656_v35 = vpop.f32.mrf.mxu2  ;;  %v1676_v48 = vpop.f32.mrf.mxu3 }
 0x2c5   : > { %v1684_v2 = vrot.slane %v1656_v35, 4  ;;  %v1685_v62 = vrot.slane %v1676_v48, 2 }
 0x2c7   : > { %v1687_v43 = vsel %vm568_vm2, %v1684_v2, %v1685_v62 }
 0x2c8   : > { %v1688_v61 = vsel %vm570_vm5, %v1686_v52, %v1687_v43 }
 0x2c9   : > { %v1690_v0 = vadd.f32 %v1688_v61, %v586_v42 }
 0x2cb   : > { %v1691_v1 = vmul.f32 0.5, %v1690_v0  ;;  %v1696_v47 = vrot.slane %v1690_v0, 2  ;;  %v1705_v3 = vrot.slane %v1690_v0, 6  ;;  %v1702_v51 = vrot.slane %v1690_v0, 4 }
 0x2cd   : > { %2096 = vtanh.f32 %v1691_v1  ;;  %v1698_v36 = vmul.f32 0.5, %v1696_v47  ;;  %v1707_v37 = vmul.f32 0.5, %v1705_v3 }
 0x2cf   : > { %2098 = vtanh.f32 %v1698_v36 }
 0x2d0   : > { %2100 = vtanh.f32 %v1702_v51 }
 0x2d1   : > { %2102 = vtanh.f32 %v1707_v37 }
 0x2d3   : > { %v2097_v4 = vpop.eup %2096 }
 0x2d4   : > { %v1693_v5 = vadd.f32 1.0, %v2097_v4 }
 0x2d5   : > { %v2099_v55 = vpop.eup %2098 }
 0x2d6   : > { %v1694_v6 = vmul.f32 0.5, %v1693_v5  ;;  %v1700_v44 = vadd.f32 1.0, %v2099_v55  ;;  %v2101_v59 = vpop.eup %2100 }
 0x2d7   : > { %v2103_v10 = vpop.eup %2102 }
 0x2d8   : > { %v1701_v7 = vmul.f32 0.5, %v1700_v44  ;;  %v1712_v9 = vmul.f32 %v2101_v59, %v1694_v6  ;;  %v1709_v12 = vadd.f32 1.0, %v2103_v10 }
 0x2da   : > { %v1711_v45 = vmul.f32 %v1701_v7, %v3980_v8  ;;  %v1710_v14 = vmul.f32 0.5, %v1709_v12 }
 0x2dc   : > { %v1713_v11 = vadd.f32 %v1712_v9, %v1711_v45 }
 0x2de   : > { %2104 = vtanh.f32 %v1713_v11  ;;  %1838 = vst [vmem:[#allocation5] sm:$0x3] %v1713_v11 }
 0x2e4   : > { %v2105_v15 = vpop.eup %2104 }
 0x2e5   : > { %v1715_v25 = vmul.f32 %v2105_v15, %v1710_v14 }
 0x2e7   : > { %2008 = vst [vmem:[%s2350_s26 + $0x6] sm:$0x3] %v1715_v25 }
 0x2e8   : > { %1837 = vst [vmem:[#allocation4] sm:$0x3] %v1715_v25 }
 0x2f0   : > { %v1754_v13 = vpop.f32.mrf.mxu1  ;;  %v1734_v21 = vpop.f32.mrf.mxu0 }
 0x2f1   : > { %v1801_v17 = vrot.slane %v1754_v13, 6 }
 0x2f3   : > { %v1804_v8 = vsel %vm566_vm4, %v1734_v21, %v1801_v17 }
 0x2f7   : > { %v1774_v29 = vpop.f32.mrf.mxu2  ;;  %v1794_v24 = vpop.f32.mrf.mxu3 }
 0x2f8   : > { %v1802_v31 = vrot.slane %v1774_v29, 4  ;;  %v1803_v33 = vrot.slane %v1794_v24, 2 }
 0x2fa   : > { %v1805_v26 = vsel %vm568_vm2, %v1802_v31, %v1803_v33 }
 0x2fb   : > { %v1806_v40 = vsel %vm570_vm5, %v1804_v8, %v1805_v26 }
 0x2fc   : > { %v1808_v49 = vadd.f32 %v1806_v40, %v4378_v34 }
 0x2fe   : > { %v1809_v38 = vmul.f32 0.5, %v1808_v49  ;;  %v1814_v30 = vrot.slane %v1808_v49, 2  ;;  %v1823_v28 = vrot.slane %v1808_v49, 6  ;;  %v1820_v41 = vrot.slane %v1808_v49, 4 }
 0x300   : > { %2106 = vtanh.f32 %v1809_v38  ;;  %v1816_v46 = vmul.f32 0.5, %v1814_v30  ;;  %v1825_v50 = vmul.f32 0.5, %v1823_v28 }
 0x302   : > { %2108 = vtanh.f32 %v1816_v46 }
 0x303   : > { %2110 = vtanh.f32 %v1820_v41 }
 0x304   : > { %2112 = vtanh.f32 %v1825_v50 }
 0x306   : > { %v2107_v57 = vpop.eup %2106 }
 0x307   : > { %v1811_v19 = vadd.f32 1.0, %v2107_v57 }
 0x308   : > { %v2109_v54 = vpop.eup %2108 }
 0x309   : > { %v1812_v23 = vmul.f32 0.5, %v1811_v19  ;;  %v1818_v16 = vadd.f32 1.0, %v2109_v54  ;;  %v2111_v22 = vpop.eup %2110 }
 0x30a   : > { %v2113_v32 = vpop.eup %2112 }
 0x30b   : > { %v1819_v58 = vmul.f32 0.5, %v1818_v16  ;;  %v1830_v20 = vmul.f32 %v2111_v22, %v1812_v23  ;;  %v1827_v18 = vadd.f32 1.0, %v2113_v32 }
 0x30d   : > { %v1829_v56 = vmul.f32 %v1819_v58, %v3989_v27  ;;  %v1828_v53 = vmul.f32 0.5, %v1827_v18 }
 0x30f   : > { %v1831_v63 = vadd.f32 %v1830_v20, %v1829_v56 }
 0x311   : > { %2114 = vtanh.f32 %v1831_v63  ;;  %1840 = vst [vmem:[#allocation7] sm:$0x3] %v1831_v63 }
 0x317   : > { %v2115_v35 = vpop.eup %2114 }
 0x318   : > { %v1833_v48 = vmul.f32 %v2115_v35, %v1828_v53 }
 0x31a   : > { %1836 = vst [vmem:[%s2355_s29] sm:$0x3] %v1833_v48 }
 0x31b   : > { %1839 = vst [vmem:[#allocation6] sm:$0x3] %v1833_v48 }
 0x31c PF: > { %s20_s11 = sadd.s32 1, %s2266_s11   ;;  %s4379_s30 = smov %s2262_s10 }
 0x31d   : > { %p17_p7 = scmp.ge.s32.totalorder %s20_s11, 4   ;;  %s4380_s10 = smov %s4382_s12 }
 0x31f   :  { %19 = sbr.rel (!%p17_p7) target bundleno = 2 (0x2), region = 119 }

// kernel: bilstm_forward_pallas.3
= control target key start
LH: loop header
LB: loop body
LE: loop exit
PB: predicated region body
PF: predicated region fallthrough
CT: control target
= control target key end

     0   :  { %s5613_s0 = inlined_call_operand.vmem [shape: f32[8,2,128], index: 0, kind: input, shape index: {}, may-alias: {0,2}]   ;;  %s5614_s1 = inlined_call_operand.vmem [shape: f32[8,2,128], index: 1, kind: input, shape index: {}, may-alias: {1,3}]   ;;  %s5615_s2 = inlined_call_operand.vmem [shape: f32[8,2,128], index: 2, kind: input, shape index: {}, may-alias: {0,2}]   ;;  %s5616_s3 = inlined_call_operand.vmem [shape: f32[8,2,128], index: 3, kind: input, shape index: {}, may-alias: {1,3}]   ;;  %s5617_s4 = inlined_call_operand.vmem [shape: f32[128,512], index: 4, kind: input, shape index: {}]   ;;  %s5618_s5 = inlined_call_operand.vmem [shape: f32[128,512], index: 5, kind: input, shape index: {}]   ;;  %s5619_s6 = inlined_call_operand.vmem [shape: f32[128,512], index: 6, kind: input, shape index: {}]   ;;  %s5620_s7 = inlined_call_operand.vmem [shape: f32[128,512], index: 7, kind: input, shape index: {}]   ;;  %s5621_s8 = inlined_call_operand.vmem [shape: f32[128,512], index: 8, kind: input, shape index: {}]   ;;  %s5622_s9 = inlined_call_operand.vmem [shape: f32[128,512], index: 9, kind: input, shape index: {}]   ;;  %s5623_s10 = inlined_call_operand.vmem [shape: f32[1,512], index: 10, kind: input, shape index: {}]   ;;  %s5624_s11 = inlined_call_operand.vmem [shape: f32[1,512], index: 11, kind: input, shape index: {}]   ;;  %s5625_s12 = inlined_call_operand.vmem [shape: f32[256,128], index: 12, kind: input, shape index: {}]   ;;  %s5626_s13 = inlined_call_operand.vmem [shape: f32[1,128], index: 13, kind: input, shape index: {}]   ;;  %s5627_s14 = inlined_call_operand.hbm [shape: f32[2,128], index: 14, kind: output, shape index: {}]  }
   0x1   :  { %5777 = sst [smem:[#allocation99_spill]] %s5627_s14 }
   0x2   :  { %19 = vsyncpa [#allocation9], 0  ;;  %s3018_s29 = smov 0   ;;  %s3020_s30 = smov 0  }
   0x3   :  { %s3022_s15 = smov 0  }
   0x4 LB: > { %5778 = sst [smem:[#allocation11_spill]] %s2935_s30  ;;  %s34_s17 = sadd.s32 1, %s2935_s30  ;;  %s2939_s15 = sphi %s3022_s15, %s25_s15   ;;  %s2935_s30 = sphi %s3020_s30, %s6008_s30   ;;  %s2931_s29 = sphi %s3018_s29, %s6007_s29  }
   0x5   : > { %p35_p0 = scmp.ge.s32.totalorder %s34_s17, 2  ;;  %p2627_p1 = scmp.ge.s32.totalorder %s2939_s15, 1 }
   0x6   : > { %p487_p2 = scmp.lt.s32.totalorder %s2939_s15, 3 }
   0x7   : > { %s6010_s17 = smov (%p35_p0, %s34_s17), 0 }
   0x8   : > { %5779 = sst [smem:[#allocation12_spill]] %s6010_s17  ;;  %p488_p3 = pnand %p2627_p1, %p487_p2 }
   0xa   : > { %491 = sbr.rel (%p488_p3) target bundleno = 1101 (0x44d), region = 76 }
   0xf   : > { %s2628_s18 = sshll.u32 %s2931_s29, 2  ;;  %s575_s19 = ssub.s32 1, %s2931_s29 }
  0x10   : > { %p558_p4 = scmp.lt.s32.totalorder %s2628_s18, 7  ;;  %s2632_s20 = sshll.u32 %s575_s19, 2 }
  0x11   : > { %p577_p5 = scmp.lt.s32.totalorder %s2632_s20, 7  ;;  %p2636_p6 = scmp.ne.s32.totalorder %s2931_s29, 0 }
  0x12   : > { %s6012_s18 = smov (!%p558_p4, %s2628_s18), 7 }
  0x13   : > { %s6014_s20 = smov (!%p577_p5, %s2632_s20), 7  ;;  %s2629_s21 = sshll.u32 %s6012_s18, 1 }
  0x14   : > { %s3044_s24 = scalar_lea.vmem %s5613_s0, %s2629_s21  ;;  %s3049_s27 = scalar_lea.vmem %s5614_s1, %s2629_s21 }
  0x15   : > { %s2633_s28 = sshll.u32 %s6014_s20, 1  ;;  %600 = sbr.rel (%p2636_p6) target bundleno = 31 (0x1f), region = 80 }
  0x16   : > { %s3054_s30 = scalar_lea.vmem %s5615_s2, %s2633_s28  ;;  %s3059_s18 = scalar_lea.vmem %s5616_s3, %s2633_s28 }
  0x1a   : > { %v2941_v0 = vmov 0.0  }
  0x1b   : > { %601 = vst [vmem:[#allocation4] sm:$0x3] %v2941_v0 }
  0x1c   : > { %602 = vst [vmem:[#allocation5] sm:$0x3] %v2941_v0 }
  0x1d   : > { %603 = vst [vmem:[#allocation6] sm:$0x3] %v2941_v0 }
  0x1e   : > { %604 = vst [vmem:[#allocation7] sm:$0x3] %v2941_v0 }
  0x1f PF: > { %v739_v1 = vld [vmem:[%s5618_s5 + $0x1f0] sm:$0xff]  ;;  %v740_v2 = vld [vmem:[%s5618_s5 + $0x1f8] sm:$0xff]  ;;  %v738_v7 = vld [vmem:[%s5618_s5 + $0x1e8] sm:$0xff]  ;;  %vm948_vm0 = vcmask 1041408   ;;  %vm954_vm1 = vcmask 1043458   ;;  %vm956_vm2 = vcmask 1045504  }
  0x20   : > { %v735_v3 = vld [vmem:[%s5618_s5 + $0x1d0] sm:$0xff]  ;;  %794 = vmatpush.msra.mxu2 %v739_v1  ;;  %814 = vmatpush.msra.mxu3 %v740_v2  ;;  %v736_v4 = vld [vmem:[%s5618_s5 + $0x1d8] sm:$0xff]  ;;  %v737_v8 = vld [vmem:[%s5618_s5 + $0x1e0] sm:$0xff]  ;;  %vm950_vm3 = vcmask 1045508   ;;  %vm952_vm4 = vcmask 1043456   ;;  %vm958_vm5 = vcmask 1045506  }
  0x21   : > { %v731_v5 = vld [vmem:[%s5618_s5 + $0x1b0] sm:$0xff]  ;;  %v732_v6 = vld [vmem:[%s5618_s5 + $0x1b8] sm:$0xff]  ;;  %v734_v9 = vld [vmem:[%s5618_s5 + $0x1c8] sm:$0xff]  ;;  %774 = vmatpush.msra.mxu1 %v738_v7  ;;  %754 = vmatpush.msra.mxu0 %v737_v8  ;;  %p2637_p7 = scmp.ne.s32.totalorder %s2931_s29, 1 }
  0x22   : > { %795 = vmatpush.msra.mxu2 %v735_v3  ;;  %815 = vmatpush.msra.mxu3 %v736_v4  ;;  %v727_v10 = vld [vmem:[%s5618_s5 + $0x190] sm:$0xff]  ;;  %v728_v11 = vld [vmem:[%s5618_s5 + $0x198] sm:$0xff]  ;;  %v733_v12 = vld [vmem:[%s5618_s5 + $0x1c0] sm:$0xff] }
  0x23   : > { %v730_v13 = vld [vmem:[%s5618_s5 + $0x1a8] sm:$0xff]  ;;  %v729_v14 = vld [vmem:[%s5618_s5 + $0x1a0] sm:$0xff]  ;;  %775 = vmatpush.msra.mxu1 %v734_v9  ;;  %v723_v15 = vld [vmem:[%s5618_s5 + $0x170] sm:$0xff]  ;;  %755 = vmatpush.msra.mxu0 %v733_v12 }
  0x24   : > { %796 = vmatpush.msra.mxu2 %v731_v5  ;;  %816 = vmatpush.msra.mxu3 %v732_v6  ;;  %v724_v16 = vld [vmem:[%s5618_s5 + $0x178] sm:$0xff]  ;;  %v726_v17 = vld [vmem:[%s5618_s5 + $0x188] sm:$0xff]  ;;  %v725_v18 = vld [vmem:[%s5618_s5 + $0x180] sm:$0xff] }
  0x25   : > { %776 = vmatpush.msra.mxu1 %v730_v13  ;;  %v719_v19 = vld [vmem:[%s5618_s5 + $0x150] sm:$0xff]  ;;  %v720_v20 = vld [vmem:[%s5618_s5 + $0x158] sm:$0xff]  ;;  %756 = vmatpush.msra.mxu0 %v729_v14  ;;  %v722_v21 = vld [vmem:[%s5618_s5 + $0x168] sm:$0xff] }
  0x26   : > { %797 = vmatpush.msra.mxu2 %v727_v10  ;;  %817 = vmatpush.msra.mxu3 %v728_v11  ;;  %v721_v22 = vld [vmem:[%s5618_s5 + $0x160] sm:$0xff]  ;;  %v715_v23 = vld [vmem:[%s5618_s5 + $0x130] sm:$0xff]  ;;  %v716_v24 = vld [vmem:[%s5618_s5 + $0x138] sm:$0xff] }
  0x27   : > { %777 = vmatpush.msra.mxu1 %v726_v17  ;;  %757 = vmatpush.msra.mxu0 %v725_v18  ;;  %v718_v25 = vld [vmem:[%s5618_s5 + $0x148] sm:$0xff]  ;;  %v717_v26 = vld [vmem:[%s5618_s5 + $0x140] sm:$0xff]  ;;  %v711_v27 = vld [vmem:[%s5618_s5 + $0x110] sm:$0xff] }
  0x28   : > { %798 = vmatpush.msra.mxu2 %v723_v15  ;;  %818 = vmatpush.msra.mxu3 %v724_v16  ;;  %v712_v28 = vld [vmem:[%s5618_s5 + $0x118] sm:$0xff]  ;;  %v714_v29 = vld [vmem:[%s5618_s5 + $0x128] sm:$0xff]  ;;  %v713_v30 = vld [vmem:[%s5618_s5 + $0x120] sm:$0xff] }
  0x29   : > { %778 = vmatpush.msra.mxu1 %v722_v21  ;;  %758 = vmatpush.msra.mxu0 %v721_v22  ;;  %v707_v31 = vld [vmem:[%s5618_s5 + $0xf0] sm:$0xff]  ;;  %v708_v32 = vld [vmem:[%s5618_s5 + $0xf8] sm:$0xff]  ;;  %v710_v33 = vld [vmem:[%s5618_s5 + $0x108] sm:$0xff] }
  0x2a   : > { %799 = vmatpush.msra.mxu2 %v719_v19  ;;  %819 = vmatpush.msra.mxu3 %v720_v20  ;;  %v709_v34 = vld [vmem:[%s5618_s5 + $0x100] sm:$0xff]  ;;  %v703_v35 = vld [vmem:[%s5618_s5 + $0xd0] sm:$0xff]  ;;  %v704_v36 = vld [vmem:[%s5618_s5 + $0xd8] sm:$0xff] }
  0x2b   : > { %779 = vmatpush.msra.mxu1 %v718_v25  ;;  %759 = vmatpush.msra.mxu0 %v717_v26  ;;  %v706_v37 = vld [vmem:[%s5618_s5 + $0xe8] sm:$0xff]  ;;  %v705_v38 = vld [vmem:[%s5618_s5 + $0xe0] sm:$0xff]  ;;  %v699_v39 = vld [vmem:[%s5618_s5 + $0xb0] sm:$0xff] }
  0x2c   : > { %800 = vmatpush.msra.mxu2 %v715_v23  ;;  %820 = vmatpush.msra.mxu3 %v716_v24  ;;  %v700_v40 = vld [vmem:[%s5618_s5 + $0xb8] sm:$0xff]  ;;  %v702_v41 = vld [vmem:[%s5618_s5 + $0xc8] sm:$0xff]  ;;  %v701_v42 = vld [vmem:[%s5618_s5 + $0xc0] sm:$0xff] }
  0x2d   : > { %780 = vmatpush.msra.mxu1 %v714_v29  ;;  %760 = vmatpush.msra.mxu0 %v713_v30  ;;  %v695_v43 = vld [vmem:[%s5618_s5 + $0x90] sm:$0xff]  ;;  %v696_v44 = vld [vmem:[%s5618_s5 + $0x98] sm:$0xff]  ;;  %v698_v45 = vld [vmem:[%s5618_s5 + $0xa8] sm:$0xff] }
  0x2e   : > { %801 = vmatpush.msra.mxu2 %v711_v27  ;;  %821 = vmatpush.msra.mxu3 %v712_v28  ;;  %v697_v46 = vld [vmem:[%s5618_s5 + $0xa0] sm:$0xff]  ;;  %v691_v47 = vld [vmem:[%s5618_s5 + $0x70] sm:$0xff]  ;;  %v692_v48 = vld [vmem:[%s5618_s5 + $0x78] sm:$0xff] }
  0x2f   : > { %781 = vmatpush.msra.mxu1 %v710_v33  ;;  %761 = vmatpush.msra.mxu0 %v709_v34  ;;  %v694_v49 = vld [vmem:[%s5618_s5 + $0x88] sm:$0xff]  ;;  %v693_v50 = vld [vmem:[%s5618_s5 + $0x80] sm:$0xff]  ;;  %v687_v51 = vld [vmem:[%s5618_s5 + $0x50] sm:$0xff] }
  0x30   : > { %802 = vmatpush.msra.mxu2 %v707_v31  ;;  %822 = vmatpush.msra.mxu3 %v708_v32  ;;  %v688_v52 = vld [vmem:[%s5618_s5 + $0x58] sm:$0xff]  ;;  %v690_v53 = vld [vmem:[%s5618_s5 + $0x68] sm:$0xff]  ;;  %v689_v54 = vld [vmem:[%s5618_s5 + $0x60] sm:$0xff] }
  0x31   : > { %782 = vmatpush.msra.mxu1 %v706_v37  ;;  %762 = vmatpush.msra.mxu0 %v705_v38  ;;  %v683_v55 = vld [vmem:[%s5618_s5 + $0x30] sm:$0xff]  ;;  %v684_v56 = vld [vmem:[%s5618_s5 + $0x38] sm:$0xff]  ;;  %v686_v57 = vld [vmem:[%s5618_s5 + $0x48] sm:$0xff] }
  0x32   : > { %803 = vmatpush.msra.mxu2 %v703_v35  ;;  %823 = vmatpush.msra.mxu3 %v704_v36  ;;  %v685_v58 = vld [vmem:[%s5618_s5 + $0x40] sm:$0xff]  ;;  %v679_v59 = vld [vmem:[%s5618_s5 + $0x10] sm:$0xff]  ;;  %v680_v60 = vld [vmem:[%s5618_s5 + $0x18] sm:$0xff] }
  0x33   : > { %783 = vmatpush.msra.mxu1 %v702_v41  ;;  %763 = vmatpush.msra.mxu0 %v701_v42  ;;  %v671_v61 = vld [vmem:[%s5617_s4 + $0x1f0] sm:$0xff]  ;;  %v672_v62 = vld [vmem:[%s5617_s4 + $0x1f8] sm:$0xff]  ;;  %v682_v63 = vld [vmem:[%s5618_s5 + $0x28] sm:$0xff] }
  0x34   : > { %804 = vmatpush.msra.mxu2 %v699_v39  ;;  %824 = vmatpush.msra.mxu3 %v700_v40  ;;  %v681_v0 = vld [vmem:[%s5618_s5 + $0x20] sm:$0xff]  ;;  %v667_v1 = vld [vmem:[%s5617_s4 + $0x1d0] sm:$0xff]  ;;  %v668_v2 = vld [vmem:[%s5617_s4 + $0x1d8] sm:$0xff] }
  0x35   : > { %784 = vmatpush.msra.mxu1 %v698_v45  ;;  %764 = vmatpush.msra.mxu0 %v697_v46  ;;  %v678_v3 = vld [vmem:[%s5618_s5 + $0x8] sm:$0xff]  ;;  %v677_v4 = vld [vmem:[%s5618_s5] sm:$0xff]  ;;  %v663_v5 = vld [vmem:[%s5617_s4 + $0x1b0] sm:$0xff] }
  0x36   : > { %805 = vmatpush.msra.mxu2 %v695_v43  ;;  %825 = vmatpush.msra.mxu3 %v696_v44  ;;  %v664_v6 = vld [vmem:[%s5617_s4 + $0x1b8] sm:$0xff]  ;;  %v670_v7 = vld [vmem:[%s5617_s4 + $0x1e8] sm:$0xff]  ;;  %v659_v8 = vld [vmem:[%s5617_s4 + $0x190] sm:$0xff] }
  0x37   : > { %785 = vmatpush.msra.mxu1 %v694_v49  ;;  %765 = vmatpush.msra.mxu0 %v693_v50  ;;  %v660_v9 = vld [vmem:[%s5617_s4 + $0x198] sm:$0xff]  ;;  %v669_v10 = vld [vmem:[%s5617_s4 + $0x1e0] sm:$0xff]  ;;  %v666_v14 = vld [vmem:[%s5617_s4 + $0x1c8] sm:$0xff] }
  0x38   : > { %806 = vmatpush.msra.mxu2 %v691_v47  ;;  %826 = vmatpush.msra.mxu3 %v692_v48  ;;  %v673_v11 = vld [vmem:[%s3049_s27] sm:$0x3]  ;;  %v674_v12 = vld [vmem:[%s3049_s27 + $0x2] sm:$0x3]  ;;  %v675_v13 = vld [vmem:[%s3049_s27 + $0x4] sm:$0x3] }
  0x39   : > { %786 = vmatpush.msra.mxu1 %v690_v53  ;;  %766 = vmatpush.msra.mxu0 %v689_v54  ;;  %v665_v15 = vld [vmem:[%s5617_s4 + $0x1c0] sm:$0xff]  ;;  %745 = vst [vmem:[#allocation1] ss:$4 sm:$0xff] %v673_v11  ;;  %v655_v17 = vld [vmem:[%s5617_s4 + $0x170] sm:$0xff]  ;;  %v656_v18 = vld [vmem:[%s5617_s4 + $0x178] sm:$0xff] }
  0x3a   : > { %807 = vmatpush.msra.mxu2 %v687_v51  ;;  %827 = vmatpush.msra.mxu3 %v688_v52  ;;  %v676_v16 = vld [vmem:[%s3049_s27 + $0x6] sm:$0x3]  ;;  %747 = vst [vmem:[#allocation1 + $0x1] ss:$4 sm:$0xff] %v674_v12  ;;  %v662_v19 = vld [vmem:[%s5617_s4 + $0x1a8] sm:$0xff]  ;;  %v651_v21 = vld [vmem:[%s5617_s4 + $0x150] sm:$0xff] }
  0x3b   : > { %787 = vmatpush.msra.mxu1 %v686_v57  ;;  %767 = vmatpush.msra.mxu0 %v685_v58  ;;  %v661_v20 = vld [vmem:[%s5617_s4 + $0x1a0] sm:$0xff]  ;;  %749 = vst [vmem:[#allocation1 + $0x2] ss:$4 sm:$0xff] %v675_v13  ;;  %v652_v22 = vld [vmem:[%s5617_s4 + $0x158] sm:$0xff]  ;;  %v658_v23 = vld [vmem:[%s5617_s4 + $0x188] sm:$0xff] }
  0x3c   : > { %808 = vmatpush.msra.mxu2 %v683_v55  ;;  %828 = vmatpush.msra.mxu3 %v684_v56  ;;  %751 = vst [vmem:[#allocation1 + $0x3] ss:$4 sm:$0xff] %v676_v16  ;;  %v657_v24 = vld [vmem:[%s5617_s4 + $0x180] sm:$0xff]  ;;  %v647_v25 = vld [vmem:[%s5617_s4 + $0x130] sm:$0xff]  ;;  %v648_v26 = vld [vmem:[%s5617_s4 + $0x138] sm:$0xff] }
  0x3d   : > { %788 = vmatpush.msra.mxu1 %v682_v63  ;;  %768 = vmatpush.msra.mxu0 %v681_v0  ;;  %v654_v27 = vld [vmem:[%s5617_s4 + $0x168] sm:$0xff]  ;;  %v653_v28 = vld [vmem:[%s5617_s4 + $0x160] sm:$0xff]  ;;  %v643_v29 = vld [vmem:[%s5617_s4 + $0x110] sm:$0xff] }
  0x3e   : > { %809 = vmatpush.msra.mxu2 %v679_v59  ;;  %829 = vmatpush.msra.mxu3 %v680_v60  ;;  %v644_v30 = vld [vmem:[%s5617_s4 + $0x118] sm:$0xff]  ;;  %v650_v31 = vld [vmem:[%s5617_s4 + $0x148] sm:$0xff]  ;;  %v639_v32 = vld [vmem:[%s5617_s4 + $0xf0] sm:$0xff] }
  0x3f   : > { %789 = vmatpush.msra.mxu1 %v678_v3  ;;  %769 = vmatpush.msra.mxu0 %v677_v4  ;;  %v649_v33 = vld [vmem:[%s5617_s4 + $0x140] sm:$0xff]  ;;  %v640_v35 = vld [vmem:[%s5617_s4 + $0xf8] sm:$0xff]  ;;  %v646_v36 = vld [vmem:[%s5617_s4 + $0x128] sm:$0xff] }
  0x40   : > { %887 = vmatpush.msrb.mxu2 %v671_v61  ;;  %907 = vmatpush.msrb.mxu3 %v672_v62  ;;  %v605_v34 = vld [vmem:[%s3044_s24] sm:$0x3]  ;;  %v606_v37 = vld [vmem:[%s3044_s24 + $0x2] sm:$0x3]  ;;  %v607_v40 = vld [vmem:[%s3044_s24 + $0x4] sm:$0x3] }
  0x41   : > { %867 = vmatpush.msrb.mxu1 %v670_v7  ;;  %847 = vmatpush.msrb.mxu0 %v669_v10  ;;  %v645_v38 = vld [vmem:[%s5617_s4 + $0x120] sm:$0xff]  ;;  %v635_v41 = vld [vmem:[%s5617_s4 + $0xd0] sm:$0xff]  ;;  %v636_v42 = vld [vmem:[%s5617_s4 + $0xd8] sm:$0xff] }
  0x42   : > { %888 = vmatpush.msrb.mxu2 %v667_v1  ;;  %908 = vmatpush.msrb.mxu3 %v668_v2  ;;  %v608_v43 = vld [vmem:[%s3044_s24 + $0x6] sm:$0x3]  ;;  %v642_v44 = vld [vmem:[%s5617_s4 + $0x108] sm:$0xff]  ;;  %v631_v46 = vld [vmem:[%s5617_s4 + $0xb0] sm:$0xff] }
  0x43   : > { %868 = vmatpush.msrb.mxu1 %v666_v14  ;;  %848 = vmatpush.msrb.mxu0 %v665_v15  ;;  %v3356_v39 = vld.sshfl [vmem:[#allocation1] sm:$0xff pattern:$0x73625140]  ;;  %v632_v47 = vld [vmem:[%s5617_s4 + $0xb8] sm:$0xff]  ;;  %v638_v48 = vld [vmem:[%s5617_s4 + $0xe8] sm:$0xff] }
  0x44   : > { %889 = vmatpush.msrb.mxu2 %v663_v5  ;;  %909 = vmatpush.msrb.mxu3 %v664_v6  ;;  %838 = vst [vmem:[#allocation1] ss:$4 sm:$0xff] %v605_v34  ;;  %v641_v45 = vld [vmem:[%s5617_s4 + $0x100] sm:$0xff]  ;;  %v627_v49 = vld [vmem:[%s5617_s4 + $0x90] sm:$0xff]  ;;  %v628_v50 = vld [vmem:[%s5617_s4 + $0x98] sm:$0xff] }
  0x45   : > { %869 = vmatpush.msrb.mxu1 %v662_v19  ;;  %849 = vmatpush.msrb.mxu0 %v661_v20  ;;  %840 = vst [vmem:[#allocation1 + $0x1] ss:$4 sm:$0xff] %v606_v37  ;;  %v637_v51 = vld [vmem:[%s5617_s4 + $0xe0] sm:$0xff]  ;;  %v634_v52 = vld [vmem:[%s5617_s4 + $0xc8] sm:$0xff]  ;;  %v623_v53 = vld [vmem:[%s5617_s4 + $0x70] sm:$0xff] }
  0x46   : > { %890 = vmatpush.msrb.mxu2 %v659_v8  ;;  %910 = vmatpush.msrb.mxu3 %v660_v9  ;;  %842 = vst [vmem:[#allocation1 + $0x2] ss:$4 sm:$0xff] %v607_v40  ;;  %v624_v54 = vld [vmem:[%s5617_s4 + $0x78] sm:$0xff]  ;;  %v633_v55 = vld [vmem:[%s5617_s4 + $0xc0] sm:$0xff]  ;;  %v630_v56 = vld [vmem:[%s5617_s4 + $0xa8] sm:$0xff] }
  0x47   : > { %870 = vmatpush.msrb.mxu1 %v658_v23  ;;  %850 = vmatpush.msrb.mxu0 %v657_v24  ;;  %844 = vst [vmem:[#allocation1 + $0x3] ss:$4 sm:$0xff] %v608_v43  ;;  %v619_v57 = vld [vmem:[%s5617_s4 + $0x50] sm:$0xff]  ;;  %v620_v58 = vld [vmem:[%s5617_s4 + $0x58] sm:$0xff]  ;;  %v629_v59 = vld [vmem:[%s5617_s4 + $0xa0] sm:$0xff] }
  0x48   : > { %891 = vmatpush.msrb.mxu2 %v655_v17  ;;  %911 = vmatpush.msrb.mxu3 %v656_v18  ;;  %v626_v60 = vld [vmem:[%s5617_s4 + $0x88] sm:$0xff]  ;;  %v615_v61 = vld [vmem:[%s5617_s4 + $0x30] sm:$0xff]  ;;  %v616_v62 = vld [vmem:[%s5617_s4 + $0x38] sm:$0xff] }
  0x49   : > { %871 = vmatpush.msrb.mxu1 %v654_v27  ;;  %851 = vmatpush.msrb.mxu0 %v653_v28  ;;  %v625_v63 = vld [vmem:[%s5617_s4 + $0x80] sm:$0xff]  ;;  %v622_v0 = vld [vmem:[%s5617_s4 + $0x68] sm:$0xff]  ;;  %v611_v1 = vld [vmem:[%s5617_s4 + $0x10] sm:$0xff] }
  0x4a   : > { %892 = vmatpush.msrb.mxu2 %v651_v21  ;;  %912 = vmatpush.msrb.mxu3 %v652_v22  ;;  %v612_v2 = vld [vmem:[%s5617_s4 + $0x18] sm:$0xff]  ;;  %v1111_v4 = vld [vmem:[%s5620_s7 + $0x1f0] sm:$0xff]  ;;  %v621_v6 = vld [vmem:[%s5617_s4 + $0x60] sm:$0xff] }
  0x4b   : > { %872 = vmatpush.msrb.mxu1 %v650_v31  ;;  %852 = vmatpush.msrb.mxu0 %v649_v33  ;;  %v1112_v5 = vld [vmem:[%s5620_s7 + $0x1f8] sm:$0xff]  ;;  %v618_v7 = vld [vmem:[%s5617_s4 + $0x48] sm:$0xff]  ;;  %v1107_v8 = vld [vmem:[%s5620_s7 + $0x1d0] sm:$0xff] }
  0x4c   : > { %893 = vmatpush.msrb.mxu2 %v647_v25  ;;  %913 = vmatpush.msrb.mxu3 %v648_v26  ;;  %v1108_v9 = vld [vmem:[%s5620_s7 + $0x1d8] sm:$0xff]  ;;  %v617_v10 = vld [vmem:[%s5617_s4 + $0x40] sm:$0xff]  ;;  %v614_v11 = vld [vmem:[%s5617_s4 + $0x28] sm:$0xff] }
  0x4d   : > { %873 = vmatpush.msrb.mxu1 %v646_v36  ;;  %853 = vmatpush.msrb.mxu0 %v645_v38  ;;  %v1103_v12 = vld [vmem:[%s5620_s7 + $0x1b0] sm:$0xff]  ;;  %v1104_v13 = vld [vmem:[%s5620_s7 + $0x1b8] sm:$0xff]  ;;  %v613_v14 = vld [vmem:[%s5617_s4 + $0x20] sm:$0xff] }
  0x4e   : > { %894 = vmatpush.msrb.mxu2 %v643_v29  ;;  %914 = vmatpush.msrb.mxu3 %v644_v30  ;;  %v845_v3 = vld.sshfl [vmem:[#allocation1] sm:$0xff pattern:$0x73625140]  ;;  %v610_v15 = vld [vmem:[%s5617_s4 + $0x8] sm:$0xff]  ;;  %v1099_v16 = vld [vmem:[%s5620_s7 + $0x190] sm:$0xff] }
  0x4f   : > { %874 = vmatpush.msrb.mxu1 %v642_v44  ;;  %854 = vmatpush.msrb.mxu0 %v641_v45  ;;  %v1100_v17 = vld [vmem:[%s5620_s7 + $0x198] sm:$0xff]  ;;  %v1110_v18 = vld [vmem:[%s5620_s7 + $0x1e8] sm:$0xff]  ;;  %v609_v19 = vld [vmem:[%s5617_s4] sm:$0xff] }
  0x50   : > { %895 = vmatpush.msrb.mxu2 %v639_v32  ;;  %915 = vmatpush.msrb.mxu3 %v640_v35  ;;  %v1095_v20 = vld [vmem:[%s5620_s7 + $0x170] sm:$0xff]  ;;  %v1109_v21 = vld [vmem:[%s5620_s7 + $0x1e0] sm:$0xff]  ;;  %v1106_v22 = vld [vmem:[%s5620_s7 + $0x1c8] sm:$0xff] }
  0x51   : > { %875 = vmatpush.msrb.mxu1 %v638_v48  ;;  %810 = vmatmul.f32.vlgmr.msra.gmra.mxu2 %v3356_v39  ;;  %v1096_v23 = vld [vmem:[%s5620_s7 + $0x178] sm:$0xff]  ;;  %v1091_v24 = vld [vmem:[%s5620_s7 + $0x150] sm:$0xff]  ;;  %v1105_v25 = vld [vmem:[%s5620_s7 + $0x1c0] sm:$0xff] }
  0x52   : > { %896 = vmatpush.msrb.mxu2 %v635_v41  ;;  %916 = vmatpush.msrb.mxu3 %v636_v42  ;;  %v1102_v26 = vld [vmem:[%s5620_s7 + $0x1a8] sm:$0xff]  ;;  %v1092_v27 = vld [vmem:[%s5620_s7 + $0x158] sm:$0xff]  ;;  %v1087_v28 = vld [vmem:[%s5620_s7 + $0x130] sm:$0xff] }
  0x53   : > { %830 = vmatmul.f32.vlgmr.msra.gmra.mxu3 %v3356_v39  ;;  %855 = vmatpush.msrb.mxu0 %v637_v51  ;;  %v1101_v29 = vld [vmem:[%s5620_s7 + $0x1a0] sm:$0xff]  ;;  %v1098_v30 = vld [vmem:[%s5620_s7 + $0x188] sm:$0xff]  ;;  %v1088_v31 = vld [vmem:[%s5620_s7 + $0x138] sm:$0xff] }
  0x54   : > { %897 = vmatpush.msrb.mxu2 %v631_v46  ;;  %917 = vmatpush.msrb.mxu3 %v632_v47  ;;  %v1083_v32 = vld [vmem:[%s5620_s7 + $0x110] sm:$0xff]  ;;  %v1097_v33 = vld [vmem:[%s5620_s7 + $0x180] sm:$0xff]  ;;  %v1094_v34 = vld [vmem:[%s5620_s7 + $0x168] sm:$0xff] }
  0x55   : > { %876 = vmatpush.msrb.mxu1 %v634_v52  ;;  %856 = vmatpush.msrb.mxu0 %v633_v55  ;;  %v1084_v35 = vld [vmem:[%s5620_s7 + $0x118] sm:$0xff]  ;;  %v1079_v36 = vld [vmem:[%s5620_s7 + $0xf0] sm:$0xff]  ;;  %v1093_v37 = vld [vmem:[%s5620_s7 + $0x160] sm:$0xff] }
  0x56   : > { %898 = vmatpush.msrb.mxu2 %v627_v49  ;;  %918 = vmatpush.msrb.mxu3 %v628_v50  ;;  %v1090_v38 = vld [vmem:[%s5620_s7 + $0x148] sm:$0xff]  ;;  %v1089_v40 = vld [vmem:[%s5620_s7 + $0x140] sm:$0xff]  ;;  %v1075_v41 = vld [vmem:[%s5620_s7 + $0xd0] sm:$0xff] }
  0x57   : > { %877 = vmatpush.msrb.mxu1 %v630_v56  ;;  %857 = vmatpush.msrb.mxu0 %v629_v59  ;;  %v1086_v42 = vld [vmem:[%s5620_s7 + $0x128] sm:$0xff]  ;;  %v1045_v43 = vld [vmem:[%s3059_s18] sm:$0x3]  ;;  %v1046_v44 = vld [vmem:[%s3059_s18 + $0x2] sm:$0x3] }
  0x58   : > { %899 = vmatpush.msrb.mxu2 %v623_v53  ;;  %919 = vmatpush.msrb.mxu3 %v624_v54  ;;  %v1076_v45 = vld [vmem:[%s5620_s7 + $0xd8] sm:$0xff]  ;;  %v1085_v46 = vld [vmem:[%s5620_s7 + $0x120] sm:$0xff]  ;;  %v1071_v47 = vld [vmem:[%s5620_s7 + $0xb0] sm:$0xff]  ;;  %1117 = vst [vmem:[#allocation1] ss:$4 sm:$0xff] %v1045_v43 }
  0x59   : > { %878 = vmatpush.msrb.mxu1 %v626_v60  ;;  %858 = vmatpush.msrb.mxu0 %v625_v63  ;;  %v1082_v48 = vld [vmem:[%s5620_s7 + $0x108] sm:$0xff]  ;;  %v1047_v49 = vld [vmem:[%s3059_s18 + $0x4] sm:$0x3]  ;;  %v1048_v50 = vld [vmem:[%s3059_s18 + $0x6] sm:$0x3] }
  0x5a   : > { %900 = vmatpush.msrb.mxu2 %v619_v57  ;;  %920 = vmatpush.msrb.mxu3 %v620_v58  ;;  %v1072_v51 = vld [vmem:[%s5620_s7 + $0xb8] sm:$0xff]  ;;  %v1067_v52 = vld [vmem:[%s5620_s7 + $0x90] sm:$0xff]  ;;  %1119 = vst [vmem:[#allocation1 + $0x1] ss:$4 sm:$0xff] %v1046_v44  ;;  %v1081_v53 = vld [vmem:[%s5620_s7 + $0x100] sm:$0xff] }
  0x5b   : > { %790 = vmatmul.f32.vlgmr.msra.gmra.mxu1 %v3356_v39  ;;  %770 = vmatmul.f32.vlgmr.msra.gmra.mxu0 %v3356_v39  ;;  %v1080_v39 = vld [vmem:[%s5620_s7 + $0xf8] sm:$0xff]  ;;  %v1078_v54 = vld [vmem:[%s5620_s7 + $0xe8] sm:$0xff]  ;;  %1121 = vst [vmem:[#allocation1 + $0x2] ss:$4 sm:$0xff] %v1047_v49  ;;  %v1063_v56 = vld [vmem:[%s5620_s7 + $0x70] sm:$0xff] }
  0x5c   : > { %901 = vmatpush.msrb.mxu2 %v615_v61  ;;  %921 = vmatpush.msrb.mxu3 %v616_v62  ;;  %v1068_v55 = vld [vmem:[%s5620_s7 + $0x98] sm:$0xff]  ;;  %1123 = vst [vmem:[#allocation1 + $0x3] ss:$4 sm:$0xff] %v1048_v50  ;;  %v1077_v57 = vld [vmem:[%s5620_s7 + $0xe0] sm:$0xff]  ;;  %v1074_v58 = vld [vmem:[%s5620_s7 + $0xc8] sm:$0xff] }
  0x5d   : > { %879 = vmatpush.msrb.mxu1 %v622_v0  ;;  %859 = vmatpush.msrb.mxu0 %v621_v6  ;;  %v1064_v59 = vld [vmem:[%s5620_s7 + $0x78] sm:$0xff]  ;;  %v1059_v60 = vld [vmem:[%s5620_s7 + $0x50] sm:$0xff]  ;;  %v1073_v61 = vld [vmem:[%s5620_s7 + $0xc0] sm:$0xff] }
  0x5e   : > { %902 = vmatpush.msrb.mxu2 %v611_v1  ;;  %922 = vmatpush.msrb.mxu3 %v612_v2  ;;  %v1070_v62 = vld [vmem:[%s5620_s7 + $0xa8] sm:$0xff]  ;;  %v1060_v63 = vld [vmem:[%s5620_s7 + $0x58] sm:$0xff]  ;;  %v1069_v0 = vld [vmem:[%s5620_s7 + $0xa0] sm:$0xff] }
  0x5f   : > { %903 = vmatmul.f32.vlgmr.msrb.gmra.mxu2 %v845_v3  ;;  %923 = vmatmul.f32.vlgmr.msrb.gmra.mxu3 %v845_v3  ;;  %v1055_v1 = vld [vmem:[%s5620_s7 + $0x30] sm:$0xff]  ;;  %v1066_v2 = vld [vmem:[%s5620_s7 + $0x88] sm:$0xff]  ;;  %v1016_v44 = vld [vmem:[%s5619_s6 + $0x118] sm:$0xff] }
  0x60   : > { %1166 = vmatpush.msra.mxu2 %v1111_v4  ;;  %1186 = vmatpush.msra.mxu3 %v1112_v5  ;;  %v977_v4 = vld [vmem:[%s3054_s30] sm:$0x3]  ;;  %v1051_v6 = vld [vmem:[%s5620_s7 + $0x10] sm:$0xff]  ;;  %v1026_v43 = vld [vmem:[%s5619_s6 + $0x168] sm:$0xff] }
  0x61   : > { %880 = vmatpush.msrb.mxu1 %v618_v7  ;;  %860 = vmatpush.msrb.mxu0 %v617_v10  ;;  %v1065_v5 = vld [vmem:[%s5620_s7 + $0x80] sm:$0xff]  ;;  %v1007_v49 = vld [vmem:[%s5619_s6 + $0xd0] sm:$0xff] }
  0x62   : > { %1167 = vmatpush.msra.mxu2 %v1107_v8  ;;  %1187 = vmatpush.msra.mxu3 %v1108_v9  ;;  %v978_v7 = vld [vmem:[%s3054_s30 + $0x2] sm:$0x3]  ;;  %v1062_v8 = vld [vmem:[%s5620_s7 + $0x68] sm:$0xff]  ;;  %v979_v9 = vld [vmem:[%s3054_s30 + $0x4] sm:$0x3] }
  0x63   : > { %881 = vmatpush.msrb.mxu1 %v614_v11  ;;  %861 = vmatpush.msrb.mxu0 %v613_v14  ;;  %v3635_v10 = vld.sshfl [vmem:[#allocation1] sm:$0xff pattern:$0x73625140]  ;;  %v1052_v11 = vld [vmem:[%s5620_s7 + $0x18] sm:$0xff] }
  0x64   : > { %1168 = vmatpush.msra.mxu2 %v1103_v12  ;;  %1188 = vmatpush.msra.mxu3 %v1104_v13  ;;  %v1043_v12 = vld [vmem:[%s5619_s6 + $0x1f0] sm:$0xff]  ;;  %v980_v13 = vld [vmem:[%s3054_s30 + $0x6] sm:$0x3]  ;;  %1210 = vst [vmem:[#allocation1] ss:$4 sm:$0xff] %v977_v4  ;;  %v1044_v14 = vld [vmem:[%s5619_s6 + $0x1f8] sm:$0xff] }
  0x65   : > { %882 = vmatpush.msrb.mxu1 %v610_v15  ;;  %862 = vmatpush.msrb.mxu0 %v609_v19  ;;  %v1061_v15 = vld [vmem:[%s5620_s7 + $0x60] sm:$0xff]  ;;  %1212 = vst [vmem:[#allocation1 + $0x1] ss:$4 sm:$0xff] %v978_v7  ;;  %v992_v4 = vld [vmem:[%s5619_s6 + $0x58] sm:$0xff]  ;;  %v987_v7 = vld [vmem:[%s5619_s6 + $0x30] sm:$0xff] }
  0x66   : > { %1169 = vmatpush.msra.mxu2 %v1099_v16  ;;  %883 = vmatmul.f32.vlgmr.msrb.gmra.mxu1 %v845_v3  ;;  %v1058_v16 = vld [vmem:[%s5620_s7 + $0x48] sm:$0xff]  ;;  %1214 = vst [vmem:[#allocation1 + $0x2] ss:$4 sm:$0xff] %v979_v9  ;;  %v1057_v19 = vld [vmem:[%s5620_s7 + $0x40] sm:$0xff] }
  0x67   : > { %1189 = vmatpush.msra.mxu3 %v1100_v17  ;;  %1146 = vmatpush.msra.mxu1 %v1110_v18  ;;  %v1039_v17 = vld [vmem:[%s5619_s6 + $0x1d0] sm:$0xff]  ;;  %v1040_v18 = vld [vmem:[%s5619_s6 + $0x1d8] sm:$0xff]  ;;  %1216 = vst [vmem:[#allocation1 + $0x3] ss:$4 sm:$0xff] %v980_v13  ;;  %v1021_v50 = vld [vmem:[%s5619_s6 + $0x140] sm:$0xff] }
  0x68   : > { %863 = vmatmul.f32.vlgmr.msrb.gmra.mxu0 %v845_v3  ;;  %1170 = vmatpush.msra.mxu2 %v1095_v20  ;;  %v1056_v3 = vld [vmem:[%s5620_s7 + $0x38] sm:$0xff]  ;;  %v1054_v20 = vld [vmem:[%s5620_s7 + $0x28] sm:$0xff]  ;;  %v997_v9 = vld [vmem:[%s5619_s6 + $0x80] sm:$0xff] }
  0x69   : > { %1126 = vmatpush.msra.mxu0 %v1109_v21  ;;  %1147 = vmatpush.msra.mxu1 %v1106_v22  ;;  %v1035_v21 = vld [vmem:[%s5619_s6 + $0x1b0] sm:$0xff]  ;;  %v1036_v22 = vld [vmem:[%s5619_s6 + $0x1b8] sm:$0xff] }
  0x6a   : > { %1190 = vmatpush.msra.mxu3 %v1096_v23  ;;  %1171 = vmatpush.msra.mxu2 %v1091_v24  ;;  %v1053_v23 = vld [vmem:[%s5620_s7 + $0x20] sm:$0xff]  ;;  %v1050_v24 = vld [vmem:[%s5620_s7 + $0x8] sm:$0xff]  ;;  %v984_v13 = vld [vmem:[%s5619_s6 + $0x18] sm:$0xff] }
  0x6b   : > { %1127 = vmatpush.msra.mxu0 %v1105_v25  ;;  %1148 = vmatpush.msra.mxu1 %v1102_v26  ;;  %v1031_v25 = vld [vmem:[%s5619_s6 + $0x190] sm:$0xff]  ;;  %v1042_v26 = vld [vmem:[%s5619_s6 + $0x1e8] sm:$0xff] }
  0x6c   : > { %1191 = vmatpush.msra.mxu3 %v1092_v27  ;;  %1172 = vmatpush.msra.mxu2 %v1087_v28  ;;  %v1032_v27 = vld [vmem:[%s5619_s6 + $0x198] sm:$0xff]  ;;  %v1049_v28 = vld [vmem:[%s5620_s7] sm:$0xff] }
  0x6d   : > { %1128 = vmatpush.msra.mxu0 %v1101_v29  ;;  %1149 = vmatpush.msra.mxu1 %v1098_v30  ;;  %v1027_v29 = vld [vmem:[%s5619_s6 + $0x170] sm:$0xff]  ;;  %v1041_v30 = vld [vmem:[%s5619_s6 + $0x1e0] sm:$0xff] }
  0x6e   : > { %1192 = vmatpush.msra.mxu3 %v1088_v31  ;;  %1173 = vmatpush.msra.mxu2 %v1083_v32  ;;  %v1038_v31 = vld [vmem:[%s5619_s6 + $0x1c8] sm:$0xff]  ;;  %v1028_v32 = vld [vmem:[%s5619_s6 + $0x178] sm:$0xff] }
  0x6f   : > { %1129 = vmatpush.msra.mxu0 %v1097_v33  ;;  %1150 = vmatpush.msra.mxu1 %v1094_v34  ;;  %v1023_v33 = vld [vmem:[%s5619_s6 + $0x150] sm:$0xff]  ;;  %v1037_v34 = vld [vmem:[%s5619_s6 + $0x1c0] sm:$0xff] }
  0x70   : > { %1193 = vmatpush.msra.mxu3 %v1084_v35  ;;  %1174 = vmatpush.msra.mxu2 %v1079_v36  ;;  %v1034_v35 = vld [vmem:[%s5619_s6 + $0x1a8] sm:$0xff]  ;;  %v1024_v36 = vld [vmem:[%s5619_s6 + $0x158] sm:$0xff] }
  0x71   : > { %1130 = vmatpush.msra.mxu0 %v1093_v37  ;;  %1151 = vmatpush.msra.mxu1 %v1090_v38  ;;  %v1019_v37 = vld [vmem:[%s5619_s6 + $0x130] sm:$0xff]  ;;  %v1033_v38 = vld [vmem:[%s5619_s6 + $0x1a0] sm:$0xff] }
  0x72   : > { %1194 = vmatpush.msra.mxu3 %v1080_v39  ;;  %1175 = vmatpush.msra.mxu2 %v1075_v41  ;;  %v1030_v39 = vld [vmem:[%s5619_s6 + $0x188] sm:$0xff]  ;;  %v1015_v41 = vld [vmem:[%s5619_s6 + $0x110] sm:$0xff] }
  0x73   : > { %1131 = vmatpush.msra.mxu0 %v1089_v40  ;;  %1152 = vmatpush.msra.mxu1 %v1086_v42  ;;  %v1020_v40 = vld [vmem:[%s5619_s6 + $0x138] sm:$0xff]  ;;  %v1029_v42 = vld [vmem:[%s5619_s6 + $0x180] sm:$0xff] }
  0x74   : > { %1195 = vmatpush.msra.mxu3 %v1076_v45  ;;  %1176 = vmatpush.msra.mxu2 %v1071_v47  ;;  %v1011_v45 = vld [vmem:[%s5619_s6 + $0xf0] sm:$0xff]  ;;  %v1022_v47 = vld [vmem:[%s5619_s6 + $0x148] sm:$0xff] }
  0x75   : > { %1132 = vmatpush.msra.mxu0 %v1085_v46  ;;  %1153 = vmatpush.msra.mxu1 %v1082_v48  ;;  %v1025_v46 = vld [vmem:[%s5619_s6 + $0x160] sm:$0xff]  ;;  %v1012_v48 = vld [vmem:[%s5619_s6 + $0xf8] sm:$0xff] }
  0x76   : > { %1196 = vmatpush.msra.mxu3 %v1072_v51  ;;  %1177 = vmatpush.msra.mxu2 %v1067_v52  ;;  %v1018_v51 = vld [vmem:[%s5619_s6 + $0x128] sm:$0xff]  ;;  %v1008_v52 = vld [vmem:[%s5619_s6 + $0xd8] sm:$0xff] }
  0x77   : > { %1133 = vmatpush.msra.mxu0 %v1081_v53  ;;  %1154 = vmatpush.msra.mxu1 %v1078_v54  ;;  %v1003_v53 = vld [vmem:[%s5619_s6 + $0xb0] sm:$0xff]  ;;  %v1017_v54 = vld [vmem:[%s5619_s6 + $0x120] sm:$0xff] }
  0x78   : > { %1197 = vmatpush.msra.mxu3 %v1068_v55  ;;  %1178 = vmatpush.msra.mxu2 %v1063_v56  ;;  %v1014_v55 = vld [vmem:[%s5619_s6 + $0x108] sm:$0xff]  ;;  %v1004_v56 = vld [vmem:[%s5619_s6 + $0xb8] sm:$0xff] }
  0x79   : > { %1134 = vmatpush.msra.mxu0 %v1077_v57  ;;  %1155 = vmatpush.msra.mxu1 %v1074_v58  ;;  %v999_v57 = vld [vmem:[%s5619_s6 + $0x90] sm:$0xff]  ;;  %v1013_v58 = vld [vmem:[%s5619_s6 + $0x100] sm:$0xff] }
  0x7a   : > { %1198 = vmatpush.msra.mxu3 %v1064_v59  ;;  %1179 = vmatpush.msra.mxu2 %v1059_v60  ;;  %v1010_v59 = vld [vmem:[%s5619_s6 + $0xe8] sm:$0xff]  ;;  %v1000_v60 = vld [vmem:[%s5619_s6 + $0x98] sm:$0xff] }
  0x7b   : > { %1135 = vmatpush.msra.mxu0 %v1073_v61  ;;  %1156 = vmatpush.msra.mxu1 %v1070_v62  ;;  %v1009_v61 = vld [vmem:[%s5619_s6 + $0xe0] sm:$0xff]  ;;  %v1006_v62 = vld [vmem:[%s5619_s6 + $0xc8] sm:$0xff] }
  0x7c   : > { %1199 = vmatpush.msra.mxu3 %v1060_v63  ;;  %1180 = vmatpush.msra.mxu2 %v1055_v1  ;;  %v995_v63 = vld [vmem:[%s5619_s6 + $0x70] sm:$0xff]  ;;  %v1005_v1 = vld [vmem:[%s5619_s6 + $0xc0] sm:$0xff] }
  0x7d   : > { %1136 = vmatpush.msra.mxu0 %v1069_v0  ;;  %1157 = vmatpush.msra.mxu1 %v1066_v2  ;;  %v996_v0 = vld [vmem:[%s5619_s6 + $0x78] sm:$0xff]  ;;  %v1002_v2 = vld [vmem:[%s5619_s6 + $0xa8] sm:$0xff] }
  0x7e   : > { %1200 = vmatpush.msra.mxu3 %v1056_v3  ;;  %1181 = vmatpush.msra.mxu2 %v1051_v6  ;;  %v991_v3 = vld [vmem:[%s5619_s6 + $0x50] sm:$0xff]  ;;  %v998_v6 = vld [vmem:[%s5619_s6 + $0x88] sm:$0xff] }
  0x7f   : > { %1137 = vmatpush.msra.mxu0 %v1065_v5  ;;  %1158 = vmatpush.msra.mxu1 %v1062_v8  ;;  %v1001_v5 = vld [vmem:[%s5619_s6 + $0xa0] sm:$0xff]  ;;  %v988_v8 = vld [vmem:[%s5619_s6 + $0x38] sm:$0xff] }
  0x80   : > { %1201 = vmatpush.msra.mxu3 %v1052_v11  ;;  %1259 = vmatpush.msrb.mxu2 %v1043_v12  ;;  %v994_v11 = vld [vmem:[%s5619_s6 + $0x68] sm:$0xff]  ;;  %v983_v12 = vld [vmem:[%s5619_s6 + $0x10] sm:$0xff] }
  0x81   : > { %1138 = vmatpush.msra.mxu0 %v1061_v15  ;;  %1159 = vmatpush.msra.mxu1 %v1058_v16  ;;  %v3839_v15 = vld [vmem:[%s5621_s8 + $0x1f0] sm:$0xff]  ;;  %v3844_v16 = vld [vmem:[%s5621_s8 + $0x1f8] sm:$0xff] }
  0x82   : > { %1279 = vmatpush.msrb.mxu3 %v1044_v14  ;;  %1260 = vmatpush.msrb.mxu2 %v1039_v17  ;;  %v1217_v14 = vld.sshfl [vmem:[#allocation1] sm:$0xff pattern:$0x73625140] }
  0x83   : > { %1139 = vmatpush.msra.mxu0 %v1057_v19  ;;  %1160 = vmatpush.msra.mxu1 %v1054_v20  ;;  %v993_v17 = vld [vmem:[%s5619_s6 + $0x60] sm:$0xff]  ;;  %v3856_v19 = vld [vmem:[%s5621_s8 + $0x1d0] sm:$0xff]  ;;  %v3862_v20 = vld [vmem:[%s5621_s8 + $0x1d8] sm:$0xff] }
  0x84   : > { %1280 = vmatpush.msrb.mxu3 %v1040_v18  ;;  %1261 = vmatpush.msrb.mxu2 %v1035_v21  ;;  %v990_v18 = vld [vmem:[%s5619_s6 + $0x48] sm:$0xff] }
  0x85   : > { %1140 = vmatpush.msra.mxu0 %v1053_v23  ;;  %1161 = vmatpush.msra.mxu1 %v1050_v24  ;;  %v986_v21 = vld [vmem:[%s5619_s6 + $0x28] sm:$0xff]  ;;  %v3880_v23 = vld [vmem:[%s5621_s8 + $0x1b8] sm:$0xff]  ;;  %v985_v24 = vld [vmem:[%s5619_s6 + $0x20] sm:$0xff] }
  0x86   : > { %1281 = vmatpush.msrb.mxu3 %v1036_v22  ;;  %1262 = vmatpush.msrb.mxu2 %v1031_v25  ;;  %v3874_v22 = vld [vmem:[%s5621_s8 + $0x1b0] sm:$0xff]  ;;  %v982_v25 = vld [vmem:[%s5619_s6 + $0x8] sm:$0xff] }
  0x87   : > { %1239 = vmatpush.msrb.mxu1 %v1042_v26  ;;  %1141 = vmatpush.msra.mxu0 %v1049_v28  ;;  %v3892_v26 = vld [vmem:[%s5621_s8 + $0x190] sm:$0xff]  ;;  %v3904_v28 = vld [vmem:[%s5621_s8 + $0x1e8] sm:$0xff] }
  0x88   : > { %1282 = vmatpush.msrb.mxu3 %v1032_v27  ;;  %1263 = vmatpush.msrb.mxu2 %v1027_v29  ;;  %v3898_v27 = vld [vmem:[%s5621_s8 + $0x198] sm:$0xff]  ;;  %v981_v29 = vld [vmem:[%s5619_s6] sm:$0xff] }
  0x89   : > { %1219 = vmatpush.msrb.mxu0 %v1041_v30  ;;  %1240 = vmatpush.msrb.mxu1 %v1038_v31  ;;  %v3913_v30 = vld [vmem:[%s5621_s8 + $0x170] sm:$0xff]  ;;  %v3919_v31 = vld [vmem:[%s5621_s8 + $0x1e0] sm:$0xff] }
  0x8a   : > { %1283 = vmatpush.msrb.mxu3 %v1028_v32  ;;  %1264 = vmatpush.msrb.mxu2 %v1023_v33  ;;  %v3924_v32 = vld [vmem:[%s5621_s8 + $0x1c8] sm:$0xff]  ;;  %v3930_v33 = vld [vmem:[%s5621_s8 + $0x178] sm:$0xff] }
  0x8b   : > { %1220 = vmatpush.msrb.mxu0 %v1037_v34  ;;  %1241 = vmatpush.msrb.mxu1 %v1034_v35  ;;  %v3935_v34 = vld [vmem:[%s5621_s8 + $0x150] sm:$0xff]  ;;  %v3941_v35 = vld [vmem:[%s5621_s8 + $0x1c0] sm:$0xff] }
  0x8c   : > { %1284 = vmatpush.msrb.mxu3 %v1024_v36  ;;  %1265 = vmatpush.msrb.mxu2 %v1019_v37  ;;  %v3946_v36 = vld [vmem:[%s5621_s8 + $0x1a8] sm:$0xff]  ;;  %v3953_v37 = vld [vmem:[%s5621_s8 + $0x158] sm:$0xff] }
  0x8d   : > { %1221 = vmatpush.msrb.mxu0 %v1033_v38  ;;  %1242 = vmatpush.msrb.mxu1 %v1030_v39  ;;  %v3958_v38 = vld [vmem:[%s5621_s8 + $0x130] sm:$0xff]  ;;  %v3965_v39 = vld [vmem:[%s5621_s8 + $0x1a0] sm:$0xff] }
  0x8e   : > { %1285 = vmatpush.msrb.mxu3 %v1020_v40  ;;  %1266 = vmatpush.msrb.mxu2 %v1015_v41  ;;  %v3970_v40 = vld [vmem:[%s5621_s8 + $0x188] sm:$0xff]  ;;  %v3977_v41 = vld [vmem:[%s5621_s8 + $0x138] sm:$0xff] }
  0x8f   : > { %1222 = vmatpush.msrb.mxu0 %v1029_v42  ;;  %1243 = vmatpush.msrb.mxu1 %v1026_v43  ;;  %v3982_v42 = vld [vmem:[%s5621_s8 + $0x110] sm:$0xff]  ;;  %v3989_v43 = vld [vmem:[%s5621_s8 + $0x180] sm:$0xff] }
  0x90   : > { %1286 = vmatpush.msrb.mxu3 %v1016_v44  ;;  %1267 = vmatpush.msrb.mxu2 %v1011_v45  ;;  %v3994_v44 = vld [vmem:[%s5621_s8 + $0x168] sm:$0xff]  ;;  %v4001_v45 = vld [vmem:[%s5621_s8 + $0x118] sm:$0xff] }
  0x91   : > { %1223 = vmatpush.msrb.mxu0 %v1025_v46  ;;  %1244 = vmatpush.msrb.mxu1 %v1022_v47  ;;  %v4006_v46 = vld [vmem:[%s5621_s8 + $0xf0] sm:$0xff]  ;;  %v4013_v47 = vld [vmem:[%s5621_s8 + $0x160] sm:$0xff] }
  0x92   : > { %1287 = vmatpush.msrb.mxu3 %v1012_v48  ;;  %1268 = vmatpush.msrb.mxu2 %v1007_v49  ;;  %v4018_v48 = vld [vmem:[%s5621_s8 + $0x148] sm:$0xff]  ;;  %v4025_v49 = vld [vmem:[%s5621_s8 + $0xf8] sm:$0xff] }
  0x93   : > { %1224 = vmatpush.msrb.mxu0 %v1021_v50  ;;  %1245 = vmatpush.msrb.mxu1 %v1018_v51  ;;  %v4030_v50 = vld [vmem:[%s5621_s8 + $0xd0] sm:$0xff]  ;;  %v4037_v51 = vld [vmem:[%s5621_s8 + $0x140] sm:$0xff] }
  0x94   : > { %1288 = vmatpush.msrb.mxu3 %v1008_v52  ;;  %1269 = vmatpush.msrb.mxu2 %v1003_v53  ;;  %v4042_v52 = vld [vmem:[%s5621_s8 + $0x128] sm:$0xff]  ;;  %v4049_v53 = vld [vmem:[%s5621_s8 + $0xd8] sm:$0xff] }
  0x95   : > { %1225 = vmatpush.msrb.mxu0 %v1017_v54  ;;  %1246 = vmatpush.msrb.mxu1 %v1014_v55  ;;  %v4054_v54 = vld [vmem:[%s5621_s8 + $0xb0] sm:$0xff]  ;;  %v4061_v55 = vld [vmem:[%s5621_s8 + $0x120] sm:$0xff] }
  0x96   : > { %1289 = vmatpush.msrb.mxu3 %v1004_v56  ;;  %1270 = vmatpush.msrb.mxu2 %v999_v57  ;;  %v4066_v56 = vld [vmem:[%s5621_s8 + $0x108] sm:$0xff]  ;;  %v4073_v57 = vld [vmem:[%s5621_s8 + $0xb8] sm:$0xff] }
  0x97   : > { %1226 = vmatpush.msrb.mxu0 %v1013_v58  ;;  %1247 = vmatpush.msrb.mxu1 %v1010_v59  ;;  %v4078_v58 = vld [vmem:[%s5621_s8 + $0x90] sm:$0xff]  ;;  %v4085_v59 = vld [vmem:[%s5621_s8 + $0x100] sm:$0xff] }
  0x98   : > { %1290 = vmatpush.msrb.mxu3 %v1000_v60  ;;  %1182 = vmatmul.f32.vlgmr.msra.gmra.mxu2 %v3635_v10  ;;  %5780 = vst [vmem:[#allocation13_spill] sm:$0xff] %v4078_v58  ;;  %v4090_v60 = vld [vmem:[%s5621_s8 + $0xe8] sm:$0xff] }
  0x99   : > { %1202 = vmatmul.f32.vlgmr.msra.gmra.mxu3 %v3635_v10  ;;  %1227 = vmatpush.msrb.mxu0 %v1009_v61  ;;  %v4097_v61 = vld [vmem:[%s5621_s8 + $0x98] sm:$0xff] }
  0x9a   : > { %1248 = vmatpush.msrb.mxu1 %v1006_v62  ;;  %1271 = vmatpush.msrb.mxu2 %v995_v63  ;;  %5781 = vst [vmem:[#allocation14_spill] sm:$0xff] %v4097_v61  ;;  %v4102_v62 = vld [vmem:[%s5621_s8 + $0x70] sm:$0xff]  ;;  %v4109_v63 = vld [vmem:[%s5621_s8 + $0xe0] sm:$0xff] }
  0x9b   : > { %1291 = vmatpush.msrb.mxu3 %v996_v0  ;;  %1228 = vmatpush.msrb.mxu0 %v1005_v1  ;;  %5782 = vst [vmem:[#allocation15_spill] sm:$0xff] %v4102_v62  ;;  %v4114_v0 = vld [vmem:[%s5621_s8 + $0xc8] sm:$0xff]  ;;  %v4121_v1 = vld [vmem:[%s5621_s8 + $0x78] sm:$0xff] }
  0x9c   : > { %1249 = vmatpush.msrb.mxu1 %v1002_v2  ;;  %1272 = vmatpush.msrb.mxu2 %v991_v3  ;;  %5783 = vst [vmem:[#allocation16_spill] sm:$0xff] %v4121_v1  ;;  %v4126_v2 = vld [vmem:[%s5621_s8 + $0x50] sm:$0xff]  ;;  %v4133_v3 = vld [vmem:[%s5621_s8 + $0xc0] sm:$0xff] }
  0x9d   : > { %1292 = vmatpush.msrb.mxu3 %v992_v4  ;;  %1229 = vmatpush.msrb.mxu0 %v1001_v5  ;;  %5784 = vst [vmem:[#allocation17_spill] sm:$0xff] %v4126_v2  ;;  %v4138_v4 = vld [vmem:[%s5621_s8 + $0xa8] sm:$0xff]  ;;  %v4145_v5 = vld [vmem:[%s5621_s8 + $0x58] sm:$0xff] }
  0x9e   : > { %1250 = vmatpush.msrb.mxu1 %v998_v6  ;;  %1273 = vmatpush.msrb.mxu2 %v987_v7  ;;  %5785 = vst [vmem:[#allocation18_spill] sm:$0xff] %v4145_v5  ;;  %v4150_v6 = vld [vmem:[%s5621_s8 + $0x30] sm:$0xff]  ;;  %v4157_v7 = vld [vmem:[%s5621_s8 + $0xa0] sm:$0xff] }
  0x9f   : > { %1293 = vmatpush.msrb.mxu3 %v988_v8  ;;  %1162 = vmatmul.f32.vlgmr.msra.gmra.mxu1 %v3635_v10  ;;  %5786 = vst [vmem:[#allocation19_spill] sm:$0xff] %v4150_v6  ;;  %v4162_v8 = vld [vmem:[%s5621_s8 + $0x88] sm:$0xff] }
  0xa0   : > { %1230 = vmatpush.msrb.mxu0 %v997_v9  ;;  %1251 = vmatpush.msrb.mxu1 %v994_v11  ;;  %5787 = vst [vmem:[#allocation20_spill] sm:$0xff] %v4157_v7  ;;  %v4169_v9 = vld [vmem:[%s5621_s8 + $0x38] sm:$0xff]  ;;  %v4174_v11 = vld [vmem:[%s5621_s8 + $0x10] sm:$0xff] }
  0xa1   : > { %1274 = vmatpush.msrb.mxu2 %v983_v12  ;;  %1294 = vmatpush.msrb.mxu3 %v984_v13  ;;  %5788 = vst [vmem:[#allocation21_spill] sm:$0xff] %v4162_v8  ;;  %v4181_v12 = vld [vmem:[%s5621_s8 + $0x80] sm:$0xff]  ;;  %v4186_v13 = vld [vmem:[%s5621_s8 + $0x68] sm:$0xff] }
  0xa2   : > { %1142 = vmatmul.f32.vlgmr.msra.gmra.mxu0 %v3635_v10  ;;  %1275 = vmatmul.f32.vlgmr.msrb.gmra.mxu2 %v1217_v14  ;;  %v989_v10 = vld [vmem:[%s5619_s6 + $0x40] sm:$0xff]  ;;  %5789 = vst [vmem:[#allocation22_spill] sm:$0xff] %v4169_v9 }
  0xa3   : > { %1295 = vmatmul.f32.vlgmr.msrb.gmra.mxu3 %v1217_v14  ;;  %1516 = vmatpush.msra.mxu2 %v3839_v15  ;;  %5790 = vst [vmem:[#allocation23_spill] sm:$0xff] %v4174_v11 }
  0xa4   : > { %1536 = vmatpush.msra.mxu3 %v3844_v16  ;;  %1231 = vmatpush.msrb.mxu0 %v993_v17  ;;  %5791 = vst [vmem:[#allocation24_spill] sm:$0xff] %v4181_v12  ;;  %v1471_v17 = vld [vmem:[#allocation4] sm:$0x3] }
  0xa5   : > { %1252 = vmatpush.msrb.mxu1 %v990_v18  ;;  %1517 = vmatpush.msra.mxu2 %v3856_v19  ;;  %5792 = vst [vmem:[#allocation25_spill] sm:$0xff] %v4186_v13  ;;  %v4200_v18 = vld [vmem:[%s5622_s9 + $0x1f0] sm:$0xff] }
  0xa6   : > { %1537 = vmatpush.msra.mxu3 %v3862_v20  ;;  %1232 = vmatpush.msrb.mxu0 %v989_v10  ;;  %5794 = vst [vmem:[#allocation27_spill] sm:$0xff] %v4200_v18  ;;  %v4207_v10 = vld [vmem:[%s5622_s9 + $0x1f8] sm:$0xff] }
  0xa7   : > { %1253 = vmatpush.msrb.mxu1 %v986_v21  ;;  %1518 = vmatpush.msra.mxu2 %v3874_v22  ;;  %5795 = vst [vmem:[#allocation28_spill] sm:$0xff] %v4207_v10  ;;  %v4212_v21 = vld [vmem:[%s5621_s8 + $0x60] sm:$0xff] }
  0xa8   : > { %1538 = vmatpush.msra.mxu3 %v3880_v23  ;;  %1233 = vmatpush.msrb.mxu0 %v985_v24  ;;  %5796 = vst [vmem:[#allocation29_spill] sm:$0xff] %v4212_v21  ;;  %v4218_v24 = vld [vmem:[%s5621_s8 + $0x48] sm:$0xff] }
  0xa9   : > { %1254 = vmatpush.msrb.mxu1 %v982_v25  ;;  %1519 = vmatpush.msra.mxu2 %v3892_v26  ;;  %5797 = vst [vmem:[#allocation30_spill] sm:$0xff] %v4218_v24  ;;  %v4223_v25 = vld [vmem:[%s5622_s9 + $0x1d0] sm:$0xff] }
  0xaa   : > { %1255 = vmatmul.f32.vlgmr.msrb.gmra.mxu1 %v1217_v14  ;;  %1539 = vmatpush.msra.mxu3 %v3898_v27  ;;  %5798 = vst [vmem:[#allocation31_spill] sm:$0xff] %v4223_v25 }
  0xab   : > { %1496 = vmatpush.msra.mxu1 %v3904_v28  ;;  %1234 = vmatpush.msrb.mxu0 %v981_v29  ;;  %v4229_v29 = vld [vmem:[%s5622_s9 + $0x1d8] sm:$0xff] }
  0xac   : > { %1235 = vmatmul.f32.vlgmr.msrb.gmra.mxu0 %v1217_v14  ;;  %1520 = vmatpush.msra.mxu2 %v3913_v30  ;;  %v4193_v14 = vld [vmem:[%s5621_s8 + $0x18] sm:$0xff]  ;;  %5799 = vst [vmem:[#allocation32_spill] sm:$0xff] %v4229_v29 }
  0xad   : > { %1476 = vmatpush.msra.mxu0 %v3919_v31  ;;  %1497 = vmatpush.msra.mxu1 %v3924_v32  ;;  %5793 = vst [vmem:[#allocation26_spill] sm:$0xff] %v4193_v14 }
  0xae   : > { %1540 = vmatpush.msra.mxu3 %v3930_v33  ;;  %1521 = vmatpush.msra.mxu2 %v3935_v34 }
  0xaf   : > { %1477 = vmatpush.msra.mxu0 %v3941_v35  ;;  %1498 = vmatpush.msra.mxu1 %v3946_v36 }
  0xb0   : > { %1541 = vmatpush.msra.mxu3 %v3953_v37  ;;  %1522 = vmatpush.msra.mxu2 %v3958_v38 }
  0xb1   : > { %1478 = vmatpush.msra.mxu0 %v3965_v39  ;;  %1499 = vmatpush.msra.mxu1 %v3970_v40 }
  0xb2   : > { %1542 = vmatpush.msra.mxu3 %v3977_v41  ;;  %1523 = vmatpush.msra.mxu2 %v3982_v42 }
  0xb3   : > { %1479 = vmatpush.msra.mxu0 %v3989_v43  ;;  %1500 = vmatpush.msra.mxu1 %v3994_v44 }
  0xb4   : > { %1543 = vmatpush.msra.mxu3 %v4001_v45  ;;  %1524 = vmatpush.msra.mxu2 %v4006_v46 }
  0xb5   : > { %1480 = vmatpush.msra.mxu0 %v4013_v47  ;;  %1501 = vmatpush.msra.mxu1 %v4018_v48 }
  0xb6   : > { %1544 = vmatpush.msra.mxu3 %v4025_v49  ;;  %1525 = vmatpush.msra.mxu2 %v4030_v50 }
  0xb7   : > { %1481 = vmatpush.msra.mxu0 %v4037_v51  ;;  %1502 = vmatpush.msra.mxu1 %v4042_v52 }
  0xb8   : > { %1545 = vmatpush.msra.mxu3 %v4049_v53  ;;  %1526 = vmatpush.msra.mxu2 %v4054_v54 }
  0xb9   : > { %1482 = vmatpush.msra.mxu0 %v4061_v55  ;;  %1503 = vmatpush.msra.mxu1 %v4066_v56 }
  0xba   : > { %1546 = vmatpush.msra.mxu3 %v4073_v57  ;;  %1527 = vmatpush.msra.mxu2 %v4078_v58 }
  0xbb   : > { %1483 = vmatpush.msra.mxu0 %v4085_v59  ;;  %1504 = vmatpush.msra.mxu1 %v4090_v60 }
  0xbc   : > { %1547 = vmatpush.msra.mxu3 %v4097_v61  ;;  %1528 = vmatpush.msra.mxu2 %v4102_v62 }
  0xbd   : > { %1484 = vmatpush.msra.mxu0 %v4109_v63  ;;  %1505 = vmatpush.msra.mxu1 %v4114_v0 }
  0xbe   : > { %1548 = vmatpush.msra.mxu3 %v4121_v1  ;;  %1529 = vmatpush.msra.mxu2 %v4126_v2  ;;  %v927_v2 = vld [vmem:[%s5623_s10] sm:$0xf] }
  0xbf   : > { %1485 = vmatpush.msra.mxu0 %v4133_v3  ;;  %1506 = vmatpush.msra.mxu1 %v4138_v4  ;;  %v930_v62 = vperm.slane %v927_v2, 1 }
  0xc0   : > { %1549 = vmatpush.msra.mxu3 %v4145_v5  ;;  %1530 = vmatpush.msra.mxu2 %v4150_v6  ;;  %v4265_v6 = vld [vmem:[%s5621_s8 + $0x8] sm:$0xff] }
  0xc1   : > { %1486 = vmatpush.msra.mxu0 %v4157_v7  ;;  %1507 = vmatpush.msra.mxu1 %v4162_v8  ;;  %5805 = vst [vmem:[#allocation38_spill] sm:$0xff] %v4265_v6 }
  0xc2   : > { %1550 = vmatpush.msra.mxu3 %v4169_v9  ;;  %1531 = vmatpush.msra.mxu2 %v4174_v11  ;;  %v4241_v11 = vld [vmem:[%s5621_s8 + $0x28] sm:$0xff]  ;;  %v4258_v9 = vld [vmem:[%s5621_s8 + $0x20] sm:$0xff] }
  0xc3   : > { %1487 = vmatpush.msra.mxu0 %v4181_v12  ;;  %1508 = vmatpush.msra.mxu1 %v4186_v13  ;;  %5801 = vst [vmem:[#allocation34_spill] sm:$0xff] %v4241_v11  ;;  %v931_v13 = vperm.slane %v927_v2, 2  ;;  %v932_v12 = vperm.slane %v927_v2, 3 }
  0xc4   : > { %1551 = vmatpush.msra.mxu3 %v4193_v14  ;;  %1532 = vmatmul.f32.vlgmr.msra.gmra.mxu2 %v1471_v17  ;;  %v4234_v14 = vld [vmem:[%s5621_s8 + $0x40] sm:$0xff]  ;;  %5804 = vst [vmem:[#allocation37_spill] sm:$0xff] %v4258_v9 }
  0xc5   : > { %1552 = vmatmul.f32.vlgmr.msra.gmra.mxu3 %v1471_v17  ;;  %1635 = vmatpush.msrb.mxu2 %v4200_v18  ;;  %5800 = vst [vmem:[#allocation33_spill] sm:$0xff] %v4234_v14  ;;  %v4246_v18 = vld [vmem:[%s5622_s9 + $0x1b0] sm:$0xff] }
  0xc6   : > { %1655 = vmatpush.msrb.mxu3 %v4207_v10  ;;  %1488 = vmatpush.msra.mxu0 %v4212_v21  ;;  %5802 = vst [vmem:[#allocation35_spill] sm:$0xff] %v4246_v18  ;;  %v4253_v10 = vld [vmem:[%s5622_s9 + $0x1b8] sm:$0xff] }
  0xc7   : > { %1509 = vmatpush.msra.mxu1 %v4218_v24  ;;  %1636 = vmatpush.msrb.mxu2 %v4223_v25  ;;  %5803 = vst [vmem:[#allocation36_spill] sm:$0xff] %v4253_v10  ;;  %v4270_v25 = vld [vmem:[%s5622_s9 + $0x190] sm:$0xff] }
  0xc8   : > { %1656 = vmatpush.msrb.mxu3 %v4229_v29  ;;  %1489 = vmatpush.msra.mxu0 %v4234_v14  ;;  %5806 = vst [vmem:[#allocation39_spill] sm:$0xff] %v4270_v25  ;;  %v4277_v29 = vld [vmem:[%s5622_s9 + $0x198] sm:$0xff]  ;;  %v4284_v14 = vld [vmem:[%s5622_s9 + $0x1e8] sm:$0xff] }
  0xc9   : > { %1510 = vmatpush.msra.mxu1 %v4241_v11  ;;  %1637 = vmatpush.msrb.mxu2 %v4246_v18  ;;  %5807 = vst [vmem:[#allocation40_spill] sm:$0xff] %v4277_v29  ;;  %v4289_v11 = vld [vmem:[%s5621_s8] sm:$0xff] }
  0xca   : > { %1657 = vmatpush.msrb.mxu3 %v4253_v10  ;;  %1490 = vmatpush.msra.mxu0 %v4258_v9  ;;  %5808 = vst [vmem:[#allocation41_spill] sm:$0xff] %v4284_v14  ;;  %v4296_v10 = vld [vmem:[%s5622_s9 + $0x170] sm:$0xff]  ;;  %v4302_v18 = vld [vmem:[%s5622_s9 + $0x1e0] sm:$0xff]  ;;  %v4307_v9 = vld [vmem:[%s5622_s9 + $0x1c8] sm:$0xff] }
  0xcb   : > { %5809 = vst [vmem:[#allocation42_spill] sm:$0xff] %v4289_v11  ;;  %1511 = vmatpush.msra.mxu1 %v4265_v6  ;;  %1638 = vmatpush.msrb.mxu2 %v4270_v25  ;;  %v4314_v25 = vld [vmem:[%s5622_s9 + $0x178] sm:$0xff]  ;;  %v4325_v6 = vld [vmem:[%s5622_s9 + $0x1c0] sm:$0xff] }
  0xcc   : > { %5810 = vst [vmem:[#allocation43_spill] sm:$0xff] %v4296_v10  ;;  %1512 = vmatmul.f32.vlgmr.msra.gmra.mxu1 %v1471_v17  ;;  %1658 = vmatpush.msrb.mxu3 %v4277_v29  ;;  %v4319_v29 = vld [vmem:[%s5622_s9 + $0x150] sm:$0xff] }
  0xcd   : > { %5811 = vst [vmem:[#allocation44_spill] sm:$0xff] %v4302_v18  ;;  %1615 = vmatpush.msrb.mxu1 %v4284_v14  ;;  %1491 = vmatpush.msra.mxu0 %v4289_v11  ;;  %v4330_v14 = vld [vmem:[%s5622_s9 + $0x1a8] sm:$0xff] }
  0xce   : > { %5812 = vst [vmem:[#allocation45_spill] sm:$0xff] %v4307_v9  ;;  %1492 = vmatmul.f32.vlgmr.msra.gmra.mxu0 %v1471_v17  ;;  %1639 = vmatpush.msrb.mxu2 %v4296_v10  ;;  %v4337_v17 = vld [vmem:[%s5622_s9 + $0x158] sm:$0xff]  ;;  %v4342_v10 = vld [vmem:[%s5622_s9 + $0x130] sm:$0xff] }
  0xcf   : > { %5813 = vst [vmem:[#allocation46_spill] sm:$0xff] %v4314_v25  ;;  %1595 = vmatpush.msrb.mxu0 %v4302_v18  ;;  %1616 = vmatpush.msrb.mxu1 %v4307_v9  ;;  %v4349_v18 = vld [vmem:[%s5622_s9 + $0x1a0] sm:$0xff]  ;;  %v4354_v9 = vld [vmem:[%s5622_s9 + $0x188] sm:$0xff] }
  0xd0   : > { %5814 = vst [vmem:[#allocation47_spill] sm:$0xff] %v4319_v29  ;;  %1659 = vmatpush.msrb.mxu3 %v4314_v25  ;;  %1640 = vmatpush.msrb.mxu2 %v4319_v29  ;;  %v4361_v25 = vld [vmem:[%s5622_s9 + $0x138] sm:$0xff]  ;;  %v4366_v29 = vld [vmem:[%s5622_s9 + $0x110] sm:$0xff] }
  0xd1   : > { %5815 = vst [vmem:[#allocation48_spill] sm:$0xff] %v4325_v6  ;;  %1596 = vmatpush.msrb.mxu0 %v4325_v6  ;;  %1617 = vmatpush.msrb.mxu1 %v4330_v14  ;;  %v4373_v6 = vld [vmem:[%s5622_s9 + $0x180] sm:$0xff] }
  0xd2   : > { %5816 = vst [vmem:[#allocation49_spill] sm:$0xff] %v4330_v14  ;;  %1660 = vmatpush.msrb.mxu3 %v4337_v17  ;;  %1641 = vmatpush.msrb.mxu2 %v4342_v10  ;;  %v4378_v14 = vld [vmem:[%s5622_s9 + $0x168] sm:$0xff] }
  0xd3   : > { %5817 = vst [vmem:[#allocation50_spill] sm:$0xff] %v4337_v17  ;;  %1597 = vmatpush.msrb.mxu0 %v4349_v18  ;;  %1618 = vmatpush.msrb.mxu1 %v4354_v9  ;;  %v4385_v17 = vld [vmem:[%s5622_s9 + $0x118] sm:$0xff] }
  0xd4   : > { %5818 = vst [vmem:[#allocation51_spill] sm:$0xff] %v4342_v10  ;;  %v4390_v10 = vld [vmem:[%s5622_s9 + $0xf0] sm:$0xff]  ;;  %1661 = vmatpush.msrb.mxu3 %v4361_v25  ;;  %1642 = vmatpush.msrb.mxu2 %v4366_v29  ;;  %v811_v11 = vpop.f32.mrf.mxu2 }
  0xd5   : > { %5819 = vst [vmem:[#allocation52_spill] sm:$0xff] %v4349_v18  ;;  %v4397_v18 = vld [vmem:[%s5622_s9 + $0x160] sm:$0xff]  ;;  %1598 = vmatpush.msrb.mxu0 %v4373_v6  ;;  %1619 = vmatpush.msrb.mxu1 %v4378_v14 }
  0xd6   : > { %5820 = vst [vmem:[#allocation53_spill] sm:$0xff] %v4354_v9  ;;  %v4402_v9 = vld [vmem:[%s5622_s9 + $0x148] sm:$0xff]  ;;  %1662 = vmatpush.msrb.mxu3 %v4385_v17  ;;  %1643 = vmatpush.msrb.mxu2 %v4390_v10  ;;  %v831_v24 = vpop.f32.mrf.mxu3 }
  0xd7   : > { %5821 = vst [vmem:[#allocation54_spill] sm:$0xff] %v4361_v25  ;;  %v4409_v25 = vld [vmem:[%s5622_s9 + $0xf8] sm:$0xff]  ;;  %1599 = vmatpush.msrb.mxu0 %v4397_v18  ;;  %1620 = vmatpush.msrb.mxu1 %v4402_v9 }
  0xd8   : > { %5822 = vst [vmem:[#allocation55_spill] sm:$0xff] %v4366_v29  ;;  %v4414_v29 = vld [vmem:[%s5622_s9 + $0xd0] sm:$0xff]  ;;  %1663 = vmatpush.msrb.mxu3 %v4409_v25  ;;  %v791_v5 = vpop.f32.mrf.mxu1  ;;  %v771_v21 = vpop.f32.mrf.mxu0 }
  0xd9   : > { %5823 = vst [vmem:[#allocation56_spill] sm:$0xff] %v4373_v6  ;;  %v4421_v6 = vld [vmem:[%s5622_s9 + $0x140] sm:$0xff]  ;;  %1644 = vmatpush.msrb.mxu2 %v4414_v29 }
  0xda   : > { %5824 = vst [vmem:[#allocation57_spill] sm:$0xff] %v4378_v14  ;;  %v4426_v14 = vld [vmem:[%s5622_s9 + $0x128] sm:$0xff]  ;;  %1600 = vmatpush.msrb.mxu0 %v4421_v6 }
  0xdb   : > { %5825 = vst [vmem:[#allocation58_spill] sm:$0xff] %v4385_v17  ;;  %v4433_v17 = vld [vmem:[%s5622_s9 + $0xd8] sm:$0xff]  ;;  %1621 = vmatpush.msrb.mxu1 %v4426_v14 }
  0xdc   : > { %5826 = vst [vmem:[#allocation59_spill] sm:$0xff] %v4390_v10  ;;  %v4438_v10 = vld [vmem:[%s5622_s9 + $0xb0] sm:$0xff]  ;;  %1664 = vmatpush.msrb.mxu3 %v4433_v17 }
  0xdd   : > { %5827 = vst [vmem:[#allocation60_spill] sm:$0xff] %v4397_v18  ;;  %v4445_v18 = vld [vmem:[%s5622_s9 + $0x120] sm:$0xff]  ;;  %1645 = vmatpush.msrb.mxu2 %v4438_v10 }
  0xde   : > { %5828 = vst [vmem:[#allocation61_spill] sm:$0xff] %v4402_v9  ;;  %v4450_v9 = vld [vmem:[%s5622_s9 + $0x108] sm:$0xff]  ;;  %1601 = vmatpush.msrb.mxu0 %v4445_v18 }
  0xdf   : > { %5829 = vst [vmem:[#allocation62_spill] sm:$0xff] %v4409_v25  ;;  %v4457_v25 = vld [vmem:[%s5622_s9 + $0xb8] sm:$0xff]  ;;  %1622 = vmatpush.msrb.mxu1 %v4450_v9 }
  0xe0   : > { %5830 = vst [vmem:[#allocation63_spill] sm:$0xff] %v4414_v29  ;;  %v4462_v29 = vld [vmem:[%s5622_s9 + $0x90] sm:$0xff]  ;;  %1665 = vmatpush.msrb.mxu3 %v4457_v25 }
  0xe1   : > { %5831 = vst [vmem:[#allocation64_spill] sm:$0xff] %v4421_v6  ;;  %v4469_v6 = vld [vmem:[%s5622_s9 + $0x100] sm:$0xff]  ;;  %1646 = vmatpush.msrb.mxu2 %v4462_v29 }
  0xe2   : > { %5832 = vst [vmem:[#allocation65_spill] sm:$0xff] %v4426_v14  ;;  %v4474_v14 = vld [vmem:[%s5622_s9 + $0xe8] sm:$0xff]  ;;  %1602 = vmatpush.msrb.mxu0 %v4469_v6  ;;  %v904_v1 = vpop.f32.mrf.mxu2  ;;  %v924_v61 = vpop.f32.mrf.mxu3 }
  0xe3   : > { %5833 = vst [vmem:[#allocation66_spill] sm:$0xff] %v4433_v17  ;;  %v4481_v17 = vld [vmem:[%s5622_s9 + $0x98] sm:$0xff]  ;;  %1623 = vmatpush.msrb.mxu1 %v4474_v14  ;;  %v905_v8 = vadd.f32 %v904_v1, %v811_v11  ;;  %v884_v7 = vpop.f32.mrf.mxu1  ;;  %v925_v58 = vadd.f32 %v924_v61, %v831_v24  ;;  %v4587_v1 = vld [vmem:[%s5622_s9 + $0x60] sm:$0xff]  ;;  %v4594_v61 = vld [vmem:[%s5622_s9 + $0x48] sm:$0xff] }
  0xe4   : > { %5834 = vst [vmem:[#allocation67_spill] sm:$0xff] %v4438_v10  ;;  %v4486_v10 = vld [vmem:[%s5622_s9 + $0x70] sm:$0xff]  ;;  %1666 = vmatpush.msrb.mxu3 %v4481_v17  ;;  %v885_v11 = vadd.f32 %v884_v7, %v791_v5 }
  0xe5   : > { %5835 = vst [vmem:[#allocation68_spill] sm:$0xff] %v4445_v18  ;;  %v4493_v18 = vld [vmem:[%s5622_s9 + $0xe0] sm:$0xff]  ;;  %1647 = vmatpush.msrb.mxu2 %v4486_v10  ;;  %v940_v24 = vadd.f32 %v932_v12, %v925_v58  ;;  %v4608_v58 = vld [vmem:[%s5622_s9 + $0x28] sm:$0xff] }
  0xe6   : > { %5836 = vst [vmem:[#allocation69_spill] sm:$0xff] %v4450_v9  ;;  %v4498_v9 = vld [vmem:[%s5622_s9 + $0xc8] sm:$0xff]  ;;  %1603 = vmatpush.msrb.mxu0 %v4493_v18  ;;  %v938_v5 = vadd.f32 %v930_v62, %v885_v11  ;;  %v4616_v62 = vld [vmem:[%s5622_s9 + $0x20] sm:$0xff] }
  0xe7   : > { %5837 = vst [vmem:[#allocation70_spill] sm:$0xff] %v4457_v25  ;;  %v4505_v25 = vld [vmem:[%s5622_s9 + $0x78] sm:$0xff]  ;;  %1624 = vmatpush.msrb.mxu1 %v4498_v9  ;;  %v4610_v12 = vrot.slane %v940_v24, 2  ;;  %v4642_v11 = vld [vmem:[%s5622_s9] sm:$0xff] }
  0xe8   : > { %5838 = vst [vmem:[#allocation71_spill] sm:$0xff] %v4462_v29  ;;  %v4510_v29 = vld [vmem:[%s5622_s9 + $0x50] sm:$0xff]  ;;  %1667 = vmatpush.msrb.mxu3 %v4505_v25 }
  0xe9   : > { %5839 = vst [vmem:[#allocation72_spill] sm:$0xff] %v4469_v6  ;;  %v4525_v6 = vld [vmem:[%s5622_s9 + $0xa8] sm:$0xff]  ;;  %1648 = vmatpush.msrb.mxu2 %v4510_v29 }
  0xea   : > { %5840 = vst [vmem:[#allocation73_spill] sm:$0xff] %v4474_v14  ;;  %v4520_v14 = vld [vmem:[%s5622_s9 + $0xc0] sm:$0xff]  ;;  %1625 = vmatpush.msrb.mxu1 %v4525_v6 }
  0xeb   : > { %5841 = vst [vmem:[#allocation74_spill] sm:$0xff] %v4481_v17  ;;  %v4532_v17 = vld [vmem:[%s5622_s9 + $0x58] sm:$0xff]  ;;  %1604 = vmatpush.msrb.mxu0 %v4520_v14 }
  0xec   : > { %5842 = vst [vmem:[#allocation75_spill] sm:$0xff] %v4486_v10  ;;  %v4537_v10 = vld [vmem:[%s5622_s9 + $0x30] sm:$0xff]  ;;  %1668 = vmatpush.msrb.mxu3 %v4532_v17 }
  0xed   : > { %5843 = vst [vmem:[#allocation76_spill] sm:$0xff] %v4493_v18  ;;  %v4544_v18 = vld [vmem:[%s5622_s9 + $0xa0] sm:$0xff]  ;;  %1649 = vmatpush.msrb.mxu2 %v4537_v10 }
  0xee   : > { %5844 = vst [vmem:[#allocation77_spill] sm:$0xff] %v4498_v9  ;;  %v4549_v9 = vld [vmem:[%s5622_s9 + $0x88] sm:$0xff]  ;;  %1605 = vmatpush.msrb.mxu0 %v4544_v18 }
  0xef   : > { %5845 = vst [vmem:[#allocation78_spill] sm:$0xff] %v4505_v25  ;;  %v4556_v25 = vld [vmem:[%s5622_s9 + $0x38] sm:$0xff]  ;;  %1626 = vmatpush.msrb.mxu1 %v4549_v9 }
  0xf0   : > { %5846 = vst [vmem:[#allocation79_spill] sm:$0xff] %v4510_v29  ;;  %v4561_v29 = vld [vmem:[%s5622_s9 + $0x10] sm:$0xff]  ;;  %1669 = vmatpush.msrb.mxu3 %v4556_v25 }
  0xf1   : > { %5847 = vst [vmem:[#allocation80_spill] sm:$0xff] %v4520_v14  ;;  %v4573_v14 = vld [vmem:[%s5622_s9 + $0x68] sm:$0xff]  ;;  %1650 = vmatpush.msrb.mxu2 %v4561_v29 }
  0xf2   : > { %5848 = vst [vmem:[#allocation81_spill] sm:$0xff] %v4525_v6  ;;  %v4568_v6 = vld [vmem:[%s5622_s9 + $0x80] sm:$0xff]  ;;  %1627 = vmatpush.msrb.mxu1 %v4573_v14 }
  0xf3   : > { %5849 = vst [vmem:[#allocation82_spill] sm:$0xff] %v4532_v17  ;;  %v1473_v17 = vld [vmem:[#allocation6] sm:$0x3]  ;;  %1606 = vmatpush.msrb.mxu0 %v4568_v6  ;;  %1754 = vmatpush.msra.mxu2 %v3839_v15 }
  0xf4   : > { %5850 = vst [vmem:[#allocation83_spill] sm:$0xff] %v4537_v10  ;;  %v4580_v10 = vld [vmem:[%s5622_s9 + $0x18] sm:$0xff]  ;;  %1651 = vmatmul.f32.vlgmr.msrb.gmra.mxu2 %v1473_v17  ;;  %1628 = vmatpush.msrb.mxu1 %v4594_v61 }
  0xf5   : > { %5851 = vst [vmem:[#allocation84_spill] sm:$0xff] %v4544_v18  ;;  %v939_v18 = vadd.f32 %v931_v13, %v905_v8  ;;  %1670 = vmatpush.msrb.mxu3 %v4580_v10  ;;  %1607 = vmatpush.msrb.mxu0 %v4587_v1  ;;  %v4618_v13 = vrot.slane %v938_v5, 6 }
  0xf6   : > { %5852 = vst [vmem:[#allocation85_spill] sm:$0xff] %v4549_v9  ;;  %v929_v9 = vperm.slane %v927_v2, 0  ;;  %v4600_v2 = vld [vmem:[%s5622_s9 + $0x40] sm:$0xff]  ;;  %1671 = vmatmul.f32.vlgmr.msrb.gmra.mxu3 %v1473_v17  ;;  %1629 = vmatpush.msrb.mxu1 %v4608_v58 }
  0xf7   : > { %5853 = vst [vmem:[#allocation86_spill] sm:$0xff] %v4556_v25  ;;  %v4602_v7 = vrot.slane %v939_v18, 4  ;;  %1608 = vmatpush.msrb.mxu0 %v4600_v2  ;;  %1774 = vmatpush.msra.mxu3 %v3844_v16  ;;  %v5866_v16 = vld [vmem:[#allocation13_spill] sm:$0xff] }
  0xf8   : > { %5854 = vst [vmem:[#allocation87_spill] sm:$0xff] %v4561_v29  ;;  %v864_v29 = vpop.f32.mrf.mxu0  ;;  %1755 = vmatpush.msra.mxu2 %v3856_v19  ;;  %v5867_v19 = vld [vmem:[#allocation20_spill] sm:$0xff] }
  0xf9   : > { %5855 = vst [vmem:[#allocation88_spill] sm:$0xff] %v4568_v6  ;;  %v865_v8 = vadd.f32 %v864_v29, %v771_v21  ;;  %v4627_v21 = vld [vmem:[%s5622_s9 + $0x8] sm:$0xff]  ;;  %v957_v29 = vsel %vm956_vm2, %v4610_v12, %v4602_v7  ;;  %v966_v15 = vsel %vm954_vm1, %v4602_v7, %v4610_v12  ;;  %1609 = vmatpush.msrb.mxu0 %v4616_v62 }
  0xfa   : > { %5856 = vst [vmem:[#allocation89_spill] sm:$0xff] %v4573_v14  ;;  %1630 = vmatpush.msrb.mxu1 %v4627_v21  ;;  %1775 = vmatpush.msra.mxu3 %v3862_v20  ;;  %v5868_v20 = vld [vmem:[#allocation14_spill] sm:$0xff] }
  0xfb   : > { %5857 = vst [vmem:[#allocation90_spill] sm:$0xff] %v4580_v10  ;;  %v4620_v18 = vadd.f32 %v929_v9, %v865_v8  ;;  %v962_v9 = vsel %vm948_vm0, %v4602_v7, %v4610_v12  ;;  %1631 = vmatmul.f32.vlgmr.msrb.gmra.mxu1 %v1473_v17  ;;  %1610 = vmatpush.msrb.mxu0 %v4642_v11 }
  0xfc   : > { %5858 = vst [vmem:[#allocation91_spill] sm:$0xff] %v4587_v1  ;;  %1611 = vmatmul.f32.vlgmr.msrb.gmra.mxu0 %v1473_v17  ;;  %1734 = vmatpush.msra.mxu1 %v3904_v28  ;;  %v5873_v28 = vld [vmem:[#allocation25_spill] sm:$0xff]  ;;  %v5890_v17 = vld [vmem:[#allocation28_spill] sm:$0xff] }
  0xfd   : > { %5859 = vst [vmem:[#allocation92_spill] sm:$0xff] %v4602_v7  ;;  %v955_v24 = vsel %vm954_vm1, %v4620_v18, %v4618_v13  ;;  %v961_v5 = vsel %vm950_vm3, %v4620_v18, %v4618_v13  ;;  %v965_v8 = vsel %vm956_vm2, %v4618_v13, %v4620_v18  ;;  %1714 = vmatpush.msra.mxu0 %v3919_v31 }
  0xfe   : > { %5860 = vst [vmem:[#allocation93_spill] sm:$0xff] %v4610_v12  ;;  %v4656_v7 = vsel %vm958_vm5, %v955_v24, %v957_v29  ;;  %v4659_v12 = vsel %vm952_vm4, %v962_v9, %v961_v5  ;;  %v4664_v10 = vsel %vm958_vm5, %v966_v15, %v965_v8  ;;  %1735 = vmatpush.msra.mxu1 %v3924_v32  ;;  %v5875_v32 = vld [vmem:[#allocation29_spill] sm:$0xff]  ;;  %v5892_v9 = vld [vmem:[#allocation31_spill] sm:$0xff]  ;;  %v5893_v15 = vld [vmem:[#allocation48_spill] sm:$0xff] }
  0xff   : > { %5861 = vst [vmem:[#allocation94_spill] sm:$0xff] %v4627_v21  ;;  %1756 = vmatpush.msra.mxu2 %v3874_v22  ;;  %1715 = vmatpush.msra.mxu0 %v3941_v35  ;;  %v5869_v22 = vld [vmem:[#allocation21_spill] sm:$0xff]  ;;  %v5894_v24 = vld [vmem:[#allocation32_spill] sm:$0xff]  ;;  %v5896_v8 = vld [vmem:[#allocation35_spill] sm:$0xff] }
 0x100   : > { %5862 = vst [vmem:[#allocation95_spill] sm:$0xff] %v4642_v11  ;;  %1776 = vmatpush.msra.mxu3 %v3880_v23  ;;  %1736 = vmatpush.msra.mxu1 %v3946_v36  ;;  %v5870_v23 = vld [vmem:[#allocation15_spill] sm:$0xff]  ;;  %v5891_v29 = vld [vmem:[#allocation45_spill] sm:$0xff] }
 0x101   : > { %5863 = vst [vmem:[#allocation96_spill] sm:$0xff] %v4656_v7  ;;  %1757 = vmatpush.msra.mxu2 %v3892_v26  ;;  %1716 = vmatpush.msra.mxu0 %v3965_v39  ;;  %v5871_v26 = vld [vmem:[#allocation24_spill] sm:$0xff]  ;;  %v5878_v36 = vld [vmem:[#allocation19_spill] sm:$0xff]  ;;  %v5895_v5 = vld [vmem:[#allocation49_spill] sm:$0xff] }
 0x102   : > { %5864 = vst [vmem:[#allocation97_spill] sm:$0xff] %v4659_v12  ;;  %1777 = vmatpush.msra.mxu3 %v3898_v27  ;;  %1737 = vmatpush.msra.mxu1 %v3970_v40  ;;  %v5872_v27 = vld [vmem:[#allocation16_spill] sm:$0xff]  ;;  %v5908_v12 = vld [vmem:[#allocation47_spill] sm:$0xff] }
 0x103   : > { %5865 = vst [vmem:[#allocation98_spill] sm:$0xff] %v4664_v10  ;;  %1758 = vmatpush.msra.mxu2 %v3913_v30  ;;  %1717 = vmatpush.msra.mxu0 %v3989_v43  ;;  %v5874_v30 = vld [vmem:[#allocation17_spill] sm:$0xff]  ;;  %v5909_v7 = vld [vmem:[#allocation64_spill] sm:$0xff] }
 0x104   : > { %1778 = vmatpush.msra.mxu3 %v3930_v33  ;;  %1738 = vmatpush.msra.mxu1 %v3994_v44  ;;  %v5876_v33 = vld [vmem:[#allocation18_spill] sm:$0xff]  ;;  %v5907_v10 = vld [vmem:[#allocation61_spill] sm:$0xff] }
 0x105   : > { %1759 = vmatpush.msra.mxu2 %v3935_v34  ;;  %1718 = vmatpush.msra.mxu0 %v4013_v47  ;;  %v5877_v34 = vld [vmem:[#allocation30_spill] sm:$0xff] }
 0x106   : > { %1779 = vmatpush.msra.mxu3 %v3953_v37  ;;  %1739 = vmatpush.msra.mxu1 %v4018_v48  ;;  %v5879_v37 = vld [vmem:[#allocation33_spill] sm:$0xff] }
 0x107   : > { %1760 = vmatpush.msra.mxu2 %v3958_v38  ;;  %1719 = vmatpush.msra.mxu0 %v4037_v51  ;;  %v5880_v38 = vld [vmem:[#allocation22_spill] sm:$0xff] }
 0x108   : > { %1780 = vmatpush.msra.mxu3 %v3977_v41  ;;  %1740 = vmatpush.msra.mxu1 %v4042_v52  ;;  %v5881_v41 = vld [vmem:[#allocation34_spill] sm:$0xff] }
 0x109   : > { %1761 = vmatpush.msra.mxu2 %v3982_v42  ;;  %1720 = vmatpush.msra.mxu0 %v4061_v55  ;;  %v5882_v42 = vld [vmem:[#allocation23_spill] sm:$0xff] }
 0x10a   : > { %1781 = vmatpush.msra.mxu3 %v4001_v45  ;;  %1741 = vmatpush.msra.mxu1 %v4066_v56  ;;  %v5883_v45 = vld [vmem:[#allocation37_spill] sm:$0xff] }
 0x10b   : > { %1762 = vmatpush.msra.mxu2 %v4006_v46  ;;  %1721 = vmatpush.msra.mxu0 %v4085_v59  ;;  %v5884_v46 = vld [vmem:[#allocation26_spill] sm:$0xff] }
 0x10c   : > { %1782 = vmatpush.msra.mxu3 %v4025_v49  ;;  %1742 = vmatpush.msra.mxu1 %v4090_v60  ;;  %v5885_v49 = vld [vmem:[#allocation38_spill] sm:$0xff] }
 0x10d   : > { %1763 = vmatpush.msra.mxu2 %v4030_v50  ;;  %1722 = vmatpush.msra.mxu0 %v4109_v63  ;;  %v5886_v50 = vld [vmem:[#allocation27_spill] sm:$0xff] }
 0x10e   : > { %1783 = vmatpush.msra.mxu3 %v4049_v53  ;;  %1743 = vmatpush.msra.mxu1 %v4114_v0  ;;  %v5887_v53 = vld [vmem:[#allocation42_spill] sm:$0xff] }
 0x10f   : > { %1764 = vmatpush.msra.mxu2 %v4054_v54  ;;  %1723 = vmatpush.msra.mxu0 %v4133_v3  ;;  %v5888_v54 = vld [vmem:[#allocation41_spill] sm:$0xff] }
 0x110   : > { %1784 = vmatpush.msra.mxu3 %v4073_v57  ;;  %1744 = vmatpush.msra.mxu1 %v4138_v4  ;;  %v5889_v57 = vld [vmem:[#allocation44_spill] sm:$0xff] }
 0x111   : > { %1765 = vmatpush.msra.mxu2 %v5866_v16  ;;  %1724 = vmatpush.msra.mxu0 %v5867_v19  ;;  %v5897_v16 = vld [vmem:[#allocation52_spill] sm:$0xff] }
 0x112   : > { %1785 = vmatpush.msra.mxu3 %v5868_v20  ;;  %1745 = vmatpush.msra.mxu1 %v5869_v22  ;;  %v5898_v20 = vld [vmem:[#allocation36_spill] sm:$0xff] }
 0x113   : > { %1766 = vmatpush.msra.mxu2 %v5870_v23  ;;  %1725 = vmatpush.msra.mxu0 %v5871_v26  ;;  %v5899_v23 = vld [vmem:[#allocation53_spill] sm:$0xff] }
 0x114   : > { %1786 = vmatpush.msra.mxu3 %v5872_v27  ;;  %1746 = vmatpush.msra.mxu1 %v5873_v28  ;;  %v5900_v27 = vld [vmem:[#allocation39_spill] sm:$0xff] }
 0x115   : > { %1767 = vmatpush.msra.mxu2 %v5874_v30  ;;  %1726 = vmatpush.msra.mxu0 %v5875_v32  ;;  %v5901_v30 = vld [vmem:[#allocation56_spill] sm:$0xff] }
 0x116   : > { %1787 = vmatpush.msra.mxu3 %v5876_v33  ;;  %1747 = vmatpush.msra.mxu1 %v5877_v34  ;;  %v5902_v33 = vld [vmem:[#allocation40_spill] sm:$0xff] }
 0x117   : > { %1768 = vmatpush.msra.mxu2 %v5878_v36  ;;  %1727 = vmatpush.msra.mxu0 %v5879_v37  ;;  %v5903_v36 = vld [vmem:[#allocation57_spill] sm:$0xff] }
 0x118   : > { %1788 = vmatpush.msra.mxu3 %v5880_v38  ;;  %1748 = vmatpush.msra.mxu1 %v5881_v41  ;;  %v5904_v38 = vld [vmem:[#allocation43_spill] sm:$0xff] }
 0x119   : > { %1769 = vmatpush.msra.mxu2 %v5882_v42  ;;  %1728 = vmatpush.msra.mxu0 %v5883_v45  ;;  %v5905_v42 = vld [vmem:[#allocation60_spill] sm:$0xff] }
 0x11a   : > { %1789 = vmatpush.msra.mxu3 %v5884_v46  ;;  %1749 = vmatpush.msra.mxu1 %v5885_v49  ;;  %v5906_v46 = vld [vmem:[#allocation46_spill] sm:$0xff] }
 0x11b   : > { %1873 = vmatpush.msrb.mxu2 %v5886_v50  ;;  %1729 = vmatpush.msra.mxu0 %v5887_v53 }
 0x11c   : > { %1853 = vmatpush.msrb.mxu1 %v5888_v54  ;;  %1893 = vmatpush.msrb.mxu3 %v5890_v17 }
 0x11d   : > { %1833 = vmatpush.msrb.mxu0 %v5889_v57  ;;  %1874 = vmatpush.msrb.mxu2 %v5892_v9 }
 0x11e   : > { %1854 = vmatpush.msrb.mxu1 %v5891_v29  ;;  %1894 = vmatpush.msrb.mxu3 %v5894_v24 }
 0x11f   : > { %1834 = vmatpush.msrb.mxu0 %v5893_v15  ;;  %1875 = vmatpush.msrb.mxu2 %v5896_v8  ;;  %v5923_v8 = vld [vmem:[#allocation77_spill] sm:$0xff] }
 0x120   : > { %1855 = vmatpush.msrb.mxu1 %v5895_v5  ;;  %1895 = vmatpush.msrb.mxu3 %v5898_v20  ;;  %v5917_v20 = vld [vmem:[#allocation72_spill] sm:$0xff]  ;;  %v5926_v5 = vld [vmem:[#allocation66_spill] sm:$0xff] }
 0x121   : > { %1835 = vmatpush.msrb.mxu0 %v5897_v16  ;;  %1876 = vmatpush.msrb.mxu2 %v5900_v27  ;;  %v5911_v27 = vld [vmem:[#allocation65_spill] sm:$0xff] }
 0x122   : > { %1856 = vmatpush.msrb.mxu1 %v5899_v23  ;;  %1896 = vmatpush.msrb.mxu3 %v5902_v33  ;;  %v5910_v23 = vld [vmem:[#allocation50_spill] sm:$0xff]  ;;  %v5913_v33 = vld [vmem:[#allocation68_spill] sm:$0xff] }
 0x123   : > { %1836 = vmatpush.msrb.mxu0 %v5901_v30  ;;  %1877 = vmatpush.msrb.mxu2 %v5904_v38  ;;  %v5912_v30 = vld [vmem:[#allocation51_spill] sm:$0xff]  ;;  %v1183_v38 = vpop.f32.mrf.mxu2 }
 0x124   : > { %1857 = vmatpush.msrb.mxu1 %v5903_v36  ;;  %1897 = vmatpush.msrb.mxu3 %v5906_v46  ;;  %v5914_v36 = vld [vmem:[#allocation54_spill] sm:$0xff]  ;;  %v5916_v46 = vld [vmem:[#allocation55_spill] sm:$0xff] }
 0x125   : > { %1837 = vmatpush.msrb.mxu0 %v5905_v42  ;;  %1878 = vmatpush.msrb.mxu2 %v5908_v12  ;;  %v5915_v42 = vld [vmem:[#allocation69_spill] sm:$0xff]  ;;  %v5918_v12 = vld [vmem:[#allocation58_spill] sm:$0xff] }
 0x126   : > { %1858 = vmatpush.msrb.mxu1 %v5907_v10  ;;  %1898 = vmatpush.msrb.mxu3 %v5910_v23  ;;  %v1203_v10 = vpop.f32.mrf.mxu3  ;;  %v5919_v23 = vld [vmem:[#allocation73_spill] sm:$0xff] }
 0x127   : > { %1838 = vmatpush.msrb.mxu0 %v5909_v7  ;;  %1879 = vmatpush.msrb.mxu2 %v5912_v30  ;;  %v1163_v7 = vpop.f32.mrf.mxu1  ;;  %v5921_v30 = vld [vmem:[#allocation76_spill] sm:$0xff] }
 0x128   : > { %1859 = vmatpush.msrb.mxu1 %v5911_v27  ;;  %1899 = vmatpush.msrb.mxu3 %v5914_v36  ;;  %v5920_v27 = vld [vmem:[#allocation59_spill] sm:$0xff]  ;;  %v1143_v36 = vpop.f32.mrf.mxu0 }
 0x129   : > { %1839 = vmatpush.msrb.mxu0 %v5913_v33  ;;  %1880 = vmatpush.msrb.mxu2 %v5916_v46  ;;  %v5922_v33 = vld [vmem:[#allocation62_spill] sm:$0xff]  ;;  %v5925_v46 = vld [vmem:[#allocation80_spill] sm:$0xff] }
 0x12a   : > { %1860 = vmatpush.msrb.mxu1 %v5915_v42  ;;  %1900 = vmatpush.msrb.mxu3 %v5918_v12  ;;  %v5924_v42 = vld [vmem:[#allocation63_spill] sm:$0xff] }
 0x12b   : > { %1840 = vmatpush.msrb.mxu0 %v5917_v20  ;;  %1881 = vmatpush.msrb.mxu2 %v5920_v27  ;;  %v1299_v12 = vld [vmem:[%s5624_s11] sm:$0xf]  ;;  %v5931_v20 = vld [vmem:[#allocation85_spill] sm:$0xff] }
 0x12c   : > { %1861 = vmatpush.msrb.mxu1 %v5919_v23  ;;  %1901 = vmatpush.msrb.mxu3 %v5922_v33  ;;  %v5927_v23 = vld [vmem:[#allocation81_spill] sm:$0xff]  ;;  %v5928_v27 = vld [vmem:[#allocation67_spill] sm:$0xff]  ;;  %v5930_v33 = vld [vmem:[#allocation70_spill] sm:$0xff]  ;;  %v1304_v16 = vperm.slane %v1299_v12, 3  ;;  %v1301_v29 = vperm.slane %v1299_v12, 0 }
 0x12d   : > { %1841 = vmatpush.msrb.mxu0 %v5921_v30  ;;  %1882 = vmatpush.msrb.mxu2 %v5924_v42  ;;  %v5929_v30 = vld [vmem:[#allocation84_spill] sm:$0xff]  ;;  %v1303_v42 = vperm.slane %v1299_v12, 2 }
 0x12e   : > { %1862 = vmatpush.msrb.mxu1 %v5923_v8  ;;  %1902 = vmatpush.msrb.mxu3 %v5926_v5  ;;  %v5932_v8 = vld [vmem:[#allocation71_spill] sm:$0xff]  ;;  %v5933_v5 = vld [vmem:[#allocation74_spill] sm:$0xff] }
 0x12f   : > { %1842 = vmatpush.msrb.mxu0 %v5925_v46  ;;  %1883 = vmatpush.msrb.mxu2 %v5928_v27  ;;  %v1276_v46 = vpop.f32.mrf.mxu2  ;;  %v1302_v27 = vperm.slane %v1299_v12, 1  ;;  %v5939_v12 = vld [vmem:[#allocation87_spill] sm:$0xff] }
 0x130   : > { %1863 = vmatpush.msrb.mxu1 %v5927_v23  ;;  %1903 = vmatpush.msrb.mxu3 %v5930_v33  ;;  %v5934_v23 = vld [vmem:[#allocation75_spill] sm:$0xff]  ;;  %v1277_v24 = vadd.f32 %v1276_v46, %v1183_v38  ;;  %v5935_v33 = vld [vmem:[#allocation78_spill] sm:$0xff]  ;;  %v1236_v38 = vpop.f32.mrf.mxu0 }
 0x131   : > { %1843 = vmatpush.msrb.mxu0 %v5929_v30  ;;  %1884 = vmatpush.msrb.mxu2 %v5932_v8  ;;  %v1296_v30 = vpop.f32.mrf.mxu3  ;;  %v5938_v46 = vld [vmem:[#allocation83_spill] sm:$0xff] }
 0x132   : > { %1864 = vmatpush.msrb.mxu1 %v5931_v20  ;;  %1904 = vmatpush.msrb.mxu3 %v5933_v5  ;;  %v1256_v20 = vpop.f32.mrf.mxu1  ;;  %v1297_v8 = vadd.f32 %v1296_v30, %v1203_v10  ;;  %v1311_v9 = vadd.f32 %v1303_v42, %v1277_v24  ;;  %v1237_v10 = vadd.f32 %v1236_v38, %v1143_v36 }
 0x133   : > { %1844 = vmatpush.msrb.mxu0 %v4568_v6  ;;  %1885 = vmatpush.msrb.mxu2 %v5934_v23  ;;  %v5936_v6 = vld [vmem:[#allocation79_spill] sm:$0xff]  ;;  %v1257_v5 = vadd.f32 %v1256_v20, %v1163_v7 }
 0x134   : > { %1865 = vmatpush.msrb.mxu1 %v4573_v14  ;;  %1905 = vmatpush.msrb.mxu3 %v5935_v33  ;;  %v5937_v14 = vld [vmem:[#allocation82_spill] sm:$0xff]  ;;  %v1312_v23 = vadd.f32 %v1304_v16, %v1297_v8  ;;  %v1309_v20 = vadd.f32 %v1301_v29, %v1237_v10 }
 0x135   : > { %1845 = vmatpush.msrb.mxu0 %v4587_v1  ;;  %1886 = vmatpush.msrb.mxu2 %v5936_v6  ;;  %v1310_v33 = vadd.f32 %v1302_v27, %v1257_v5  ;;  %v1318_v1 = vrot.slane %v1311_v9, 4  ;;  %v5940_v8 = vld [vmem:[#allocation90_spill] sm:$0xff] }
 0x136   : > { %1866 = vmatpush.msrb.mxu1 %v4594_v61  ;;  %1906 = vmatpush.msrb.mxu3 %v5937_v14  ;;  %v1319_v7 = vrot.slane %v1312_v23, 2 }
 0x137   : > { %1846 = vmatpush.msrb.mxu0 %v4600_v2  ;;  %1887 = vmatpush.msrb.mxu2 %v5938_v46  ;;  %v1317_v24 = vrot.slane %v1310_v33, 6  ;;  %v5945_v46 = vld [vmem:[#allocation92_spill] sm:$0xff] }
 0x138   : > { %1867 = vmatpush.msrb.mxu1 %v4608_v58  ;;  %1907 = vmatpush.msrb.mxu3 %v4556_v25  ;;  %v1324_v16 = vsel %vm956_vm2, %v1319_v7, %v1318_v1  ;;  %v1328_v9 = vsel %vm948_vm0, %v1318_v1, %v1319_v7  ;;  %v1321_v5 = vsel %vm950_vm3, %v1318_v1, %v1319_v7  ;;  %v5944_v25 = vld [vmem:[#allocation93_spill] sm:$0xff] }
 0x139   : > { %1847 = vmatpush.msrb.mxu0 %v4616_v62  ;;  %1888 = vmatpush.msrb.mxu2 %v5939_v12  ;;  %v1320_v27 = vsel %vm948_vm0, %v1309_v20, %v1317_v24  ;;  %v1323_v23 = vsel %vm954_vm1, %v1309_v20, %v1317_v24  ;;  %v1327_v30 = vsel %vm950_vm3, %v1309_v20, %v1317_v24 }
 0x13a   : > { %1868 = vmatpush.msrb.mxu1 %v4627_v21  ;;  %1908 = vmatpush.msrb.mxu3 %v5940_v8  ;;  %v4802_v36 = vsel %vm952_vm4, %v1328_v9, %v1327_v30  ;;  %v4805_v29 = vsel %vm958_vm5, %v1323_v23, %v1324_v16  ;;  %v4808_v33 = vsel %vm952_vm4, %v1320_v27, %v1321_v5 }
 0x13b   : > { %1848 = vmatpush.msrb.mxu0 %v4642_v11  ;;  %5941 = vst [vmem:[#allocation13_spill] sm:$0xff] %v4802_v36  ;;  %v949_v11 = vsel %vm948_vm0, %v4620_v18, %v4618_v13  ;;  %v951_v9 = vsel %vm950_vm3, %v5945_v46, %v5944_v25 }
 0x13c   : > { %5942 = vst [vmem:[#allocation20_spill] sm:$0xff] %v4805_v29  ;;  %v953_v27 = vsel %vm952_vm4, %v949_v11, %v951_v9 }
 0x13d   : > { %5943 = vst [vmem:[#allocation14_spill] sm:$0xff] %v4808_v33 }
 0x147   : > { %v1533_v42 = vpop.f32.mrf.mxu2 }
 0x148   : > { %v1561_v38 = vrot.slane %v1533_v42, 4  ;;  %v1553_v10 = vpop.f32.mrf.mxu3 }
 0x149   : > { %v1513_v8 = vpop.f32.mrf.mxu1  ;;  %v1562_v12 = vrot.slane %v1553_v10, 2 }
 0x14a   : > { %v1560_v21 = vrot.slane %v1513_v8, 6 }
 0x14b   : > { %v1564_v16 = vsel %vm950_vm3, %v1561_v38, %v1562_v12  ;;  %v1493_v23 = vpop.f32.mrf.mxu0 }
 0x14c   : > { %v1563_v5 = vsel %vm948_vm0, %v1493_v23, %v1560_v21  ;;  %v1472_v21 = vld [vmem:[#allocation5] sm:$0x3] }
 0x14d   : > { %v1565_v30 = vsel %vm952_vm4, %v1563_v5, %v1564_v16 }
 0x14e   : > { %v1567_v42 = vadd.f32 %v1565_v30, %v953_v27  ;;  %v1332_v30 = vsel %vm954_vm1, %v1318_v1, %v1319_v7  ;;  %v4833_v7 = vld [vmem:[%s5621_s8 + $0x1e8] sm:$0xff] }
 0x150   : > { %v1568_v10 = vmul.f32 0.5, %v1567_v42  ;;  %v1573_v8 = vrot.slane %v1567_v42, 2  ;;  %v1582_v29 = vrot.slane %v1567_v42, 6  ;;  %v1579_v13 = vrot.slane %v1567_v42, 4 }
 0x152   : > { %2674 = vtanh.f32 %v1568_v10  ;;  %v1575_v33 = vmul.f32 0.5, %v1573_v8  ;;  %v1584_v18 = vmul.f32 0.5, %v1582_v29  ;;  %v1331_v29 = vsel %vm956_vm2, %v1317_v24, %v1309_v20 }
 0x154   : > { %2676 = vtanh.f32 %v1575_v33 }
 0x155   : > { %2678 = vtanh.f32 %v1579_v13 }
 0x156   : > { %2680 = vtanh.f32 %v1584_v18 }
 0x158   : > { %v2675_v36 = vpop.eup %2674 }
 0x159   : > { %v1570_v25 = vadd.f32 1.0, %v2675_v36 }
 0x15a   : > { %v2677_v46 = vpop.eup %2676 }
 0x15b   : > { %v1571_v12 = vmul.f32 0.5, %v1570_v25  ;;  %v1577_v38 = vadd.f32 1.0, %v2677_v46  ;;  %v2679_v9 = vpop.eup %2678  ;;  %v1333_v25 = vsel %vm958_vm5, %v1332_v30, %v1331_v29  ;;  %v4858_v29 = vld [vmem:[%s5621_s8 + $0x1d0] sm:$0xff]  ;;  %v4871_v30 = vld [vmem:[%s5621_s8 + $0x1a8] sm:$0xff] }
 0x15c   : > { %v2681_v5 = vpop.eup %2680 }
 0x15d   : > { %v1578_v11 = vmul.f32 0.5, %v1577_v38  ;;  %v1589_v23 = vmul.f32 %v2679_v9, %v1571_v12  ;;  %v1586_v33 = vadd.f32 1.0, %v2681_v5  ;;  %v1334_v9 = vrot.slane %v1333_v25, 6 }
 0x15f   : > { %v1588_v16 = vmul.f32 %v1578_v11, %v1472_v21  ;;  %v1587_v36 = vmul.f32 0.5, %v1586_v33 }
 0x161   : > { %v4820_v27 = vadd.f32 %v1589_v23, %v1588_v16  ;;  %v4839_v16 = vld [vmem:[%s5621_s8 + $0x1f0] sm:$0xff]  ;;  %v4845_v23 = vld [vmem:[%s5621_s8 + $0x1f8] sm:$0xff] }
 0x163   : > { %2682 = vtanh.f32 %v4820_v27 }
 0x169   : > { %v2683_v42 = vpop.eup %2682 }
 0x16a   : > { %v1592_v46 = vmul.f32 %v2683_v42, %v1587_v36  ;;  %v4877_v42 = vld [vmem:[%s5621_s8 + $0x1b0] sm:$0xff] }
 0x16c   : > { %1730 = vmatmul.f32.vlgmr.msra.gmra.mxu0 %v1592_v46  ;;  %1750 = vmatmul.f32.vlgmr.msra.gmra.mxu1 %v1592_v46 }
 0x16d   : > { %1770 = vmatmul.f32.vlgmr.msra.gmra.mxu2 %v1592_v46  ;;  %1790 = vmatmul.f32.vlgmr.msra.gmra.mxu3 %v1592_v46  ;;  %v4925_v46 = vld [vmem:[%s5621_s8 + $0x158] sm:$0xff] }
 0x16e   : > { %1952 = vmatpush.msra.mxu0 %v3919_v31  ;;  %1972 = vmatpush.msra.mxu1 %v4833_v7  ;;  %v4852_v31 = vld [vmem:[%s5621_s8 + $0x1c8] sm:$0xff] }
 0x16f   : > { %1992 = vmatpush.msra.mxu2 %v4839_v16  ;;  %2012 = vmatpush.msra.mxu3 %v4845_v23 }
 0x170   : > { %1953 = vmatpush.msra.mxu0 %v3941_v35  ;;  %1973 = vmatpush.msra.mxu1 %v4852_v31  ;;  %v4864_v35 = vld [vmem:[%s5621_s8 + $0x1d8] sm:$0xff] }
 0x171   : > { %1993 = vmatpush.msra.mxu2 %v4858_v29  ;;  %2013 = vmatpush.msra.mxu3 %v4864_v35 }
 0x172   : > { %1954 = vmatpush.msra.mxu0 %v3965_v39  ;;  %1974 = vmatpush.msra.mxu1 %v4871_v30  ;;  %v4883_v39 = vld [vmem:[%s5621_s8 + $0x1b8] sm:$0xff] }
 0x173   : > { %1994 = vmatpush.msra.mxu2 %v4877_v42  ;;  %2014 = vmatpush.msra.mxu3 %v4883_v39 }
 0x174   : > { %1955 = vmatpush.msra.mxu0 %v3989_v43  ;;  %1975 = vmatpush.msra.mxu1 %v3970_v40  ;;  %v4905_v40 = vld [vmem:[%s5621_s8 + $0x170] sm:$0xff]  ;;  %v4911_v43 = vld [vmem:[%s5621_s8 + $0x178] sm:$0xff] }
 0x176   : > { %1956 = vmatpush.msra.mxu0 %v4013_v47  ;;  %1976 = vmatpush.msra.mxu1 %v3994_v44  ;;  %v4919_v47 = vld [vmem:[%s5621_s8 + $0x150] sm:$0xff] }
 0x177   : > { %v1652_v10 = vpop.f32.mrf.mxu2 }
 0x178   : > { %v1632_v8 = vpop.f32.mrf.mxu1  ;;  %v1680_v13 = vrot.slane %v1652_v10, 4  ;;  %1957 = vmatpush.msra.mxu0 %v4037_v51  ;;  %1977 = vmatpush.msra.mxu1 %v4018_v48  ;;  %v4933_v51 = vld [vmem:[%s5621_s8 + $0x130] sm:$0xff] }
 0x179   : > { %v1672_v18 = vpop.f32.mrf.mxu3  ;;  %v1679_v12 = vrot.slane %v1632_v8, 6  ;;  %v1612_v21 = vpop.f32.mrf.mxu0 }
 0x17a   : > { %v1681_v38 = vrot.slane %v1672_v18, 2  ;;  %v4897_v18 = vld [vmem:[%s5621_s8 + $0x198] sm:$0xff]  ;;  %1958 = vmatpush.msra.mxu0 %v4061_v55  ;;  %1978 = vmatpush.msra.mxu1 %v4042_v52  ;;  %v1474_v52 = vld [vmem:[#allocation7] sm:$0x3]  ;;  %v4947_v55 = vld [vmem:[%s5621_s8 + $0x110] sm:$0xff] }
 0x17b   : > { %v1682_v24 = vsel %vm948_vm0, %v1612_v21, %v1679_v12  ;;  %2015 = vmatpush.msra.mxu3 %v4897_v18 }
 0x17c   : > { %v1683_v11 = vsel %vm950_vm3, %v1680_v13, %v1681_v38  ;;  %v4891_v13 = vld [vmem:[%s5621_s8 + $0x190] sm:$0xff]  ;;  %v4939_v38 = vld [vmem:[%s5621_s8 + $0x138] sm:$0xff]  ;;  %1959 = vmatpush.msra.mxu0 %v4085_v59  ;;  %1979 = vmatpush.msra.mxu1 %v4066_v56 }
 0x17d   : > { %v1684_v1 = vsel %vm952_vm4, %v1682_v24, %v1683_v11  ;;  %1995 = vmatpush.msra.mxu2 %v4891_v13  ;;  %2016 = vmatpush.msra.mxu3 %v4911_v43  ;;  %v4961_v59 = vld [vmem:[%s5621_s8 + $0xf0] sm:$0xff] }
 0x17e   : > { %v1686_v20 = vadd.f32 %v1684_v1, %v1334_v9  ;;  %v4953_v9 = vld [vmem:[%s5621_s8 + $0x118] sm:$0xff]  ;;  %1960 = vmatpush.msra.mxu0 %v4109_v63  ;;  %1980 = vmatpush.msra.mxu1 %v4090_v60  ;;  %v4975_v60 = vld [vmem:[%s5621_s8 + $0xd0] sm:$0xff] }
 0x17f   : > { %1996 = vmatpush.msra.mxu2 %v4905_v40  ;;  %2017 = vmatpush.msra.mxu3 %v4925_v46  ;;  %v4967_v1 = vld [vmem:[%s5621_s8 + $0xf8] sm:$0xff] }
 0x180   : > { %v1687_v5 = vmul.f32 0.5, %v1686_v20  ;;  %v1692_v33 = vrot.slane %v1686_v20, 2  ;;  %v1701_v10 = vrot.slane %v1686_v20, 6  ;;  %v1698_v8 = vrot.slane %v1686_v20, 4  ;;  %1961 = vmatpush.msra.mxu0 %v4133_v3  ;;  %1981 = vmatpush.msra.mxu1 %v4114_v0  ;;  %v4981_v63 = vld [vmem:[%s5621_s8 + $0xd8] sm:$0xff]  ;;  %v4991_v0 = vld [vmem:[%s5621_s8 + $0xb0] sm:$0xff] }
 0x181   : > { %1997 = vmatpush.msra.mxu2 %v4919_v47  ;;  %2018 = vmatpush.msra.mxu3 %v4939_v38  ;;  %v4997_v3 = vld [vmem:[%s5621_s8 + $0xb8] sm:$0xff] }
 0x182   : > { %2684 = vtanh.f32 %v1687_v5  ;;  %v1694_v36 = vmul.f32 0.5, %v1692_v33  ;;  %v1703_v25 = vmul.f32 0.5, %v1701_v10  ;;  %1962 = vmatpush.msra.mxu0 %v5867_v19  ;;  %1982 = vmatpush.msra.mxu1 %v4138_v4  ;;  %v5006_v19 = vld [vmem:[%s5621_s8 + $0x90] sm:$0xff]  ;;  %v5012_v10 = vld [vmem:[%s5621_s8 + $0x98] sm:$0xff] }
 0x183   : > { %1998 = vmatpush.msra.mxu2 %v4933_v51  ;;  %2019 = vmatpush.msra.mxu3 %v4953_v9 }
 0x184   : > { %2686 = vtanh.f32 %v1694_v36  ;;  %1963 = vmatpush.msra.mxu0 %v5871_v26  ;;  %1983 = vmatpush.msra.mxu1 %v5869_v22  ;;  %v5020_v22 = vld [vmem:[%s5621_s8 + $0x70] sm:$0xff]  ;;  %v5026_v26 = vld [vmem:[%s5621_s8 + $0x78] sm:$0xff] }
 0x185   : > { %2688 = vtanh.f32 %v1698_v8  ;;  %1999 = vmatpush.msra.mxu2 %v4947_v55  ;;  %2020 = vmatpush.msra.mxu3 %v4967_v1  ;;  %v5040_v8 = vld [vmem:[%s5621_s8 + $0x58] sm:$0xff] }
 0x186   : > { %2690 = vtanh.f32 %v1703_v25  ;;  %1964 = vmatpush.msra.mxu0 %v5875_v32  ;;  %1984 = vmatpush.msra.mxu1 %v5873_v28  ;;  %v5034_v28 = vld [vmem:[%s5621_s8 + $0x50] sm:$0xff] }
 0x187   : > { %2000 = vmatpush.msra.mxu2 %v4961_v59  ;;  %2021 = vmatpush.msra.mxu3 %v4981_v63 }
 0x188   : > { %v2685_v44 = vpop.eup %2684  ;;  %1965 = vmatpush.msra.mxu0 %v5879_v37  ;;  %1985 = vmatpush.msra.mxu1 %v5877_v34  ;;  %v5048_v37 = vld [vmem:[%s5621_s8 + $0x30] sm:$0xff] }
 0x189   : > { %v1689_v12 = vadd.f32 1.0, %v2685_v44  ;;  %2001 = vmatpush.msra.mxu2 %v4975_v60  ;;  %2022 = vmatpush.msra.mxu3 %v4997_v3  ;;  %v5054_v44 = vld [vmem:[%s5621_s8 + $0x38] sm:$0xff] }
 0x18a   : > { %v2687_v48 = vpop.eup %2686  ;;  %1966 = vmatpush.msra.mxu0 %v5883_v45  ;;  %1986 = vmatpush.msra.mxu1 %v5881_v41  ;;  %v5062_v41 = vld [vmem:[%s5621_s8 + $0x10] sm:$0xff]  ;;  %v5068_v45 = vld [vmem:[%s5621_s8 + $0x18] sm:$0xff] }
 0x18b   : > { %v1690_v21 = vmul.f32 0.5, %v1689_v12  ;;  %v1696_v11 = vadd.f32 1.0, %v2687_v48  ;;  %v2689_v56 = vpop.eup %2688  ;;  %2002 = vmatpush.msra.mxu2 %v4991_v0  ;;  %2023 = vmatpush.msra.mxu3 %v5012_v10  ;;  %v5948_v12 = vld [vmem:[#allocation32_spill] sm:$0xff] }
 0x18c   : > { %v2691_v33 = vpop.eup %2690  ;;  %1967 = vmatpush.msra.mxu0 %v5887_v53  ;;  %1987 = vmatpush.msra.mxu1 %v5885_v49  ;;  %v5946_v49 = vld [vmem:[#allocation45_spill] sm:$0xff]  ;;  %v5947_v53 = vld [vmem:[#allocation31_spill] sm:$0xff]  ;;  %v5949_v48 = vld [vmem:[#allocation52_spill] sm:$0xff] }
 0x18d   : > { %v1697_v24 = vmul.f32 0.5, %v1696_v11  ;;  %v1708_v5 = vmul.f32 %v2689_v56, %v1690_v21  ;;  %v1705_v4 = vadd.f32 1.0, %v2691_v33  ;;  %2003 = vmatpush.msra.mxu2 %v5006_v19  ;;  %2024 = vmatpush.msra.mxu3 %v5026_v26  ;;  %v5950_v21 = vld [vmem:[#allocation49_spill] sm:$0xff]  ;;  %v5951_v11 = vld [vmem:[#allocation35_spill] sm:$0xff] }
 0x18e   : > { %v5959_v56 = vld [vmem:[#allocation43_spill] sm:$0xff]  ;;  %v5962_v33 = vld [vmem:[#allocation61_spill] sm:$0xff] }
 0x18f   : > { %v1707_v20 = vmul.f32 %v1697_v24, %v1474_v52  ;;  %2004 = vmatpush.msra.mxu2 %v5020_v22  ;;  %v1706_v32 = vmul.f32 0.5, %v1705_v4  ;;  %2025 = vmatpush.msra.mxu3 %v5040_v8  ;;  %v5957_v52 = vld [vmem:[#allocation60_spill] sm:$0xff]  ;;  %v5958_v24 = vld [vmem:[#allocation57_spill] sm:$0xff]  ;;  %v5963_v4 = vld [vmem:[#allocation47_spill] sm:$0xff] }
 0x191   : > { %v4984_v36 = vadd.f32 %v1708_v5, %v1707_v20  ;;  %2005 = vmatpush.msra.mxu2 %v5034_v28  ;;  %2026 = vmatpush.msra.mxu3 %v5054_v44  ;;  %v5960_v20 = vld [vmem:[#allocation46_spill] sm:$0xff]  ;;  %v5961_v5 = vld [vmem:[#allocation64_spill] sm:$0xff] }
 0x193   : > { %2692 = vtanh.f32 %v4984_v36  ;;  %2006 = vmatpush.msra.mxu2 %v5048_v37  ;;  %2027 = vmatpush.msra.mxu3 %v5068_v45 }
 0x195   : > { %2007 = vmatpush.msra.mxu2 %v5062_v41 }
 0x199   : > { %v2693_v25 = vpop.eup %2692 }
 0x19a   : > { %v1711_v34 = vmul.f32 %v2693_v25, %v1706_v32  ;;  %v5964_v32 = vld [vmem:[#allocation50_spill] sm:$0xff]  ;;  %v5965_v25 = vld [vmem:[#allocation68_spill] sm:$0xff] }
 0x19c   : > { %1849 = vmatmul.f32.vlgmr.msrb.gmra.mxu0 %v1711_v34  ;;  %1869 = vmatmul.f32.vlgmr.msrb.gmra.mxu1 %v1711_v34 }
 0x19d   : > { %1889 = vmatmul.f32.vlgmr.msrb.gmra.mxu2 %v1711_v34  ;;  %1909 = vmatmul.f32.vlgmr.msrb.gmra.mxu3 %v1711_v34  ;;  %v5966_v34 = vld [vmem:[#allocation65_spill] sm:$0xff] }
 0x19e   : > { %2071 = vmatpush.msrb.mxu0 %v5889_v57  ;;  %2091 = vmatpush.msrb.mxu1 %v5888_v54  ;;  %v5952_v57 = vld [vmem:[#allocation36_spill] sm:$0xff] }
 0x19f   : > { %2111 = vmatpush.msrb.mxu2 %v5886_v50  ;;  %2131 = vmatpush.msrb.mxu3 %v5890_v17  ;;  %v5953_v54 = vld [vmem:[#allocation56_spill] sm:$0xff]  ;;  %v5954_v50 = vld [vmem:[#allocation53_spill] sm:$0xff]  ;;  %v5955_v17 = vld [vmem:[#allocation39_spill] sm:$0xff] }
 0x1a0   : > { %2072 = vmatpush.msrb.mxu0 %v5893_v15  ;;  %2092 = vmatpush.msrb.mxu1 %v5946_v49  ;;  %v5956_v15 = vld [vmem:[#allocation40_spill] sm:$0xff]  ;;  %v5967_v49 = vld [vmem:[#allocation51_spill] sm:$0xff] }
 0x1a1   : > { %2112 = vmatpush.msrb.mxu2 %v5947_v53  ;;  %2132 = vmatpush.msrb.mxu3 %v5948_v12  ;;  %v5968_v53 = vld [vmem:[#allocation54_spill] sm:$0xff]  ;;  %v5969_v12 = vld [vmem:[#allocation72_spill] sm:$0xff] }
 0x1a2   : > { %2073 = vmatpush.msrb.mxu0 %v5949_v48  ;;  %2093 = vmatpush.msrb.mxu1 %v5950_v21  ;;  %v5970_v48 = vld [vmem:[#allocation69_spill] sm:$0xff]  ;;  %v5971_v21 = vld [vmem:[#allocation55_spill] sm:$0xff] }
 0x1a3   : > { %2113 = vmatpush.msrb.mxu2 %v5951_v11  ;;  %2133 = vmatpush.msrb.mxu3 %v5952_v57  ;;  %v5972_v11 = vld [vmem:[#allocation58_spill] sm:$0xff]  ;;  %v5973_v57 = vld [vmem:[#allocation76_spill] sm:$0xff] }
 0x1a4   : > { %2074 = vmatpush.msrb.mxu0 %v5953_v54  ;;  %2094 = vmatpush.msrb.mxu1 %v5954_v50  ;;  %v5974_v54 = vld [vmem:[#allocation73_spill] sm:$0xff]  ;;  %v5975_v50 = vld [vmem:[#allocation59_spill] sm:$0xff] }
 0x1a5   : > { %2114 = vmatpush.msrb.mxu2 %v5955_v17  ;;  %2134 = vmatpush.msrb.mxu3 %v5956_v15  ;;  %v5976_v17 = vld [vmem:[#allocation62_spill] sm:$0xff]  ;;  %v5977_v15 = vld [vmem:[#allocation80_spill] sm:$0xff] }
 0x1a6   : > { %2075 = vmatpush.msrb.mxu0 %v5957_v52  ;;  %2095 = vmatpush.msrb.mxu1 %v5958_v24  ;;  %v5978_v52 = vld [vmem:[#allocation77_spill] sm:$0xff]  ;;  %v5979_v24 = vld [vmem:[#allocation63_spill] sm:$0xff] }
 0x1a7   : > { %2115 = vmatpush.msrb.mxu2 %v5959_v56  ;;  %2135 = vmatpush.msrb.mxu3 %v5960_v20  ;;  %v5980_v56 = vld [vmem:[#allocation66_spill] sm:$0xff]  ;;  %v5981_v20 = vld [vmem:[#allocation84_spill] sm:$0xff] }
 0x1a8   : > { %2076 = vmatpush.msrb.mxu0 %v5961_v5  ;;  %2096 = vmatpush.msrb.mxu1 %v5962_v33  ;;  %v5982_v5 = vld [vmem:[#allocation81_spill] sm:$0xff]  ;;  %v5983_v33 = vld [vmem:[#allocation67_spill] sm:$0xff] }
 0x1a9   : > { %2116 = vmatpush.msrb.mxu2 %v5963_v4  ;;  %2136 = vmatpush.msrb.mxu3 %v5964_v32  ;;  %v5984_v4 = vld [vmem:[#allocation70_spill] sm:$0xff]  ;;  %v5985_v32 = vld [vmem:[#allocation88_spill] sm:$0xff] }
 0x1aa   : > { %2077 = vmatpush.msrb.mxu0 %v5965_v25  ;;  %2097 = vmatpush.msrb.mxu1 %v5966_v34  ;;  %v5986_v25 = vld [vmem:[#allocation85_spill] sm:$0xff]  ;;  %v5987_v34 = vld [vmem:[#allocation71_spill] sm:$0xff] }
 0x1ab   : > { %2117 = vmatpush.msrb.mxu2 %v5967_v49  ;;  %2137 = vmatpush.msrb.mxu3 %v5968_v53  ;;  %v5988_v49 = vld [vmem:[#allocation74_spill] sm:$0xff]  ;;  %v5989_v53 = vld [vmem:[#allocation91_spill] sm:$0xff] }
 0x1ac   : > { %2078 = vmatpush.msrb.mxu0 %v5969_v12  ;;  %2098 = vmatpush.msrb.mxu1 %v5970_v48  ;;  %v5990_v12 = vld [vmem:[#allocation89_spill] sm:$0xff]  ;;  %v5991_v48 = vld [vmem:[#allocation75_spill] sm:$0xff] }
 0x1ad   : > { %2118 = vmatpush.msrb.mxu2 %v5971_v21  ;;  %2138 = vmatpush.msrb.mxu3 %v5972_v11  ;;  %v5992_v21 = vld [vmem:[#allocation78_spill] sm:$0xff]  ;;  %v5993_v11 = vld [vmem:[#allocation83_spill] sm:$0xff] }
 0x1ae   : > { %2079 = vmatpush.msrb.mxu0 %v5973_v57  ;;  %2099 = vmatpush.msrb.mxu1 %v5974_v54  ;;  %v5994_v57 = vld [vmem:[#allocation86_spill] sm:$0xff]  ;;  %v5995_v54 = vld [vmem:[#allocation95_spill] sm:$0xff] }
 0x1af   : > { %2119 = vmatpush.msrb.mxu2 %v5975_v50  ;;  %2139 = vmatpush.msrb.mxu3 %v5976_v17  ;;  %v5996_v50 = vld [vmem:[#allocation94_spill] sm:$0xff]  ;;  %v5997_v17 = vld [vmem:[#allocation87_spill] sm:$0xff] }
 0x1b0   : > { %2080 = vmatpush.msrb.mxu0 %v5977_v15  ;;  %2100 = vmatpush.msrb.mxu1 %v5978_v52 }
 0x1b1   : > { %2120 = vmatpush.msrb.mxu2 %v5979_v24  ;;  %2140 = vmatpush.msrb.mxu3 %v5980_v56  ;;  %v5999_v56 = vld [vmem:[#allocation96_spill] sm:$0xff] }
 0x1b2   : > { %2081 = vmatpush.msrb.mxu0 %v5981_v20  ;;  %2101 = vmatpush.msrb.mxu1 %v5982_v5  ;;  %v960_v20 = vrot.slane %v5999_v56, 2 }
 0x1b3   : > { %2121 = vmatpush.msrb.mxu2 %v5983_v33  ;;  %2141 = vmatpush.msrb.mxu3 %v5984_v4 }
 0x1b4   : > { %2082 = vmatpush.msrb.mxu0 %v5985_v32  ;;  %2102 = vmatpush.msrb.mxu1 %v5986_v25 }
 0x1b5   : > { %2122 = vmatpush.msrb.mxu2 %v5987_v34  ;;  %2142 = vmatpush.msrb.mxu3 %v5988_v49 }
 0x1b6   : > { %2083 = vmatpush.msrb.mxu0 %v5989_v53  ;;  %2103 = vmatpush.msrb.mxu1 %v5990_v12 }
 0x1b7   : > { %2123 = vmatpush.msrb.mxu2 %v5991_v48  ;;  %2143 = vmatpush.msrb.mxu3 %v5992_v21 }
 0x1b8   : > { %2084 = vmatpush.msrb.mxu0 %v4600_v2  ;;  %2104 = vmatpush.msrb.mxu1 %v4594_v61  ;;  %v5998_v2 = vld [vmem:[#allocation90_spill] sm:$0xff] }
 0x1b9   : > { %2124 = vmatpush.msrb.mxu2 %v5936_v6  ;;  %2144 = vmatpush.msrb.mxu3 %v5937_v14 }
 0x1ba   : > { %2085 = vmatpush.msrb.mxu0 %v4616_v62  ;;  %2105 = vmatpush.msrb.mxu1 %v4608_v58 }
 0x1bb   : > { %2125 = vmatpush.msrb.mxu2 %v5993_v11  ;;  %2145 = vmatpush.msrb.mxu3 %v5994_v57 }
 0x1bc   : > { %2086 = vmatpush.msrb.mxu0 %v5995_v54  ;;  %2106 = vmatpush.msrb.mxu1 %v5996_v50 }
 0x1bd   : > { %2126 = vmatpush.msrb.mxu2 %v5997_v17  ;;  %2146 = vmatpush.msrb.mxu3 %v5998_v2 }
 0x1e9   : > { %v1751_v61 = vpop.f32.mrf.mxu1  ;;  %v1731_v24 = vpop.f32.mrf.mxu0 }
 0x1ea   : > { %v1798_v6 = vrot.slane %v1751_v61, 6 }
 0x1ec   : > { %v1801_v58 = vsel %vm948_vm0, %v1731_v24, %v1798_v6 }
 0x1f0   : > { %v1771_v15 = vpop.f32.mrf.mxu2  ;;  %v1791_v14 = vpop.f32.mrf.mxu3 }
 0x1f1   : > { %v1799_v52 = vrot.slane %v1771_v15, 4  ;;  %v1800_v62 = vrot.slane %v1791_v14, 2 }
 0x1f3   : > { %v1802_v5 = vsel %vm950_vm3, %v1799_v52, %v1800_v62 }
 0x1f4   : > { %v1803_v33 = vsel %vm952_vm4, %v1801_v58, %v1802_v5 }
 0x1f5   : > { %v1805_v4 = vadd.f32 %v1803_v33, %v960_v20 }
 0x1f7   : > { %v1806_v32 = vmul.f32 0.5, %v1805_v4  ;;  %v1811_v25 = vrot.slane %v1805_v4, 2  ;;  %v1820_v49 = vrot.slane %v1805_v4, 6  ;;  %v1817_v53 = vrot.slane %v1805_v4, 4 }
 0x1f9   : > { %2694 = vtanh.f32 %v1806_v32  ;;  %v1813_v34 = vmul.f32 0.5, %v1811_v25  ;;  %v1822_v12 = vmul.f32 0.5, %v1820_v49  ;;  %v6000_v25 = vld [vmem:[#allocation13_spill] sm:$0xff] }
 0x1fb   : > { %2696 = vtanh.f32 %v1813_v34  ;;  %v1330_v34 = vrot.slane %v6000_v25, 4  ;;  %v2826_v25 = vld [vmem:[%s5622_s9 + $0x1a0] sm:$0xff] }
 0x1fc   : > { %2698 = vtanh.f32 %v1817_v53 }
 0x1fd   : > { %2700 = vtanh.f32 %v1822_v12  ;;  %v2789_v12 = vld [vmem:[%s5621_s8 + $0x1e0] sm:$0xff] }
 0x1ff   : > { %v2695_v48 = vpop.eup %2694 }
 0x200   : > { %v1808_v21 = vadd.f32 1.0, %v2695_v48 }
 0x201   : > { %v2697_v11 = vpop.eup %2696 }
 0x202   : > { %v1809_v57 = vmul.f32 0.5, %v1808_v21  ;;  %v1815_v54 = vadd.f32 1.0, %v2697_v11  ;;  %v2699_v17 = vpop.eup %2698  ;;  %v2790_v21 = vld [vmem:[%s5621_s8 + $0x1c0] sm:$0xff] }
 0x203   : > { %v2701_v6 = vpop.eup %2700 }
 0x204   : > { %v1816_v50 = vmul.f32 0.5, %v1815_v54  ;;  %v1827_v61 = vmul.f32 %v2699_v17, %v1809_v57  ;;  %v1824_v14 = vadd.f32 1.0, %v2701_v6  ;;  %v2803_v6 = vld [vmem:[%s5621_s8 + $0xe8] sm:$0xff] }
 0x206   : > { %v1826_v2 = vmul.f32 %v1816_v50, %v4820_v27  ;;  %v1825_v62 = vmul.f32 0.5, %v1824_v14  ;;  %v2799_v50 = vld [vmem:[%s5621_s8 + $0x128] sm:$0xff] }
 0x208   : > { %v5140_v15 = vadd.f32 %v1827_v61, %v1826_v2  ;;  %v2801_v61 = vld [vmem:[%s5621_s8 + $0x108] sm:$0xff] }
 0x20a   : > { %2702 = vtanh.f32 %v5140_v15 }
 0x210   : > { %v2703_v24 = vpop.eup %2702 }
 0x211   : > { %v1830_v5 = vmul.f32 %v2703_v24, %v1825_v62  ;;  %v2805_v62 = vld [vmem:[%s5621_s8 + $0xc8] sm:$0xff] }
 0x213   : > { %1968 = vmatmul.f32.vlgmr.msra.gmra.mxu0 %v1830_v5  ;;  %1988 = vmatmul.f32.vlgmr.msra.gmra.mxu1 %v1830_v5 }
 0x214   : > { %2008 = vmatmul.f32.vlgmr.msra.gmra.mxu2 %v1830_v5  ;;  %2028 = vmatmul.f32.vlgmr.msra.gmra.mxu3 %v1830_v5 }
 0x215   : > { %2190 = vmatpush.msra.mxu0 %v2789_v12  ;;  %2210 = vmatpush.msra.mxu1 %v4833_v7  ;;  %v2791_v7 = vld [vmem:[%s5621_s8 + $0x1a0] sm:$0xff] }
 0x216   : > { %2230 = vmatpush.msra.mxu2 %v4839_v16  ;;  %2250 = vmatpush.msra.mxu3 %v4845_v23  ;;  %v2830_v12 = vld [vmem:[%s5622_s9 + $0x180] sm:$0xff] }
 0x217   : > { %2191 = vmatpush.msra.mxu0 %v2790_v21  ;;  %2211 = vmatpush.msra.mxu1 %v4852_v31  ;;  %v2792_v31 = vld [vmem:[%s5621_s8 + $0x180] sm:$0xff]  ;;  %v2832_v21 = vld [vmem:[%s5622_s9 + $0x190] sm:$0xff] }
 0x218   : > { %2231 = vmatpush.msra.mxu2 %v4858_v29  ;;  %2251 = vmatpush.msra.mxu3 %v4864_v35  ;;  %v2793_v29 = vld [vmem:[%s5621_s8 + $0x188] sm:$0xff] }
 0x219   : > { %v1870_v52 = vpop.f32.mrf.mxu1  ;;  %v1850_v32 = vpop.f32.mrf.mxu0  ;;  %2192 = vmatpush.msra.mxu0 %v2791_v7  ;;  %2212 = vmatpush.msra.mxu1 %v4871_v30  ;;  %v2794_v30 = vld [vmem:[%s5621_s8 + $0x160] sm:$0xff]  ;;  %v2835_v7 = vld [vmem:[%s5622_s9 + $0x168] sm:$0xff] }
 0x21a   : > { %v1917_v58 = vrot.slane %v1870_v52, 6  ;;  %2232 = vmatpush.msra.mxu2 %v4877_v42  ;;  %2252 = vmatpush.msra.mxu3 %v4883_v39  ;;  %v2795_v42 = vld [vmem:[%s5621_s8 + $0x168] sm:$0xff] }
 0x21b   : > { %2193 = vmatpush.msra.mxu0 %v2792_v31  ;;  %2213 = vmatpush.msra.mxu1 %v2793_v29  ;;  %v2838_v31 = vld [vmem:[%s5622_s9 + $0x140] sm:$0xff]  ;;  %v2839_v29 = vld [vmem:[%s5622_s9 + $0x148] sm:$0xff] }
 0x21c   : > { %v1920_v27 = vsel %vm948_vm0, %v1850_v32, %v1917_v58  ;;  %2233 = vmatpush.msra.mxu2 %v4891_v13  ;;  %2253 = vmatpush.msra.mxu3 %v4897_v18  ;;  %v2796_v13 = vld [vmem:[%s5621_s8 + $0x140] sm:$0xff]  ;;  %v2797_v18 = vld [vmem:[%s5621_s8 + $0x148] sm:$0xff]  ;;  %v2824_v32 = vld [vmem:[%s5622_s9 + $0x1d0] sm:$0xff] }
 0x21d   : > { %2194 = vmatpush.msra.mxu0 %v2794_v30  ;;  %2214 = vmatpush.msra.mxu1 %v2795_v42  ;;  %v2841_v30 = vld [vmem:[%s5622_s9 + $0x158] sm:$0xff]  ;;  %v2842_v42 = vld [vmem:[%s5622_s9 + $0x120] sm:$0xff] }
 0x21e   : > { %2234 = vmatpush.msra.mxu2 %v4905_v40  ;;  %2254 = vmatpush.msra.mxu3 %v4911_v43  ;;  %v2798_v43 = vld [vmem:[%s5621_s8 + $0x120] sm:$0xff] }
 0x21f   : > { %2195 = vmatpush.msra.mxu0 %v2796_v13  ;;  %2215 = vmatpush.msra.mxu1 %v2797_v18  ;;  %v2844_v13 = vld [vmem:[%s5622_s9 + $0x130] sm:$0xff]  ;;  %v2845_v18 = vld [vmem:[%s5622_s9 + $0x138] sm:$0xff] }
 0x220   : > { %v1890_v56 = vpop.f32.mrf.mxu2  ;;  %v1910_v20 = vpop.f32.mrf.mxu3  ;;  %2235 = vmatpush.msra.mxu2 %v4919_v47  ;;  %2255 = vmatpush.msra.mxu3 %v4925_v46  ;;  %v2800_v46 = vld [vmem:[%s5621_s8 + $0x100] sm:$0xff] }
 0x221   : > { %v1918_v33 = vrot.slane %v1890_v56, 4  ;;  %v1919_v4 = vrot.slane %v1910_v20, 2  ;;  %2196 = vmatpush.msra.mxu0 %v2798_v43  ;;  %2216 = vmatpush.msra.mxu1 %v2799_v50  ;;  %v2848_v43 = vld [vmem:[%s5622_s9 + $0x110] sm:$0xff]  ;;  %v2849_v50 = vld [vmem:[%s5622_s9 + $0x118] sm:$0xff] }
 0x222   : > { %2236 = vmatpush.msra.mxu2 %v4933_v51  ;;  %2256 = vmatpush.msra.mxu3 %v4939_v38  ;;  %v2802_v38 = vld [vmem:[%s5621_s8 + $0xe0] sm:$0xff] }
 0x223   : > { %v1921_v49 = vsel %vm950_vm3, %v1918_v33, %v1919_v4  ;;  %2197 = vmatpush.msra.mxu0 %v2800_v46  ;;  %2217 = vmatpush.msra.mxu1 %v2801_v61  ;;  %v2820_v33 = vld [vmem:[%s5622_s9 + $0x1f0] sm:$0xff]  ;;  %v2823_v4 = vld [vmem:[%s5622_s9 + $0x1c8] sm:$0xff]  ;;  %v2853_v46 = vld [vmem:[%s5622_s9 + $0xf8] sm:$0xff] }
 0x224   : > { %v1922_v53 = vsel %vm952_vm4, %v1920_v27, %v1921_v49  ;;  %2237 = vmatpush.msra.mxu2 %v4947_v55  ;;  %2257 = vmatpush.msra.mxu3 %v4953_v9  ;;  %v2804_v9 = vld [vmem:[%s5621_s8 + $0xc0] sm:$0xff]  ;;  %v2825_v27 = vld [vmem:[%s5622_s9 + $0x1d8] sm:$0xff]  ;;  %v2828_v49 = vld [vmem:[%s5622_s9 + $0x1b0] sm:$0xff] }
 0x225   : > { %v1924_v48 = vadd.f32 %v1922_v53, %v1330_v34  ;;  %2198 = vmatpush.msra.mxu0 %v2802_v38  ;;  %2218 = vmatpush.msra.mxu1 %v2803_v6  ;;  %v2827_v34 = vld [vmem:[%s5622_s9 + $0x1a8] sm:$0xff]  ;;  %v2829_v53 = vld [vmem:[%s5622_s9 + $0x1b8] sm:$0xff]  ;;  %v2854_v61 = vld [vmem:[%s5622_s9 + $0xc0] sm:$0xff] }
 0x226   : > { %2238 = vmatpush.msra.mxu2 %v4961_v59  ;;  %2258 = vmatpush.msra.mxu3 %v4967_v1  ;;  %v2806_v1 = vld [vmem:[%s5621_s8 + $0xa0] sm:$0xff]  ;;  %v2856_v38 = vld [vmem:[%s5622_s9 + $0xd0] sm:$0xff]  ;;  %v2857_v6 = vld [vmem:[%s5622_s9 + $0xd8] sm:$0xff] }
 0x227   : > { %v1925_v11 = vmul.f32 0.5, %v1924_v48  ;;  %v1930_v57 = vrot.slane %v1924_v48, 2  ;;  %v1939_v23 = vrot.slane %v1924_v48, 6  ;;  %v1936_v35 = vrot.slane %v1924_v48, 4  ;;  %2199 = vmatpush.msra.mxu0 %v2804_v9  ;;  %2219 = vmatpush.msra.mxu1 %v2805_v62  ;;  %v2831_v48 = vld [vmem:[%s5622_s9 + $0x188] sm:$0xff]  ;;  %v2861_v9 = vld [vmem:[%s5622_s9 + $0xb8] sm:$0xff] }
 0x228   : > { %2239 = vmatpush.msra.mxu2 %v4975_v60  ;;  %2259 = vmatpush.msra.mxu3 %v4981_v63  ;;  %v2808_v60 = vld [vmem:[%s5621_s8 + $0x80] sm:$0xff]  ;;  %v2809_v63 = vld [vmem:[%s5621_s8 + $0x88] sm:$0xff] }
 0x229   : > { %2704 = vtanh.f32 %v1925_v11  ;;  %v1932_v16 = vmul.f32 0.5, %v1930_v57  ;;  %v1941_v39 = vmul.f32 0.5, %v1939_v23  ;;  %2200 = vmatpush.msra.mxu0 %v2806_v1  ;;  %v2833_v11 = vld [vmem:[%s5622_s9 + $0x198] sm:$0xff]  ;;  %v2834_v57 = vld [vmem:[%s5622_s9 + $0x160] sm:$0xff]  ;;  %v2864_v1 = vld [vmem:[%s5622_s9 + $0x90] sm:$0xff] }
 0x22a   : > { %2240 = vmatpush.msra.mxu2 %v4991_v0  ;;  %2260 = vmatpush.msra.mxu3 %v4997_v3  ;;  %v2810_v0 = vld [vmem:[%s5621_s8 + $0x60] sm:$0xff]  ;;  %v2811_v3 = vld [vmem:[%s5621_s8 + $0x68] sm:$0xff]  ;;  %v2837_v23 = vld [vmem:[%s5622_s9 + $0x178] sm:$0xff] }
 0x22b   : > { %2706 = vtanh.f32 %v1932_v16  ;;  %2201 = vmatpush.msra.mxu0 %v2808_v60  ;;  %v2836_v16 = vld [vmem:[%s5622_s9 + $0x170] sm:$0xff]  ;;  %v2862_v62 = vld [vmem:[%s5622_s9 + $0x80] sm:$0xff] }
 0x22c   : > { %2708 = vtanh.f32 %v1936_v35  ;;  %2241 = vmatpush.msra.mxu2 %v5006_v19  ;;  %2261 = vmatpush.msra.mxu3 %v5012_v10  ;;  %v2812_v19 = vld [vmem:[%s5621_s8 + $0x40] sm:$0xff]  ;;  %v2813_v10 = vld [vmem:[%s5621_s8 + $0x48] sm:$0xff]  ;;  %v2840_v35 = vld [vmem:[%s5622_s9 + $0x150] sm:$0xff] }
 0x22d   : > { %2710 = vtanh.f32 %v1941_v39  ;;  %2202 = vmatpush.msra.mxu0 %v2810_v0  ;;  %v2843_v39 = vld [vmem:[%s5622_s9 + $0x128] sm:$0xff]  ;;  %v2866_v60 = vld [vmem:[%s5622_s9 + $0x60] sm:$0xff]  ;;  %v2869_v0 = vld [vmem:[%s5622_s9 + $0x78] sm:$0xff] }
 0x22e   : > { %2242 = vmatpush.msra.mxu2 %v5020_v22  ;;  %2262 = vmatpush.msra.mxu3 %v5026_v26  ;;  %v2814_v22 = vld [vmem:[%s5621_s8 + $0x20] sm:$0xff]  ;;  %v2815_v26 = vld [vmem:[%s5621_s8 + $0x28] sm:$0xff] }
 0x22f   : > { %v2705_v54 = vpop.eup %2704  ;;  %2203 = vmatpush.msra.mxu0 %v2812_v19  ;;  %v2871_v19 = vld [vmem:[%s5622_s9 + $0x48] sm:$0xff] }
 0x230   : > { %v1927_v40 = vadd.f32 1.0, %v2705_v54  ;;  %2243 = vmatpush.msra.mxu2 %v5034_v28  ;;  %2263 = vmatpush.msra.mxu3 %v5040_v8  ;;  %v2816_v28 = vld [vmem:[%s5621_s8] sm:$0xff]  ;;  %v2817_v8 = vld [vmem:[%s5621_s8 + $0x8] sm:$0xff] }
 0x231   : > { %v2707_v17 = vpop.eup %2706  ;;  %2204 = vmatpush.msra.mxu0 %v2814_v22  ;;  %v2846_v54 = vld [vmem:[%s5622_s9 + $0x100] sm:$0xff]  ;;  %v2875_v22 = vld [vmem:[%s5622_s9 + $0x28] sm:$0xff] }
 0x232   : > { %v1928_v2 = vmul.f32 0.5, %v1927_v40  ;;  %v1934_v47 = vadd.f32 1.0, %v2707_v17  ;;  %v2709_v14 = vpop.eup %2708  ;;  %2244 = vmatpush.msra.mxu2 %v5048_v37  ;;  %2264 = vmatpush.msra.mxu3 %v5054_v44  ;;  %v2818_v37 = vld [vmem:[%s5622_s9 + $0x1e0] sm:$0xff]  ;;  %v2819_v44 = vld [vmem:[%s5622_s9 + $0x1e8] sm:$0xff] }
 0x233   : > { %v2711_v59 = vpop.eup %2710  ;;  %2205 = vmatpush.msra.mxu0 %v2816_v28  ;;  %v2847_v40 = vld [vmem:[%s5622_s9 + $0x108] sm:$0xff]  ;;  %v2850_v17 = vld [vmem:[%s5622_s9 + $0xe0] sm:$0xff] }
 0x234   : > { %v1935_v51 = vmul.f32 0.5, %v1934_v47  ;;  %v1946_v52 = vmul.f32 %v2709_v14, %v1928_v2  ;;  %v1943_v58 = vadd.f32 1.0, %v2711_v59  ;;  %2245 = vmatpush.msra.mxu2 %v5062_v41  ;;  %2265 = vmatpush.msra.mxu3 %v5068_v45  ;;  %v2821_v41 = vld [vmem:[%s5622_s9 + $0x1f8] sm:$0xff]  ;;  %v2822_v45 = vld [vmem:[%s5622_s9 + $0x1c0] sm:$0xff]  ;;  %v2851_v2 = vld [vmem:[%s5622_s9 + $0xe8] sm:$0xff] }
 0x235   : > { %v2852_v47 = vld [vmem:[%s5622_s9 + $0xf0] sm:$0xff]  ;;  %v2858_v14 = vld [vmem:[%s5622_s9 + $0xa0] sm:$0xff]  ;;  %v2863_v59 = vld [vmem:[%s5622_s9 + $0x88] sm:$0xff] }
 0x236   : > { %v1945_v55 = vmul.f32 %v1935_v51, %v4984_v36  ;;  %v2807_v36 = vld [vmem:[%s5621_s8 + $0xa8] sm:$0xff]  ;;  %v1944_v56 = vmul.f32 0.5, %v1943_v58  ;;  %v2868_v58 = vld [vmem:[%s5622_s9 + $0x70] sm:$0xff]  ;;  %v2878_v28 = vld [vmem:[%s5622_s9] sm:$0xff] }
 0x237   : > { %2220 = vmatpush.msra.mxu1 %v2807_v36  ;;  %v2855_v51 = vld [vmem:[%s5622_s9 + $0xc8] sm:$0xff]  ;;  %v2865_v36 = vld [vmem:[%s5622_s9 + $0x98] sm:$0xff] }
 0x238   : > { %v5222_v24 = vadd.f32 %v1946_v52, %v1945_v55  ;;  %v2859_v55 = vld [vmem:[%s5622_s9 + $0xa8] sm:$0xff]  ;;  %v2860_v52 = vld [vmem:[%s5622_s9 + $0xb0] sm:$0xff] }
 0x239   : > { %2221 = vmatpush.msra.mxu1 %v2809_v63  ;;  %v2867_v63 = vld [vmem:[%s5622_s9 + $0x68] sm:$0xff] }
 0x23a   : > { %2712 = vtanh.f32 %v5222_v24 }
 0x23b   : > { %2222 = vmatpush.msra.mxu1 %v2811_v3  ;;  %v2870_v3 = vld [vmem:[%s5622_s9 + $0x40] sm:$0xff] }
 0x23d   : > { %2223 = vmatpush.msra.mxu1 %v2813_v10  ;;  %v2872_v10 = vld [vmem:[%s5622_s9 + $0x50] sm:$0xff] }
 0x23f   : > { %2224 = vmatpush.msra.mxu1 %v2815_v26  ;;  %v2876_v26 = vld [vmem:[%s5622_s9 + $0x30] sm:$0xff] }
 0x240   : > { %v2713_v20 = vpop.eup %2712 }
 0x241   : > { %v1949_v5 = vmul.f32 %v2713_v20, %v1944_v56  ;;  %2225 = vmatpush.msra.mxu1 %v2817_v8  ;;  %v2873_v56 = vld [vmem:[%s5622_s9 + $0x58] sm:$0xff]  ;;  %v2874_v20 = vld [vmem:[%s5622_s9 + $0x20] sm:$0xff]  ;;  %v2879_v8 = vld [vmem:[%s5622_s9 + $0x8] sm:$0xff] }
 0x243   : > { %2087 = vmatmul.f32.vlgmr.msrb.gmra.mxu0 %v1949_v5  ;;  %2107 = vmatmul.f32.vlgmr.msrb.gmra.mxu1 %v1949_v5 }
 0x244   : > { %2127 = vmatmul.f32.vlgmr.msrb.gmra.mxu2 %v1949_v5  ;;  %2147 = vmatmul.f32.vlgmr.msrb.gmra.mxu3 %v1949_v5  ;;  %v2877_v5 = vld [vmem:[%s5622_s9 + $0x38] sm:$0xff] }
 0x245   : > { %2308 = vmatpush.msrb.mxu0 %v2818_v37  ;;  %2328 = vmatpush.msrb.mxu1 %v2819_v44  ;;  %v2880_v37 = vld [vmem:[%s5622_s9 + $0x10] sm:$0xff]  ;;  %v2881_v44 = vld [vmem:[%s5622_s9 + $0x18] sm:$0xff] }
 0x246   : > { %2348 = vmatpush.msrb.mxu2 %v2820_v33  ;;  %2368 = vmatpush.msrb.mxu3 %v2821_v41 }
 0x247   : > { %2309 = vmatpush.msrb.mxu0 %v2822_v45  ;;  %2329 = vmatpush.msrb.mxu1 %v2823_v4 }
 0x248   : > { %2349 = vmatpush.msrb.mxu2 %v2824_v32  ;;  %2369 = vmatpush.msrb.mxu3 %v2825_v27 }
 0x249   : > { %2310 = vmatpush.msrb.mxu0 %v2826_v25  ;;  %2330 = vmatpush.msrb.mxu1 %v2827_v34 }
 0x24a   : > { %2350 = vmatpush.msrb.mxu2 %v2828_v49  ;;  %2370 = vmatpush.msrb.mxu3 %v2829_v53  ;;  %v6001_v49 = vld [vmem:[#allocation97_spill] sm:$0xff] }
 0x24b   : > { %2311 = vmatpush.msrb.mxu0 %v2830_v12  ;;  %2331 = vmatpush.msrb.mxu1 %v2831_v48  ;;  %v964_v53 = vrot.slane %v6001_v49, 4 }
 0x24c   : > { %2351 = vmatpush.msrb.mxu2 %v2832_v21  ;;  %2371 = vmatpush.msrb.mxu3 %v2833_v11 }
 0x24d   : > { %2312 = vmatpush.msrb.mxu0 %v2834_v57  ;;  %2332 = vmatpush.msrb.mxu1 %v2835_v7 }
 0x24e   : > { %2352 = vmatpush.msrb.mxu2 %v2836_v16  ;;  %2372 = vmatpush.msrb.mxu3 %v2837_v23 }
 0x24f   : > { %2313 = vmatpush.msrb.mxu0 %v2838_v31  ;;  %2333 = vmatpush.msrb.mxu1 %v2839_v29 }
 0x250   : > { %2353 = vmatpush.msrb.mxu2 %v2840_v35  ;;  %2373 = vmatpush.msrb.mxu3 %v2841_v30 }
 0x251   : > { %2314 = vmatpush.msrb.mxu0 %v2842_v42  ;;  %2334 = vmatpush.msrb.mxu1 %v2843_v39 }
 0x252   : > { %2354 = vmatpush.msrb.mxu2 %v2844_v13  ;;  %2374 = vmatpush.msrb.mxu3 %v2845_v18 }
 0x253   : > { %2315 = vmatpush.msrb.mxu0 %v2846_v54  ;;  %2335 = vmatpush.msrb.mxu1 %v2847_v40 }
 0x254   : > { %2355 = vmatpush.msrb.mxu2 %v2848_v43  ;;  %2375 = vmatpush.msrb.mxu3 %v2849_v50 }
 0x255   : > { %2316 = vmatpush.msrb.mxu0 %v2850_v17  ;;  %2336 = vmatpush.msrb.mxu1 %v2851_v2 }
 0x256   : > { %2356 = vmatpush.msrb.mxu2 %v2852_v47  ;;  %2376 = vmatpush.msrb.mxu3 %v2853_v46 }
 0x257   : > { %2317 = vmatpush.msrb.mxu0 %v2854_v61  ;;  %2337 = vmatpush.msrb.mxu1 %v2855_v51 }
 0x258   : > { %2357 = vmatpush.msrb.mxu2 %v2856_v38  ;;  %2377 = vmatpush.msrb.mxu3 %v2857_v6 }
 0x259   : > { %2318 = vmatpush.msrb.mxu0 %v2858_v14  ;;  %2338 = vmatpush.msrb.mxu1 %v2859_v55 }
 0x25a   : > { %2358 = vmatpush.msrb.mxu2 %v2860_v52  ;;  %2378 = vmatpush.msrb.mxu3 %v2861_v9  ;;  %v6002_v9 = vld [vmem:[#allocation20_spill] sm:$0xff] }
 0x25b   : > { %2319 = vmatpush.msrb.mxu0 %v2862_v62  ;;  %2339 = vmatpush.msrb.mxu1 %v2863_v59  ;;  %v1326_v62 = vrot.slane %v6002_v9, 2 }
 0x25c   : > { %2359 = vmatpush.msrb.mxu2 %v2864_v1  ;;  %2379 = vmatpush.msrb.mxu3 %v2865_v36 }
 0x25d   : > { %2320 = vmatpush.msrb.mxu0 %v2866_v60  ;;  %2340 = vmatpush.msrb.mxu1 %v2867_v63 }
 0x25e   : > { %2360 = vmatpush.msrb.mxu2 %v2868_v58  ;;  %2380 = vmatpush.msrb.mxu3 %v2869_v0 }
 0x25f   : > { %2321 = vmatpush.msrb.mxu0 %v2870_v3  ;;  %2341 = vmatpush.msrb.mxu1 %v2871_v19 }
 0x260   : > { %2361 = vmatpush.msrb.mxu2 %v2872_v10  ;;  %2381 = vmatpush.msrb.mxu3 %v2873_v56 }
 0x261   : > { %2322 = vmatpush.msrb.mxu0 %v2874_v20  ;;  %2342 = vmatpush.msrb.mxu1 %v2875_v22 }
 0x262   : > { %2362 = vmatpush.msrb.mxu2 %v2876_v26  ;;  %2382 = vmatpush.msrb.mxu3 %v2877_v5 }
 0x263   : > { %2323 = vmatpush.msrb.mxu0 %v2878_v28  ;;  %2343 = vmatpush.msrb.mxu1 %v2879_v8 }
 0x264   : > { %2363 = vmatpush.msrb.mxu2 %v2880_v37  ;;  %2383 = vmatpush.msrb.mxu3 %v2881_v44 }
 0x290   : > { %v1989_v33 = vpop.f32.mrf.mxu1  ;;  %v1969_v25 = vpop.f32.mrf.mxu0 }
 0x291   : > { %v2036_v41 = vrot.slane %v1989_v33, 6 }
 0x293   : > { %v2039_v34 = vsel %vm948_vm0, %v1969_v25, %v2036_v41 }
 0x297   : > { %v2009_v45 = vpop.f32.mrf.mxu2  ;;  %v2029_v4 = vpop.f32.mrf.mxu3 }
 0x298   : > { %v2037_v32 = vrot.slane %v2009_v45, 4  ;;  %v2038_v27 = vrot.slane %v2029_v4, 2 }
 0x29a   : > { %v2040_v12 = vsel %vm950_vm3, %v2037_v32, %v2038_v27 }
 0x29b   : > { %v2041_v48 = vsel %vm952_vm4, %v2039_v34, %v2040_v12 }
 0x29c   : > { %v2043_v21 = vadd.f32 %v2041_v48, %v964_v53 }
 0x29e   : > { %v2044_v11 = vmul.f32 0.5, %v2043_v21  ;;  %v2049_v57 = vrot.slane %v2043_v21, 2  ;;  %v2058_v16 = vrot.slane %v2043_v21, 6  ;;  %v2055_v23 = vrot.slane %v2043_v21, 4  ;;  %v6003_v21 = vld [vmem:[#allocation98_spill] sm:$0xff] }
 0x2a0   : > { %2714 = vtanh.f32 %v2044_v11  ;;  %v2051_v7 = vmul.f32 0.5, %v2049_v57  ;;  %v2060_v31 = vmul.f32 0.5, %v2058_v16  ;;  %v968_v11 = vrot.slane %v6003_v21, 6 }
 0x2a2   : > { %2716 = vtanh.f32 %v2051_v7 }
 0x2a3   : > { %2718 = vtanh.f32 %v2055_v23 }
 0x2a4   : > { %2720 = vtanh.f32 %v2060_v31 }
 0x2a6   : > { %v2715_v29 = vpop.eup %2714 }
 0x2a7   : > { %v2046_v35 = vadd.f32 1.0, %v2715_v29 }
 0x2a8   : > { %v2717_v30 = vpop.eup %2716 }
 0x2a9   : > { %v2047_v42 = vmul.f32 0.5, %v2046_v35  ;;  %v2053_v39 = vadd.f32 1.0, %v2717_v30  ;;  %v2719_v18 = vpop.eup %2718 }
 0x2aa   : > { %v2721_v43 = vpop.eup %2720 }
 0x2ab   : > { %v2054_v13 = vmul.f32 0.5, %v2053_v39  ;;  %v2065_v40 = vmul.f32 %v2719_v18, %v2047_v42  ;;  %v2062_v17 = vadd.f32 1.0, %v2721_v43 }
 0x2ad   : > { %v2064_v54 = vmul.f32 %v2054_v13, %v5140_v15  ;;  %v2063_v47 = vmul.f32 0.5, %v2062_v17 }
 0x2af   : > { %v5470_v50 = vadd.f32 %v2065_v40, %v2064_v54 }
 0x2b1   : > { %2722 = vtanh.f32 %v5470_v50 }
 0x2b7   : > { %v2723_v46 = vpop.eup %2722 }
 0x2b8   : > { %v2068_v6 = vmul.f32 %v2723_v46, %v2063_v47 }
 0x2ba   : > { %2206 = vmatmul.f32.vlgmr.msra.gmra.mxu0 %v2068_v6  ;;  %2226 = vmatmul.f32.vlgmr.msra.gmra.mxu1 %v2068_v6 }
 0x2bb   : > { %2246 = vmatmul.f32.vlgmr.msra.gmra.mxu2 %v2068_v6  ;;  %2266 = vmatmul.f32.vlgmr.msra.gmra.mxu3 %v2068_v6 }
 0x2c0   : > { %v2108_v2 = vpop.f32.mrf.mxu1  ;;  %v2088_v52 = vpop.f32.mrf.mxu0 }
 0x2c1   : > { %v2155_v61 = vrot.slane %v2108_v2, 6 }
 0x2c3   : > { %v2158_v15 = vsel %vm948_vm0, %v2088_v52, %v2155_v61 }
 0x2c7   : > { %v2128_v51 = vpop.f32.mrf.mxu2  ;;  %v2148_v38 = vpop.f32.mrf.mxu3 }
 0x2c8   : > { %v2156_v14 = vrot.slane %v2128_v51, 4  ;;  %v2157_v55 = vrot.slane %v2148_v38, 2 }
 0x2ca   : > { %v2159_v59 = vsel %vm950_vm3, %v2156_v14, %v2157_v55 }
 0x2cb   : > { %v2160_v1 = vsel %vm952_vm4, %v2158_v15, %v2159_v59 }
 0x2cc   : > { %v2162_v36 = vadd.f32 %v2160_v1, %v1326_v62 }
 0x2ce   : > { %v2163_v60 = vmul.f32 0.5, %v2162_v36  ;;  %v2168_v63 = vrot.slane %v2162_v36, 2  ;;  %v2177_v0 = vrot.slane %v2162_v36, 6  ;;  %v2174_v3 = vrot.slane %v2162_v36, 4 }
 0x2d0   : > { %2724 = vtanh.f32 %v2163_v60  ;;  %v2170_v58 = vmul.f32 0.5, %v2168_v63  ;;  %v2179_v19 = vmul.f32 0.5, %v2177_v0  ;;  %v6004_v63 = vld [vmem:[#allocation14_spill] sm:$0xff] }
 0x2d2   : > { %2726 = vtanh.f32 %v2170_v58 }
 0x2d3   : > { %2728 = vtanh.f32 %v2174_v3 }
 0x2d4   : > { %2730 = vtanh.f32 %v2179_v19 }
 0x2d6   : > { %v2725_v10 = vpop.eup %2724 }
 0x2d7   : > { %v2165_v56 = vadd.f32 1.0, %v2725_v10 }
 0x2d8   : > { %v2727_v20 = vpop.eup %2726 }
 0x2d9   : > { %v2166_v22 = vmul.f32 0.5, %v2165_v56  ;;  %v2172_v26 = vadd.f32 1.0, %v2727_v20  ;;  %v2729_v28 = vpop.eup %2728 }
 0x2da   : > { %v2731_v44 = vpop.eup %2730 }
 0x2db   : > { %v2173_v5 = vmul.f32 0.5, %v2172_v26  ;;  %v2184_v37 = vmul.f32 %v2729_v28, %v2166_v22  ;;  %v2181_v41 = vadd.f32 1.0, %v2731_v44 }
 0x2dd   : > { %v2183_v8 = vmul.f32 %v2173_v5, %v5222_v24  ;;  %v2182_v45 = vmul.f32 0.5, %v2181_v41 }
 0x2df   : > { %v5478_v33 = vadd.f32 %v2184_v37, %v2183_v8 }
 0x2e1   : > { %2732 = vtanh.f32 %v5478_v33 }
 0x2e7   : > { %v2733_v4 = vpop.eup %2732 }
 0x2e8   : > { %v2187_v32 = vmul.f32 %v2733_v4, %v2182_v45 }
 0x2ea   : > { %2324 = vmatmul.f32.vlgmr.msrb.gmra.mxu0 %v2187_v32  ;;  %2344 = vmatmul.f32.vlgmr.msrb.gmra.mxu1 %v2187_v32 }
 0x2eb   : > { %2364 = vmatmul.f32.vlgmr.msrb.gmra.mxu2 %v2187_v32  ;;  %2384 = vmatmul.f32.vlgmr.msrb.gmra.mxu3 %v2187_v32 }
 0x337   : > { %v2227_v27 = vpop.f32.mrf.mxu1  ;;  %v2207_v12 = vpop.f32.mrf.mxu0 }
 0x338   : > { %v2274_v25 = vrot.slane %v2227_v27, 6 }
 0x33a   : > { %v2277_v48 = vsel %vm948_vm0, %v2207_v12, %v2274_v25 }
 0x33e   : > { %v2247_v34 = vpop.f32.mrf.mxu2  ;;  %v2267_v49 = vpop.f32.mrf.mxu3 }
 0x33f   : > { %v2275_v53 = vrot.slane %v2247_v34, 4  ;;  %v2276_v24 = vrot.slane %v2267_v49, 2 }
 0x341   : > { %v2278_v57 = vsel %vm950_vm3, %v2275_v53, %v2276_v24 }
 0x342   : > { %v2279_v7 = vsel %vm952_vm4, %v2277_v48, %v2278_v57 }
 0x343   : > { %v2281_v16 = vadd.f32 %v2279_v7, %v968_v11 }
 0x345   : > { %v2282_v23 = vmul.f32 0.5, %v2281_v16  ;;  %v2287_v31 = vrot.slane %v2281_v16, 2  ;;  %v2296_v35 = vrot.slane %v2281_v16, 6  ;;  %v2293_v30 = vrot.slane %v2281_v16, 4 }
 0x347   : > { %2734 = vtanh.f32 %v2282_v23  ;;  %v2289_v29 = vmul.f32 0.5, %v2287_v31  ;;  %v2298_v42 = vmul.f32 0.5, %v2296_v35 }
 0x349   : > { %2736 = vtanh.f32 %v2289_v29 }
 0x34a   : > { %2738 = vtanh.f32 %v2293_v30 }
 0x34b   : > { %2740 = vtanh.f32 %v2298_v42 }
 0x34d   : > { %v2735_v39 = vpop.eup %2734 }
 0x34e   : > { %v2284_v13 = vadd.f32 1.0, %v2735_v39 }
 0x34f   : > { %v2737_v18 = vpop.eup %2736 }
 0x350   : > { %v2285_v54 = vmul.f32 0.5, %v2284_v13  ;;  %v2291_v40 = vadd.f32 1.0, %v2737_v18  ;;  %v2739_v17 = vpop.eup %2738 }
 0x351   : > { %v2741_v46 = vpop.eup %2740 }
 0x352   : > { %v2292_v43 = vmul.f32 0.5, %v2291_v40  ;;  %v2303_v47 = vmul.f32 %v2739_v17, %v2285_v54  ;;  %v2300_v51 = vadd.f32 1.0, %v2741_v46 }
 0x354   : > { %v2302_v2 = vmul.f32 %v2292_v43, %v5470_v50  ;;  %v2301_v6 = vmul.f32 0.5, %v2300_v51 }
 0x356   : > { %v2304_v61 = vadd.f32 %v2303_v47, %v2302_v2 }
 0x358   : > { %2742 = vtanh.f32 %v2304_v61  ;;  %2426 = vst [vmem:[#allocation5] sm:$0x3] %v2304_v61 }
 0x35e   : > { %v2743_v14 = vpop.eup %2742 }
 0x35f   : > { %v5486_v52 = vmul.f32 %v2743_v14, %v2301_v6 }
 0x361   : > { %2425 = vst [vmem:[#allocation4] sm:$0x3] %v5486_v52 }
 0x367   : > { %v2345_v38 = vpop.f32.mrf.mxu1  ;;  %v2325_v1 = vpop.f32.mrf.mxu0 }
 0x368   : > { %v2392_v55 = vrot.slane %v2345_v38, 6 }
 0x36a   : > { %v2395_v50 = vsel %vm948_vm0, %v2325_v1, %v2392_v55 }
 0x36e   : > { %v2365_v15 = vpop.f32.mrf.mxu2  ;;  %v2385_v9 = vpop.f32.mrf.mxu3 }
 0x36f   : > { %v2393_v62 = vrot.slane %v2365_v15, 4  ;;  %v2394_v59 = vrot.slane %v2385_v9, 2 }
 0x371   : > { %v2396_v36 = vsel %vm950_vm3, %v2393_v62, %v2394_v59 }
 0x372   : > { %v2397_v60 = vsel %vm952_vm4, %v2395_v50, %v2396_v36 }
 0x373   : > { %v2399_v58 = vadd.f32 %v2397_v60, %v6004_v63 }
 0x375   : > { %v2400_v0 = vmul.f32 0.5, %v2399_v58  ;;  %v2405_v3 = vrot.slane %v2399_v58, 2  ;;  %v2414_v10 = vrot.slane %v2399_v58, 6  ;;  %v2411_v56 = vrot.slane %v2399_v58, 4 }
 0x377   : > { %2744 = vtanh.f32 %v2400_v0  ;;  %v2407_v19 = vmul.f32 0.5, %v2405_v3  ;;  %v2416_v20 = vmul.f32 0.5, %v2414_v10 }
 0x379   : > { %2746 = vtanh.f32 %v2407_v19 }
 0x37a   : > { %2748 = vtanh.f32 %v2411_v56 }
 0x37b   : > { %2750 = vtanh.f32 %v2416_v20 }
 0x37d   : > { %v2745_v22 = vpop.eup %2744 }
 0x37e   : > { %v2402_v26 = vadd.f32 1.0, %v2745_v22 }
 0x37f   : > { %v2747_v5 = vpop.eup %2746 }
 0x380   : > { %v2403_v28 = vmul.f32 0.5, %v2402_v26  ;;  %v2409_v8 = vadd.f32 1.0, %v2747_v5  ;;  %v2749_v44 = vpop.eup %2748 }
 0x381   : > { %v2751_v4 = vpop.eup %2750 }
 0x382   : > { %v2410_v37 = vmul.f32 0.5, %v2409_v8  ;;  %v2421_v45 = vmul.f32 %v2749_v44, %v2403_v28  ;;  %v2418_v27 = vadd.f32 1.0, %v2751_v4 }
 0x384   : > { %v2420_v41 = vmul.f32 %v2410_v37, %v5478_v33  ;;  %v2419_v25 = vmul.f32 0.5, %v2418_v27 }
 0x386   : > { %v2422_v32 = vadd.f32 %v2421_v45, %v2420_v41 }
 0x388   : > { %2752 = vtanh.f32 %v2422_v32  ;;  %2428 = vst [vmem:[#allocation7] sm:$0x3] %v2422_v32 }
 0x38d   : > { %2432 = sbr.rel (%p2637_p7) target bundleno = 1091 (0x443), region = 84 }
 0x38e   : > { %v2753_v34 = vpop.eup %2752 }
 0x38f   : > { %v5494_v49 = vmul.f32 %v2753_v34, %v2419_v25 }
 0x391   : > { %2427 = vst [vmem:[#allocation6] sm:$0x3] %v5494_v49 }
 0x392   : > { %v2464_v53 = vld [vmem:[%s5625_s12 + $0xf8] sm:$0xff]  ;;  %v2463_v24 = vld [vmem:[%s5625_s12 + $0xf0] sm:$0xff]  ;;  %v2462_v48 = vld [vmem:[%s5625_s12 + $0xe8] sm:$0xff] }
 0x393   : > { %v2448_v33 = vld [vmem:[%s5625_s12 + $0x78] sm:$0xff]  ;;  %2465 = vmatpush.msra.mxu0 %v2464_v53  ;;  %v2447_v12 = vld [vmem:[%s5625_s12 + $0x70] sm:$0xff]  ;;  %v2446_v21 = vld [vmem:[%s5625_s12 + $0x68] sm:$0xff] }
 0x394   : > { %2485 = vmatpush.msra.mxu1 %v2448_v33  ;;  %v2461_v11 = vld [vmem:[%s5625_s12 + $0xe0] sm:$0xff]  ;;  %v2460_v7 = vld [vmem:[%s5625_s12 + $0xd8] sm:$0xff]  ;;  %v2459_v23 = vld [vmem:[%s5625_s12 + $0xd0] sm:$0xff] }
 0x395   : > { %2466 = vmatpush.msra.mxu0 %v2463_v24  ;;  %v2445_v57 = vld [vmem:[%s5625_s12 + $0x60] sm:$0xff]  ;;  %v2444_v16 = vld [vmem:[%s5625_s12 + $0x58] sm:$0xff]  ;;  %v2443_v31 = vld [vmem:[%s5625_s12 + $0x50] sm:$0xff] }
 0x396   : > { %2486 = vmatpush.msra.mxu1 %v2447_v12  ;;  %v2458_v29 = vld [vmem:[%s5625_s12 + $0xc8] sm:$0xff]  ;;  %v2457_v30 = vld [vmem:[%s5625_s12 + $0xc0] sm:$0xff]  ;;  %v2456_v39 = vld [vmem:[%s5625_s12 + $0xb8] sm:$0xff] }
 0x397   : > { %2467 = vmatpush.msra.mxu0 %v2462_v48  ;;  %v2442_v35 = vld [vmem:[%s5625_s12 + $0x48] sm:$0xff]  ;;  %v2441_v42 = vld [vmem:[%s5625_s12 + $0x40] sm:$0xff]  ;;  %v2440_v13 = vld [vmem:[%s5625_s12 + $0x38] sm:$0xff] }
 0x398   : > { %2487 = vmatpush.msra.mxu1 %v2446_v21  ;;  %v2455_v18 = vld [vmem:[%s5625_s12 + $0xb0] sm:$0xff]  ;;  %v2454_v40 = vld [vmem:[%s5625_s12 + $0xa8] sm:$0xff]  ;;  %v2453_v17 = vld [vmem:[%s5625_s12 + $0xa0] sm:$0xff] }
 0x399   : > { %2468 = vmatpush.msra.mxu0 %v2461_v11  ;;  %v2439_v54 = vld [vmem:[%s5625_s12 + $0x30] sm:$0xff]  ;;  %v2438_v43 = vld [vmem:[%s5625_s12 + $0x28] sm:$0xff]  ;;  %v2437_v2 = vld [vmem:[%s5625_s12 + $0x20] sm:$0xff] }
 0x39a   : > { %2488 = vmatpush.msra.mxu1 %v2445_v57  ;;  %v2452_v47 = vld [vmem:[%s5625_s12 + $0x98] sm:$0xff]  ;;  %v2451_v61 = vld [vmem:[%s5625_s12 + $0x90] sm:$0xff]  ;;  %v2450_v38 = vld [vmem:[%s5625_s12 + $0x88] sm:$0xff] }
 0x39b   : > { %2469 = vmatpush.msra.mxu0 %v2460_v7  ;;  %v2436_v46 = vld [vmem:[%s5625_s12 + $0x18] sm:$0xff]  ;;  %v2435_v51 = vld [vmem:[%s5625_s12 + $0x10] sm:$0xff]  ;;  %v2434_v6 = vld [vmem:[%s5625_s12 + $0x8] sm:$0xff] }
 0x39c   : > { %2489 = vmatpush.msra.mxu1 %v2444_v16  ;;  %v2449_v14 = vld [vmem:[%s5625_s12 + $0x80] sm:$0xff] }
 0x39d   : > { %2470 = vmatpush.msra.mxu0 %v2459_v23  ;;  %v2433_v55 = vld [vmem:[%s5625_s12] sm:$0xff] }
 0x39e   : > { %2490 = vmatpush.msra.mxu1 %v2443_v31  ;;  %v2882_v15 = vld [vmem:[%s5626_s13] ss:$0 sm:$0xff] }
 0x39f   : > { %2471 = vmatpush.msra.mxu0 %v2458_v29 }
 0x3a0   : > { %2491 = vmatpush.msra.mxu1 %v2442_v35 }
 0x3a1   : > { %2472 = vmatpush.msra.mxu0 %v2457_v30 }
 0x3a2   : > { %2492 = vmatpush.msra.mxu1 %v2441_v42 }
 0x3a3   : > { %2473 = vmatpush.msra.mxu0 %v2456_v39 }
 0x3a4   : > { %2493 = vmatpush.msra.mxu1 %v2440_v13 }
 0x3a5   : > { %2474 = vmatpush.msra.mxu0 %v2455_v18 }
 0x3a6   : > { %2494 = vmatpush.msra.mxu1 %v2439_v54 }
 0x3a7   : > { %2475 = vmatpush.msra.mxu0 %v2454_v40 }
 0x3a8   : > { %2495 = vmatpush.msra.mxu1 %v2438_v43 }
 0x3a9   : > { %2476 = vmatpush.msra.mxu0 %v2453_v17 }
 0x3aa   : > { %2496 = vmatpush.msra.mxu1 %v2437_v2 }
 0x3ab   : > { %2477 = vmatpush.msra.mxu0 %v2452_v47 }
 0x3ac   : > { %2497 = vmatpush.msra.mxu1 %v2436_v46 }
 0x3ad   : > { %2478 = vmatpush.msra.mxu0 %v2451_v61 }
 0x3ae   : > { %2498 = vmatpush.msra.mxu1 %v2435_v51 }
 0x3af   : > { %2479 = vmatpush.msra.mxu0 %v2450_v38 }
 0x3b0   : > { %2499 = vmatpush.msra.mxu1 %v2434_v6 }
 0x3b1   : > { %2480 = vmatpush.msra.mxu0 %v2449_v14 }
 0x3b2   : > { %2500 = vmatpush.msra.mxu1 %v2433_v55  ;;  %2481 = vmatmul.f32.vlgmr.msra.gmra.mxu0 %v5494_v49 }
 0x3b3   : > { %2501 = vmatmul.f32.vlgmr.msra.gmra.mxu1 %v5486_v52 }
 0x42f   : > { %v2482_v9 = vpop.f32.mrf.mxu0 }
 0x430   : > { %v2502_v62 = vpop.f32.mrf.mxu1 }
 0x431   : > { %v2503_v59 = vadd.f32 %v2502_v62, %v2482_v9 }
 0x433   : > { %v2509_v1 = vadd.f32 %v2882_v15, %v2503_v59 }
 0x435   : > { %v2510_v50 = vmul.f32 0.5, %v2509_v1 }
 0x437   : > { %2883 = vtanh.f32 %v2510_v50 }
 0x43d   : > { %v2884_v36 = vpop.eup %2883 }
 0x43e   : > { %v2512_v60 = vadd.f32 1.0, %v2884_v36 }
 0x440   : > { %v2513_v63 = vmul.f32 0.5, %v2512_v60 }
 0x442   : > { %2514 = vst [vmem:[#allocation8] sm:$0x3] %v2513_v63 }
 0x443 PF: > { %s6005_s25 = sadd.s32 4294967295, %s2939_s15   ;;  %s6006_s19 = sld [smem:[#allocation99_spill]] }
 0x444   : > { %p2646_p8 = scmp.eq.s32.totalorder %s6005_s25, 1  ;;  %s2942_s24 = smov [#allocation8]  }
 0x445   : > { %s2523_s29 = sshll.u32 %s2942_s24, 4  ;;  %s2524_s29 = int_to_ptr.vmem [resolvable:$true] %s2523_s29 }
 0x449   : > { %s2525_s20 = sshll.u32 %s6006_s19, 4  ;;  %s2526_s20 = int_to_ptr.hbm [resolvable:$true] %s2525_s20 }
 0x44a   : > { %2643 = dma.vmem_to_hbm [thread:$0]  (%p2646_p8), %s2524_s29, 32, %s2526_s20, [#allocation9]  }
 0x44b   : > { %2926 = dma.done.wait (%p2646_p8), [#allocation9], 32  }
 0x44c   : > { %2928 = vsyncadd (%p2646_p8), [#allocation9], 4294967264 }
 0x44d PF: > { %s25_s15 = sadd.s32 1, %s2939_s15   ;;  %s6007_s29 = sld [smem:[#allocation11_spill]] }
 0x44e   : > { %p22_p9 = scmp.ge.s32.totalorder %s25_s15, 4   ;;  %s6008_s30 = sld [smem:[#allocation12_spill]] }
 0x450   :  { %24 = sbr.rel (!%p22_p9) target bundleno = 4 (0x4), region = 139 }
 0x455   :  { %2539 = vsyncpa [#allocation9], 1 }
 0x456   :  { %2541 = vsyncpa [#allocation9 + $0x1], 1 }

</bundles_post_ra>
